<compile_context>
chip_gen: v6e
topology: v6e:2x2x1
jax: 0.10.0
libtpu: 0.0.40
codegen_flags: <defaults>
</compile_context>

<pallas_src>
import functools
import math

import jax
import jax.numpy as jnp
from jax.experimental import pallas as pl
from jax.experimental.pallas import tpu as pltpu

NTAPS = 63          # num_control_params == FIR taps (module default)
L_OUT = 512         # output samples per row (lane axis of each tile)
ROWS_TILE = 16      # rows of output per grid step (sublane axis, multiple of 8)
HALO = 128          # lane-aligned per-row halo, must be >= ntaps - 1


def _fir_kernel(coef_ref, win_ref, out_ref, *, ntaps, l_out):
    # coef_ref: (bs, ntaps) f32 in SMEM (adaptor already applied)
    # win_ref : (ROWS_TILE, l_out + HALO) f32 framed window for one batch elem
    # out_ref : (ROWS_TILE, l_out) f32 output block
    n = pl.program_id(0)
    win = win_ref[...]                               # keep window in vregs
    acc = jnp.zeros(out_ref.shape, jnp.float32)
    for k in range(ntaps):                           # static unroll (63 taps)
        acc = acc + win[:, k:k + l_out] * coef_ref[n, k]
    out_ref[...] = acc


def fir_filter_forward(x, b, weight, bias):
    """Pallas equivalent of FIRFilter.forward.

    x: (bs, 1, s) f32, b: (bs, ntaps) f32
    weight: (ntaps, ntaps), bias: (ntaps,)   -- torch.nn.Linear params
    returns (bs, 1, s) f32
    """
    bs, ch, s = x.shape
    assert ch == 1, "FIRFilter expects mono input (batch, 1, samples)"
    ntaps = b.shape[-1]
    assert ntaps % 2 == 1, "'same'-length FIR assumes an odd tap count"
    assert ntaps - 1 <= HALO, "halo too small for this tap count"
    pad = ntaps // 2

    # Adaptor (torch.nn.Linear): hoisted out of the kernel, computed once.
    badapt = (b @ weight.T + bias).astype(jnp.float32)           # (bs, ntaps)

    # Frame the signal into overlapping, lane-aligned rows (single XLA pass).
    n_rows = pl.cdiv(s, L_OUT)
    n_rows_pad = pl.cdiv(n_rows, ROWS_TILE) * ROWS_TILE
    t_total = n_rows_pad * L_OUT

    x2 = x[:, 0, :].astype(jnp.float32)                          # (bs, s)
    right = t_total + L_OUT - pad - s                            # covers halo + tile pad
    xe = jnp.pad(x2, ((0, 0), (pad, right)))                     # (bs, t_total + L_OUT)
    main = xe[:, :t_total].reshape(bs, n_rows_pad, L_OUT)
    halo = xe[:, L_OUT:L_OUT + t_total].reshape(bs, n_rows_pad, L_OUT)[:, :, :HALO]
    xwin = jnp.concatenate([main, halo], axis=-1)                # (bs, rows, L_OUT+HALO)

    kernel = functools.partial(_fir_kernel, ntaps=ntaps, l_out=L_OUT)
    grid = (bs, n_rows_pad // ROWS_TILE)

    out = pl.pallas_call(
        kernel,
        out_shape=jax.ShapeDtypeStruct((bs, n_rows_pad, L_OUT), jnp.float32),
        grid_spec=pltpu.PrefetchScalarGridSpec(
            num_scalar_prefetch=0,
            grid=grid,
            in_specs=[
                # FIR coefficients: whole (bs, ntaps) array resident in SMEM.
                pl.BlockSpec(memory_space=pltpu.MemorySpace.SMEM),
                # Framed signal: one (ROWS_TILE, L_OUT + HALO) block per step.
                pl.BlockSpec((None, ROWS_TILE, L_OUT + HALO),
                             lambda n, i: (n, i, 0)),
            ],
            out_specs=pl.BlockSpec((None, ROWS_TILE, L_OUT),
                                   lambda n, i: (n, i, 0)),
        ),
        compiler_params=pltpu.CompilerParams(
            dimension_semantics=("parallel", "parallel")),
    )(badapt, xwin)

    return out.reshape(bs, t_total)[:, :s].reshape(bs, 1, s)


def fir_filter_reference(x, b, weight, bias):
    """Pure-JAX reference mirroring the PyTorch module."""
    bs, ch, s = x.shape
    ntaps = b.shape[-1]
    pad = ntaps // 2
    b_ad = b @ weight.T + bias
    xp = jnp.pad(x[:, 0, :], ((0, 0), (pad, pad)))
    ys = []
    for n in range(bs):
        # conv1d is cross-correlation -> convolve against reversed taps
        ys.append(jnp.convolve(xp[n], b_ad[n][::-1], mode="valid"))
    return jnp.stack(ys).reshape(bs, 1, s)


if __name__ == "__main__":
    bs, s = 2, 256
    key = jax.random.PRNGKey(0)
    kx, kb, kw, kbias = jax.random.split(key, 4)

    x = jax.random.normal(kx, (bs, 1, s), dtype=jnp.float32)
    b = jax.random.normal(kb, (bs, NTAPS), dtype=jnp.float32)

    # deterministic torch.nn.Linear-style init: U(-1/sqrt(in), 1/sqrt(in))
    bound = 1.0 / math.sqrt(NTAPS)
    weight = jax.random.uniform(kw, (NTAPS, NTAPS), jnp.float32, -bound, bound)
    bias = jax.random.uniform(kbias, (NTAPS,), jnp.float32, -bound, bound)

    y = fir_filter_forward(x, b, weight, bias)
    y = jax.block_until_ready(y)

    y_ref = fir_filter_reference(x, b, weight, bias)
    assert y.shape == (bs, 1, s)
    assert jnp.allclose(y, y_ref, atol=1e-4, rtol=1e-4), "mismatch vs reference"
    print("KERNEL_OK")
</pallas_src>

<mosaic_0001>
module attributes {stable_mosaic.version = 11 : i64} {
  func.func @_fir_kernel(%arg0: i32, %arg1: i32, %arg2: memref<2x63xf32, #tpu.memory_space<smem>>, %arg3: memref<1x16x640xf32, #tpu.memory_space<vmem>>, %arg4: memref<1x16x512xf32, #tpu.memory_space<vmem>>) attributes {dimension_semantics = [#tpu.dimension_semantics<parallel>, #tpu.dimension_semantics<parallel>], iteration_bounds = array<i64: 2, 1>, scalar_prefetch = 0 : i64, scratch_operands = 0 : i64, tpu.core_type = #tpu.core_type<tc>, window_params = [{transform_indices = @transform_0, window_bounds = array<i64: 2, 63>}, {transform_indices = @transform_1, window_bounds = array<i64: 1, 16, 640>}, {transform_indices = @transform_2, window_bounds = array<i64: 1, 16, 512>}]} {
    %c0 = arith.constant 0 : index
    %c0_0 = arith.constant 0 : index
    %c0_1 = arith.constant 0 : index
    %0 = vector.load %arg3[%c0, %c0_0, %c0_1] : memref<1x16x640xf32, #tpu.memory_space<vmem>>, vector<1x16x640xf32>
    %1 = vector.shape_cast %0 : vector<1x16x640xf32> to vector<16x640xf32>
    %cst = arith.constant 0.000000e+00 : f32
    %2 = vector.broadcast %cst : f32 to vector<16x512xf32>
    %3 = vector.extract_strided_slice %1 {offsets = [0, 0], sizes = [16, 512], strides = [1, 1]} : vector<16x640xf32> to vector<16x512xf32>
    %4 = arith.index_cast %arg0 : i32 to index
    %c0_2 = arith.constant 0 : index
    %5 = memref.load %arg2[%4, %c0_2] : memref<2x63xf32, #tpu.memory_space<smem>>
    %6 = vector.broadcast %5 : f32 to vector<16x512xf32>
    %7 = arith.mulf %3, %6 : vector<16x512xf32>
    %8 = arith.addf %2, %7 : vector<16x512xf32>
    %9 = vector.extract_strided_slice %1 {offsets = [0, 1], sizes = [16, 512], strides = [1, 1]} : vector<16x640xf32> to vector<16x512xf32>
    %10 = arith.index_cast %arg0 : i32 to index
    %c1 = arith.constant 1 : index
    %11 = memref.load %arg2[%10, %c1] : memref<2x63xf32, #tpu.memory_space<smem>>
    %12 = vector.broadcast %11 : f32 to vector<16x512xf32>
    %13 = arith.mulf %9, %12 : vector<16x512xf32>
    %14 = arith.addf %8, %13 : vector<16x512xf32>
    %15 = vector.extract_strided_slice %1 {offsets = [0, 2], sizes = [16, 512], strides = [1, 1]} : vector<16x640xf32> to vector<16x512xf32>
    %16 = arith.index_cast %arg0 : i32 to index
    %c2 = arith.constant 2 : index
    %17 = memref.load %arg2[%16, %c2] : memref<2x63xf32, #tpu.memory_space<smem>>
    %18 = vector.broadcast %17 : f32 to vector<16x512xf32>
    %19 = arith.mulf %15, %18 : vector<16x512xf32>
    %20 = arith.addf %14, %19 : vector<16x512xf32>
    %21 = vector.extract_strided_slice %1 {offsets = [0, 3], sizes = [16, 512], strides = [1, 1]} : vector<16x640xf32> to vector<16x512xf32>
    %22 = arith.index_cast %arg0 : i32 to index
    %c3 = arith.constant 3 : index
    %23 = memref.load %arg2[%22, %c3] : memref<2x63xf32, #tpu.memory_space<smem>>
    %24 = vector.broadcast %23 : f32 to vector<16x512xf32>
    %25 = arith.mulf %21, %24 : vector<16x512xf32>
    %26 = arith.addf %20, %25 : vector<16x512xf32>
    %27 = vector.extract_strided_slice %1 {offsets = [0, 4], sizes = [16, 512], strides = [1, 1]} : vector<16x640xf32> to vector<16x512xf32>
    %28 = arith.index_cast %arg0 : i32 to index
    %c4 = arith.constant 4 : index
    %29 = memref.load %arg2[%28, %c4] : memref<2x63xf32, #tpu.memory_space<smem>>
    %30 = vector.broadcast %29 : f32 to vector<16x512xf32>
    %31 = arith.mulf %27, %30 : vector<16x512xf32>
    %32 = arith.addf %26, %31 : vector<16x512xf32>
    %33 = vector.extract_strided_slice %1 {offsets = [0, 5], sizes = [16, 512], strides = [1, 1]} : vector<16x640xf32> to vector<16x512xf32>
    %34 = arith.index_cast %arg0 : i32 to index
    %c5 = arith.constant 5 : index
    %35 = memref.load %arg2[%34, %c5] : memref<2x63xf32, #tpu.memory_space<smem>>
    %36 = vector.broadcast %35 : f32 to vector<16x512xf32>
    %37 = arith.mulf %33, %36 : vector<16x512xf32>
    %38 = arith.addf %32, %37 : vector<16x512xf32>
    %39 = vector.extract_strided_slice %1 {offsets = [0, 6], sizes = [16, 512], strides = [1, 1]} : vector<16x640xf32> to vector<16x512xf32>
    %40 = arith.index_cast %arg0 : i32 to index
    %c6 = arith.constant 6 : index
    %41 = memref.load %arg2[%40, %c6] : memref<2x63xf32, #tpu.memory_space<smem>>
    %42 = vector.broadcast %41 : f32 to vector<16x512xf32>
    %43 = arith.mulf %39, %42 : vector<16x512xf32>
    %44 = arith.addf %38, %43 : vector<16x512xf32>
    %45 = vector.extract_strided_slice %1 {offsets = [0, 7], sizes = [16, 512], strides = [1, 1]} : vector<16x640xf32> to vector<16x512xf32>
    %46 = arith.index_cast %arg0 : i32 to index
    %c7 = arith.constant 7 : index
    %47 = memref.load %arg2[%46, %c7] : memref<2x63xf32, #tpu.memory_space<smem>>
    %48 = vector.broadcast %47 : f32 to vector<16x512xf32>
    %49 = arith.mulf %45, %48 : vector<16x512xf32>
    %50 = arith.addf %44, %49 : vector<16x512xf32>
    %51 = vector.extract_strided_slice %1 {offsets = [0, 8], sizes = [16, 512], strides = [1, 1]} : vector<16x640xf32> to vector<16x512xf32>
    %52 = arith.index_cast %arg0 : i32 to index
    %c8 = arith.constant 8 : index
    %53 = memref.load %arg2[%52, %c8] : memref<2x63xf32, #tpu.memory_space<smem>>
    %54 = vector.broadcast %53 : f32 to vector<16x512xf32>
    %55 = arith.mulf %51, %54 : vector<16x512xf32>
    %56 = arith.addf %50, %55 : vector<16x512xf32>
    %57 = vector.extract_strided_slice %1 {offsets = [0, 9], sizes = [16, 512], strides = [1, 1]} : vector<16x640xf32> to vector<16x512xf32>
    %58 = arith.index_cast %arg0 : i32 to index
    %c9 = arith.constant 9 : index
    %59 = memref.load %arg2[%58, %c9] : memref<2x63xf32, #tpu.memory_space<smem>>
    %60 = vector.broadcast %59 : f32 to vector<16x512xf32>
    %61 = arith.mulf %57, %60 : vector<16x512xf32>
    %62 = arith.addf %56, %61 : vector<16x512xf32>
    %63 = vector.extract_strided_slice %1 {offsets = [0, 10], sizes = [16, 512], strides = [1, 1]} : vector<16x640xf32> to vector<16x512xf32>
    %64 = arith.index_cast %arg0 : i32 to index
    %c10 = arith.constant 10 : index
    %65 = memref.load %arg2[%64, %c10] : memref<2x63xf32, #tpu.memory_space<smem>>
    %66 = vector.broadcast %65 : f32 to vector<16x512xf32>
    %67 = arith.mulf %63, %66 : vector<16x512xf32>
    %68 = arith.addf %62, %67 : vector<16x512xf32>
    %69 = vector.extract_strided_slice %1 {offsets = [0, 11], sizes = [16, 512], strides = [1, 1]} : vector<16x640xf32> to vector<16x512xf32>
    %70 = arith.index_cast %arg0 : i32 to index
    %c11 = arith.constant 11 : index
    %71 = memref.load %arg2[%70, %c11] : memref<2x63xf32, #tpu.memory_space<smem>>
    %72 = vector.broadcast %71 : f32 to vector<16x512xf32>
    %73 = arith.mulf %69, %72 : vector<16x512xf32>
    %74 = arith.addf %68, %73 : vector<16x512xf32>
    %75 = vector.extract_strided_slice %1 {offsets = [0, 12], sizes = [16, 512], strides = [1, 1]} : vector<16x640xf32> to vector<16x512xf32>
    %76 = arith.index_cast %arg0 : i32 to index
    %c12 = arith.constant 12 : index
    %77 = memref.load %arg2[%76, %c12] : memref<2x63xf32, #tpu.memory_space<smem>>
    %78 = vector.broadcast %77 : f32 to vector<16x512xf32>
    %79 = arith.mulf %75, %78 : vector<16x512xf32>
    %80 = arith.addf %74, %79 : vector<16x512xf32>
    %81 = vector.extract_strided_slice %1 {offsets = [0, 13], sizes = [16, 512], strides = [1, 1]} : vector<16x640xf32> to vector<16x512xf32>
    %82 = arith.index_cast %arg0 : i32 to index
    %c13 = arith.constant 13 : index
    %83 = memref.load %arg2[%82, %c13] : memref<2x63xf32, #tpu.memory_space<smem>>
    %84 = vector.broadcast %83 : f32 to vector<16x512xf32>
    %85 = arith.mulf %81, %84 : vector<16x512xf32>
    %86 = arith.addf %80, %85 : vector<16x512xf32>
    %87 = vector.extract_strided_slice %1 {offsets = [0, 14], sizes = [16, 512], strides = [1, 1]} : vector<16x640xf32> to vector<16x512xf32>
    %88 = arith.index_cast %arg0 : i32 to index
    %c14 = arith.constant 14 : index
    %89 = memref.load %arg2[%88, %c14] : memref<2x63xf32, #tpu.memory_space<smem>>
    %90 = vector.broadcast %89 : f32 to vector<16x512xf32>
    %91 = arith.mulf %87, %90 : vector<16x512xf32>
    %92 = arith.addf %86, %91 : vector<16x512xf32>
    %93 = vector.extract_strided_slice %1 {offsets = [0, 15], sizes = [16, 512], strides = [1, 1]} : vector<16x640xf32> to vector<16x512xf32>
    %94 = arith.index_cast %arg0 : i32 to index
    %c15 = arith.constant 15 : index
    %95 = memref.load %arg2[%94, %c15] : memref<2x63xf32, #tpu.memory_space<smem>>
    %96 = vector.broadcast %95 : f32 to vector<16x512xf32>
    %97 = arith.mulf %93, %96 : vector<16x512xf32>
    %98 = arith.addf %92, %97 : vector<16x512xf32>
    %99 = vector.extract_strided_slice %1 {offsets = [0, 16], sizes = [16, 512], strides = [1, 1]} : vector<16x640xf32> to vector<16x512xf32>
    %100 = arith.index_cast %arg0 : i32 to index
    %c16 = arith.constant 16 : index
    %101 = memref.load %arg2[%100, %c16] : memref<2x63xf32, #tpu.memory_space<smem>>
    %102 = vector.broadcast %101 : f32 to vector<16x512xf32>
    %103 = arith.mulf %99, %102 : vector<16x512xf32>
    %104 = arith.addf %98, %103 : vector<16x512xf32>
    %105 = vector.extract_strided_slice %1 {offsets = [0, 17], sizes = [16, 512], strides = [1, 1]} : vector<16x640xf32> to vector<16x512xf32>
    %106 = arith.index_cast %arg0 : i32 to index
    %c17 = arith.constant 17 : index
    %107 = memref.load %arg2[%106, %c17] : memref<2x63xf32, #tpu.memory_space<smem>>
    %108 = vector.broadcast %107 : f32 to vector<16x512xf32>
    %109 = arith.mulf %105, %108 : vector<16x512xf32>
    %110 = arith.addf %104, %109 : vector<16x512xf32>
    %111 = vector.extract_strided_slice %1 {offsets = [0, 18], sizes = [16, 512], strides = [1, 1]} : vector<16x640xf32> to vector<16x512xf32>
    %112 = arith.index_cast %arg0 : i32 to index
    %c18 = arith.constant 18 : index
    %113 = memref.load %arg2[%112, %c18] : memref<2x63xf32, #tpu.memory_space<smem>>
    %114 = vector.broadcast %113 : f32 to vector<16x512xf32>
    %115 = arith.mulf %111, %114 : vector<16x512xf32>
    %116 = arith.addf %110, %115 : vector<16x512xf32>
    %117 = vector.extract_strided_slice %1 {offsets = [0, 19], sizes = [16, 512], strides = [1, 1]} : vector<16x640xf32> to vector<16x512xf32>
    %118 = arith.index_cast %arg0 : i32 to index
    %c19 = arith.constant 19 : index
    %119 = memref.load %arg2[%118, %c19] : memref<2x63xf32, #tpu.memory_space<smem>>
    %120 = vector.broadcast %119 : f32 to vector<16x512xf32>
    %121 = arith.mulf %117, %120 : vector<16x512xf32>
    %122 = arith.addf %116, %121 : vector<16x512xf32>
    %123 = vector.extract_strided_slice %1 {offsets = [0, 20], sizes = [16, 512], strides = [1, 1]} : vector<16x640xf32> to vector<16x512xf32>
    %124 = arith.index_cast %arg0 : i32 to index
    %c20 = arith.constant 20 : index
    %125 = memref.load %arg2[%124, %c20] : memref<2x63xf32, #tpu.memory_space<smem>>
    %126 = vector.broadcast %125 : f32 to vector<16x512xf32>
    %127 = arith.mulf %123, %126 : vector<16x512xf32>
    %128 = arith.addf %122, %127 : vector<16x512xf32>
    %129 = vector.extract_strided_slice %1 {offsets = [0, 21], sizes = [16, 512], strides = [1, 1]} : vector<16x640xf32> to vector<16x512xf32>
    %130 = arith.index_cast %arg0 : i32 to index
    %c21 = arith.constant 21 : index
    %131 = memref.load %arg2[%130, %c21] : memref<2x63xf32, #tpu.memory_space<smem>>
    %132 = vector.broadcast %131 : f32 to vector<16x512xf32>
    %133 = arith.mulf %129, %132 : vector<16x512xf32>
    %134 = arith.addf %128, %133 : vector<16x512xf32>
    %135 = vector.extract_strided_slice %1 {offsets = [0, 22], sizes = [16, 512], strides = [1, 1]} : vector<16x640xf32> to vector<16x512xf32>
    %136 = arith.index_cast %arg0 : i32 to index
    %c22 = arith.constant 22 : index
    %137 = memref.load %arg2[%136, %c22] : memref<2x63xf32, #tpu.memory_space<smem>>
    %138 = vector.broadcast %137 : f32 to vector<16x512xf32>
    %139 = arith.mulf %135, %138 : vector<16x512xf32>
    %140 = arith.addf %134, %139 : vector<16x512xf32>
    %141 = vector.extract_strided_slice %1 {offsets = [0, 23], sizes = [16, 512], strides = [1, 1]} : vector<16x640xf32> to vector<16x512xf32>
    %142 = arith.index_cast %arg0 : i32 to index
    %c23 = arith.constant 23 : index
    %143 = memref.load %arg2[%142, %c23] : memref<2x63xf32, #tpu.memory_space<smem>>
    %144 = vector.broadcast %143 : f32 to vector<16x512xf32>
    %145 = arith.mulf %141, %144 : vector<16x512xf32>
    %146 = arith.addf %140, %145 : vector<16x512xf32>
    %147 = vector.extract_strided_slice %1 {offsets = [0, 24], sizes = [16, 512], strides = [1, 1]} : vector<16x640xf32> to vector<16x512xf32>
    %148 = arith.index_cast %arg0 : i32 to index
    %c24 = arith.constant 24 : index
    %149 = memref.load %arg2[%148, %c24] : memref<2x63xf32, #tpu.memory_space<smem>>
    %150 = vector.broadcast %149 : f32 to vector<16x512xf32>
    %151 = arith.mulf %147, %150 : vector<16x512xf32>
    %152 = arith.addf %146, %151 : vector<16x512xf32>
    %153 = vector.extract_strided_slice %1 {offsets = [0, 25], sizes = [16, 512], strides = [1, 1]} : vector<16x640xf32> to vector<16x512xf32>
    %154 = arith.index_cast %arg0 : i32 to index
    %c25 = arith.constant 25 : index
    %155 = memref.load %arg2[%154, %c25] : memref<2x63xf32, #tpu.memory_space<smem>>
    %156 = vector.broadcast %155 : f32 to vector<16x512xf32>
    %157 = arith.mulf %153, %156 : vector<16x512xf32>
    %158 = arith.addf %152, %157 : vector<16x512xf32>
    %159 = vector.extract_strided_slice %1 {offsets = [0, 26], sizes = [16, 512], strides = [1, 1]} : vector<16x640xf32> to vector<16x512xf32>
    %160 = arith.index_cast %arg0 : i32 to index
    %c26 = arith.constant 26 : index
    %161 = memref.load %arg2[%160, %c26] : memref<2x63xf32, #tpu.memory_space<smem>>
    %162 = vector.broadcast %161 : f32 to vector<16x512xf32>
    %163 = arith.mulf %159, %162 : vector<16x512xf32>
    %164 = arith.addf %158, %163 : vector<16x512xf32>
    %165 = vector.extract_strided_slice %1 {offsets = [0, 27], sizes = [16, 512], strides = [1, 1]} : vector<16x640xf32> to vector<16x512xf32>
    %166 = arith.index_cast %arg0 : i32 to index
    %c27 = arith.constant 27 : index
    %167 = memref.load %arg2[%166, %c27] : memref<2x63xf32, #tpu.memory_space<smem>>
    %168 = vector.broadcast %167 : f32 to vector<16x512xf32>
    %169 = arith.mulf %165, %168 : vector<16x512xf32>
    %170 = arith.addf %164, %169 : vector<16x512xf32>
    %171 = vector.extract_strided_slice %1 {offsets = [0, 28], sizes = [16, 512], strides = [1, 1]} : vector<16x640xf32> to vector<16x512xf32>
    %172 = arith.index_cast %arg0 : i32 to index
    %c28 = arith.constant 28 : index
    %173 = memref.load %arg2[%172, %c28] : memref<2x63xf32, #tpu.memory_space<smem>>
    %174 = vector.broadcast %173 : f32 to vector<16x512xf32>
    %175 = arith.mulf %171, %174 : vector<16x512xf32>
    %176 = arith.addf %170, %175 : vector<16x512xf32>
    %177 = vector.extract_strided_slice %1 {offsets = [0, 29], sizes = [16, 512], strides = [1, 1]} : vector<16x640xf32> to vector<16x512xf32>
    %178 = arith.index_cast %arg0 : i32 to index
    %c29 = arith.constant 29 : index
    %179 = memref.load %arg2[%178, %c29] : memref<2x63xf32, #tpu.memory_space<smem>>
    %180 = vector.broadcast %179 : f32 to vector<16x512xf32>
    %181 = arith.mulf %177, %180 : vector<16x512xf32>
    %182 = arith.addf %176, %181 : vector<16x512xf32>
    %183 = vector.extract_strided_slice %1 {offsets = [0, 30], sizes = [16, 512], strides = [1, 1]} : vector<16x640xf32> to vector<16x512xf32>
    %184 = arith.index_cast %arg0 : i32 to index
    %c30 = arith.constant 30 : index
    %185 = memref.load %arg2[%184, %c30] : memref<2x63xf32, #tpu.memory_space<smem>>
    %186 = vector.broadcast %185 : f32 to vector<16x512xf32>
    %187 = arith.mulf %183, %186 : vector<16x512xf32>
    %188 = arith.addf %182, %187 : vector<16x512xf32>
    %189 = vector.extract_strided_slice %1 {offsets = [0, 31], sizes = [16, 512], strides = [1, 1]} : vector<16x640xf32> to vector<16x512xf32>
    %190 = arith.index_cast %arg0 : i32 to index
    %c31 = arith.constant 31 : index
    %191 = memref.load %arg2[%190, %c31] : memref<2x63xf32, #tpu.memory_space<smem>>
    %192 = vector.broadcast %191 : f32 to vector<16x512xf32>
    %193 = arith.mulf %189, %192 : vector<16x512xf32>
    %194 = arith.addf %188, %193 : vector<16x512xf32>
    %195 = vector.extract_strided_slice %1 {offsets = [0, 32], sizes = [16, 512], strides = [1, 1]} : vector<16x640xf32> to vector<16x512xf32>
    %196 = arith.index_cast %arg0 : i32 to index
    %c32 = arith.constant 32 : index
    %197 = memref.load %arg2[%196, %c32] : memref<2x63xf32, #tpu.memory_space<smem>>
    %198 = vector.broadcast %197 : f32 to vector<16x512xf32>
    %199 = arith.mulf %195, %198 : vector<16x512xf32>
    %200 = arith.addf %194, %199 : vector<16x512xf32>
    %201 = vector.extract_strided_slice %1 {offsets = [0, 33], sizes = [16, 512], strides = [1, 1]} : vector<16x640xf32> to vector<16x512xf32>
    %202 = arith.index_cast %arg0 : i32 to index
    %c33 = arith.constant 33 : index
    %203 = memref.load %arg2[%202, %c33] : memref<2x63xf32, #tpu.memory_space<smem>>
    %204 = vector.broadcast %203 : f32 to vector<16x512xf32>
    %205 = arith.mulf %201, %204 : vector<16x512xf32>
    %206 = arith.addf %200, %205 : vector<16x512xf32>
    %207 = vector.extract_strided_slice %1 {offsets = [0, 34], sizes = [16, 512], strides = [1, 1]} : vector<16x640xf32> to vector<16x512xf32>
    %208 = arith.index_cast %arg0 : i32 to index
    %c34 = arith.constant 34 : index
    %209 = memref.load %arg2[%208, %c34] : memref<2x63xf32, #tpu.memory_space<smem>>
    %210 = vector.broadcast %209 : f32 to vector<16x512xf32>
    %211 = arith.mulf %207, %210 : vector<16x512xf32>
    %212 = arith.addf %206, %211 : vector<16x512xf32>
    %213 = vector.extract_strided_slice %1 {offsets = [0, 35], sizes = [16, 512], strides = [1, 1]} : vector<16x640xf32> to vector<16x512xf32>
    %214 = arith.index_cast %arg0 : i32 to index
    %c35 = arith.constant 35 : index
    %215 = memref.load %arg2[%214, %c35] : memref<2x63xf32, #tpu.memory_space<smem>>
    %216 = vector.broadcast %215 : f32 to vector<16x512xf32>
    %217 = arith.mulf %213, %216 : vector<16x512xf32>
    %218 = arith.addf %212, %217 : vector<16x512xf32>
    %219 = vector.extract_strided_slice %1 {offsets = [0, 36], sizes = [16, 512], strides = [1, 1]} : vector<16x640xf32> to vector<16x512xf32>
    %220 = arith.index_cast %arg0 : i32 to index
    %c36 = arith.constant 36 : index
    %221 = memref.load %arg2[%220, %c36] : memref<2x63xf32, #tpu.memory_space<smem>>
    %222 = vector.broadcast %221 : f32 to vector<16x512xf32>
    %223 = arith.mulf %219, %222 : vector<16x512xf32>
    %224 = arith.addf %218, %223 : vector<16x512xf32>
    %225 = vector.extract_strided_slice %1 {offsets = [0, 37], sizes = [16, 512], strides = [1, 1]} : vector<16x640xf32> to vector<16x512xf32>
    %226 = arith.index_cast %arg0 : i32 to index
    %c37 = arith.constant 37 : index
    %227 = memref.load %arg2[%226, %c37] : memref<2x63xf32, #tpu.memory_space<smem>>
    %228 = vector.broadcast %227 : f32 to vector<16x512xf32>
    %229 = arith.mulf %225, %228 : vector<16x512xf32>
    %230 = arith.addf %224, %229 : vector<16x512xf32>
    %231 = vector.extract_strided_slice %1 {offsets = [0, 38], sizes = [16, 512], strides = [1, 1]} : vector<16x640xf32> to vector<16x512xf32>
    %232 = arith.index_cast %arg0 : i32 to index
    %c38 = arith.constant 38 : index
    %233 = memref.load %arg2[%232, %c38] : memref<2x63xf32, #tpu.memory_space<smem>>
    %234 = vector.broadcast %233 : f32 to vector<16x512xf32>
    %235 = arith.mulf %231, %234 : vector<16x512xf32>
    %236 = arith.addf %230, %235 : vector<16x512xf32>
    %237 = vector.extract_strided_slice %1 {offsets = [0, 39], sizes = [16, 512], strides = [1, 1]} : vector<16x640xf32> to vector<16x512xf32>
    %238 = arith.index_cast %arg0 : i32 to index
    %c39 = arith.constant 39 : index
    %239 = memref.load %arg2[%238, %c39] : memref<2x63xf32, #tpu.memory_space<smem>>
    %240 = vector.broadcast %239 : f32 to vector<16x512xf32>
    %241 = arith.mulf %237, %240 : vector<16x512xf32>
    %242 = arith.addf %236, %241 : vector<16x512xf32>
    %243 = vector.extract_strided_slice %1 {offsets = [0, 40], sizes = [16, 512], strides = [1, 1]} : vector<16x640xf32> to vector<16x512xf32>
    %244 = arith.index_cast %arg0 : i32 to index
    %c40 = arith.constant 40 : index
    %245 = memref.load %arg2[%244, %c40] : memref<2x63xf32, #tpu.memory_space<smem>>
    %246 = vector.broadcast %245 : f32 to vector<16x512xf32>
    %247 = arith.mulf %243, %246 : vector<16x512xf32>
    %248 = arith.addf %242, %247 : vector<16x512xf32>
    %249 = vector.extract_strided_slice %1 {offsets = [0, 41], sizes = [16, 512], strides = [1, 1]} : vector<16x640xf32> to vector<16x512xf32>
    %250 = arith.index_cast %arg0 : i32 to index
    %c41 = arith.constant 41 : index
    %251 = memref.load %arg2[%250, %c41] : memref<2x63xf32, #tpu.memory_space<smem>>
    %252 = vector.broadcast %251 : f32 to vector<16x512xf32>
    %253 = arith.mulf %249, %252 : vector<16x512xf32>
    %254 = arith.addf %248, %253 : vector<16x512xf32>
    %255 = vector.extract_strided_slice %1 {offsets = [0, 42], sizes = [16, 512], strides = [1, 1]} : vector<16x640xf32> to vector<16x512xf32>
    %256 = arith.index_cast %arg0 : i32 to index
    %c42 = arith.constant 42 : index
    %257 = memref.load %arg2[%256, %c42] : memref<2x63xf32, #tpu.memory_space<smem>>
    %258 = vector.broadcast %257 : f32 to vector<16x512xf32>
    %259 = arith.mulf %255, %258 : vector<16x512xf32>
    %260 = arith.addf %254, %259 : vector<16x512xf32>
    %261 = vector.extract_strided_slice %1 {offsets = [0, 43], sizes = [16, 512], strides = [1, 1]} : vector<16x640xf32> to vector<16x512xf32>
    %262 = arith.index_cast %arg0 : i32 to index
    %c43 = arith.constant 43 : index
    %263 = memref.load %arg2[%262, %c43] : memref<2x63xf32, #tpu.memory_space<smem>>
    %264 = vector.broadcast %263 : f32 to vector<16x512xf32>
    %265 = arith.mulf %261, %264 : vector<16x512xf32>
    %266 = arith.addf %260, %265 : vector<16x512xf32>
    %267 = vector.extract_strided_slice %1 {offsets = [0, 44], sizes = [16, 512], strides = [1, 1]} : vector<16x640xf32> to vector<16x512xf32>
    %268 = arith.index_cast %arg0 : i32 to index
    %c44 = arith.constant 44 : index
    %269 = memref.load %arg2[%268, %c44] : memref<2x63xf32, #tpu.memory_space<smem>>
    %270 = vector.broadcast %269 : f32 to vector<16x512xf32>
    %271 = arith.mulf %267, %270 : vector<16x512xf32>
    %272 = arith.addf %266, %271 : vector<16x512xf32>
    %273 = vector.extract_strided_slice %1 {offsets = [0, 45], sizes = [16, 512], strides = [1, 1]} : vector<16x640xf32> to vector<16x512xf32>
    %274 = arith.index_cast %arg0 : i32 to index
    %c45 = arith.constant 45 : index
    %275 = memref.load %arg2[%274, %c45] : memref<2x63xf32, #tpu.memory_space<smem>>
    %276 = vector.broadcast %275 : f32 to vector<16x512xf32>
    %277 = arith.mulf %273, %276 : vector<16x512xf32>
    %278 = arith.addf %272, %277 : vector<16x512xf32>
    %279 = vector.extract_strided_slice %1 {offsets = [0, 46], sizes = [16, 512], strides = [1, 1]} : vector<16x640xf32> to vector<16x512xf32>
    %280 = arith.index_cast %arg0 : i32 to index
    %c46 = arith.constant 46 : index
    %281 = memref.load %arg2[%280, %c46] : memref<2x63xf32, #tpu.memory_space<smem>>
    %282 = vector.broadcast %281 : f32 to vector<16x512xf32>
    %283 = arith.mulf %279, %282 : vector<16x512xf32>
    %284 = arith.addf %278, %283 : vector<16x512xf32>
    %285 = vector.extract_strided_slice %1 {offsets = [0, 47], sizes = [16, 512], strides = [1, 1]} : vector<16x640xf32> to vector<16x512xf32>
    %286 = arith.index_cast %arg0 : i32 to index
    %c47 = arith.constant 47 : index
    %287 = memref.load %arg2[%286, %c47] : memref<2x63xf32, #tpu.memory_space<smem>>
    %288 = vector.broadcast %287 : f32 to vector<16x512xf32>
    %289 = arith.mulf %285, %288 : vector<16x512xf32>
    %290 = arith.addf %284, %289 : vector<16x512xf32>
    %291 = vector.extract_strided_slice %1 {offsets = [0, 48], sizes = [16, 512], strides = [1, 1]} : vector<16x640xf32> to vector<16x512xf32>
    %292 = arith.index_cast %arg0 : i32 to index
    %c48 = arith.constant 48 : index
    %293 = memref.load %arg2[%292, %c48] : memref<2x63xf32, #tpu.memory_space<smem>>
    %294 = vector.broadcast %293 : f32 to vector<16x512xf32>
    %295 = arith.mulf %291, %294 : vector<16x512xf32>
    %296 = arith.addf %290, %295 : vector<16x512xf32>
    %297 = vector.extract_strided_slice %1 {offsets = [0, 49], sizes = [16, 512], strides = [1, 1]} : vector<16x640xf32> to vector<16x512xf32>
    %298 = arith.index_cast %arg0 : i32 to index
    %c49 = arith.constant 49 : index
    %299 = memref.load %arg2[%298, %c49] : memref<2x63xf32, #tpu.memory_space<smem>>
    %300 = vector.broadcast %299 : f32 to vector<16x512xf32>
    %301 = arith.mulf %297, %300 : vector<16x512xf32>
    %302 = arith.addf %296, %301 : vector<16x512xf32>
    %303 = vector.extract_strided_slice %1 {offsets = [0, 50], sizes = [16, 512], strides = [1, 1]} : vector<16x640xf32> to vector<16x512xf32>
    %304 = arith.index_cast %arg0 : i32 to index
    %c50 = arith.constant 50 : index
    %305 = memref.load %arg2[%304, %c50] : memref<2x63xf32, #tpu.memory_space<smem>>
    %306 = vector.broadcast %305 : f32 to vector<16x512xf32>
    %307 = arith.mulf %303, %306 : vector<16x512xf32>
    %308 = arith.addf %302, %307 : vector<16x512xf32>
    %309 = vector.extract_strided_slice %1 {offsets = [0, 51], sizes = [16, 512], strides = [1, 1]} : vector<16x640xf32> to vector<16x512xf32>
    %310 = arith.index_cast %arg0 : i32 to index
    %c51 = arith.constant 51 : index
    %311 = memref.load %arg2[%310, %c51] : memref<2x63xf32, #tpu.memory_space<smem>>
    %312 = vector.broadcast %311 : f32 to vector<16x512xf32>
    %313 = arith.mulf %309, %312 : vector<16x512xf32>
    %314 = arith.addf %308, %313 : vector<16x512xf32>
    %315 = vector.extract_strided_slice %1 {offsets = [0, 52], sizes = [16, 512], strides = [1, 1]} : vector<16x640xf32> to vector<16x512xf32>
    %316 = arith.index_cast %arg0 : i32 to index
    %c52 = arith.constant 52 : index
    %317 = memref.load %arg2[%316, %c52] : memref<2x63xf32, #tpu.memory_space<smem>>
    %318 = vector.broadcast %317 : f32 to vector<16x512xf32>
    %319 = arith.mulf %315, %318 : vector<16x512xf32>
    %320 = arith.addf %314, %319 : vector<16x512xf32>
    %321 = vector.extract_strided_slice %1 {offsets = [0, 53], sizes = [16, 512], strides = [1, 1]} : vector<16x640xf32> to vector<16x512xf32>
    %322 = arith.index_cast %arg0 : i32 to index
    %c53 = arith.constant 53 : index
    %323 = memref.load %arg2[%322, %c53] : memref<2x63xf32, #tpu.memory_space<smem>>
    %324 = vector.broadcast %323 : f32 to vector<16x512xf32>
    %325 = arith.mulf %321, %324 : vector<16x512xf32>
    %326 = arith.addf %320, %325 : vector<16x512xf32>
    %327 = vector.extract_strided_slice %1 {offsets = [0, 54], sizes = [16, 512], strides = [1, 1]} : vector<16x640xf32> to vector<16x512xf32>
    %328 = arith.index_cast %arg0 : i32 to index
    %c54 = arith.constant 54 : index
    %329 = memref.load %arg2[%328, %c54] : memref<2x63xf32, #tpu.memory_space<smem>>
    %330 = vector.broadcast %329 : f32 to vector<16x512xf32>
    %331 = arith.mulf %327, %330 : vector<16x512xf32>
    %332 = arith.addf %326, %331 : vector<16x512xf32>
    %333 = vector.extract_strided_slice %1 {offsets = [0, 55], sizes = [16, 512], strides = [1, 1]} : vector<16x640xf32> to vector<16x512xf32>
    %334 = arith.index_cast %arg0 : i32 to index
    %c55 = arith.constant 55 : index
    %335 = memref.load %arg2[%334, %c55] : memref<2x63xf32, #tpu.memory_space<smem>>
    %336 = vector.broadcast %335 : f32 to vector<16x512xf32>
    %337 = arith.mulf %333, %336 : vector<16x512xf32>
    %338 = arith.addf %332, %337 : vector<16x512xf32>
    %339 = vector.extract_strided_slice %1 {offsets = [0, 56], sizes = [16, 512], strides = [1, 1]} : vector<16x640xf32> to vector<16x512xf32>
    %340 = arith.index_cast %arg0 : i32 to index
    %c56 = arith.constant 56 : index
    %341 = memref.load %arg2[%340, %c56] : memref<2x63xf32, #tpu.memory_space<smem>>
    %342 = vector.broadcast %341 : f32 to vector<16x512xf32>
    %343 = arith.mulf %339, %342 : vector<16x512xf32>
    %344 = arith.addf %338, %343 : vector<16x512xf32>
    %345 = vector.extract_strided_slice %1 {offsets = [0, 57], sizes = [16, 512], strides = [1, 1]} : vector<16x640xf32> to vector<16x512xf32>
    %346 = arith.index_cast %arg0 : i32 to index
    %c57 = arith.constant 57 : index
    %347 = memref.load %arg2[%346, %c57] : memref<2x63xf32, #tpu.memory_space<smem>>
    %348 = vector.broadcast %347 : f32 to vector<16x512xf32>
    %349 = arith.mulf %345, %348 : vector<16x512xf32>
    %350 = arith.addf %344, %349 : vector<16x512xf32>
    %351 = vector.extract_strided_slice %1 {offsets = [0, 58], sizes = [16, 512], strides = [1, 1]} : vector<16x640xf32> to vector<16x512xf32>
    %352 = arith.index_cast %arg0 : i32 to index
    %c58 = arith.constant 58 : index
    %353 = memref.load %arg2[%352, %c58] : memref<2x63xf32, #tpu.memory_space<smem>>
    %354 = vector.broadcast %353 : f32 to vector<16x512xf32>
    %355 = arith.mulf %351, %354 : vector<16x512xf32>
    %356 = arith.addf %350, %355 : vector<16x512xf32>
    %357 = vector.extract_strided_slice %1 {offsets = [0, 59], sizes = [16, 512], strides = [1, 1]} : vector<16x640xf32> to vector<16x512xf32>
    %358 = arith.index_cast %arg0 : i32 to index
    %c59 = arith.constant 59 : index
    %359 = memref.load %arg2[%358, %c59] : memref<2x63xf32, #tpu.memory_space<smem>>
    %360 = vector.broadcast %359 : f32 to vector<16x512xf32>
    %361 = arith.mulf %357, %360 : vector<16x512xf32>
    %362 = arith.addf %356, %361 : vector<16x512xf32>
    %363 = vector.extract_strided_slice %1 {offsets = [0, 60], sizes = [16, 512], strides = [1, 1]} : vector<16x640xf32> to vector<16x512xf32>
    %364 = arith.index_cast %arg0 : i32 to index
    %c60 = arith.constant 60 : index
    %365 = memref.load %arg2[%364, %c60] : memref<2x63xf32, #tpu.memory_space<smem>>
    %366 = vector.broadcast %365 : f32 to vector<16x512xf32>
    %367 = arith.mulf %363, %366 : vector<16x512xf32>
    %368 = arith.addf %362, %367 : vector<16x512xf32>
    %369 = vector.extract_strided_slice %1 {offsets = [0, 61], sizes = [16, 512], strides = [1, 1]} : vector<16x640xf32> to vector<16x512xf32>
    %370 = arith.index_cast %arg0 : i32 to index
    %c61 = arith.constant 61 : index
    %371 = memref.load %arg2[%370, %c61] : memref<2x63xf32, #tpu.memory_space<smem>>
    %372 = vector.broadcast %371 : f32 to vector<16x512xf32>
    %373 = arith.mulf %369, %372 : vector<16x512xf32>
    %374 = arith.addf %368, %373 : vector<16x512xf32>
    %375 = vector.extract_strided_slice %1 {offsets = [0, 62], sizes = [16, 512], strides = [1, 1]} : vector<16x640xf32> to vector<16x512xf32>
    %376 = arith.index_cast %arg0 : i32 to index
    %c62 = arith.constant 62 : index
    %377 = memref.load %arg2[%376, %c62] : memref<2x63xf32, #tpu.memory_space<smem>>
    %378 = vector.broadcast %377 : f32 to vector<16x512xf32>
    %379 = arith.mulf %375, %378 : vector<16x512xf32>
    %380 = arith.addf %374, %379 : vector<16x512xf32>
    %c0_3 = arith.constant 0 : index
    %c0_4 = arith.constant 0 : index
    %c0_5 = arith.constant 0 : index
    %381 = vector.load %arg4[%c0_3, %c0_4, %c0_5] : memref<1x16x512xf32, #tpu.memory_space<vmem>>, vector<1x16x512xf32>
    %382 = vector.shape_cast %381 : vector<1x16x512xf32> to vector<16x512xf32>
    %383 = vector.shape_cast %380 : vector<16x512xf32> to vector<1x16x512xf32>
    tpu.vector_store %arg4[%c0_3, %c0_4, %c0_5], %383 {strides = array<i32>} : memref<1x16x512xf32, #tpu.memory_space<vmem>>, vector<1x16x512xf32>,
    return
  }
  func.func @transform_0(%arg0: i32, %arg1: i32) -> (i32, i32) {
    %c0_i32 = arith.constant 0 : i32
    %c0_i32_0 = arith.constant 0 : i32
    %c0_i32_1 = arith.constant 0 : i32
    return %c0_i32, %c0_i32_0 : i32, i32
  }
  func.func @transform_1(%arg0: i32, %arg1: i32) -> (i32, i32, i32) {
    %c0_i32 = arith.constant 0 : i32
    %c0_i32_0 = arith.constant 0 : i32
    return %arg0, %arg1, %c0_i32 : i32, i32, i32
  }
  func.func @transform_2(%arg0: i32, %arg1: i32) -> (i32, i32, i32) {
    %c0_i32 = arith.constant 0 : i32
    %c0_i32_0 = arith.constant 0 : i32
    return %arg0, %arg1, %c0_i32 : i32, i32, i32
  }
}

</mosaic_0001>

<bundles_post_ra>
// kernel: tpu_custom_call.1
= control target key start
LH: loop header
LB: loop body
LE: loop exit
PB: predicated region body
PF: predicated region fallthrough
CT: control target
= control target key end

     0   :  { %7 = vsyncpa [#allocation5], 0  ;;  %s8911_s0 = inlined_call_operand.hbm [shape: f32[2,63], index: 0, kind: input, shape index: {}]   ;;  %s8912_s1 = inlined_call_operand.hbm [shape: f32[2,16,640], index: 1, kind: input, shape index: {}]   ;;  %s8913_s2 = inlined_call_operand.hbm [shape: f32[2,16,512], index: 2, kind: output, shape index: {}]  }
   0x1   :  { %8 = vsyncpa [#allocation3], 0 }
   0x2   :  { %10 = vsyncpa [#allocation3 + $0x1], 0 }
   0x3   :  { %11 = vsyncpa [#allocation4], 0 }
   0x4   :  { %13 = vsyncpa [#allocation4 + $0x1], 0  ;;  %s4981_s9 = smov 0   ;;  %s4983_s10 = smov 0  }
   0x5   :  { %s4985_s11 = smov 0   ;;  %s4987_s12 = smov 0  }
   0x6   :  { %s4989_s13 = smov 0   ;;  %s4991_s14 = smov 0  }
   0x7 LB: > { %s4564_s15 = sadd.s32 4294967295, %s4895_s14   ;;  %s4565_s16 = sadd.s32 4294967294, %s4895_s14   ;;  %s4895_s14 = sphi %s4991_s14, %s19_s14   ;;  %s4891_s13 = sphi %s4989_s13, %s10090_s13   ;;  %s4887_s12 = sphi %s4987_s12, %s10089_s12   ;;  %s4883_s11 = sphi %s4985_s11, %s10088_s11   ;;  %s4879_s10 = sphi %s4983_s10, %s10087_s10   ;;  %s4875_s9 = sphi %s4981_s9, %s10086_s9  }
   0x8   : > { %s61_s17 = sadd.s32 1, %s4883_s11  ;;  %p68_p0 = scmp.ne.s32.totalorder %s4883_s11, %s4879_s10 }
   0x9   : > { %p69_p1 = scmp.eq.s32.totalorder %s4895_s14, 0  ;;  %p74_p2 = scmp.ne.s32.totalorder %s4879_s10, %s4875_s9 }
   0xa   : > { %p5019_p3 = scmp.eq.s32.totalorder %s4564_s15, 0  ;;  %p100_p4 = scmp.eq.s32.totalorder %s4564_s15, 1 }
   0xb   : > { %p70_p5 = por %p69_p1, %p68_p0  ;;  %p106_p6 = scmp.eq.s32.totalorder %s4565_s16, 1 }
   0xc   : > { %p5025_p7 = por %p5019_p3, %p74_p2  ;;  %p5029_p8 = por %p100_p4, %p68_p0 }
   0xd   : > { %p5033_p9 = por %p106_p6, %p74_p2  ;;  %p4566_p10 = scmp.ge.s32.totalorder %s4895_s14, 1 }
   0xe   : > { %p113_p11 = scmp.lt.s32.totalorder %s4895_s14, 3  ;;  %p4604_p1 = scmp.lt.s32.totalorder %s4895_s14, 2 }
   0xf   : > { %s9189_s21 = scalar_select %p5033_p9, 1, 0 }
  0x10   : > { %p5040_p13 = pnand %p4566_p10, %p113_p11  ;;  %s135_s23 = sand.u32 1, %s4883_s11  }
  0x11   : > { %p5048_p2 = pnand %p4604_p1, %p70_p5  ;;  %s31_s25 = sadd.s32 1, %s4891_s13 }
  0x12   : > { %p4591_p0 = pneg %p5040_p13  ;;  %s4580_s26 = smul.u32 80, %s135_s23 }
  0x13   : > { %p33_p6 = scmp.ge.s32.totalorder %s31_s25, 2  ;;  %s4897_s27 = smov [#allocation2]  }
  0x14   : > { %p4592_p4 = pnand %p4591_p0, %p5019_p3  ;;  %s4581_s30 = smul.u32 1280, %s4891_s13 }
  0x15   : > { %s10092_s25 = smov (%p33_p6, %s31_s25), 0  ;;  %s139_s4 = scalar_lea.vmem [#allocation6], %s4580_s26 }
  0x16   : > { %4594 = dma.hbm_to_smem (!%p4592_p4), %s8911_s0, 32, %s4897_s27, [#allocation5]  }
  0x17   : > { %s56_s3 = ssub.s32 %s4891_s13, %s10092_s25  ;;  %s149_s5 = sshll.u32 %s139_s4, 4  ;;  %s150_s5 = int_to_ptr.vmem [resolvable:$true] %s149_s5 }
  0x18   : > { %p59_p5 = scmp.eq.s32.totalorder %s56_s3, 0  ;;  %s148_s8 = scalar_lea.hbm %s8912_s1, %s4581_s30 }
  0x19   : > { %s136_s16 = scalar_lea.sflag [#allocation3], %s135_s23  ;;  %p4785_p10 = pneg %p5048_p2 }
  0x1a   : > { %s5069_s15 = scalar_select %p59_p5, %s4883_s11, %s61_s17  }
  0x1b   : > { %s4796_s27 = scalar_lea.vmem %s150_s5, 1280  ;;  %s4898_s28 = smov [#allocation6]  }
  0x1c   : > { %p4797_p11 = scmp.ne.s32.totalorder %s150_s5, %s4796_s27  ;;  %s4801_s29 = sshll.u32 %s4898_s28, 4  ;;  %s4802_s29 = int_to_ptr.vmem [resolvable:$false] %s4801_s29 }
  0x1d   : > { %s4803_s26 = scalar_lea.vmem %s4802_s29, 2560  ;;  %p4804_p4 = scmp.lt.s32.totalorder %s150_s5, %s4802_s29 }
  0x1e   : > { %p4799_p1 = pnand %p4797_p11, %p4785_p10  ;;  %p4805_p6 = scmp.lt.s32.totalorder %s4803_s26, %s4796_s27 }
  0x20   : > { %p4800_p0 = pneg %p4799_p1  ;;  %p4806_p12 = por %p4805_p6, %p4804_p4 }
  0x22   : > { %p4807_p9 = pnand %p4806_p12, %p4800_p0 }
  0x24   : > { %4810 = shalt.err (!%p4807_p9)
}
  0x25   : > { %s4899_s30 = smov 640   ;;  %s4900_s17 = smov 40  }
  0x26   : > { %4598 = dma.hbm_to_vmem [thread:$0]  (!%p5048_p2), %s148_s8, 1280, %s150_s5, %s136_s16, %s4899_s30, %s4899_s30, %s4900_s17  }
  0x27   : > { %161 = sbr.rel (%p5040_p13) target bundleno = 1432 (0x598), region = 28 }
  0x2c   : > { %4862 = dma.done.wait (%p5019_p3), [#allocation5], 32  }
  0x2d   : > { %4864 = vsyncadd (%p5019_p3), [#allocation5], 4294967264  ;;  %s5082_s23 = sand.u32 1, %s4879_s10  }
  0x2e   : > { %s4582_s3 = smul.u32 80, %s5082_s23  ;;  %s168_s4 = scalar_lea.sflag [#allocation3], %s5082_s23 }
  0x30   : > { %s5086_s6 = scalar_lea.vmem [#allocation6], %s4582_s3 }
  0x31   : > { %4866 = dma.done.wait (%p5025_p7), %s168_s4, 1280  }
  0x32   : > { %4868 = vsyncadd (%p5025_p7), %s168_s4, 4294966016 }
  0x33   : > { %176 = sfence }
  0x34   : > { %s5093_s18 = sshll.u32 %s4887_s12, 7  ;;  %v5097_v0 = vld [vmem:[%s5086_s6 + $0x10] sm:$0xff]  ;;  %v5100_v1 = vld [vmem:[%s5086_s6] sm:$0xff]  ;;  %v5103_v3 = vld [vmem:[%s5086_s6 + $0x18] sm:$0xff]  ;;  %s4901_s19 = smov 127   ;;  %vm267_vm0 = vcmask 1039360  }
  0x35   : > { %s224_s22 = sadd.s32 1, %s5093_s18  ;;  %v5106_v4 = vld [vmem:[%s5086_s6 + $0x8] sm:$0xff]  ;;  %v5116_v10 = vld [vmem:[%s5086_s6 + $0x20] sm:$0xff]  ;;  %s292_s5 = sadd.s32 2, %s5093_s18  ;;  %v5122_v13 = vld [vmem:[%s5086_s6 + $0x38] sm:$0xff]  ;;  %vm335_vm1 = vcmask 1031168  }
  0x36   : > { %s225_s24 = sld [smem:[#allocation2 + %s224_s22]]  ;;  %v5113_v9 = vld [vmem:[%s5086_s6 + $0x28] sm:$0xff]  ;;  %v5125_v14 = vld [vmem:[%s5086_s6 + $0x30] sm:$0xff]  ;;  %v5133_v18 = vld [vmem:[%s5086_s6 + $0x40] sm:$0xff]  ;;  %s4902_s8 = smov 126   ;;  %vm403_vm2 = vcmask 1022976  }
  0x37   : > { %s293_s7 = sld [smem:[#allocation2 + %s292_s5]]  ;;  %v5130_v17 = vld [vmem:[%s5086_s6 + $0x48] sm:$0xff]  ;;  %s360_s16 = sadd.s32 3, %s5093_s18  ;;  %vm471_vm3 = vcmask 1014784   ;;  %vm539_vm4 = vcmask 1006592   ;;  %vm607_vm5 = vcmask 998400  }
  0x38   : > { %s361_s27 = sld [smem:[#allocation2 + %s360_s16]]  ;;  %s4903_s28 = smov 125   ;;  %vm675_vm6 = vcmask 990208   ;;  %vm743_vm7 = vcmask 982016   ;;  %vm811_vm8 = vcmask 973824   ;;  %vm879_vm9 = vcmask 965632  }
  0x39   : > { %s428_s29 = sadd.s32 4, %s5093_s18  ;;  %s4904_s30 = smov 124   ;;  %vm947_vm10 = vcmask 957440   ;;  %vm1015_vm11 = vcmask 949248   ;;  %vm1083_vm12 = vcmask 941056   ;;  %vm1151_vm13 = vcmask 932864  }
  0x3a   : > { %s429_s26 = sld [smem:[#allocation2 + %s428_s29]]  ;;  %s496_s17 = sadd.s32 5, %s5093_s18  ;;  %vm1219_vm14 = vcmask 924672   ;;  %vm1287_vm15 = vcmask 916480  }
  0x3b   : > { %s497_s3 = sld [smem:[#allocation2 + %s496_s17]]  ;;  %s4905_s4 = smov 123  }
  0x3c   : > { %v226_v2 = vstv %s225_s24  ;;  %s564_s22 = sadd.s32 6, %s5093_s18  ;;  %s632_s5 = sadd.s32 7, %s5093_s18 }
  0x3d   : > { %v229_v5 = vmul.f32 %v226_v2, %v5097_v0  ;;  %v227_v6 = vmul.f32 %v226_v2, %v5100_v1  ;;  %v230_v7 = vmul.f32 %v226_v2, %v5103_v3  ;;  %v228_v8 = vmul.f32 %v226_v2, %v5106_v4  ;;  %s565_s24 = sld [smem:[#allocation2 + %s564_s22]]  ;;  %s700_s16 = sadd.s32 8, %s5093_s18 }
  0x3e   : > { %v232_v11 = vmul.f32 %v226_v2, %v5113_v9  ;;  %v231_v12 = vmul.f32 %v226_v2, %v5116_v10  ;;  %v234_v15 = vmul.f32 %v226_v2, %v5122_v13  ;;  %v233_v16 = vmul.f32 %v226_v2, %v5125_v14  ;;  %s768_s29 = sadd.s32 9, %s5093_s18  ;;  %s836_s17 = sadd.s32 10, %s5093_s18 }
  0x3f   : > { %251 = vrot.lane.b32.xlu1 %v229_v5, %s4901_s19  ;;  %247 = vrot.lane.b32.xlu0 %v227_v6, %s4901_s19  ;;  %v236_v19 = vmul.f32 %v226_v2, %v5130_v17  ;;  %v235_v20 = vmul.f32 %v226_v2, %v5133_v18  ;;  %v294_v21 = vstv %s293_s7  ;;  %v362_v32 = vstv %s361_s27  ;;  %s633_s7 = sld [smem:[#allocation2 + %s632_s5]]  ;;  %s904_s22 = sadd.s32 11, %s5093_s18 }
  0x40   : > { %v296_v22 = vmul.f32 %v294_v21, %v5106_v4  ;;  %v295_v23 = vmul.f32 %v294_v21, %v5100_v1  ;;  %v298_v24 = vmul.f32 %v294_v21, %v5103_v3  ;;  %v297_v25 = vmul.f32 %v294_v21, %v5097_v0  ;;  %s701_s27 = sld [smem:[#allocation2 + %s700_s16]]  ;;  %s972_s5 = sadd.s32 12, %s5093_s18 }
  0x41   : > { %v300_v26 = vmul.f32 %v294_v21, %v5113_v9  ;;  %v299_v27 = vmul.f32 %v294_v21, %v5116_v10  ;;  %v302_v28 = vmul.f32 %v294_v21, %v5122_v13  ;;  %v301_v29 = vmul.f32 %v294_v21, %v5125_v14  ;;  %s1040_s16 = sadd.s32 13, %s5093_s18 }
  0x42   : > { %v304_v30 = vmul.f32 %v294_v21, %v5130_v17  ;;  %v303_v31 = vmul.f32 %v294_v21, %v5133_v18  ;;  %v364_v33 = vmul.f32 %v362_v32, %v5106_v4  ;;  %v363_v34 = vmul.f32 %v362_v32, %v5100_v1 }
  0x43   : > { %253 = vrot.lane.b32.xlu1 %v230_v7, %s4901_s19  ;;  %249 = vrot.lane.b32.xlu0 %v228_v8, %s4901_s19  ;;  %v366_v35 = vmul.f32 %v362_v32, %v5103_v3  ;;  %v365_v36 = vmul.f32 %v362_v32, %v5097_v0  ;;  %v368_v37 = vmul.f32 %v362_v32, %v5113_v9  ;;  %v430_v43 = vstv %s429_s26  ;;  %s769_s26 = sld [smem:[#allocation2 + %s768_s29]]  ;;  %s1108_s29 = sadd.s32 14, %s5093_s18 }
  0x44   : > { %v367_v38 = vmul.f32 %v362_v32, %v5116_v10  ;;  %v370_v39 = vmul.f32 %v362_v32, %v5122_v13  ;;  %v369_v40 = vmul.f32 %v362_v32, %v5125_v14  ;;  %v372_v41 = vmul.f32 %v362_v32, %v5130_v17 }
  0x45   : > { %v371_v42 = vmul.f32 %v362_v32, %v5133_v18  ;;  %v432_v44 = vmul.f32 %v430_v43, %v5106_v4  ;;  %v431_v45 = vmul.f32 %v430_v43, %v5100_v1  ;;  %v434_v46 = vmul.f32 %v430_v43, %v5103_v3 }
  0x46   : > { %v433_v47 = vmul.f32 %v430_v43, %v5097_v0  ;;  %v436_v48 = vmul.f32 %v430_v43, %v5113_v9  ;;  %v435_v49 = vmul.f32 %v430_v43, %v5116_v10  ;;  %v438_v50 = vmul.f32 %v430_v43, %v5122_v13 }
  0x47   : > { %257 = vrot.lane.b32.xlu1 %v232_v11, %s4901_s19  ;;  %255 = vrot.lane.b32.xlu0 %v231_v12, %s4901_s19  ;;  %v437_v51 = vmul.f32 %v430_v43, %v5125_v14  ;;  %v440_v52 = vmul.f32 %v430_v43, %v5130_v17  ;;  %v439_v53 = vmul.f32 %v430_v43, %v5133_v18  ;;  %v498_v54 = vstv %s497_s3  ;;  %s837_s3 = sld [smem:[#allocation2 + %s836_s17]]  ;;  %s1176_s17 = sadd.s32 15, %s5093_s18 }
  0x48   : > { %v500_v55 = vmul.f32 %v498_v54, %v5106_v4  ;;  %v499_v56 = vmul.f32 %v498_v54, %v5100_v1  ;;  %v502_v57 = vmul.f32 %v498_v54, %v5103_v3  ;;  %v501_v58 = vmul.f32 %v498_v54, %v5097_v0 }
  0x49   : > { %v504_v59 = vmul.f32 %v498_v54, %v5113_v9  ;;  %v503_v60 = vmul.f32 %v498_v54, %v5116_v10  ;;  %v506_v61 = vmul.f32 %v498_v54, %v5122_v13  ;;  %v505_v62 = vmul.f32 %v498_v54, %v5125_v14 }
  0x4a   : > { %v508_v63 = vmul.f32 %v498_v54, %v5130_v17  ;;  %v507_v2 = vmul.f32 %v498_v54, %v5133_v18  ;;  %v566_v5 = vstv %s565_s24  ;;  %v702_v43 = vstv %s701_s27  ;;  %s905_s24 = sld [smem:[#allocation2 + %s904_s22]]  ;;  %s1244_s22 = sadd.s32 16, %s5093_s18 }
  0x4b   : > { %261 = vrot.lane.b32.xlu1 %v234_v15, %s4901_s19  ;;  %259 = vrot.lane.b32.xlu0 %v233_v16, %s4901_s19  ;;  %v568_v6 = vmul.f32 %v566_v5, %v5106_v4  ;;  %v567_v7 = vmul.f32 %v566_v5, %v5100_v1  ;;  %v570_v8 = vmul.f32 %v566_v5, %v5103_v3  ;;  %s1041_s27 = sld [smem:[#allocation2 + %s1040_s16]]  ;;  %s1380_s16 = sadd.s32 18, %s5093_s18 }
  0x4c   : > { %v569_v11 = vmul.f32 %v566_v5, %v5097_v0  ;;  %v572_v12 = vmul.f32 %v566_v5, %v5113_v9  ;;  %v571_v15 = vmul.f32 %v566_v5, %v5116_v10  ;;  %v574_v16 = vmul.f32 %v566_v5, %v5122_v13 }
  0x4d   : > { %v575_v21 = vmul.f32 %v566_v5, %v5133_v18  ;;  %v708_v54 = vmul.f32 %v702_v43, %v5113_v9 }
  0x4f   : > { %265 = vrot.lane.b32.xlu1 %v236_v19, %s4901_s19  ;;  %263 = vrot.lane.b32.xlu0 %v235_v20, %s4901_s19  ;;  %s4906_s19 = smov 122   ;;  %v573_v19 = vmul.f32 %v566_v5, %v5125_v14  ;;  %v576_v20 = vmul.f32 %v566_v5, %v5130_v17 }
  0x53   : > { %317 = vrot.lane.b32.xlu1 %v296_v22, %s4902_s8  ;;  %315 = vrot.lane.b32.xlu0 %v295_v23, %s4902_s8  ;;  %v634_v22 = vstv %s633_s7  ;;  %s973_s7 = sld [smem:[#allocation2 + %s972_s5]]  ;;  %s1312_s5 = sadd.s32 17, %s5093_s18 }
  0x57   : > { %321 = vrot.lane.b32.xlu1 %v298_v24, %s4902_s8  ;;  %319 = vrot.lane.b32.xlu0 %v297_v25, %s4902_s8  ;;  %v636_v25 = vmul.f32 %v634_v22, %v5106_v4 }
  0x5b   : > { %325 = vrot.lane.b32.xlu1 %v300_v26, %s4902_s8  ;;  %323 = vrot.lane.b32.xlu0 %v299_v27, %s4902_s8  ;;  %v635_v26 = vmul.f32 %v634_v22, %v5100_v1 }
  0x5f   : > { %329 = vrot.lane.b32.xlu1 %v302_v28, %s4902_s8  ;;  %327 = vrot.lane.b32.xlu0 %v301_v29, %s4902_s8  ;;  %v638_v29 = vmul.f32 %v634_v22, %v5103_v3 }
  0x63   : > { %333 = vrot.lane.b32.xlu1 %v304_v30, %s4902_s8  ;;  %331 = vrot.lane.b32.xlu0 %v303_v31, %s4902_s8  ;;  %s4907_s8 = smov 121   ;;  %v637_v30 = vmul.f32 %v634_v22, %v5097_v0 }
  0x67   : > { %385 = vrot.lane.b32.xlu1 %v364_v33, %s4903_s28  ;;  %383 = vrot.lane.b32.xlu0 %v363_v34, %s4903_s28  ;;  %v640_v33 = vmul.f32 %v634_v22, %v5113_v9  ;;  %v639_v34 = vmul.f32 %v634_v22, %v5116_v10 }
  0x6b   : > { %389 = vrot.lane.b32.xlu1 %v366_v35, %s4903_s28  ;;  %387 = vrot.lane.b32.xlu0 %v365_v36, %s4903_s28 }
  0x6f   : > { %393 = vrot.lane.b32.xlu1 %v368_v37, %s4903_s28  ;;  %391 = vrot.lane.b32.xlu0 %v367_v38, %s4903_s28  ;;  %v642_v37 = vmul.f32 %v634_v22, %v5122_v13  ;;  %v641_v38 = vmul.f32 %v634_v22, %v5125_v14 }
  0x73   : > { %397 = vrot.lane.b32.xlu1 %v370_v39, %s4903_s28  ;;  %395 = vrot.lane.b32.xlu0 %v369_v40, %s4903_s28 }
  0x77   : > { %401 = vrot.lane.b32.xlu1 %v372_v41, %s4903_s28  ;;  %399 = vrot.lane.b32.xlu0 %v371_v42, %s4903_s28  ;;  %v644_v41 = vmul.f32 %v634_v22, %v5130_v17  ;;  %v643_v42 = vmul.f32 %v634_v22, %v5133_v18  ;;  %s4908_s28 = smov 120  }
  0x7b   : > { %453 = vrot.lane.b32.xlu1 %v432_v44, %s4904_s30  ;;  %451 = vrot.lane.b32.xlu0 %v431_v45, %s4904_s30 }
  0x7f   : > { %457 = vrot.lane.b32.xlu1 %v434_v46, %s4904_s30  ;;  %455 = vrot.lane.b32.xlu0 %v433_v47, %s4904_s30  ;;  %v704_v46 = vmul.f32 %v702_v43, %v5106_v4  ;;  %v703_v47 = vmul.f32 %v702_v43, %v5100_v1 }
  0x83   : > { %461 = vrot.lane.b32.xlu1 %v436_v48, %s4904_s30  ;;  %459 = vrot.lane.b32.xlu0 %v435_v49, %s4904_s30 }
  0x87   : > { %465 = vrot.lane.b32.xlu1 %v438_v50, %s4904_s30  ;;  %463 = vrot.lane.b32.xlu0 %v437_v51, %s4904_s30  ;;  %v706_v50 = vmul.f32 %v702_v43, %v5103_v3  ;;  %v705_v51 = vmul.f32 %v702_v43, %v5097_v0 }
  0x8b   : > { %469 = vrot.lane.b32.xlu1 %v440_v52, %s4904_s30  ;;  %467 = vrot.lane.b32.xlu0 %v439_v53, %s4904_s30  ;;  %s4909_s30 = smov 119  }
  0x8f   : > { %521 = vrot.lane.b32.xlu1 %v500_v55, %s4905_s4  ;;  %519 = vrot.lane.b32.xlu0 %v499_v56, %s4905_s4  ;;  %v707_v55 = vmul.f32 %v702_v43, %v5116_v10 }
  0x93   : > { %525 = vrot.lane.b32.xlu1 %v502_v57, %s4905_s4  ;;  %523 = vrot.lane.b32.xlu0 %v501_v58, %s4905_s4  ;;  %v710_v58 = vmul.f32 %v702_v43, %v5122_v13 }
  0x97   : > { %529 = vrot.lane.b32.xlu1 %v504_v59, %s4905_s4  ;;  %527 = vrot.lane.b32.xlu0 %v503_v60, %s4905_s4  ;;  %v709_v59 = vmul.f32 %v702_v43, %v5125_v14 }
  0x9b   : > { %533 = vrot.lane.b32.xlu1 %v506_v61, %s4905_s4  ;;  %531 = vrot.lane.b32.xlu0 %v505_v62, %s4905_s4  ;;  %v712_v62 = vmul.f32 %v702_v43, %v5130_v17 }
  0x9f   : > { %537 = vrot.lane.b32.xlu1 %v508_v63, %s4905_s4  ;;  %535 = vrot.lane.b32.xlu0 %v507_v2, %s4905_s4  ;;  %v711_v63 = vmul.f32 %v702_v43, %v5133_v18  ;;  %v770_v2 = vstv %s769_s26  ;;  %s4910_s4 = smov 118   ;;  %s1109_s26 = sld [smem:[#allocation2 + %s1108_s29]] }
  0xa0   : > { %v775_v22 = vmul.f32 %v770_v2, %v5116_v10  ;;  %s1448_s29 = sadd.s32 19, %s5093_s18 }
  0xa3   : > { %589 = vrot.lane.b32.xlu1 %v568_v6, %s4906_s19  ;;  %587 = vrot.lane.b32.xlu0 %v567_v7, %s4906_s19  ;;  %v772_v7 = vmul.f32 %v770_v2, %v5106_v4 }
  0xa7   : > { %593 = vrot.lane.b32.xlu1 %v570_v8, %s4906_s19  ;;  %591 = vrot.lane.b32.xlu0 %v569_v11, %s4906_s19  ;;  %v771_v8 = vmul.f32 %v770_v2, %v5100_v1 }
  0xab   : > { %597 = vrot.lane.b32.xlu1 %v572_v12, %s4906_s19  ;;  %595 = vrot.lane.b32.xlu0 %v571_v15, %s4906_s19  ;;  %v774_v15 = vmul.f32 %v770_v2, %v5103_v3 }
  0xaf   : > { %601 = vrot.lane.b32.xlu1 %v574_v16, %s4906_s19  ;;  %599 = vrot.lane.b32.xlu0 %v573_v19, %s4906_s19  ;;  %v773_v16 = vmul.f32 %v770_v2, %v5097_v0 }
  0xb1   : > { %v5192_v23 = vpop.permute.xlu1 %251  ;;  %v5194_v24 = vpop.permute.xlu0 %247 }
  0xb3   : > { %605 = vrot.lane.b32.xlu1 %v576_v20, %s4906_s19  ;;  %603 = vrot.lane.b32.xlu0 %v575_v21, %s4906_s19  ;;  %v776_v21 = vmul.f32 %v770_v2, %v5113_v9  ;;  %s4911_s19 = smov 117  }
  0xb5   : > { %v5198_v27 = vpop.permute.xlu1 %253  ;;  %v5200_v28 = vpop.permute.xlu0 %249 }
  0xb7   : > { %657 = vrot.lane.b32.xlu1 %v636_v25, %s4907_s8  ;;  %655 = vrot.lane.b32.xlu0 %v635_v26, %s4907_s8 }
  0xb9   : > { %v5204_v31 = vpop.permute.xlu1 %257  ;;  %v5206_v32 = vpop.permute.xlu0 %255 }
  0xbb   : > { %661 = vrot.lane.b32.xlu1 %v638_v29, %s4907_s8  ;;  %659 = vrot.lane.b32.xlu0 %v637_v30, %s4907_s8  ;;  %v778_v29 = vmul.f32 %v770_v2, %v5122_v13  ;;  %v777_v30 = vmul.f32 %v770_v2, %v5125_v14 }
  0xbd   : > { %v5211_v35 = vpop.permute.xlu1 %261  ;;  %v5213_v36 = vpop.permute.xlu0 %259 }
  0xbf   : > { %665 = vrot.lane.b32.xlu1 %v640_v33, %s4907_s8  ;;  %663 = vrot.lane.b32.xlu0 %v639_v34, %s4907_s8 }
  0xc1   : > { %v5217_v39 = vpop.permute.xlu1 %265  ;;  %v5219_v40 = vpop.permute.xlu0 %263 }
  0xc3   : > { %669 = vrot.lane.b32.xlu1 %v642_v37, %s4907_s8  ;;  %667 = vrot.lane.b32.xlu0 %v641_v38, %s4907_s8  ;;  %v780_v37 = vmul.f32 %v770_v2, %v5130_v17  ;;  %v779_v38 = vmul.f32 %v770_v2, %v5133_v18 }
  0xc5   : > { %v5223_v44 = vpop.permute.xlu1 %317  ;;  %v5225_v45 = vpop.permute.xlu0 %315 }
  0xc7   : > { %673 = vrot.lane.b32.xlu1 %v644_v41, %s4907_s8  ;;  %671 = vrot.lane.b32.xlu0 %v643_v42, %s4907_s8  ;;  %v838_v41 = vstv %s837_s3  ;;  %s4912_s8 = smov 116   ;;  %s1177_s3 = sld [smem:[#allocation2 + %s1176_s17]] }
  0xc8   : > { %s1516_s17 = sadd.s32 20, %s5093_s18 }
  0xc9   : > { %v5229_v48 = vpop.permute.xlu1 %321  ;;  %v5231_v49 = vpop.permute.xlu0 %319 }
  0xcb   : > { %725 = vrot.lane.b32.xlu1 %v704_v46, %s4908_s28  ;;  %723 = vrot.lane.b32.xlu0 %v703_v47, %s4908_s28  ;;  %v840_v46 = vmul.f32 %v838_v41, %v5106_v4  ;;  %v839_v47 = vmul.f32 %v838_v41, %v5100_v1 }
  0xcd   : > { %v5235_v52 = vpop.permute.xlu1 %325  ;;  %v5237_v53 = vpop.permute.xlu0 %323 }
  0xcf   : > { %729 = vrot.lane.b32.xlu1 %v706_v50, %s4908_s28  ;;  %727 = vrot.lane.b32.xlu0 %v705_v51, %s4908_s28 }
  0xd1   : > { %v5242_v56 = vpop.permute.xlu1 %329  ;;  %v5244_v57 = vpop.permute.xlu0 %327 }
  0xd3   : > { %733 = vrot.lane.b32.xlu1 %v708_v54, %s4908_s28  ;;  %731 = vrot.lane.b32.xlu0 %v707_v55, %s4908_s28  ;;  %v842_v54 = vmul.f32 %v838_v41, %v5103_v3  ;;  %v841_v55 = vmul.f32 %v838_v41, %v5097_v0 }
  0xd5   : > { %v5248_v60 = vpop.permute.xlu1 %333  ;;  %v5250_v61 = vpop.permute.xlu0 %331 }
  0xd7   : > { %737 = vrot.lane.b32.xlu1 %v710_v58, %s4908_s28  ;;  %735 = vrot.lane.b32.xlu0 %v709_v59, %s4908_s28 }
  0xd9   : > { %v5254_v5 = vpop.permute.xlu1 %385  ;;  %v5256_v6 = vpop.permute.xlu0 %383 }
  0xdb   : > { %741 = vrot.lane.b32.xlu1 %v712_v62, %s4908_s28  ;;  %739 = vrot.lane.b32.xlu0 %v711_v63, %s4908_s28  ;;  %v844_v62 = vmul.f32 %v838_v41, %v5113_v9  ;;  %v843_v63 = vmul.f32 %v838_v41, %v5116_v10  ;;  %s4913_s28 = smov 115  }
  0xdd   : > { %v5260_v11 = vpop.permute.xlu1 %389  ;;  %v5262_v12 = vpop.permute.xlu0 %387 }
  0xdf   : > { %793 = vrot.lane.b32.xlu1 %v772_v7, %s4909_s30  ;;  %791 = vrot.lane.b32.xlu0 %v771_v8, %s4909_s30  ;;  %v846_v8 = vmul.f32 %v838_v41, %v5122_v13 }
  0xe1   : > { %v5266_v19 = vpop.permute.xlu1 %393  ;;  %v5268_v20 = vpop.permute.xlu0 %391 }
  0xe3   : > { %797 = vrot.lane.b32.xlu1 %v774_v15, %s4909_s30  ;;  %795 = vrot.lane.b32.xlu0 %v773_v16, %s4909_s30  ;;  %v845_v15 = vmul.f32 %v838_v41, %v5125_v14 }
  0xe5   : > { %v5273_v25 = vpop.permute.xlu1 %397  ;;  %v5275_v26 = vpop.permute.xlu0 %395 }
  0xe7   : > { %801 = vrot.lane.b32.xlu1 %v776_v21, %s4909_s30  ;;  %799 = vrot.lane.b32.xlu0 %v775_v22, %s4909_s30  ;;  %v848_v22 = vmul.f32 %v838_v41, %v5130_v17 }
  0xe9   : > { %v5279_v33 = vpop.permute.xlu1 %401  ;;  %v5281_v34 = vpop.permute.xlu0 %399 }
  0xeb   : > { %805 = vrot.lane.b32.xlu1 %v778_v29, %s4909_s30  ;;  %803 = vrot.lane.b32.xlu0 %v777_v30, %s4909_s30  ;;  %v847_v29 = vmul.f32 %v838_v41, %v5133_v18  ;;  %v906_v30 = vstv %s905_s24  ;;  %s1245_s24 = sld [smem:[#allocation2 + %s1244_s22]]  ;;  %s1584_s22 = sadd.s32 21, %s5093_s18 }
  0xec   : > { %v910_v41 = vmul.f32 %v906_v30, %v5103_v3 }
  0xed   : > { %v5285_v42 = vpop.permute.xlu1 %453  ;;  %v5287_v43 = vpop.permute.xlu0 %451 }
  0xef   : > { %809 = vrot.lane.b32.xlu1 %v780_v37, %s4909_s30  ;;  %807 = vrot.lane.b32.xlu0 %v779_v38, %s4909_s30  ;;  %s4914_s30 = smov 114  }
  0xf1   : > { %v5291_v50 = vpop.permute.xlu1 %457  ;;  %v5293_v51 = vpop.permute.xlu0 %455 }
  0xf3   : > { %861 = vrot.lane.b32.xlu1 %v840_v46, %s4910_s4  ;;  %859 = vrot.lane.b32.xlu0 %v839_v47, %s4910_s4  ;;  %v908_v46 = vmul.f32 %v906_v30, %v5106_v4  ;;  %v907_v47 = vmul.f32 %v906_v30, %v5100_v1 }
  0xf5   : > { %v5297_v58 = vpop.permute.xlu1 %461  ;;  %v5299_v59 = vpop.permute.xlu0 %459 }
  0xf7   : > { %865 = vrot.lane.b32.xlu1 %v842_v54, %s4910_s4  ;;  %863 = vrot.lane.b32.xlu0 %v841_v55, %s4910_s4 }
  0xf9   : > { %v5304_v2 = vpop.permute.xlu1 %465  ;;  %v5306_v7 = vpop.permute.xlu0 %463 }
  0xfb   : > { %869 = vrot.lane.b32.xlu1 %v844_v62, %s4910_s4  ;;  %867 = vrot.lane.b32.xlu0 %v843_v63, %s4910_s4  ;;  %v909_v62 = vmul.f32 %v906_v30, %v5097_v0 }
  0xfd   : > { %v5310_v16 = vpop.permute.xlu1 %469  ;;  %v5312_v21 = vpop.permute.xlu0 %467 }
  0xff   : > { %873 = vrot.lane.b32.xlu1 %v846_v8, %s4910_s4  ;;  %871 = vrot.lane.b32.xlu0 %v845_v15, %s4910_s4  ;;  %v912_v15 = vmul.f32 %v906_v30, %v5113_v9 }
 0x101   : > { %v5316_v37 = vpop.permute.xlu1 %521  ;;  %v5318_v38 = vpop.permute.xlu0 %519 }
 0x102   : > { %9192 = vst [vmem:[#allocation11_spill] sm:$0xff] %v5316_v37  ;;  %9193 = vst [vmem:[#allocation12_spill] sm:$0xff] %v5318_v38 }
 0x103   : > { %877 = vrot.lane.b32.xlu1 %v848_v22, %s4910_s4  ;;  %875 = vrot.lane.b32.xlu0 %v847_v29, %s4910_s4  ;;  %v911_v22 = vmul.f32 %v906_v30, %v5116_v10  ;;  %s4915_s4 = smov 113  }
 0x105   : > { %v5322_v54 = vpop.permute.xlu1 %525  ;;  %v5324_v55 = vpop.permute.xlu0 %523 }
 0x106   : > { %9194 = vst [vmem:[#allocation13_spill] sm:$0xff] %v5322_v54  ;;  %9195 = vst [vmem:[#allocation14_spill] sm:$0xff] %v5324_v55  ;;  %v974_v55 = vstv %s973_s7  ;;  %s1313_s7 = sld [smem:[#allocation2 + %s1312_s5]]  ;;  %s1652_s5 = sadd.s32 22, %s5093_s18 }
 0x107   : > { %929 = vrot.lane.b32.xlu1 %v908_v46, %s4911_s19  ;;  %927 = vrot.lane.b32.xlu0 %v907_v47, %s4911_s19  ;;  %v914_v47 = vmul.f32 %v906_v30, %v5122_v13 }
 0x109   : > { %v5328_v63 = vpop.permute.xlu1 %529  ;;  %v5330_v8 = vpop.permute.xlu0 %527 }
 0x10a   : > { %9196 = vst [vmem:[#allocation15_spill] sm:$0xff] %v5328_v63  ;;  %9197 = vst [vmem:[#allocation16_spill] sm:$0xff] %v5330_v8  ;;  %v913_v63 = vmul.f32 %v906_v30, %v5125_v14 }
 0x10b   : > { %933 = vrot.lane.b32.xlu1 %v910_v41, %s4911_s19  ;;  %931 = vrot.lane.b32.xlu0 %v909_v62, %s4911_s19  ;;  %v916_v41 = vmul.f32 %v906_v30, %v5130_v17  ;;  %v915_v62 = vmul.f32 %v906_v30, %v5133_v18  ;;  %v978_v30 = vmul.f32 %v974_v55, %v5103_v3 }
 0x10d   : > { %v5335_v29 = vpop.permute.xlu1 %533  ;;  %v5337_v46 = vpop.permute.xlu0 %531 }
 0x10e   : > { %9198 = vst [vmem:[#allocation17_spill] sm:$0xff] %v5335_v29  ;;  %9199 = vst [vmem:[#allocation18_spill] sm:$0xff] %v5337_v46 }
 0x10f   : > { %937 = vrot.lane.b32.xlu1 %v912_v15, %s4911_s19  ;;  %935 = vrot.lane.b32.xlu0 %v911_v22, %s4911_s19  ;;  %v976_v22 = vmul.f32 %v974_v55, %v5106_v4 }
 0x111   : > { %v5341_v54 = vpop.permute.xlu1 %537  ;;  %v5343_v8 = vpop.permute.xlu0 %535 }
 0x112   : > { %9200 = vst [vmem:[#allocation19_spill] sm:$0xff] %v5341_v54  ;;  %9201 = vst [vmem:[#allocation20_spill] sm:$0xff] %v5343_v8  ;;  %v975_v54 = vmul.f32 %v974_v55, %v5100_v1  ;;  %v1042_v8 = vstv %s1041_s27  ;;  %s1381_s27 = sld [smem:[#allocation2 + %s1380_s16]]  ;;  %s1720_s16 = sadd.s32 23, %s5093_s18 }
 0x113   : > { %941 = vrot.lane.b32.xlu1 %v914_v47, %s4911_s19  ;;  %939 = vrot.lane.b32.xlu0 %v913_v63, %s4911_s19  ;;  %v977_v63 = vmul.f32 %v974_v55, %v5097_v0 }
 0x115   : > { %v5347_v29 = vpop.permute.xlu1 %589  ;;  %v5349_v15 = vpop.permute.xlu0 %587 }
 0x116   : > { %9202 = vst [vmem:[#allocation21_spill] sm:$0xff] %v5347_v29  ;;  %9203 = vst [vmem:[#allocation22_spill] sm:$0xff] %v5349_v15 }
 0x117   : > { %945 = vrot.lane.b32.xlu1 %v916_v41, %s4911_s19  ;;  %943 = vrot.lane.b32.xlu0 %v915_v62, %s4911_s19  ;;  %v980_v41 = vmul.f32 %v974_v55, %v5113_v9  ;;  %v979_v62 = vmul.f32 %v974_v55, %v5116_v10  ;;  %s4916_s19 = smov 112  }
 0x119   : > { %v5353_v46 = vpop.permute.xlu1 %593  ;;  %v5355_v47 = vpop.permute.xlu0 %591 }
 0x11a   : > { %9204 = vst [vmem:[#allocation23_spill] sm:$0xff] %v5353_v46  ;;  %9205 = vst [vmem:[#allocation24_spill] sm:$0xff] %v5355_v47 }
 0x11b   : > { %997 = vrot.lane.b32.xlu1 %v976_v22, %s4912_s8  ;;  %995 = vrot.lane.b32.xlu0 %v975_v54, %s4912_s8  ;;  %v982_v54 = vmul.f32 %v974_v55, %v5122_v13 }
 0x11d   : > { %v5359_v29 = vpop.permute.xlu1 %597  ;;  %v5361_v15 = vpop.permute.xlu0 %595 }
 0x11e   : > { %9206 = vst [vmem:[#allocation25_spill] sm:$0xff] %v5359_v29  ;;  %9207 = vst [vmem:[#allocation26_spill] sm:$0xff] %v5361_v15  ;;  %v981_v29 = vmul.f32 %v974_v55, %v5125_v14 }
 0x11f   : > { %1001 = vrot.lane.b32.xlu1 %v978_v30, %s4912_s8  ;;  %999 = vrot.lane.b32.xlu0 %v977_v63, %s4912_s8  ;;  %v984_v30 = vmul.f32 %v974_v55, %v5130_v17  ;;  %v983_v63 = vmul.f32 %v974_v55, %v5133_v18  ;;  %v1046_v55 = vmul.f32 %v1042_v8, %v5103_v3 }
 0x121   : > { %v5366_v46 = vpop.permute.xlu1 %601  ;;  %v5368_v22 = vpop.permute.xlu0 %599 }
 0x122   : > { %9208 = vst [vmem:[#allocation27_spill] sm:$0xff] %v5366_v46  ;;  %9209 = vst [vmem:[#allocation28_spill] sm:$0xff] %v5368_v22 }
 0x123   : > { %1005 = vrot.lane.b32.xlu1 %v980_v41, %s4912_s8  ;;  %1003 = vrot.lane.b32.xlu0 %v979_v62, %s4912_s8  ;;  %v1044_v62 = vmul.f32 %v1042_v8, %v5106_v4 }
 0x125   : > { %v5372_v47 = vpop.permute.xlu1 %605  ;;  %v5374_v15 = vpop.permute.xlu0 %603 }
 0x126   : > { %9210 = vst [vmem:[#allocation29_spill] sm:$0xff] %v5372_v47  ;;  %9211 = vst [vmem:[#allocation30_spill] sm:$0xff] %v5374_v15  ;;  %v1043_v47 = vmul.f32 %v1042_v8, %v5100_v1  ;;  %v1110_v15 = vstv %s1109_s26  ;;  %s1449_s26 = sld [smem:[#allocation2 + %s1448_s29]]  ;;  %s1788_s29 = sadd.s32 24, %s5093_s18 }
 0x127   : > { %1009 = vrot.lane.b32.xlu1 %v982_v54, %s4912_s8  ;;  %1007 = vrot.lane.b32.xlu0 %v981_v29, %s4912_s8  ;;  %v1045_v29 = vmul.f32 %v1042_v8, %v5097_v0 }
 0x129   : > { %v5378_v46 = vpop.permute.xlu1 %657  ;;  %v5380_v41 = vpop.permute.xlu0 %655 }
 0x12a   : > { %9212 = vst [vmem:[#allocation31_spill] sm:$0xff] %v5378_v46  ;;  %9213 = vst [vmem:[#allocation32_spill] sm:$0xff] %v5380_v41 }
 0x12b   : > { %1013 = vrot.lane.b32.xlu1 %v984_v30, %s4912_s8  ;;  %1011 = vrot.lane.b32.xlu0 %v983_v63, %s4912_s8  ;;  %v1048_v30 = vmul.f32 %v1042_v8, %v5113_v9  ;;  %v1047_v63 = vmul.f32 %v1042_v8, %v5116_v10  ;;  %s4917_s8 = smov 111  }
 0x12d   : > { %v5384_v22 = vpop.permute.xlu1 %661  ;;  %v5386_v54 = vpop.permute.xlu0 %659 }
 0x12e   : > { %9214 = vst [vmem:[#allocation33_spill] sm:$0xff] %v5384_v22  ;;  %9215 = vst [vmem:[#allocation34_spill] sm:$0xff] %v5386_v54 }
 0x12f   : > { %1065 = vrot.lane.b32.xlu1 %v1044_v62, %s4913_s28  ;;  %1063 = vrot.lane.b32.xlu0 %v1043_v47, %s4913_s28  ;;  %v1050_v47 = vmul.f32 %v1042_v8, %v5122_v13 }
 0x131   : > { %v5390_v46 = vpop.permute.xlu1 %665  ;;  %v5392_v41 = vpop.permute.xlu0 %663 }
 0x132   : > { %9216 = vst [vmem:[#allocation35_spill] sm:$0xff] %v5390_v46  ;;  %9217 = vst [vmem:[#allocation36_spill] sm:$0xff] %v5392_v41  ;;  %v1049_v46 = vmul.f32 %v1042_v8, %v5125_v14 }
 0x133   : > { %1069 = vrot.lane.b32.xlu1 %v1046_v55, %s4913_s28  ;;  %1067 = vrot.lane.b32.xlu0 %v1045_v29, %s4913_s28  ;;  %v1052_v55 = vmul.f32 %v1042_v8, %v5130_v17  ;;  %v1051_v29 = vmul.f32 %v1042_v8, %v5133_v18  ;;  %v1114_v8 = vmul.f32 %v1110_v15, %v5103_v3 }
 0x135   : > { %v5397_v22 = vpop.permute.xlu1 %669  ;;  %v5399_v62 = vpop.permute.xlu0 %667 }
 0x136   : > { %9218 = vst [vmem:[#allocation37_spill] sm:$0xff] %v5397_v22  ;;  %9219 = vst [vmem:[#allocation38_spill] sm:$0xff] %v5399_v62 }
 0x137   : > { %1073 = vrot.lane.b32.xlu1 %v1048_v30, %s4913_s28  ;;  %1071 = vrot.lane.b32.xlu0 %v1047_v63, %s4913_s28  ;;  %v1112_v63 = vmul.f32 %v1110_v15, %v5106_v4 }
 0x139   : > { %v5403_v54 = vpop.permute.xlu1 %673  ;;  %v5405_v41 = vpop.permute.xlu0 %671 }
 0x13a   : > { %9220 = vst [vmem:[#allocation39_spill] sm:$0xff] %v5403_v54  ;;  %9221 = vst [vmem:[#allocation40_spill] sm:$0xff] %v5405_v41  ;;  %v1111_v54 = vmul.f32 %v1110_v15, %v5100_v1  ;;  %v1178_v41 = vstv %s1177_s3  ;;  %s1517_s3 = sld [smem:[#allocation2 + %s1516_s17]]  ;;  %s1856_s17 = sadd.s32 25, %s5093_s18 }
 0x13b   : > { %1077 = vrot.lane.b32.xlu1 %v1050_v47, %s4913_s28  ;;  %1075 = vrot.lane.b32.xlu0 %v1049_v46, %s4913_s28  ;;  %v1113_v46 = vmul.f32 %v1110_v15, %v5097_v0 }
 0x13d   : > { %v5409_v22 = vpop.permute.xlu1 %725  ;;  %v5411_v30 = vpop.permute.xlu0 %723 }
 0x13e   : > { %9222 = vst [vmem:[#allocation41_spill] sm:$0xff] %v5409_v22  ;;  %9223 = vst [vmem:[#allocation42_spill] sm:$0xff] %v5411_v30 }
 0x13f   : > { %1081 = vrot.lane.b32.xlu1 %v1052_v55, %s4913_s28  ;;  %1079 = vrot.lane.b32.xlu0 %v1051_v29, %s4913_s28  ;;  %v1116_v55 = vmul.f32 %v1110_v15, %v5113_v9  ;;  %v1115_v29 = vmul.f32 %v1110_v15, %v5116_v10  ;;  %s4918_s28 = smov 110  }
 0x141   : > { %v5415_v62 = vpop.permute.xlu1 %729  ;;  %v5417_v47 = vpop.permute.xlu0 %727 }
 0x142   : > { %9224 = vst [vmem:[#allocation43_spill] sm:$0xff] %v5415_v62  ;;  %9225 = vst [vmem:[#allocation44_spill] sm:$0xff] %v5417_v47 }
 0x143   : > { %1133 = vrot.lane.b32.xlu1 %v1112_v63, %s4914_s30  ;;  %1131 = vrot.lane.b32.xlu0 %v1111_v54, %s4914_s30  ;;  %v1118_v54 = vmul.f32 %v1110_v15, %v5122_v13 }
 0x145   : > { %v5421_v22 = vpop.permute.xlu1 %733  ;;  %v5423_v30 = vpop.permute.xlu0 %731 }
 0x146   : > { %9226 = vst [vmem:[#allocation45_spill] sm:$0xff] %v5421_v22  ;;  %9227 = vst [vmem:[#allocation46_spill] sm:$0xff] %v5423_v30  ;;  %v1117_v22 = vmul.f32 %v1110_v15, %v5125_v14 }
 0x147   : > { %1137 = vrot.lane.b32.xlu1 %v1114_v8, %s4914_s30  ;;  %1135 = vrot.lane.b32.xlu0 %v1113_v46, %s4914_s30  ;;  %v1120_v8 = vmul.f32 %v1110_v15, %v5130_v17  ;;  %v1119_v46 = vmul.f32 %v1110_v15, %v5133_v18  ;;  %v1182_v15 = vmul.f32 %v1178_v41, %v5103_v3 }
 0x149   : > { %v5428_v62 = vpop.permute.xlu1 %737  ;;  %v5430_v63 = vpop.permute.xlu0 %735 }
 0x14a   : > { %9228 = vst [vmem:[#allocation47_spill] sm:$0xff] %v5428_v62  ;;  %9229 = vst [vmem:[#allocation48_spill] sm:$0xff] %v5430_v63 }
 0x14b   : > { %1141 = vrot.lane.b32.xlu1 %v1116_v55, %s4914_s30  ;;  %1139 = vrot.lane.b32.xlu0 %v1115_v29, %s4914_s30  ;;  %v1180_v29 = vmul.f32 %v1178_v41, %v5106_v4 }
 0x14d   : > { %v5434_v47 = vpop.permute.xlu1 %741  ;;  %v5436_v30 = vpop.permute.xlu0 %739 }
 0x14e   : > { %9230 = vst [vmem:[#allocation49_spill] sm:$0xff] %v5434_v47  ;;  %9231 = vst [vmem:[#allocation50_spill] sm:$0xff] %v5436_v30  ;;  %v1179_v47 = vmul.f32 %v1178_v41, %v5100_v1  ;;  %v1246_v30 = vstv %s1245_s24  ;;  %s1585_s24 = sld [smem:[#allocation2 + %s1584_s22]]  ;;  %s1924_s22 = sadd.s32 26, %s5093_s18 }
 0x14f   : > { %1145 = vrot.lane.b32.xlu1 %v1118_v54, %s4914_s30  ;;  %1143 = vrot.lane.b32.xlu0 %v1117_v22, %s4914_s30  ;;  %v1181_v22 = vmul.f32 %v1178_v41, %v5097_v0 }
 0x151   : > { %v5440_v62 = vpop.permute.xlu1 %793  ;;  %v5442_v55 = vpop.permute.xlu0 %791 }
 0x152   : > { %9232 = vst [vmem:[#allocation51_spill] sm:$0xff] %v5440_v62  ;;  %9233 = vst [vmem:[#allocation52_spill] sm:$0xff] %v5442_v55 }
 0x153   : > { %1149 = vrot.lane.b32.xlu1 %v1120_v8, %s4914_s30  ;;  %1147 = vrot.lane.b32.xlu0 %v1119_v46, %s4914_s30  ;;  %v1184_v8 = vmul.f32 %v1178_v41, %v5113_v9  ;;  %v1183_v46 = vmul.f32 %v1178_v41, %v5116_v10  ;;  %s4919_s30 = smov 109  }
 0x155   : > { %v5446_v63 = vpop.permute.xlu1 %797  ;;  %v5448_v54 = vpop.permute.xlu0 %795 }
 0x156   : > { %9234 = vst [vmem:[#allocation53_spill] sm:$0xff] %v5446_v63  ;;  %9235 = vst [vmem:[#allocation54_spill] sm:$0xff] %v5448_v54 }
 0x157   : > { %1201 = vrot.lane.b32.xlu1 %v1180_v29, %s4915_s4  ;;  %1199 = vrot.lane.b32.xlu0 %v1179_v47, %s4915_s4  ;;  %v1186_v47 = vmul.f32 %v1178_v41, %v5122_v13 }
 0x159   : > { %v5452_v62 = vpop.permute.xlu1 %801  ;;  %v5454_v55 = vpop.permute.xlu0 %799 }
 0x15a   : > { %9236 = vst [vmem:[#allocation55_spill] sm:$0xff] %v5452_v62  ;;  %9237 = vst [vmem:[#allocation56_spill] sm:$0xff] %v5454_v55  ;;  %v1185_v62 = vmul.f32 %v1178_v41, %v5125_v14 }
 0x15b   : > { %1205 = vrot.lane.b32.xlu1 %v1182_v15, %s4915_s4  ;;  %1203 = vrot.lane.b32.xlu0 %v1181_v22, %s4915_s4  ;;  %v1188_v15 = vmul.f32 %v1178_v41, %v5130_v17  ;;  %v1187_v22 = vmul.f32 %v1178_v41, %v5133_v18  ;;  %v1250_v41 = vmul.f32 %v1246_v30, %v5103_v3 }
 0x15d   : > { %v5459_v63 = vpop.permute.xlu1 %805  ;;  %v5461_v29 = vpop.permute.xlu0 %803 }
 0x15e   : > { %9238 = vst [vmem:[#allocation57_spill] sm:$0xff] %v5459_v63  ;;  %9239 = vst [vmem:[#allocation58_spill] sm:$0xff] %v5461_v29 }
 0x15f   : > { %1209 = vrot.lane.b32.xlu1 %v1184_v8, %s4915_s4  ;;  %1207 = vrot.lane.b32.xlu0 %v1183_v46, %s4915_s4  ;;  %v1248_v46 = vmul.f32 %v1246_v30, %v5106_v4 }
 0x161   : > { %v5465_v54 = vpop.permute.xlu1 %809  ;;  %v5467_v55 = vpop.permute.xlu0 %807 }
 0x162   : > { %9240 = vst [vmem:[#allocation59_spill] sm:$0xff] %v5465_v54  ;;  %9241 = vst [vmem:[#allocation60_spill] sm:$0xff] %v5467_v55  ;;  %v1247_v54 = vmul.f32 %v1246_v30, %v5100_v1  ;;  %v1314_v55 = vstv %s1313_s7  ;;  %s1653_s7 = sld [smem:[#allocation2 + %s1652_s5]]  ;;  %s1992_s5 = sadd.s32 27, %s5093_s18 }
 0x163   : > { %1213 = vrot.lane.b32.xlu1 %v1186_v47, %s4915_s4  ;;  %1211 = vrot.lane.b32.xlu0 %v1185_v62, %s4915_s4  ;;  %v1249_v62 = vmul.f32 %v1246_v30, %v5097_v0 }
 0x165   : > { %v5471_v63 = vpop.permute.xlu1 %861  ;;  %v5473_v8 = vpop.permute.xlu0 %859 }
 0x166   : > { %9242 = vst [vmem:[#allocation61_spill] sm:$0xff] %v5471_v63  ;;  %9243 = vst [vmem:[#allocation62_spill] sm:$0xff] %v5473_v8 }
 0x167   : > { %1217 = vrot.lane.b32.xlu1 %v1188_v15, %s4915_s4  ;;  %1215 = vrot.lane.b32.xlu0 %v1187_v22, %s4915_s4  ;;  %v1252_v15 = vmul.f32 %v1246_v30, %v5113_v9  ;;  %v1251_v22 = vmul.f32 %v1246_v30, %v5116_v10  ;;  %s4920_s4 = smov 108  }
 0x169   : > { %v5477_v29 = vpop.permute.xlu1 %865  ;;  %v5479_v47 = vpop.permute.xlu0 %863 }
 0x16a   : > { %9244 = vst [vmem:[#allocation63_spill] sm:$0xff] %v5477_v29  ;;  %9245 = vst [vmem:[#allocation64_spill] sm:$0xff] %v5479_v47 }
 0x16b   : > { %1269 = vrot.lane.b32.xlu1 %v1248_v46, %s4916_s19  ;;  %1267 = vrot.lane.b32.xlu0 %v1247_v54, %s4916_s19  ;;  %v1254_v54 = vmul.f32 %v1246_v30, %v5122_v13 }
 0x16d   : > { %v5483_v63 = vpop.permute.xlu1 %869  ;;  %v5485_v8 = vpop.permute.xlu0 %867 }
 0x16e   : > { %9246 = vst [vmem:[#allocation65_spill] sm:$0xff] %v5483_v63  ;;  %9247 = vst [vmem:[#allocation66_spill] sm:$0xff] %v5485_v8  ;;  %v1253_v63 = vmul.f32 %v1246_v30, %v5125_v14 }
 0x16f   : > { %1273 = vrot.lane.b32.xlu1 %v1250_v41, %s4916_s19  ;;  %1271 = vrot.lane.b32.xlu0 %v1249_v62, %s4916_s19  ;;  %v1256_v41 = vmul.f32 %v1246_v30, %v5130_v17  ;;  %v1255_v62 = vmul.f32 %v1246_v30, %v5133_v18  ;;  %v1318_v30 = vmul.f32 %v1314_v55, %v5103_v3 }
 0x170   : > { %v1321_v3 = vmul.f32 %v1314_v55, %v5125_v14 }
 0x171   : > { %v5490_v29 = vpop.permute.xlu1 %873  ;;  %v5492_v46 = vpop.permute.xlu0 %871 }
 0x172   : > { %9248 = vst [vmem:[#allocation67_spill] sm:$0xff] %v5490_v29  ;;  %9249 = vst [vmem:[#allocation68_spill] sm:$0xff] %v5492_v46 }
 0x173   : > { %1277 = vrot.lane.b32.xlu1 %v1252_v15, %s4916_s19  ;;  %1275 = vrot.lane.b32.xlu0 %v1251_v22, %s4916_s19  ;;  %v1316_v22 = vmul.f32 %v1314_v55, %v5106_v4  ;;  %v1319_v4 = vmul.f32 %v1314_v55, %v5116_v10  ;;  %v1323_v10 = vmul.f32 %v1314_v55, %v5133_v18 }
 0x175   : > { %v5496_v47 = vpop.permute.xlu1 %877  ;;  %v5498_v8 = vpop.permute.xlu0 %875 }
 0x176   : > { %9250 = vst [vmem:[#allocation69_spill] sm:$0xff] %v5496_v47  ;;  %9251 = vst [vmem:[#allocation70_spill] sm:$0xff] %v5498_v8  ;;  %v1315_v47 = vmul.f32 %v1314_v55, %v5100_v1  ;;  %v1320_v1 = vmul.f32 %v1314_v55, %v5113_v9  ;;  %v1324_v9 = vmul.f32 %v1314_v55, %v5130_v17  ;;  %v1518_v8 = vstv %s1517_s3  ;;  %s1857_s3 = sld [smem:[#allocation2 + %s1856_s17]]  ;;  %s2196_s17 = sadd.s32 30, %s5093_s18 }
 0x177   : > { %1281 = vrot.lane.b32.xlu1 %v1254_v54, %s4916_s19  ;;  %1279 = vrot.lane.b32.xlu0 %v1253_v63, %s4916_s19  ;;  %v1317_v63 = vmul.f32 %v1314_v55, %v5097_v0  ;;  %v1322_v0 = vmul.f32 %v1314_v55, %v5122_v13  ;;  %v5538_v13 = vld [vmem:[%s5086_s6 + $0x8] sm:$0xff]  ;;  %v5552_v55 = vld [vmem:[%s5086_s6 + $0x18] sm:$0xff] }
 0x179   : > { %v5502_v29 = vpop.permute.xlu1 %929  ;;  %v5504_v15 = vpop.permute.xlu0 %927 }
 0x17a   : > { %9252 = vst [vmem:[#allocation71_spill] sm:$0xff] %v5502_v29  ;;  %9253 = vst [vmem:[#allocation72_spill] sm:$0xff] %v5504_v15 }
 0x17b   : > { %1285 = vrot.lane.b32.xlu1 %v1256_v41, %s4916_s19  ;;  %1283 = vrot.lane.b32.xlu0 %v1255_v62, %s4916_s19  ;;  %s4921_s19 = smov 107  }
 0x17d   : > { %v5508_v46 = vpop.permute.xlu1 %933  ;;  %v5510_v54 = vpop.permute.xlu0 %931 }
 0x17e   : > { %9254 = vst [vmem:[#allocation73_spill] sm:$0xff] %v5508_v46  ;;  %9255 = vst [vmem:[#allocation74_spill] sm:$0xff] %v5510_v54 }
 0x17f   : > { %1337 = vrot.lane.b32.xlu1 %v1316_v22, %s4917_s8  ;;  %1335 = vrot.lane.b32.xlu0 %v1315_v47, %s4917_s8 }
 0x181   : > { %v5514_v29 = vpop.permute.xlu1 %937  ;;  %v5516_v15 = vpop.permute.xlu0 %935 }
 0x182   : > { %9256 = vst [vmem:[#allocation75_spill] sm:$0xff] %v5514_v29  ;;  %9257 = vst [vmem:[#allocation76_spill] sm:$0xff] %v5516_v15 }
 0x183   : > { %1341 = vrot.lane.b32.xlu1 %v1318_v30, %s4917_s8  ;;  %1339 = vrot.lane.b32.xlu0 %v1317_v63, %s4917_s8  ;;  %v1382_v30 = vstv %s1381_s27  ;;  %s1721_s27 = sld [smem:[#allocation2 + %s1720_s16]]  ;;  %s2060_s16 = sadd.s32 28, %s5093_s18 }
 0x184   : > { %v1384_v14 = vmul.f32 %v5538_v13, %v1382_v30 }
 0x185   : > { %v5521_v41 = vpop.permute.xlu1 %941  ;;  %v5523_v62 = vpop.permute.xlu0 %939 }
 0x186   : > { %9258 = vst [vmem:[#allocation77_spill] sm:$0xff] %v5521_v41  ;;  %9259 = vst [vmem:[#allocation78_spill] sm:$0xff] %v5523_v62  ;;  %v1450_v62 = vstv %s1449_s26  ;;  %s1789_s26 = sld [smem:[#allocation2 + %s1788_s29]]  ;;  %s2128_s29 = sadd.s32 29, %s5093_s18 }
 0x187   : > { %1345 = vrot.lane.b32.xlu1 %v1320_v1, %s4917_s8  ;;  %1343 = vrot.lane.b32.xlu0 %v1319_v4, %s4917_s8  ;;  %v5542_v4 = vld [vmem:[%s5086_s6] sm:$0xff] }
 0x188   : > { %v1383_v17 = vmul.f32 %v5542_v4, %v1382_v30 }
 0x189   : > { %v5527_v47 = vpop.permute.xlu1 %945  ;;  %v5529_v22 = vpop.permute.xlu0 %943 }
 0x18a   : > { %9260 = vst [vmem:[#allocation79_spill] sm:$0xff] %v5527_v47  ;;  %9261 = vst [vmem:[#allocation80_spill] sm:$0xff] %v5529_v22 }
 0x18b   : > { %1349 = vrot.lane.b32.xlu1 %v1322_v0, %s4917_s8  ;;  %1347 = vrot.lane.b32.xlu0 %v1321_v3, %s4917_s8  ;;  %v1386_v3 = vmul.f32 %v5552_v55, %v1382_v30 }
 0x18d   : > { %v5533_v63 = vpop.permute.xlu1 %997  ;;  %v5535_v1 = vpop.permute.xlu0 %995 }
 0x18e   : > { %9262 = vst [vmem:[#allocation81_spill] sm:$0xff] %v5533_v63  ;;  %9263 = vst [vmem:[#allocation82_spill] sm:$0xff] %v5535_v1 }
 0x18f   : > { %1353 = vrot.lane.b32.xlu1 %v1324_v9, %s4917_s8  ;;  %1351 = vrot.lane.b32.xlu0 %v1323_v10, %s4917_s8  ;;  %v5556_v9 = vld [vmem:[%s5086_s6 + $0x10] sm:$0xff]  ;;  %s4922_s8 = smov 106  }
 0x190   : > { %v1385_v10 = vmul.f32 %v5556_v9, %v1382_v30 }
 0x191   : > { %v5545_v0 = vpop.permute.xlu1 %1001  ;;  %v5547_v18 = vpop.permute.xlu0 %999 }
 0x192   : > { %9264 = vst [vmem:[#allocation83_spill] sm:$0xff] %v5545_v0  ;;  %9265 = vst [vmem:[#allocation84_spill] sm:$0xff] %v5547_v18  ;;  %v5571_v18 = vld [vmem:[%s5086_s6 + $0x20] sm:$0xff] }
 0x193   : > { %1405 = vrot.lane.b32.xlu1 %v1384_v14, %s4918_s28  ;;  %1403 = vrot.lane.b32.xlu0 %v1383_v17, %s4918_s28  ;;  %v5567_v14 = vld [vmem:[%s5086_s6 + $0x28] sm:$0xff]  ;;  %v1387_v63 = vmul.f32 %v5571_v18, %v1382_v30 }
 0x194   : > { %v1388_v17 = vmul.f32 %v5567_v14, %v1382_v30 }
 0x195   : > { %v5559_v1 = vpop.permute.xlu1 %1005  ;;  %v5561_v0 = vpop.permute.xlu0 %1003 }
 0x196   : > { %9266 = vst [vmem:[#allocation85_spill] sm:$0xff] %v5559_v1  ;;  %9267 = vst [vmem:[#allocation86_spill] sm:$0xff] %v5561_v0  ;;  %v5585_v0 = vld [vmem:[%s5086_s6 + $0x30] sm:$0xff] }
 0x197   : > { %1409 = vrot.lane.b32.xlu1 %v1386_v3, %s4918_s28  ;;  %1407 = vrot.lane.b32.xlu0 %v1385_v10, %s4918_s28  ;;  %v5581_v3 = vld [vmem:[%s5086_s6 + $0x38] sm:$0xff]  ;;  %v1389_v22 = vmul.f32 %v5585_v0, %v1382_v30 }
 0x198   : > { %v1390_v10 = vmul.f32 %v5581_v3, %v1382_v30 }
 0x199   : > { %v5574_v1 = vpop.permute.xlu1 %1009  ;;  %v5576_v47 = vpop.permute.xlu0 %1007 }
 0x19a   : > { %9268 = vst [vmem:[#allocation87_spill] sm:$0xff] %v5574_v1  ;;  %9269 = vst [vmem:[#allocation88_spill] sm:$0xff] %v5576_v47  ;;  %v5595_v1 = vld [vmem:[%s5086_s6 + $0x48] sm:$0xff] }
 0x19b   : > { %1413 = vrot.lane.b32.xlu1 %v1388_v17, %s4918_s28  ;;  %1411 = vrot.lane.b32.xlu0 %v1387_v63, %s4918_s28  ;;  %v1392_v63 = vmul.f32 %v5595_v1, %v1382_v30  ;;  %v5599_v17 = vld [vmem:[%s5086_s6 + $0x40] sm:$0xff] }
 0x19c   : > { %v1391_v47 = vmul.f32 %v5599_v17, %v1382_v30  ;;  %v1454_v30 = vmul.f32 %v5552_v55, %v1450_v62 }
 0x19d   : > { %v5588_v41 = vpop.permute.xlu1 %1013  ;;  %v5590_v29 = vpop.permute.xlu0 %1011 }
 0x19e   : > { %9270 = vst [vmem:[#allocation89_spill] sm:$0xff] %v5588_v41  ;;  %9271 = vst [vmem:[#allocation90_spill] sm:$0xff] %v5590_v29 }
 0x19f   : > { %1417 = vrot.lane.b32.xlu1 %v1390_v10, %s4918_s28  ;;  %1415 = vrot.lane.b32.xlu0 %v1389_v22, %s4918_s28  ;;  %v1452_v22 = vmul.f32 %v5538_v13, %v1450_v62  ;;  %v1451_v10 = vmul.f32 %v5542_v4, %v1450_v62 }
 0x1a1   : > { %v5602_v15 = vpop.permute.xlu1 %1065  ;;  %v5604_v46 = vpop.permute.xlu0 %1063 }
 0x1a2   : > { %9272 = vst [vmem:[#allocation91_spill] sm:$0xff] %v5602_v15  ;;  %9273 = vst [vmem:[#allocation92_spill] sm:$0xff] %v5604_v46  ;;  %v1453_v15 = vmul.f32 %v5556_v9, %v1450_v62 }
 0x1a3   : > { %1421 = vrot.lane.b32.xlu1 %v1392_v63, %s4918_s28  ;;  %1419 = vrot.lane.b32.xlu0 %v1391_v47, %s4918_s28  ;;  %v1456_v47 = vmul.f32 %v5567_v14, %v1450_v62  ;;  %s4923_s28 = smov 105  }
 0x1a5   : > { %v5610_v41 = vpop.permute.xlu1 %1069  ;;  %v5612_v29 = vpop.permute.xlu0 %1067 }
 0x1a6   : > { %9274 = vst [vmem:[#allocation93_spill] sm:$0xff] %v5610_v41  ;;  %9275 = vst [vmem:[#allocation94_spill] sm:$0xff] %v5612_v29  ;;  %v1455_v41 = vmul.f32 %v5571_v18, %v1450_v62 }
 0x1a7   : > { %1473 = vrot.lane.b32.xlu1 %v1452_v22, %s4919_s30  ;;  %1471 = vrot.lane.b32.xlu0 %v1451_v10, %s4919_s30  ;;  %v1458_v10 = vmul.f32 %v5581_v3, %v1450_v62 }
 0x1a9   : > { %v5616_v46 = vpop.permute.xlu1 %1073  ;;  %v5618_v63 = vpop.permute.xlu0 %1071 }
 0x1aa   : > { %9276 = vst [vmem:[#allocation95_spill] sm:$0xff] %v5616_v46  ;;  %9277 = vst [vmem:[#allocation96_spill] sm:$0xff] %v5618_v63  ;;  %v1457_v46 = vmul.f32 %v5585_v0, %v1450_v62 }
 0x1ab   : > { %1477 = vrot.lane.b32.xlu1 %v1454_v30, %s4919_s30  ;;  %1475 = vrot.lane.b32.xlu0 %v1453_v15, %s4919_s30  ;;  %v1460_v15 = vmul.f32 %v5595_v1, %v1450_v62  ;;  %v1459_v30 = vmul.f32 %v5599_v17, %v1450_v62  ;;  %v1521_v62 = vmul.f32 %v5556_v9, %v1518_v8 }
 0x1ad   : > { %v5623_v29 = vpop.permute.xlu1 %1077  ;;  %v5625_v22 = vpop.permute.xlu0 %1075 }
 0x1ae   : > { %9278 = vst [vmem:[#allocation97_spill] sm:$0xff] %v5623_v29  ;;  %9279 = vst [vmem:[#allocation98_spill] sm:$0xff] %v5625_v22 }
 0x1af   : > { %1481 = vrot.lane.b32.xlu1 %v1456_v47, %s4919_s30  ;;  %1479 = vrot.lane.b32.xlu0 %v1455_v41, %s4919_s30  ;;  %v1520_v41 = vmul.f32 %v5538_v13, %v1518_v8 }
 0x1b1   : > { %v5629_v54 = vpop.permute.xlu1 %1081  ;;  %v5631_v63 = vpop.permute.xlu0 %1079 }
 0x1b2   : > { %9280 = vst [vmem:[#allocation99_spill] sm:$0xff] %v5629_v54  ;;  %9281 = vst [vmem:[#allocation100_spill] sm:$0xff] %v5631_v63  ;;  %v1519_v54 = vmul.f32 %v5542_v4, %v1518_v8  ;;  %v1586_v63 = vstv %s1585_s24  ;;  %s1925_s24 = sld [smem:[#allocation2 + %s1924_s22]]  ;;  %s2264_s22 = sadd.s32 31, %s5093_s18 }
 0x1b3   : > { %1485 = vrot.lane.b32.xlu1 %v1458_v10, %s4919_s30  ;;  %1483 = vrot.lane.b32.xlu0 %v1457_v46, %s4919_s30  ;;  %v1522_v46 = vmul.f32 %v5552_v55, %v1518_v8 }
 0x1b5   : > { %v5635_v29 = vpop.permute.xlu1 %1133  ;;  %v5637_v47 = vpop.permute.xlu0 %1131 }
 0x1b6   : > { %9282 = vst [vmem:[#allocation101_spill] sm:$0xff] %v5635_v29  ;;  %9283 = vst [vmem:[#allocation102_spill] sm:$0xff] %v5637_v47 }
 0x1b7   : > { %1489 = vrot.lane.b32.xlu1 %v1460_v15, %s4919_s30  ;;  %1487 = vrot.lane.b32.xlu0 %v1459_v30, %s4919_s30  ;;  %v1524_v15 = vmul.f32 %v5567_v14, %v1518_v8  ;;  %v1523_v30 = vmul.f32 %v5571_v18, %v1518_v8  ;;  %s4924_s30 = smov 104  }
 0x1b9   : > { %v5641_v22 = vpop.permute.xlu1 %1137  ;;  %v5643_v10 = vpop.permute.xlu0 %1135 }
 0x1ba   : > { %9284 = vst [vmem:[#allocation103_spill] sm:$0xff] %v5641_v22  ;;  %9285 = vst [vmem:[#allocation104_spill] sm:$0xff] %v5643_v10 }
 0x1bb   : > { %1541 = vrot.lane.b32.xlu1 %v1520_v41, %s4920_s4  ;;  %1539 = vrot.lane.b32.xlu0 %v1519_v54, %s4920_s4  ;;  %v1526_v54 = vmul.f32 %v5581_v3, %v1518_v8 }
 0x1bd   : > { %v5647_v29 = vpop.permute.xlu1 %1141  ;;  %v5649_v47 = vpop.permute.xlu0 %1139 }
 0x1be   : > { %9286 = vst [vmem:[#allocation105_spill] sm:$0xff] %v5647_v29  ;;  %9287 = vst [vmem:[#allocation106_spill] sm:$0xff] %v5649_v47  ;;  %v1525_v29 = vmul.f32 %v5585_v0, %v1518_v8 }
 0x1bf   : > { %1545 = vrot.lane.b32.xlu1 %v1522_v46, %s4920_s4  ;;  %1543 = vrot.lane.b32.xlu0 %v1521_v62, %s4920_s4  ;;  %v1528_v46 = vmul.f32 %v5595_v1, %v1518_v8  ;;  %v1527_v62 = vmul.f32 %v5599_v17, %v1518_v8  ;;  %v1589_v8 = vmul.f32 %v5556_v9, %v1586_v63 }
 0x1c1   : > { %v5654_v22 = vpop.permute.xlu1 %1145  ;;  %v5656_v41 = vpop.permute.xlu0 %1143 }
 0x1c2   : > { %9288 = vst [vmem:[#allocation107_spill] sm:$0xff] %v5654_v22  ;;  %9289 = vst [vmem:[#allocation108_spill] sm:$0xff] %v5656_v41 }
 0x1c3   : > { %1549 = vrot.lane.b32.xlu1 %v1524_v15, %s4920_s4  ;;  %1547 = vrot.lane.b32.xlu0 %v1523_v30, %s4920_s4  ;;  %v1588_v30 = vmul.f32 %v5538_v13, %v1586_v63 }
 0x1c5   : > { %v5660_v10 = vpop.permute.xlu1 %1149  ;;  %v5662_v47 = vpop.permute.xlu0 %1147 }
 0x1c6   : > { %9290 = vst [vmem:[#allocation109_spill] sm:$0xff] %v5660_v10  ;;  %9291 = vst [vmem:[#allocation110_spill] sm:$0xff] %v5662_v47  ;;  %v1587_v10 = vmul.f32 %v5542_v4, %v1586_v63  ;;  %v1654_v47 = vstv %s1653_s7  ;;  %s1993_s7 = sld [smem:[#allocation2 + %s1992_s5]]  ;;  %s2332_s5 = sadd.s32 32, %s5093_s18 }
 0x1c7   : > { %1553 = vrot.lane.b32.xlu1 %v1526_v54, %s4920_s4  ;;  %1551 = vrot.lane.b32.xlu0 %v1525_v29, %s4920_s4  ;;  %v1590_v29 = vmul.f32 %v5552_v55, %v1586_v63 }
 0x1c9   : > { %v5666_v22 = vpop.permute.xlu1 %1201  ;;  %v5668_v15 = vpop.permute.xlu0 %1199 }
 0x1ca   : > { %9292 = vst [vmem:[#allocation111_spill] sm:$0xff] %v5666_v22  ;;  %9293 = vst [vmem:[#allocation112_spill] sm:$0xff] %v5668_v15 }
 0x1cb   : > { %1557 = vrot.lane.b32.xlu1 %v1528_v46, %s4920_s4  ;;  %1555 = vrot.lane.b32.xlu0 %v1527_v62, %s4920_s4  ;;  %v1592_v46 = vmul.f32 %v5567_v14, %v1586_v63  ;;  %v1591_v62 = vmul.f32 %v5571_v18, %v1586_v63  ;;  %s4925_s4 = smov 103  }
 0x1cd   : > { %v5672_v41 = vpop.permute.xlu1 %1205  ;;  %v5674_v54 = vpop.permute.xlu0 %1203 }
 0x1ce   : > { %9294 = vst [vmem:[#allocation113_spill] sm:$0xff] %v5672_v41  ;;  %9295 = vst [vmem:[#allocation114_spill] sm:$0xff] %v5674_v54 }
 0x1cf   : > { %1609 = vrot.lane.b32.xlu1 %v1588_v30, %s4921_s19  ;;  %1607 = vrot.lane.b32.xlu0 %v1587_v10, %s4921_s19  ;;  %v1594_v10 = vmul.f32 %v5581_v3, %v1586_v63 }
 0x1d1   : > { %v5678_v22 = vpop.permute.xlu1 %1209  ;;  %v5680_v15 = vpop.permute.xlu0 %1207 }
 0x1d2   : > { %9296 = vst [vmem:[#allocation115_spill] sm:$0xff] %v5678_v22  ;;  %9297 = vst [vmem:[#allocation116_spill] sm:$0xff] %v5680_v15  ;;  %v1593_v22 = vmul.f32 %v5585_v0, %v1586_v63 }
 0x1d3   : > { %1613 = vrot.lane.b32.xlu1 %v1590_v29, %s4921_s19  ;;  %1611 = vrot.lane.b32.xlu0 %v1589_v8, %s4921_s19  ;;  %v1596_v29 = vmul.f32 %v5595_v1, %v1586_v63  ;;  %v1595_v8 = vmul.f32 %v5599_v17, %v1586_v63  ;;  %v1658_v63 = vmul.f32 %v5552_v55, %v1654_v47 }
 0x1d5   : > { %v5685_v41 = vpop.permute.xlu1 %1213  ;;  %v5687_v30 = vpop.permute.xlu0 %1211 }
 0x1d6   : > { %9298 = vst [vmem:[#allocation117_spill] sm:$0xff] %v5685_v41  ;;  %9299 = vst [vmem:[#allocation118_spill] sm:$0xff] %v5687_v30 }
 0x1d7   : > { %1617 = vrot.lane.b32.xlu1 %v1592_v46, %s4921_s19  ;;  %1615 = vrot.lane.b32.xlu0 %v1591_v62, %s4921_s19  ;;  %v1656_v62 = vmul.f32 %v5538_v13, %v1654_v47 }
 0x1d9   : > { %v5691_v54 = vpop.permute.xlu1 %1217  ;;  %v5693_v15 = vpop.permute.xlu0 %1215 }
 0x1da   : > { %9300 = vst [vmem:[#allocation119_spill] sm:$0xff] %v5691_v54  ;;  %9301 = vst [vmem:[#allocation120_spill] sm:$0xff] %v5693_v15  ;;  %v1655_v54 = vmul.f32 %v5542_v4, %v1654_v47  ;;  %v1722_v15 = vstv %s1721_s27  ;;  %s2061_s27 = sld [smem:[#allocation2 + %s2060_s16]]  ;;  %s2400_s16 = sadd.s32 33, %s5093_s18 }
 0x1db   : > { %1621 = vrot.lane.b32.xlu1 %v1594_v10, %s4921_s19  ;;  %1619 = vrot.lane.b32.xlu0 %v1593_v22, %s4921_s19  ;;  %v1657_v22 = vmul.f32 %v5556_v9, %v1654_v47 }
 0x1dd   : > { %v5697_v41 = vpop.permute.xlu1 %1269  ;;  %v5699_v46 = vpop.permute.xlu0 %1267 }
 0x1de   : > { %9302 = vst [vmem:[#allocation121_spill] sm:$0xff] %v5697_v41  ;;  %9303 = vst [vmem:[#allocation122_spill] sm:$0xff] %v5699_v46 }
 0x1df   : > { %1625 = vrot.lane.b32.xlu1 %v1596_v29, %s4921_s19  ;;  %1623 = vrot.lane.b32.xlu0 %v1595_v8, %s4921_s19  ;;  %v1660_v29 = vmul.f32 %v5567_v14, %v1654_v47  ;;  %v1659_v8 = vmul.f32 %v5571_v18, %v1654_v47  ;;  %s4926_s19 = smov 102  }
 0x1e1   : > { %v5703_v30 = vpop.permute.xlu1 %1273  ;;  %v5705_v10 = vpop.permute.xlu0 %1271 }
 0x1e2   : > { %9304 = vst [vmem:[#allocation123_spill] sm:$0xff] %v5703_v30  ;;  %9305 = vst [vmem:[#allocation124_spill] sm:$0xff] %v5705_v10 }
 0x1e3   : > { %1677 = vrot.lane.b32.xlu1 %v1656_v62, %s4922_s8  ;;  %1675 = vrot.lane.b32.xlu0 %v1655_v54, %s4922_s8  ;;  %v1662_v54 = vmul.f32 %v5581_v3, %v1654_v47 }
 0x1e5   : > { %v5709_v41 = vpop.permute.xlu1 %1277  ;;  %v5711_v46 = vpop.permute.xlu0 %1275 }
 0x1e6   : > { %9306 = vst [vmem:[#allocation125_spill] sm:$0xff] %v5709_v41  ;;  %9307 = vst [vmem:[#allocation126_spill] sm:$0xff] %v5711_v46  ;;  %v1661_v41 = vmul.f32 %v5585_v0, %v1654_v47 }
 0x1e7   : > { %1681 = vrot.lane.b32.xlu1 %v1658_v63, %s4922_s8  ;;  %1679 = vrot.lane.b32.xlu0 %v1657_v22, %s4922_s8  ;;  %v1664_v63 = vmul.f32 %v5595_v1, %v1654_v47  ;;  %v1663_v22 = vmul.f32 %v5599_v17, %v1654_v47  ;;  %v1726_v47 = vmul.f32 %v5552_v55, %v1722_v15 }
 0x1e9   : > { %v5716_v30 = vpop.permute.xlu1 %1281  ;;  %v5718_v62 = vpop.permute.xlu0 %1279 }
 0x1ea   : > { %9308 = vst [vmem:[#allocation127_spill] sm:$0xff] %v5716_v30  ;;  %9309 = vst [vmem:[#allocation128_spill] sm:$0xff] %v5718_v62 }
 0x1eb   : > { %1685 = vrot.lane.b32.xlu1 %v1660_v29, %s4922_s8  ;;  %1683 = vrot.lane.b32.xlu0 %v1659_v8, %s4922_s8  ;;  %v1724_v8 = vmul.f32 %v5538_v13, %v1722_v15 }
 0x1ed   : > { %v5722_v10 = vpop.permute.xlu1 %1285  ;;  %v5724_v46 = vpop.permute.xlu0 %1283 }
 0x1ee   : > { %9310 = vst [vmem:[#allocation129_spill] sm:$0xff] %v5722_v10  ;;  %9311 = vst [vmem:[#allocation130_spill] sm:$0xff] %v5724_v46  ;;  %v1723_v10 = vmul.f32 %v5542_v4, %v1722_v15  ;;  %v1790_v46 = vstv %s1789_s26  ;;  %s2129_s26 = sld [smem:[#allocation2 + %s2128_s29]]  ;;  %s2468_s29 = sadd.s32 34, %s5093_s18 }
 0x1ef   : > { %1689 = vrot.lane.b32.xlu1 %v1662_v54, %s4922_s8  ;;  %1687 = vrot.lane.b32.xlu0 %v1661_v41, %s4922_s8  ;;  %v1725_v41 = vmul.f32 %v5556_v9, %v1722_v15 }
 0x1f1   : > { %v5728_v30 = vpop.permute.xlu1 %1337  ;;  %v5730_v29 = vpop.permute.xlu0 %1335 }
 0x1f2   : > { %9312 = vst [vmem:[#allocation131_spill] sm:$0xff] %v5728_v30  ;;  %9313 = vst [vmem:[#allocation132_spill] sm:$0xff] %v5730_v29 }
 0x1f3   : > { %1693 = vrot.lane.b32.xlu1 %v1664_v63, %s4922_s8  ;;  %1691 = vrot.lane.b32.xlu0 %v1663_v22, %s4922_s8  ;;  %v1728_v63 = vmul.f32 %v5567_v14, %v1722_v15  ;;  %v1727_v22 = vmul.f32 %v5571_v18, %v1722_v15  ;;  %s4927_s8 = smov 101  }
 0x1f5   : > { %v5734_v62 = vpop.permute.xlu1 %1341  ;;  %v5736_v54 = vpop.permute.xlu0 %1339 }
 0x1f6   : > { %9314 = vst [vmem:[#allocation133_spill] sm:$0xff] %v5734_v62  ;;  %9315 = vst [vmem:[#allocation134_spill] sm:$0xff] %v5736_v54 }
 0x1f7   : > { %1745 = vrot.lane.b32.xlu1 %v1724_v8, %s4923_s28  ;;  %1743 = vrot.lane.b32.xlu0 %v1723_v10, %s4923_s28  ;;  %v1730_v10 = vmul.f32 %v5581_v3, %v1722_v15 }
 0x1f9   : > { %v5740_v30 = vpop.permute.xlu1 %1345  ;;  %v5742_v29 = vpop.permute.xlu0 %1343 }
 0x1fa   : > { %9316 = vst [vmem:[#allocation135_spill] sm:$0xff] %v5740_v30  ;;  %9317 = vst [vmem:[#allocation136_spill] sm:$0xff] %v5742_v29  ;;  %v1729_v30 = vmul.f32 %v5585_v0, %v1722_v15 }
 0x1fb   : > { %1749 = vrot.lane.b32.xlu1 %v1726_v47, %s4923_s28  ;;  %1747 = vrot.lane.b32.xlu0 %v1725_v41, %s4923_s28  ;;  %v1732_v47 = vmul.f32 %v5595_v1, %v1722_v15  ;;  %v1731_v41 = vmul.f32 %v5599_v17, %v1722_v15  ;;  %v1794_v15 = vmul.f32 %v5552_v55, %v1790_v46 }
 0x1fd   : > { %v5747_v62 = vpop.permute.xlu1 %1349  ;;  %v5749_v8 = vpop.permute.xlu0 %1347 }
 0x1fe   : > { %9318 = vst [vmem:[#allocation137_spill] sm:$0xff] %v5747_v62  ;;  %9319 = vst [vmem:[#allocation138_spill] sm:$0xff] %v5749_v8 }
 0x1ff   : > { %1753 = vrot.lane.b32.xlu1 %v1728_v63, %s4923_s28  ;;  %1751 = vrot.lane.b32.xlu0 %v1727_v22, %s4923_s28  ;;  %v1792_v22 = vmul.f32 %v5538_v13, %v1790_v46 }
 0x201   : > { %v5753_v54 = vpop.permute.xlu1 %1353  ;;  %v5755_v29 = vpop.permute.xlu0 %1351 }
 0x202   : > { %9320 = vst [vmem:[#allocation139_spill] sm:$0xff] %v5753_v54  ;;  %9321 = vst [vmem:[#allocation140_spill] sm:$0xff] %v5755_v29  ;;  %v1791_v54 = vmul.f32 %v5542_v4, %v1790_v46  ;;  %v1858_v29 = vstv %s1857_s3  ;;  %s2197_s3 = sld [smem:[#allocation2 + %s2196_s17]]  ;;  %s2536_s17 = sadd.s32 35, %s5093_s18 }
 0x203   : > { %1757 = vrot.lane.b32.xlu1 %v1730_v10, %s4923_s28  ;;  %1755 = vrot.lane.b32.xlu0 %v1729_v30, %s4923_s28  ;;  %v1793_v30 = vmul.f32 %v5556_v9, %v1790_v46 }
 0x205   : > { %v5759_v62 = vpop.permute.xlu1 %1405  ;;  %v5761_v63 = vpop.permute.xlu0 %1403 }
 0x206   : > { %9322 = vst [vmem:[#allocation141_spill] sm:$0xff] %v5759_v62  ;;  %9323 = vst [vmem:[#allocation142_spill] sm:$0xff] %v5761_v63 }
 0x207   : > { %1761 = vrot.lane.b32.xlu1 %v1732_v47, %s4923_s28  ;;  %1759 = vrot.lane.b32.xlu0 %v1731_v41, %s4923_s28  ;;  %v1796_v47 = vmul.f32 %v5567_v14, %v1790_v46  ;;  %v1795_v41 = vmul.f32 %v5571_v18, %v1790_v46  ;;  %s4928_s28 = smov 100  }
 0x209   : > { %v5765_v8 = vpop.permute.xlu1 %1409  ;;  %v5767_v10 = vpop.permute.xlu0 %1407 }
 0x20a   : > { %9324 = vst [vmem:[#allocation143_spill] sm:$0xff] %v5765_v8  ;;  %9325 = vst [vmem:[#allocation144_spill] sm:$0xff] %v5767_v10 }
 0x20b   : > { %1813 = vrot.lane.b32.xlu1 %v1792_v22, %s4924_s30  ;;  %1811 = vrot.lane.b32.xlu0 %v1791_v54, %s4924_s30  ;;  %v1798_v54 = vmul.f32 %v5581_v3, %v1790_v46 }
 0x20d   : > { %v5771_v62 = vpop.permute.xlu1 %1413  ;;  %v5773_v63 = vpop.permute.xlu0 %1411 }
 0x20e   : > { %9326 = vst [vmem:[#allocation145_spill] sm:$0xff] %v5771_v62  ;;  %9327 = vst [vmem:[#allocation146_spill] sm:$0xff] %v5773_v63  ;;  %v1797_v62 = vmul.f32 %v5585_v0, %v1790_v46 }
 0x20f   : > { %1817 = vrot.lane.b32.xlu1 %v1794_v15, %s4924_s30  ;;  %1815 = vrot.lane.b32.xlu0 %v1793_v30, %s4924_s30  ;;  %v1800_v15 = vmul.f32 %v5595_v1, %v1790_v46  ;;  %v1799_v30 = vmul.f32 %v5599_v17, %v1790_v46  ;;  %v1862_v46 = vmul.f32 %v5552_v55, %v1858_v29 }
 0x211   : > { %v5778_v8 = vpop.permute.xlu1 %1417  ;;  %v5780_v22 = vpop.permute.xlu0 %1415 }
 0x212   : > { %9328 = vst [vmem:[#allocation147_spill] sm:$0xff] %v5778_v8  ;;  %9329 = vst [vmem:[#allocation148_spill] sm:$0xff] %v5780_v22 }
 0x213   : > { %1821 = vrot.lane.b32.xlu1 %v1796_v47, %s4924_s30  ;;  %1819 = vrot.lane.b32.xlu0 %v1795_v41, %s4924_s30  ;;  %v1860_v41 = vmul.f32 %v5538_v13, %v1858_v29 }
 0x215   : > { %v5784_v10 = vpop.permute.xlu1 %1421  ;;  %v5786_v63 = vpop.permute.xlu0 %1419 }
 0x216   : > { %9330 = vst [vmem:[#allocation149_spill] sm:$0xff] %v5784_v10  ;;  %9331 = vst [vmem:[#allocation150_spill] sm:$0xff] %v5786_v63  ;;  %v1859_v10 = vmul.f32 %v5542_v4, %v1858_v29  ;;  %v1926_v63 = vstv %s1925_s24  ;;  %s2265_s24 = sld [smem:[#allocation2 + %s2264_s22]]  ;;  %s2604_s22 = sadd.s32 36, %s5093_s18 }
 0x217   : > { %1825 = vrot.lane.b32.xlu1 %v1798_v54, %s4924_s30  ;;  %1823 = vrot.lane.b32.xlu0 %v1797_v62, %s4924_s30  ;;  %v1861_v62 = vmul.f32 %v5556_v9, %v1858_v29 }
 0x219   : > { %v5790_v8 = vpop.permute.xlu1 %1473  ;;  %v5792_v47 = vpop.permute.xlu0 %1471 }
 0x21a   : > { %9332 = vst [vmem:[#allocation151_spill] sm:$0xff] %v5790_v8  ;;  %9333 = vst [vmem:[#allocation152_spill] sm:$0xff] %v5792_v47 }
 0x21b   : > { %1829 = vrot.lane.b32.xlu1 %v1800_v15, %s4924_s30  ;;  %1827 = vrot.lane.b32.xlu0 %v1799_v30, %s4924_s30  ;;  %v1864_v15 = vmul.f32 %v5567_v14, %v1858_v29  ;;  %v1863_v30 = vmul.f32 %v5571_v18, %v1858_v29  ;;  %s4929_s30 = smov 99  }
 0x21d   : > { %v5796_v22 = vpop.permute.xlu1 %1477  ;;  %v5798_v54 = vpop.permute.xlu0 %1475 }
 0x21e   : > { %9334 = vst [vmem:[#allocation153_spill] sm:$0xff] %v5796_v22  ;;  %9335 = vst [vmem:[#allocation154_spill] sm:$0xff] %v5798_v54 }
 0x21f   : > { %1881 = vrot.lane.b32.xlu1 %v1860_v41, %s4925_s4  ;;  %1879 = vrot.lane.b32.xlu0 %v1859_v10, %s4925_s4  ;;  %v1866_v10 = vmul.f32 %v5581_v3, %v1858_v29 }
 0x221   : > { %v5802_v8 = vpop.permute.xlu1 %1481  ;;  %v5804_v47 = vpop.permute.xlu0 %1479 }
 0x222   : > { %9336 = vst [vmem:[#allocation155_spill] sm:$0xff] %v5802_v8  ;;  %9337 = vst [vmem:[#allocation156_spill] sm:$0xff] %v5804_v47  ;;  %v1865_v8 = vmul.f32 %v5585_v0, %v1858_v29 }
 0x223   : > { %1885 = vrot.lane.b32.xlu1 %v1862_v46, %s4925_s4  ;;  %1883 = vrot.lane.b32.xlu0 %v1861_v62, %s4925_s4  ;;  %v1868_v46 = vmul.f32 %v5595_v1, %v1858_v29  ;;  %v1867_v62 = vmul.f32 %v5599_v17, %v1858_v29  ;;  %v1930_v29 = vmul.f32 %v5552_v55, %v1926_v63 }
 0x225   : > { %v5809_v22 = vpop.permute.xlu1 %1485  ;;  %v5811_v41 = vpop.permute.xlu0 %1483 }
 0x226   : > { %9338 = vst [vmem:[#allocation157_spill] sm:$0xff] %v5809_v22  ;;  %9339 = vst [vmem:[#allocation158_spill] sm:$0xff] %v5811_v41 }
 0x227   : > { %1889 = vrot.lane.b32.xlu1 %v1864_v15, %s4925_s4  ;;  %1887 = vrot.lane.b32.xlu0 %v1863_v30, %s4925_s4  ;;  %v1928_v30 = vmul.f32 %v5538_v13, %v1926_v63 }
 0x229   : > { %v5815_v54 = vpop.permute.xlu1 %1489  ;;  %v5817_v47 = vpop.permute.xlu0 %1487 }
 0x22a   : > { %9340 = vst [vmem:[#allocation159_spill] sm:$0xff] %v5815_v54  ;;  %9341 = vst [vmem:[#allocation160_spill] sm:$0xff] %v5817_v47  ;;  %v1927_v54 = vmul.f32 %v5542_v4, %v1926_v63  ;;  %v1994_v47 = vstv %s1993_s7  ;;  %s2333_s7 = sld [smem:[#allocation2 + %s2332_s5]]  ;;  %s2672_s5 = sadd.s32 37, %s5093_s18 }
 0x22b   : > { %1893 = vrot.lane.b32.xlu1 %v1866_v10, %s4925_s4  ;;  %1891 = vrot.lane.b32.xlu0 %v1865_v8, %s4925_s4  ;;  %v1929_v8 = vmul.f32 %v5556_v9, %v1926_v63 }
 0x22d   : > { %v5821_v22 = vpop.permute.xlu1 %1541  ;;  %v5823_v15 = vpop.permute.xlu0 %1539 }
 0x22e   : > { %9342 = vst [vmem:[#allocation161_spill] sm:$0xff] %v5821_v22  ;;  %9343 = vst [vmem:[#allocation162_spill] sm:$0xff] %v5823_v15 }
 0x22f   : > { %1897 = vrot.lane.b32.xlu1 %v1868_v46, %s4925_s4  ;;  %1895 = vrot.lane.b32.xlu0 %v1867_v62, %s4925_s4  ;;  %v1932_v46 = vmul.f32 %v5567_v14, %v1926_v63  ;;  %v1931_v62 = vmul.f32 %v5571_v18, %v1926_v63  ;;  %s4930_s4 = smov 98  }
 0x231   : > { %v5827_v41 = vpop.permute.xlu1 %1545  ;;  %v5829_v10 = vpop.permute.xlu0 %1543 }
 0x232   : > { %9344 = vst [vmem:[#allocation163_spill] sm:$0xff] %v5827_v41  ;;  %9345 = vst [vmem:[#allocation164_spill] sm:$0xff] %v5829_v10 }
 0x233   : > { %1949 = vrot.lane.b32.xlu1 %v1928_v30, %s4926_s19  ;;  %1947 = vrot.lane.b32.xlu0 %v1927_v54, %s4926_s19  ;;  %v1934_v54 = vmul.f32 %v5581_v3, %v1926_v63 }
 0x235   : > { %v5833_v22 = vpop.permute.xlu1 %1549  ;;  %v5835_v15 = vpop.permute.xlu0 %1547 }
 0x236   : > { %9346 = vst [vmem:[#allocation165_spill] sm:$0xff] %v5833_v22  ;;  %9347 = vst [vmem:[#allocation166_spill] sm:$0xff] %v5835_v15  ;;  %v1933_v22 = vmul.f32 %v5585_v0, %v1926_v63 }
 0x237   : > { %1953 = vrot.lane.b32.xlu1 %v1930_v29, %s4926_s19  ;;  %1951 = vrot.lane.b32.xlu0 %v1929_v8, %s4926_s19  ;;  %v1936_v29 = vmul.f32 %v5595_v1, %v1926_v63  ;;  %v1935_v8 = vmul.f32 %v5599_v17, %v1926_v63  ;;  %v1998_v63 = vmul.f32 %v5552_v55, %v1994_v47 }
 0x239   : > { %v5840_v41 = vpop.permute.xlu1 %1553  ;;  %v5842_v30 = vpop.permute.xlu0 %1551 }
 0x23a   : > { %9348 = vst [vmem:[#allocation167_spill] sm:$0xff] %v5840_v41  ;;  %9349 = vst [vmem:[#allocation168_spill] sm:$0xff] %v5842_v30 }
 0x23b   : > { %1957 = vrot.lane.b32.xlu1 %v1932_v46, %s4926_s19  ;;  %1955 = vrot.lane.b32.xlu0 %v1931_v62, %s4926_s19  ;;  %v1996_v62 = vmul.f32 %v5538_v13, %v1994_v47 }
 0x23d   : > { %v5846_v10 = vpop.permute.xlu1 %1557  ;;  %v5848_v15 = vpop.permute.xlu0 %1555 }
 0x23e   : > { %9350 = vst [vmem:[#allocation169_spill] sm:$0xff] %v5846_v10  ;;  %9351 = vst [vmem:[#allocation170_spill] sm:$0xff] %v5848_v15  ;;  %v1995_v10 = vmul.f32 %v5542_v4, %v1994_v47  ;;  %v2062_v15 = vstv %s2061_s27  ;;  %s2401_s27 = sld [smem:[#allocation2 + %s2400_s16]]  ;;  %s2740_s16 = sadd.s32 38, %s5093_s18 }
 0x23f   : > { %1961 = vrot.lane.b32.xlu1 %v1934_v54, %s4926_s19  ;;  %1959 = vrot.lane.b32.xlu0 %v1933_v22, %s4926_s19  ;;  %v1997_v22 = vmul.f32 %v5556_v9, %v1994_v47 }
 0x241   : > { %v5852_v41 = vpop.permute.xlu1 %1609  ;;  %v5854_v46 = vpop.permute.xlu0 %1607 }
 0x242   : > { %9352 = vst [vmem:[#allocation171_spill] sm:$0xff] %v5852_v41  ;;  %9353 = vst [vmem:[#allocation172_spill] sm:$0xff] %v5854_v46 }
 0x243   : > { %1965 = vrot.lane.b32.xlu1 %v1936_v29, %s4926_s19  ;;  %1963 = vrot.lane.b32.xlu0 %v1935_v8, %s4926_s19  ;;  %v2000_v29 = vmul.f32 %v5567_v14, %v1994_v47  ;;  %v1999_v8 = vmul.f32 %v5571_v18, %v1994_v47  ;;  %s4931_s19 = smov 97  }
 0x245   : > { %v5858_v30 = vpop.permute.xlu1 %1613  ;;  %v5860_v54 = vpop.permute.xlu0 %1611 }
 0x246   : > { %9354 = vst [vmem:[#allocation173_spill] sm:$0xff] %v5858_v30  ;;  %9355 = vst [vmem:[#allocation174_spill] sm:$0xff] %v5860_v54 }
 0x247   : > { %2017 = vrot.lane.b32.xlu1 %v1996_v62, %s4927_s8  ;;  %2015 = vrot.lane.b32.xlu0 %v1995_v10, %s4927_s8  ;;  %v2002_v10 = vmul.f32 %v5581_v3, %v1994_v47 }
 0x249   : > { %v5864_v41 = vpop.permute.xlu1 %1617  ;;  %v5866_v46 = vpop.permute.xlu0 %1615 }
 0x24a   : > { %9356 = vst [vmem:[#allocation175_spill] sm:$0xff] %v5864_v41  ;;  %9357 = vst [vmem:[#allocation176_spill] sm:$0xff] %v5866_v46  ;;  %v2001_v41 = vmul.f32 %v5585_v0, %v1994_v47 }
 0x24b   : > { %2021 = vrot.lane.b32.xlu1 %v1998_v63, %s4927_s8  ;;  %2019 = vrot.lane.b32.xlu0 %v1997_v22, %s4927_s8  ;;  %v2004_v63 = vmul.f32 %v5595_v1, %v1994_v47  ;;  %v2003_v22 = vmul.f32 %v5599_v17, %v1994_v47  ;;  %v2066_v47 = vmul.f32 %v5552_v55, %v2062_v15 }
 0x24d   : > { %v5871_v30 = vpop.permute.xlu1 %1621  ;;  %v5873_v62 = vpop.permute.xlu0 %1619 }
 0x24e   : > { %9358 = vst [vmem:[#allocation177_spill] sm:$0xff] %v5871_v30  ;;  %9359 = vst [vmem:[#allocation178_spill] sm:$0xff] %v5873_v62 }
 0x24f   : > { %2025 = vrot.lane.b32.xlu1 %v2000_v29, %s4927_s8  ;;  %2023 = vrot.lane.b32.xlu0 %v1999_v8, %s4927_s8  ;;  %v2064_v8 = vmul.f32 %v5538_v13, %v2062_v15 }
 0x251   : > { %v5877_v54 = vpop.permute.xlu1 %1625  ;;  %v5879_v46 = vpop.permute.xlu0 %1623 }
 0x252   : > { %9360 = vst [vmem:[#allocation179_spill] sm:$0xff] %v5877_v54  ;;  %9361 = vst [vmem:[#allocation180_spill] sm:$0xff] %v5879_v46  ;;  %v2063_v54 = vmul.f32 %v5542_v4, %v2062_v15  ;;  %v2130_v46 = vstv %s2129_s26  ;;  %s2469_s26 = sld [smem:[#allocation2 + %s2468_s29]]  ;;  %s2808_s29 = sadd.s32 39, %s5093_s18 }
 0x253   : > { %2029 = vrot.lane.b32.xlu1 %v2002_v10, %s4927_s8  ;;  %2027 = vrot.lane.b32.xlu0 %v2001_v41, %s4927_s8  ;;  %v2065_v41 = vmul.f32 %v5556_v9, %v2062_v15 }
 0x255   : > { %v5883_v30 = vpop.permute.xlu1 %1677  ;;  %v5885_v29 = vpop.permute.xlu0 %1675 }
 0x256   : > { %9362 = vst [vmem:[#allocation181_spill] sm:$0xff] %v5883_v30  ;;  %9363 = vst [vmem:[#allocation182_spill] sm:$0xff] %v5885_v29 }
 0x257   : > { %2033 = vrot.lane.b32.xlu1 %v2004_v63, %s4927_s8  ;;  %2031 = vrot.lane.b32.xlu0 %v2003_v22, %s4927_s8  ;;  %v2068_v63 = vmul.f32 %v5567_v14, %v2062_v15  ;;  %v2067_v22 = vmul.f32 %v5571_v18, %v2062_v15  ;;  %s4932_s8 = smov 96  }
 0x259   : > { %v5889_v62 = vpop.permute.xlu1 %1681  ;;  %v5891_v10 = vpop.permute.xlu0 %1679 }
 0x25a   : > { %9364 = vst [vmem:[#allocation183_spill] sm:$0xff] %v5889_v62  ;;  %9365 = vst [vmem:[#allocation184_spill] sm:$0xff] %v5891_v10 }
 0x25b   : > { %2085 = vrot.lane.b32.xlu1 %v2064_v8, %s4928_s28  ;;  %2083 = vrot.lane.b32.xlu0 %v2063_v54, %s4928_s28  ;;  %v2070_v54 = vmul.f32 %v5581_v3, %v2062_v15 }
 0x25d   : > { %v5895_v30 = vpop.permute.xlu1 %1685  ;;  %v5897_v29 = vpop.permute.xlu0 %1683 }
 0x25e   : > { %9366 = vst [vmem:[#allocation185_spill] sm:$0xff] %v5895_v30  ;;  %9367 = vst [vmem:[#allocation186_spill] sm:$0xff] %v5897_v29  ;;  %v2069_v30 = vmul.f32 %v5585_v0, %v2062_v15 }
 0x25f   : > { %2089 = vrot.lane.b32.xlu1 %v2066_v47, %s4928_s28  ;;  %2087 = vrot.lane.b32.xlu0 %v2065_v41, %s4928_s28  ;;  %v2072_v47 = vmul.f32 %v5595_v1, %v2062_v15  ;;  %v2071_v41 = vmul.f32 %v5599_v17, %v2062_v15  ;;  %v2134_v15 = vmul.f32 %v5552_v55, %v2130_v46 }
 0x261   : > { %v5902_v62 = vpop.permute.xlu1 %1689  ;;  %v5904_v8 = vpop.permute.xlu0 %1687 }
 0x262   : > { %9368 = vst [vmem:[#allocation187_spill] sm:$0xff] %v5902_v62  ;;  %9369 = vst [vmem:[#allocation188_spill] sm:$0xff] %v5904_v8 }
 0x263   : > { %2093 = vrot.lane.b32.xlu1 %v2068_v63, %s4928_s28  ;;  %2091 = vrot.lane.b32.xlu0 %v2067_v22, %s4928_s28  ;;  %v2132_v22 = vmul.f32 %v5538_v13, %v2130_v46 }
 0x265   : > { %v5908_v10 = vpop.permute.xlu1 %1693  ;;  %v5910_v29 = vpop.permute.xlu0 %1691 }
 0x266   : > { %9370 = vst [vmem:[#allocation189_spill] sm:$0xff] %v5908_v10  ;;  %9371 = vst [vmem:[#allocation190_spill] sm:$0xff] %v5910_v29  ;;  %v2131_v10 = vmul.f32 %v5542_v4, %v2130_v46  ;;  %v2198_v29 = vstv %s2197_s3  ;;  %s2537_s3 = sld [smem:[#allocation2 + %s2536_s17]]  ;;  %s2876_s17 = sadd.s32 40, %s5093_s18 }
 0x267   : > { %2097 = vrot.lane.b32.xlu1 %v2070_v54, %s4928_s28  ;;  %2095 = vrot.lane.b32.xlu0 %v2069_v30, %s4928_s28  ;;  %v2133_v30 = vmul.f32 %v5556_v9, %v2130_v46 }
 0x269   : > { %v5914_v62 = vpop.permute.xlu1 %1745  ;;  %v5916_v63 = vpop.permute.xlu0 %1743 }
 0x26a   : > { %9372 = vst [vmem:[#allocation191_spill] sm:$0xff] %v5914_v62  ;;  %9373 = vst [vmem:[#allocation192_spill] sm:$0xff] %v5916_v63 }
 0x26b   : > { %2101 = vrot.lane.b32.xlu1 %v2072_v47, %s4928_s28  ;;  %2099 = vrot.lane.b32.xlu0 %v2071_v41, %s4928_s28  ;;  %v2136_v47 = vmul.f32 %v5567_v14, %v2130_v46  ;;  %v2135_v41 = vmul.f32 %v5571_v18, %v2130_v46  ;;  %s4933_s28 = smov 95  }
 0x26d   : > { %v5920_v8 = vpop.permute.xlu1 %1749  ;;  %v5922_v54 = vpop.permute.xlu0 %1747 }
 0x26e   : > { %9374 = vst [vmem:[#allocation193_spill] sm:$0xff] %v5920_v8  ;;  %9375 = vst [vmem:[#allocation194_spill] sm:$0xff] %v5922_v54 }
 0x26f   : > { %2153 = vrot.lane.b32.xlu1 %v2132_v22, %s4929_s30  ;;  %2151 = vrot.lane.b32.xlu0 %v2131_v10, %s4929_s30  ;;  %v2138_v10 = vmul.f32 %v5581_v3, %v2130_v46 }
 0x271   : > { %v5926_v62 = vpop.permute.xlu1 %1753  ;;  %v5928_v63 = vpop.permute.xlu0 %1751 }
 0x272   : > { %9376 = vst [vmem:[#allocation195_spill] sm:$0xff] %v5926_v62  ;;  %9377 = vst [vmem:[#allocation196_spill] sm:$0xff] %v5928_v63  ;;  %v2137_v62 = vmul.f32 %v5585_v0, %v2130_v46 }
 0x273   : > { %2157 = vrot.lane.b32.xlu1 %v2134_v15, %s4929_s30  ;;  %2155 = vrot.lane.b32.xlu0 %v2133_v30, %s4929_s30  ;;  %v2140_v15 = vmul.f32 %v5595_v1, %v2130_v46  ;;  %v2139_v30 = vmul.f32 %v5599_v17, %v2130_v46  ;;  %v2202_v46 = vmul.f32 %v5552_v55, %v2198_v29 }
 0x275   : > { %v5933_v8 = vpop.permute.xlu1 %1757  ;;  %v5935_v22 = vpop.permute.xlu0 %1755 }
 0x276   : > { %9378 = vst [vmem:[#allocation197_spill] sm:$0xff] %v5933_v8  ;;  %9379 = vst [vmem:[#allocation198_spill] sm:$0xff] %v5935_v22 }
 0x277   : > { %2161 = vrot.lane.b32.xlu1 %v2136_v47, %s4929_s30  ;;  %2159 = vrot.lane.b32.xlu0 %v2135_v41, %s4929_s30  ;;  %v2200_v41 = vmul.f32 %v5538_v13, %v2198_v29 }
 0x279   : > { %v5939_v54 = vpop.permute.xlu1 %1761  ;;  %v5941_v63 = vpop.permute.xlu0 %1759 }
 0x27a   : > { %9380 = vst [vmem:[#allocation199_spill] sm:$0xff] %v5939_v54  ;;  %9381 = vst [vmem:[#allocation200_spill] sm:$0xff] %v5941_v63  ;;  %v2199_v54 = vmul.f32 %v5542_v4, %v2198_v29  ;;  %v2266_v63 = vstv %s2265_s24  ;;  %s2605_s24 = sld [smem:[#allocation2 + %s2604_s22]]  ;;  %s2944_s22 = sadd.s32 41, %s5093_s18 }
 0x27b   : > { %2165 = vrot.lane.b32.xlu1 %v2138_v10, %s4929_s30  ;;  %2163 = vrot.lane.b32.xlu0 %v2137_v62, %s4929_s30  ;;  %v2201_v62 = vmul.f32 %v5556_v9, %v2198_v29 }
 0x27d   : > { %v5945_v8 = vpop.permute.xlu1 %1813  ;;  %v5947_v47 = vpop.permute.xlu0 %1811 }
 0x27e   : > { %9382 = vst [vmem:[#allocation201_spill] sm:$0xff] %v5945_v8  ;;  %9383 = vst [vmem:[#allocation202_spill] sm:$0xff] %v5947_v47 }
 0x27f   : > { %2169 = vrot.lane.b32.xlu1 %v2140_v15, %s4929_s30  ;;  %2167 = vrot.lane.b32.xlu0 %v2139_v30, %s4929_s30  ;;  %v2204_v15 = vmul.f32 %v5567_v14, %v2198_v29  ;;  %v2203_v30 = vmul.f32 %v5571_v18, %v2198_v29  ;;  %s4934_s30 = smov 94  }
 0x281   : > { %v5951_v22 = vpop.permute.xlu1 %1817  ;;  %v5953_v10 = vpop.permute.xlu0 %1815 }
 0x282   : > { %9384 = vst [vmem:[#allocation203_spill] sm:$0xff] %v5951_v22  ;;  %9385 = vst [vmem:[#allocation204_spill] sm:$0xff] %v5953_v10 }
 0x283   : > { %2221 = vrot.lane.b32.xlu1 %v2200_v41, %s4930_s4  ;;  %2219 = vrot.lane.b32.xlu0 %v2199_v54, %s4930_s4  ;;  %v2206_v54 = vmul.f32 %v5581_v3, %v2198_v29 }
 0x285   : > { %v5957_v8 = vpop.permute.xlu1 %1821  ;;  %v5959_v47 = vpop.permute.xlu0 %1819 }
 0x286   : > { %9386 = vst [vmem:[#allocation205_spill] sm:$0xff] %v5957_v8  ;;  %9387 = vst [vmem:[#allocation206_spill] sm:$0xff] %v5959_v47  ;;  %v2205_v8 = vmul.f32 %v5585_v0, %v2198_v29 }
 0x287   : > { %2225 = vrot.lane.b32.xlu1 %v2202_v46, %s4930_s4  ;;  %2223 = vrot.lane.b32.xlu0 %v2201_v62, %s4930_s4  ;;  %v2208_v46 = vmul.f32 %v5595_v1, %v2198_v29  ;;  %v2207_v62 = vmul.f32 %v5599_v17, %v2198_v29  ;;  %v2270_v29 = vmul.f32 %v5552_v55, %v2266_v63 }
 0x289   : > { %v5964_v22 = vpop.permute.xlu1 %1825  ;;  %v5966_v41 = vpop.permute.xlu0 %1823 }
 0x28a   : > { %9388 = vst [vmem:[#allocation207_spill] sm:$0xff] %v5964_v22  ;;  %9389 = vst [vmem:[#allocation208_spill] sm:$0xff] %v5966_v41 }
 0x28b   : > { %2229 = vrot.lane.b32.xlu1 %v2204_v15, %s4930_s4  ;;  %2227 = vrot.lane.b32.xlu0 %v2203_v30, %s4930_s4  ;;  %v2268_v30 = vmul.f32 %v5538_v13, %v2266_v63 }
 0x28d   : > { %v5970_v10 = vpop.permute.xlu1 %1829  ;;  %v5972_v47 = vpop.permute.xlu0 %1827 }
 0x28e   : > { %9390 = vst [vmem:[#allocation209_spill] sm:$0xff] %v5970_v10  ;;  %9391 = vst [vmem:[#allocation210_spill] sm:$0xff] %v5972_v47  ;;  %v2267_v10 = vmul.f32 %v5542_v4, %v2266_v63  ;;  %v2334_v47 = vstv %s2333_s7  ;;  %s2673_s7 = sld [smem:[#allocation2 + %s2672_s5]]  ;;  %s3012_s5 = sadd.s32 42, %s5093_s18 }
 0x28f   : > { %2233 = vrot.lane.b32.xlu1 %v2206_v54, %s4930_s4  ;;  %2231 = vrot.lane.b32.xlu0 %v2205_v8, %s4930_s4  ;;  %v2269_v8 = vmul.f32 %v5556_v9, %v2266_v63 }
 0x291   : > { %v5976_v22 = vpop.permute.xlu1 %1881  ;;  %v5978_v15 = vpop.permute.xlu0 %1879 }
 0x292   : > { %9392 = vst [vmem:[#allocation211_spill] sm:$0xff] %v5976_v22  ;;  %9393 = vst [vmem:[#allocation212_spill] sm:$0xff] %v5978_v15 }
 0x293   : > { %2237 = vrot.lane.b32.xlu1 %v2208_v46, %s4930_s4  ;;  %2235 = vrot.lane.b32.xlu0 %v2207_v62, %s4930_s4  ;;  %v2272_v46 = vmul.f32 %v5567_v14, %v2266_v63  ;;  %v2271_v62 = vmul.f32 %v5571_v18, %v2266_v63  ;;  %s4935_s4 = smov 93  }
 0x295   : > { %v5982_v41 = vpop.permute.xlu1 %1885  ;;  %v5984_v54 = vpop.permute.xlu0 %1883 }
 0x296   : > { %9394 = vst [vmem:[#allocation213_spill] sm:$0xff] %v5982_v41  ;;  %9395 = vst [vmem:[#allocation214_spill] sm:$0xff] %v5984_v54 }
 0x297   : > { %2289 = vrot.lane.b32.xlu1 %v2268_v30, %s4931_s19  ;;  %2287 = vrot.lane.b32.xlu0 %v2267_v10, %s4931_s19  ;;  %v2274_v10 = vmul.f32 %v5581_v3, %v2266_v63 }
 0x299   : > { %v5988_v22 = vpop.permute.xlu1 %1889  ;;  %v5990_v15 = vpop.permute.xlu0 %1887 }
 0x29a   : > { %9396 = vst [vmem:[#allocation215_spill] sm:$0xff] %v5988_v22  ;;  %9397 = vst [vmem:[#allocation216_spill] sm:$0xff] %v5990_v15  ;;  %v2273_v22 = vmul.f32 %v5585_v0, %v2266_v63 }
 0x29b   : > { %2293 = vrot.lane.b32.xlu1 %v2270_v29, %s4931_s19  ;;  %2291 = vrot.lane.b32.xlu0 %v2269_v8, %s4931_s19  ;;  %v2276_v29 = vmul.f32 %v5595_v1, %v2266_v63  ;;  %v2275_v8 = vmul.f32 %v5599_v17, %v2266_v63  ;;  %v2338_v63 = vmul.f32 %v5552_v55, %v2334_v47 }
 0x29d   : > { %v5995_v41 = vpop.permute.xlu1 %1893  ;;  %v5997_v30 = vpop.permute.xlu0 %1891 }
 0x29e   : > { %9398 = vst [vmem:[#allocation217_spill] sm:$0xff] %v5995_v41  ;;  %9399 = vst [vmem:[#allocation218_spill] sm:$0xff] %v5997_v30 }
 0x29f   : > { %2297 = vrot.lane.b32.xlu1 %v2272_v46, %s4931_s19  ;;  %2295 = vrot.lane.b32.xlu0 %v2271_v62, %s4931_s19  ;;  %v2336_v62 = vmul.f32 %v5538_v13, %v2334_v47 }
 0x2a1   : > { %v6001_v54 = vpop.permute.xlu1 %1897  ;;  %v6003_v15 = vpop.permute.xlu0 %1895 }
 0x2a2   : > { %9400 = vst [vmem:[#allocation219_spill] sm:$0xff] %v6001_v54  ;;  %9401 = vst [vmem:[#allocation220_spill] sm:$0xff] %v6003_v15  ;;  %v2335_v54 = vmul.f32 %v5542_v4, %v2334_v47  ;;  %v2402_v15 = vstv %s2401_s27  ;;  %s2741_s27 = sld [smem:[#allocation2 + %s2740_s16]]  ;;  %s3080_s16 = sadd.s32 43, %s5093_s18 }
 0x2a3   : > { %2301 = vrot.lane.b32.xlu1 %v2274_v10, %s4931_s19  ;;  %2299 = vrot.lane.b32.xlu0 %v2273_v22, %s4931_s19  ;;  %v2337_v22 = vmul.f32 %v5556_v9, %v2334_v47 }
 0x2a5   : > { %v6007_v41 = vpop.permute.xlu1 %1949  ;;  %v6009_v46 = vpop.permute.xlu0 %1947 }
 0x2a6   : > { %9402 = vst [vmem:[#allocation221_spill] sm:$0xff] %v6007_v41  ;;  %9403 = vst [vmem:[#allocation222_spill] sm:$0xff] %v6009_v46 }
 0x2a7   : > { %2305 = vrot.lane.b32.xlu1 %v2276_v29, %s4931_s19  ;;  %2303 = vrot.lane.b32.xlu0 %v2275_v8, %s4931_s19  ;;  %v2340_v29 = vmul.f32 %v5567_v14, %v2334_v47  ;;  %v2339_v8 = vmul.f32 %v5571_v18, %v2334_v47  ;;  %s4936_s19 = smov 92  }
 0x2a9   : > { %v6013_v30 = vpop.permute.xlu1 %1953  ;;  %v6015_v10 = vpop.permute.xlu0 %1951 }
 0x2aa   : > { %9404 = vst [vmem:[#allocation223_spill] sm:$0xff] %v6013_v30  ;;  %9405 = vst [vmem:[#allocation224_spill] sm:$0xff] %v6015_v10 }
 0x2ab   : > { %2357 = vrot.lane.b32.xlu1 %v2336_v62, %s4932_s8  ;;  %2355 = vrot.lane.b32.xlu0 %v2335_v54, %s4932_s8  ;;  %v2342_v54 = vmul.f32 %v5581_v3, %v2334_v47 }
 0x2ad   : > { %v6019_v41 = vpop.permute.xlu1 %1957  ;;  %v6021_v46 = vpop.permute.xlu0 %1955 }
 0x2ae   : > { %9406 = vst [vmem:[#allocation225_spill] sm:$0xff] %v6019_v41  ;;  %9407 = vst [vmem:[#allocation226_spill] sm:$0xff] %v6021_v46  ;;  %v2341_v41 = vmul.f32 %v5585_v0, %v2334_v47 }
 0x2af   : > { %2361 = vrot.lane.b32.xlu1 %v2338_v63, %s4932_s8  ;;  %2359 = vrot.lane.b32.xlu0 %v2337_v22, %s4932_s8  ;;  %v2344_v63 = vmul.f32 %v5595_v1, %v2334_v47  ;;  %v2343_v22 = vmul.f32 %v5599_v17, %v2334_v47  ;;  %v2406_v47 = vmul.f32 %v5552_v55, %v2402_v15 }
 0x2b0   : > { %v2410_v55 = vmul.f32 %v5581_v3, %v2402_v15 }
 0x2b1   : > { %v6026_v30 = vpop.permute.xlu1 %1961  ;;  %v6028_v62 = vpop.permute.xlu0 %1959 }
 0x2b2   : > { %9408 = vst [vmem:[#allocation227_spill] sm:$0xff] %v6026_v30  ;;  %9409 = vst [vmem:[#allocation228_spill] sm:$0xff] %v6028_v62 }
 0x2b3   : > { %2365 = vrot.lane.b32.xlu1 %v2340_v29, %s4932_s8  ;;  %2363 = vrot.lane.b32.xlu0 %v2339_v8, %s4932_s8  ;;  %v2404_v8 = vmul.f32 %v5538_v13, %v2402_v15  ;;  %v2408_v13 = vmul.f32 %v5567_v14, %v2402_v15  ;;  %v2411_v14 = vmul.f32 %v5599_v17, %v2402_v15 }
 0x2b5   : > { %v6032_v10 = vpop.permute.xlu1 %1965  ;;  %v6034_v46 = vpop.permute.xlu0 %1963 }
 0x2b6   : > { %9410 = vst [vmem:[#allocation229_spill] sm:$0xff] %v6032_v10  ;;  %9411 = vst [vmem:[#allocation230_spill] sm:$0xff] %v6034_v46  ;;  %v2403_v10 = vmul.f32 %v5542_v4, %v2402_v15  ;;  %v2407_v4 = vmul.f32 %v5571_v18, %v2402_v15  ;;  %v2412_v18 = vmul.f32 %v5595_v1, %v2402_v15  ;;  %v2606_v46 = vstv %s2605_s24  ;;  %s2945_s24 = sld [smem:[#allocation2 + %s2944_s22]]  ;;  %s3284_s22 = sadd.s32 46, %s5093_s18 }
 0x2b7   : > { %2369 = vrot.lane.b32.xlu1 %v2342_v54, %s4932_s8  ;;  %2367 = vrot.lane.b32.xlu0 %v2341_v41, %s4932_s8  ;;  %v2405_v41 = vmul.f32 %v5556_v9, %v2402_v15  ;;  %v2409_v9 = vmul.f32 %v5585_v0, %v2402_v15  ;;  %v6074_v0 = vld [vmem:[%s5086_s6 + $0x8] sm:$0xff]  ;;  %v6088_v15 = vld [vmem:[%s5086_s6 + $0x18] sm:$0xff] }
 0x2b9   : > { %v6038_v30 = vpop.permute.xlu1 %2017  ;;  %v6040_v29 = vpop.permute.xlu0 %2015 }
 0x2ba   : > { %9412 = vst [vmem:[#allocation231_spill] sm:$0xff] %v6038_v30  ;;  %9413 = vst [vmem:[#allocation232_spill] sm:$0xff] %v6040_v29 }
 0x2bb   : > { %2373 = vrot.lane.b32.xlu1 %v2344_v63, %s4932_s8  ;;  %2371 = vrot.lane.b32.xlu0 %v2343_v22, %s4932_s8  ;;  %s4937_s8 = smov 91  }
 0x2bd   : > { %v6044_v62 = vpop.permute.xlu1 %2021  ;;  %v6046_v54 = vpop.permute.xlu0 %2019 }
 0x2be   : > { %9414 = vst [vmem:[#allocation233_spill] sm:$0xff] %v6044_v62  ;;  %9415 = vst [vmem:[#allocation234_spill] sm:$0xff] %v6046_v54 }
 0x2bf   : > { %2425 = vrot.lane.b32.xlu1 %v2404_v8, %s4933_s28  ;;  %2423 = vrot.lane.b32.xlu0 %v2403_v10, %s4933_s28 }
 0x2c1   : > { %v6050_v30 = vpop.permute.xlu1 %2025  ;;  %v6052_v29 = vpop.permute.xlu0 %2023 }
 0x2c2   : > { %9416 = vst [vmem:[#allocation235_spill] sm:$0xff] %v6050_v30  ;;  %9417 = vst [vmem:[#allocation236_spill] sm:$0xff] %v6052_v29 }
 0x2c3   : > { %2429 = vrot.lane.b32.xlu1 %v2406_v47, %s4933_s28  ;;  %2427 = vrot.lane.b32.xlu0 %v2405_v41, %s4933_s28  ;;  %v2470_v47 = vstv %s2469_s26  ;;  %s2809_s26 = sld [smem:[#allocation2 + %s2808_s29]]  ;;  %s3148_s29 = sadd.s32 44, %s5093_s18 }
 0x2c4   : > { %v2472_v3 = vmul.f32 %v6074_v0, %v2470_v47 }
 0x2c5   : > { %v6057_v63 = vpop.permute.xlu1 %2029  ;;  %v6059_v22 = vpop.permute.xlu0 %2027 }
 0x2c6   : > { %9418 = vst [vmem:[#allocation237_spill] sm:$0xff] %v6057_v63  ;;  %9419 = vst [vmem:[#allocation238_spill] sm:$0xff] %v6059_v22  ;;  %v2538_v22 = vstv %s2537_s3  ;;  %s2877_s3 = sld [smem:[#allocation2 + %s2876_s17]]  ;;  %s3216_s17 = sadd.s32 45, %s5093_s18 }
 0x2c7   : > { %2433 = vrot.lane.b32.xlu1 %v2408_v13, %s4933_s28  ;;  %2431 = vrot.lane.b32.xlu0 %v2407_v4, %s4933_s28  ;;  %v6078_v4 = vld [vmem:[%s5086_s6] sm:$0xff] }
 0x2c8   : > { %v2471_v1 = vmul.f32 %v6078_v4, %v2470_v47 }
 0x2c9   : > { %v6063_v10 = vpop.permute.xlu1 %2033  ;;  %v6065_v8 = vpop.permute.xlu0 %2031 }
 0x2ca   : > { %9420 = vst [vmem:[#allocation239_spill] sm:$0xff] %v6063_v10  ;;  %9421 = vst [vmem:[#allocation240_spill] sm:$0xff] %v6065_v8 }
 0x2cb   : > { %2437 = vrot.lane.b32.xlu1 %v2410_v55, %s4933_s28  ;;  %2435 = vrot.lane.b32.xlu0 %v2409_v9, %s4933_s28  ;;  %v2474_v9 = vmul.f32 %v6088_v15, %v2470_v47 }
 0x2cd   : > { %v6069_v41 = vpop.permute.xlu1 %2085  ;;  %v6071_v13 = vpop.permute.xlu0 %2083 }
 0x2ce   : > { %9422 = vst [vmem:[#allocation241_spill] sm:$0xff] %v6069_v41  ;;  %9423 = vst [vmem:[#allocation242_spill] sm:$0xff] %v6071_v13 }
 0x2cf   : > { %2441 = vrot.lane.b32.xlu1 %v2412_v18, %s4933_s28  ;;  %2439 = vrot.lane.b32.xlu0 %v2411_v14, %s4933_s28  ;;  %v6092_v18 = vld [vmem:[%s5086_s6 + $0x10] sm:$0xff]  ;;  %s4938_s28 = smov 90  }
 0x2d0   : > { %v2473_v14 = vmul.f32 %v6092_v18, %v2470_v47 }
 0x2d1   : > { %v6081_v55 = vpop.permute.xlu1 %2089  ;;  %v6083_v17 = vpop.permute.xlu0 %2087 }
 0x2d2   : > { %9424 = vst [vmem:[#allocation243_spill] sm:$0xff] %v6081_v55  ;;  %9425 = vst [vmem:[#allocation244_spill] sm:$0xff] %v6083_v17  ;;  %v6107_v17 = vld [vmem:[%s5086_s6 + $0x20] sm:$0xff] }
 0x2d3   : > { %2493 = vrot.lane.b32.xlu1 %v2472_v3, %s4934_s30  ;;  %2491 = vrot.lane.b32.xlu0 %v2471_v1, %s4934_s30  ;;  %v6103_v3 = vld [vmem:[%s5086_s6 + $0x28] sm:$0xff]  ;;  %v2475_v41 = vmul.f32 %v6107_v17, %v2470_v47 }
 0x2d4   : > { %v2476_v1 = vmul.f32 %v6103_v3, %v2470_v47 }
 0x2d5   : > { %v6095_v13 = vpop.permute.xlu1 %2093  ;;  %v6097_v55 = vpop.permute.xlu0 %2091 }
 0x2d6   : > { %9426 = vst [vmem:[#allocation245_spill] sm:$0xff] %v6095_v13  ;;  %9427 = vst [vmem:[#allocation246_spill] sm:$0xff] %v6097_v55  ;;  %v6121_v55 = vld [vmem:[%s5086_s6 + $0x30] sm:$0xff] }
 0x2d7   : > { %2497 = vrot.lane.b32.xlu1 %v2474_v9, %s4934_s30  ;;  %2495 = vrot.lane.b32.xlu0 %v2473_v14, %s4934_s30  ;;  %v6117_v9 = vld [vmem:[%s5086_s6 + $0x38] sm:$0xff]  ;;  %v2477_v8 = vmul.f32 %v6121_v55, %v2470_v47 }
 0x2d8   : > { %v2478_v14 = vmul.f32 %v6117_v9, %v2470_v47 }
 0x2d9   : > { %v6110_v13 = vpop.permute.xlu1 %2097  ;;  %v6112_v10 = vpop.permute.xlu0 %2095 }
 0x2da   : > { %9428 = vst [vmem:[#allocation247_spill] sm:$0xff] %v6110_v13  ;;  %9429 = vst [vmem:[#allocation248_spill] sm:$0xff] %v6112_v10  ;;  %v6131_v13 = vld [vmem:[%s5086_s6 + $0x48] sm:$0xff] }
 0x2db   : > { %2501 = vrot.lane.b32.xlu1 %v2476_v1, %s4934_s30  ;;  %2499 = vrot.lane.b32.xlu0 %v2475_v41, %s4934_s30  ;;  %v2480_v41 = vmul.f32 %v6131_v13, %v2470_v47  ;;  %v6135_v1 = vld [vmem:[%s5086_s6 + $0x40] sm:$0xff] }
 0x2dc   : > { %v2479_v10 = vmul.f32 %v6135_v1, %v2470_v47  ;;  %v2542_v47 = vmul.f32 %v6088_v15, %v2538_v22 }
 0x2dd   : > { %v6124_v63 = vpop.permute.xlu1 %2101  ;;  %v6126_v30 = vpop.permute.xlu0 %2099 }
 0x2de   : > { %9430 = vst [vmem:[#allocation249_spill] sm:$0xff] %v6124_v63  ;;  %9431 = vst [vmem:[#allocation250_spill] sm:$0xff] %v6126_v30 }
 0x2df   : > { %2505 = vrot.lane.b32.xlu1 %v2478_v14, %s4934_s30  ;;  %2503 = vrot.lane.b32.xlu0 %v2477_v8, %s4934_s30  ;;  %v2540_v8 = vmul.f32 %v6074_v0, %v2538_v22  ;;  %v2539_v14 = vmul.f32 %v6078_v4, %v2538_v22 }
 0x2e1   : > { %v6138_v29 = vpop.permute.xlu1 %2153  ;;  %v6140_v62 = vpop.permute.xlu0 %2151 }
 0x2e2   : > { %9432 = vst [vmem:[#allocation251_spill] sm:$0xff] %v6138_v29  ;;  %9433 = vst [vmem:[#allocation252_spill] sm:$0xff] %v6140_v62  ;;  %v2541_v29 = vmul.f32 %v6092_v18, %v2538_v22 }
 0x2e3   : > { %2509 = vrot.lane.b32.xlu1 %v2480_v41, %s4934_s30  ;;  %2507 = vrot.lane.b32.xlu0 %v2479_v10, %s4934_s30  ;;  %v2544_v10 = vmul.f32 %v6103_v3, %v2538_v22  ;;  %s4939_s30 = smov 89  }
 0x2e5   : > { %v6146_v63 = vpop.permute.xlu1 %2157  ;;  %v6148_v30 = vpop.permute.xlu0 %2155 }
 0x2e6   : > { %9434 = vst [vmem:[#allocation253_spill] sm:$0xff] %v6146_v63  ;;  %9435 = vst [vmem:[#allocation254_spill] sm:$0xff] %v6148_v30  ;;  %v2543_v63 = vmul.f32 %v6107_v17, %v2538_v22 }
 0x2e7   : > { %2561 = vrot.lane.b32.xlu1 %v2540_v8, %s4935_s4  ;;  %2559 = vrot.lane.b32.xlu0 %v2539_v14, %s4935_s4  ;;  %v2546_v14 = vmul.f32 %v6117_v9, %v2538_v22 }
 0x2e9   : > { %v6152_v62 = vpop.permute.xlu1 %2161  ;;  %v6154_v41 = vpop.permute.xlu0 %2159 }
 0x2ea   : > { %9436 = vst [vmem:[#allocation255_spill] sm:$0xff] %v6152_v62  ;;  %9437 = vst [vmem:[#allocation256_spill] sm:$0xff] %v6154_v41  ;;  %v2545_v62 = vmul.f32 %v6121_v55, %v2538_v22 }
 0x2eb   : > { %2565 = vrot.lane.b32.xlu1 %v2542_v47, %s4935_s4  ;;  %2563 = vrot.lane.b32.xlu0 %v2541_v29, %s4935_s4  ;;  %v2548_v29 = vmul.f32 %v6131_v13, %v2538_v22  ;;  %v2547_v47 = vmul.f32 %v6135_v1, %v2538_v22  ;;  %v2609_v22 = vmul.f32 %v6092_v18, %v2606_v46 }
 0x2ed   : > { %v6159_v30 = vpop.permute.xlu1 %2165  ;;  %v6161_v8 = vpop.permute.xlu0 %2163 }
 0x2ee   : > { %9438 = vst [vmem:[#allocation257_spill] sm:$0xff] %v6159_v30  ;;  %9439 = vst [vmem:[#allocation258_spill] sm:$0xff] %v6161_v8 }
 0x2ef   : > { %2569 = vrot.lane.b32.xlu1 %v2544_v10, %s4935_s4  ;;  %2567 = vrot.lane.b32.xlu0 %v2543_v63, %s4935_s4  ;;  %v2608_v63 = vmul.f32 %v6074_v0, %v2606_v46 }
 0x2f1   : > { %v6165_v54 = vpop.permute.xlu1 %2169  ;;  %v6167_v41 = vpop.permute.xlu0 %2167 }
 0x2f2   : > { %9440 = vst [vmem:[#allocation259_spill] sm:$0xff] %v6165_v54  ;;  %9441 = vst [vmem:[#allocation260_spill] sm:$0xff] %v6167_v41  ;;  %v2607_v54 = vmul.f32 %v6078_v4, %v2606_v46  ;;  %v2674_v41 = vstv %s2673_s7  ;;  %s3013_s7 = sld [smem:[#allocation2 + %s3012_s5]]  ;;  %s3352_s5 = sadd.s32 47, %s5093_s18 }
 0x2f3   : > { %2573 = vrot.lane.b32.xlu1 %v2546_v14, %s4935_s4  ;;  %2571 = vrot.lane.b32.xlu0 %v2545_v62, %s4935_s4  ;;  %v2610_v62 = vmul.f32 %v6088_v15, %v2606_v46 }
 0x2f5   : > { %v6171_v30 = vpop.permute.xlu1 %2221  ;;  %v6173_v10 = vpop.permute.xlu0 %2219 }
 0x2f6   : > { %9442 = vst [vmem:[#allocation261_spill] sm:$0xff] %v6171_v30  ;;  %9443 = vst [vmem:[#allocation262_spill] sm:$0xff] %v6173_v10 }
 0x2f7   : > { %2577 = vrot.lane.b32.xlu1 %v2548_v29, %s4935_s4  ;;  %2575 = vrot.lane.b32.xlu0 %v2547_v47, %s4935_s4  ;;  %v2612_v29 = vmul.f32 %v6103_v3, %v2606_v46  ;;  %v2611_v47 = vmul.f32 %v6107_v17, %v2606_v46  ;;  %s4940_s4 = smov 88  }
 0x2f9   : > { %v6177_v8 = vpop.permute.xlu1 %2225  ;;  %v6179_v14 = vpop.permute.xlu0 %2223 }
 0x2fa   : > { %9444 = vst [vmem:[#allocation263_spill] sm:$0xff] %v6177_v8  ;;  %9445 = vst [vmem:[#allocation264_spill] sm:$0xff] %v6179_v14 }
 0x2fb   : > { %2629 = vrot.lane.b32.xlu1 %v2608_v63, %s4936_s19  ;;  %2627 = vrot.lane.b32.xlu0 %v2607_v54, %s4936_s19  ;;  %v2614_v54 = vmul.f32 %v6117_v9, %v2606_v46 }
 0x2fd   : > { %v6183_v30 = vpop.permute.xlu1 %2229  ;;  %v6185_v10 = vpop.permute.xlu0 %2227 }
 0x2fe   : > { %9446 = vst [vmem:[#allocation265_spill] sm:$0xff] %v6183_v30  ;;  %9447 = vst [vmem:[#allocation266_spill] sm:$0xff] %v6185_v10  ;;  %v2613_v30 = vmul.f32 %v6121_v55, %v2606_v46 }
 0x2ff   : > { %2633 = vrot.lane.b32.xlu1 %v2610_v62, %s4936_s19  ;;  %2631 = vrot.lane.b32.xlu0 %v2609_v22, %s4936_s19  ;;  %v2616_v62 = vmul.f32 %v6131_v13, %v2606_v46  ;;  %v2615_v22 = vmul.f32 %v6135_v1, %v2606_v46  ;;  %v2677_v46 = vmul.f32 %v6092_v18, %v2674_v41 }
 0x301   : > { %v6190_v8 = vpop.permute.xlu1 %2233  ;;  %v6192_v63 = vpop.permute.xlu0 %2231 }
 0x302   : > { %9448 = vst [vmem:[#allocation267_spill] sm:$0xff] %v6190_v8  ;;  %9449 = vst [vmem:[#allocation268_spill] sm:$0xff] %v6192_v63 }
 0x303   : > { %2637 = vrot.lane.b32.xlu1 %v2612_v29, %s4936_s19  ;;  %2635 = vrot.lane.b32.xlu0 %v2611_v47, %s4936_s19  ;;  %v2676_v47 = vmul.f32 %v6074_v0, %v2674_v41 }
 0x305   : > { %v6196_v14 = vpop.permute.xlu1 %2237  ;;  %v6198_v10 = vpop.permute.xlu0 %2235 }
 0x306   : > { %9450 = vst [vmem:[#allocation269_spill] sm:$0xff] %v6196_v14  ;;  %9451 = vst [vmem:[#allocation270_spill] sm:$0xff] %v6198_v10  ;;  %v2675_v14 = vmul.f32 %v6078_v4, %v2674_v41  ;;  %v2742_v10 = vstv %s2741_s27  ;;  %s3081_s27 = sld [smem:[#allocation2 + %s3080_s16]]  ;;  %s4947_s16 = smov 81  }
 0x307   : > { %2641 = vrot.lane.b32.xlu1 %v2614_v54, %s4936_s19  ;;  %2639 = vrot.lane.b32.xlu0 %v2613_v30, %s4936_s19  ;;  %v2678_v30 = vmul.f32 %v6088_v15, %v2674_v41 }
 0x309   : > { %v6202_v8 = vpop.permute.xlu1 %2289  ;;  %v6204_v29 = vpop.permute.xlu0 %2287 }
 0x30a   : > { %9452 = vst [vmem:[#allocation271_spill] sm:$0xff] %v6202_v8  ;;  %9453 = vst [vmem:[#allocation272_spill] sm:$0xff] %v6204_v29 }
 0x30b   : > { %2645 = vrot.lane.b32.xlu1 %v2616_v62, %s4936_s19  ;;  %2643 = vrot.lane.b32.xlu0 %v2615_v22, %s4936_s19  ;;  %v2680_v62 = vmul.f32 %v6103_v3, %v2674_v41  ;;  %v2679_v22 = vmul.f32 %v6107_v17, %v2674_v41  ;;  %s4941_s19 = smov 87  }
 0x30d   : > { %v6208_v63 = vpop.permute.xlu1 %2293  ;;  %v6210_v54 = vpop.permute.xlu0 %2291 }
 0x30e   : > { %9454 = vst [vmem:[#allocation273_spill] sm:$0xff] %v6208_v63  ;;  %9455 = vst [vmem:[#allocation274_spill] sm:$0xff] %v6210_v54 }
 0x30f   : > { %2697 = vrot.lane.b32.xlu1 %v2676_v47, %s4937_s8  ;;  %2695 = vrot.lane.b32.xlu0 %v2675_v14, %s4937_s8  ;;  %v2682_v14 = vmul.f32 %v6117_v9, %v2674_v41 }
 0x311   : > { %v6214_v8 = vpop.permute.xlu1 %2297  ;;  %v6216_v29 = vpop.permute.xlu0 %2295 }
 0x312   : > { %9456 = vst [vmem:[#allocation275_spill] sm:$0xff] %v6214_v8  ;;  %9457 = vst [vmem:[#allocation276_spill] sm:$0xff] %v6216_v29  ;;  %v2681_v8 = vmul.f32 %v6121_v55, %v2674_v41 }
 0x313   : > { %2701 = vrot.lane.b32.xlu1 %v2678_v30, %s4937_s8  ;;  %2699 = vrot.lane.b32.xlu0 %v2677_v46, %s4937_s8  ;;  %v2684_v30 = vmul.f32 %v6131_v13, %v2674_v41  ;;  %v2683_v46 = vmul.f32 %v6135_v1, %v2674_v41  ;;  %v2746_v41 = vmul.f32 %v6088_v15, %v2742_v10 }
 0x315   : > { %v6221_v63 = vpop.permute.xlu1 %2301  ;;  %v6223_v47 = vpop.permute.xlu0 %2299 }
 0x316   : > { %9458 = vst [vmem:[#allocation277_spill] sm:$0xff] %v6221_v63  ;;  %9459 = vst [vmem:[#allocation278_spill] sm:$0xff] %v6223_v47 }
 0x317   : > { %2705 = vrot.lane.b32.xlu1 %v2680_v62, %s4937_s8  ;;  %2703 = vrot.lane.b32.xlu0 %v2679_v22, %s4937_s8  ;;  %v2744_v22 = vmul.f32 %v6074_v0, %v2742_v10 }
 0x319   : > { %v6227_v54 = vpop.permute.xlu1 %2305  ;;  %v6229_v29 = vpop.permute.xlu0 %2303 }
 0x31a   : > { %9460 = vst [vmem:[#allocation279_spill] sm:$0xff] %v6227_v54  ;;  %9461 = vst [vmem:[#allocation280_spill] sm:$0xff] %v6229_v29  ;;  %v2743_v54 = vmul.f32 %v6078_v4, %v2742_v10  ;;  %v2810_v29 = vstv %s2809_s26  ;;  %s3149_s26 = sld [smem:[#allocation2 + %s3148_s29]]  ;;  %s4948_s29 = smov 80  }
 0x31b   : > { %2709 = vrot.lane.b32.xlu1 %v2682_v14, %s4937_s8  ;;  %2707 = vrot.lane.b32.xlu0 %v2681_v8, %s4937_s8  ;;  %v2745_v8 = vmul.f32 %v6092_v18, %v2742_v10 }
 0x31d   : > { %v6233_v63 = vpop.permute.xlu1 %2357  ;;  %v6235_v62 = vpop.permute.xlu0 %2355 }
 0x31e   : > { %9462 = vst [vmem:[#allocation281_spill] sm:$0xff] %v6233_v63  ;;  %9463 = vst [vmem:[#allocation282_spill] sm:$0xff] %v6235_v62 }
 0x31f   : > { %2713 = vrot.lane.b32.xlu1 %v2684_v30, %s4937_s8  ;;  %2711 = vrot.lane.b32.xlu0 %v2683_v46, %s4937_s8  ;;  %v2748_v30 = vmul.f32 %v6103_v3, %v2742_v10  ;;  %v2747_v46 = vmul.f32 %v6107_v17, %v2742_v10  ;;  %s4942_s8 = smov 86  }
 0x321   : > { %v6239_v47 = vpop.permute.xlu1 %2361  ;;  %v6241_v14 = vpop.permute.xlu0 %2359 }
 0x322   : > { %9464 = vst [vmem:[#allocation283_spill] sm:$0xff] %v6239_v47  ;;  %9465 = vst [vmem:[#allocation284_spill] sm:$0xff] %v6241_v14 }
 0x323   : > { %2765 = vrot.lane.b32.xlu1 %v2744_v22, %s4938_s28  ;;  %2763 = vrot.lane.b32.xlu0 %v2743_v54, %s4938_s28  ;;  %v2750_v54 = vmul.f32 %v6117_v9, %v2742_v10 }
 0x325   : > { %v6245_v63 = vpop.permute.xlu1 %2365  ;;  %v6247_v62 = vpop.permute.xlu0 %2363 }
 0x326   : > { %9466 = vst [vmem:[#allocation285_spill] sm:$0xff] %v6245_v63  ;;  %9467 = vst [vmem:[#allocation286_spill] sm:$0xff] %v6247_v62  ;;  %v2749_v63 = vmul.f32 %v6121_v55, %v2742_v10 }
 0x327   : > { %2769 = vrot.lane.b32.xlu1 %v2746_v41, %s4938_s28  ;;  %2767 = vrot.lane.b32.xlu0 %v2745_v8, %s4938_s28  ;;  %v2752_v41 = vmul.f32 %v6131_v13, %v2742_v10  ;;  %v2751_v8 = vmul.f32 %v6135_v1, %v2742_v10  ;;  %v2814_v10 = vmul.f32 %v6088_v15, %v2810_v29 }
 0x329   : > { %v6252_v47 = vpop.permute.xlu1 %2369  ;;  %v6254_v22 = vpop.permute.xlu0 %2367 }
 0x32a   : > { %9468 = vst [vmem:[#allocation287_spill] sm:$0xff] %v6252_v47  ;;  %9469 = vst [vmem:[#allocation288_spill] sm:$0xff] %v6254_v22 }
 0x32b   : > { %2773 = vrot.lane.b32.xlu1 %v2748_v30, %s4938_s28  ;;  %2771 = vrot.lane.b32.xlu0 %v2747_v46, %s4938_s28  ;;  %v2812_v46 = vmul.f32 %v6074_v0, %v2810_v29 }
 0x32d   : > { %v6258_v14 = vpop.permute.xlu1 %2373  ;;  %v6260_v62 = vpop.permute.xlu0 %2371 }
 0x32e   : > { %9470 = vst [vmem:[#allocation289_spill] sm:$0xff] %v6258_v14  ;;  %9471 = vst [vmem:[#allocation290_spill] sm:$0xff] %v6260_v62  ;;  %v2811_v14 = vmul.f32 %v6078_v4, %v2810_v29  ;;  %v2878_v62 = vstv %s2877_s3  ;;  %s3217_s3 = sld [smem:[#allocation2 + %s3216_s17]]  ;;  %s4949_s17 = smov 79  }
 0x32f   : > { %2777 = vrot.lane.b32.xlu1 %v2750_v54, %s4938_s28  ;;  %2775 = vrot.lane.b32.xlu0 %v2749_v63, %s4938_s28  ;;  %v2813_v63 = vmul.f32 %v6092_v18, %v2810_v29 }
 0x331   : > { %v6264_v47 = vpop.permute.xlu1 %2425  ;;  %v6266_v30 = vpop.permute.xlu0 %2423 }
 0x332   : > { %9472 = vst [vmem:[#allocation291_spill] sm:$0xff] %v6264_v47  ;;  %9473 = vst [vmem:[#allocation292_spill] sm:$0xff] %v6266_v30 }
 0x333   : > { %2781 = vrot.lane.b32.xlu1 %v2752_v41, %s4938_s28  ;;  %2779 = vrot.lane.b32.xlu0 %v2751_v8, %s4938_s28  ;;  %v2816_v41 = vmul.f32 %v6103_v3, %v2810_v29  ;;  %v2815_v8 = vmul.f32 %v6107_v17, %v2810_v29  ;;  %s4943_s28 = smov 85  }
 0x335   : > { %v6270_v22 = vpop.permute.xlu1 %2429  ;;  %v6272_v54 = vpop.permute.xlu0 %2427 }
 0x336   : > { %9474 = vst [vmem:[#allocation293_spill] sm:$0xff] %v6270_v22  ;;  %9475 = vst [vmem:[#allocation294_spill] sm:$0xff] %v6272_v54 }
 0x337   : > { %2833 = vrot.lane.b32.xlu1 %v2812_v46, %s4939_s30  ;;  %2831 = vrot.lane.b32.xlu0 %v2811_v14, %s4939_s30  ;;  %v2818_v14 = vmul.f32 %v6117_v9, %v2810_v29 }
 0x339   : > { %v6276_v47 = vpop.permute.xlu1 %2433  ;;  %v6278_v30 = vpop.permute.xlu0 %2431 }
 0x33a   : > { %9476 = vst [vmem:[#allocation295_spill] sm:$0xff] %v6276_v47  ;;  %9477 = vst [vmem:[#allocation296_spill] sm:$0xff] %v6278_v30  ;;  %v2817_v47 = vmul.f32 %v6121_v55, %v2810_v29 }
 0x33b   : > { %2837 = vrot.lane.b32.xlu1 %v2814_v10, %s4939_s30  ;;  %2835 = vrot.lane.b32.xlu0 %v2813_v63, %s4939_s30  ;;  %v2820_v10 = vmul.f32 %v6131_v13, %v2810_v29  ;;  %v2819_v63 = vmul.f32 %v6135_v1, %v2810_v29  ;;  %v2882_v29 = vmul.f32 %v6088_v15, %v2878_v62 }
 0x33d   : > { %v6283_v22 = vpop.permute.xlu1 %2437  ;;  %v6285_v46 = vpop.permute.xlu0 %2435 }
 0x33e   : > { %9478 = vst [vmem:[#allocation297_spill] sm:$0xff] %v6283_v22  ;;  %9479 = vst [vmem:[#allocation298_spill] sm:$0xff] %v6285_v46 }
 0x33f   : > { %2841 = vrot.lane.b32.xlu1 %v2816_v41, %s4939_s30  ;;  %2839 = vrot.lane.b32.xlu0 %v2815_v8, %s4939_s30  ;;  %v2880_v8 = vmul.f32 %v6074_v0, %v2878_v62 }
 0x341   : > { %v6289_v54 = vpop.permute.xlu1 %2441  ;;  %v6291_v30 = vpop.permute.xlu0 %2439 }
 0x342   : > { %9480 = vst [vmem:[#allocation299_spill] sm:$0xff] %v6289_v54  ;;  %9481 = vst [vmem:[#allocation300_spill] sm:$0xff] %v6291_v30  ;;  %v2879_v54 = vmul.f32 %v6078_v4, %v2878_v62  ;;  %v2946_v30 = vstv %s2945_s24  ;;  %s3285_s24 = sld [smem:[#allocation2 + %s3284_s22]]  ;;  %s4950_s22 = smov 78  }
 0x343   : > { %2845 = vrot.lane.b32.xlu1 %v2818_v14, %s4939_s30  ;;  %2843 = vrot.lane.b32.xlu0 %v2817_v47, %s4939_s30  ;;  %v2881_v47 = vmul.f32 %v6092_v18, %v2878_v62 }
 0x345   : > { %v6295_v22 = vpop.permute.xlu1 %2493  ;;  %v6297_v41 = vpop.permute.xlu0 %2491 }
 0x346   : > { %9482 = vst [vmem:[#allocation301_spill] sm:$0xff] %v6295_v22  ;;  %9483 = vst [vmem:[#allocation302_spill] sm:$0xff] %v6297_v41 }
 0x347   : > { %2849 = vrot.lane.b32.xlu1 %v2820_v10, %s4939_s30  ;;  %2847 = vrot.lane.b32.xlu0 %v2819_v63, %s4939_s30  ;;  %v2884_v10 = vmul.f32 %v6103_v3, %v2878_v62  ;;  %v2883_v63 = vmul.f32 %v6107_v17, %v2878_v62  ;;  %s4944_s30 = smov 84  }
 0x349   : > { %v6301_v46 = vpop.permute.xlu1 %2497  ;;  %v6303_v14 = vpop.permute.xlu0 %2495 }
 0x34a   : > { %9484 = vst [vmem:[#allocation303_spill] sm:$0xff] %v6301_v46  ;;  %9485 = vst [vmem:[#allocation304_spill] sm:$0xff] %v6303_v14 }
 0x34b   : > { %2901 = vrot.lane.b32.xlu1 %v2880_v8, %s4940_s4  ;;  %2899 = vrot.lane.b32.xlu0 %v2879_v54, %s4940_s4  ;;  %v2886_v54 = vmul.f32 %v6117_v9, %v2878_v62 }
 0x34d   : > { %v6307_v22 = vpop.permute.xlu1 %2501  ;;  %v6309_v41 = vpop.permute.xlu0 %2499 }
 0x34e   : > { %9486 = vst [vmem:[#allocation305_spill] sm:$0xff] %v6307_v22  ;;  %9487 = vst [vmem:[#allocation306_spill] sm:$0xff] %v6309_v41  ;;  %v2885_v22 = vmul.f32 %v6121_v55, %v2878_v62 }
 0x34f   : > { %2905 = vrot.lane.b32.xlu1 %v2882_v29, %s4940_s4  ;;  %2903 = vrot.lane.b32.xlu0 %v2881_v47, %s4940_s4  ;;  %v2888_v29 = vmul.f32 %v6131_v13, %v2878_v62  ;;  %v2887_v47 = vmul.f32 %v6135_v1, %v2878_v62  ;;  %v2950_v62 = vmul.f32 %v6088_v15, %v2946_v30 }
 0x351   : > { %v6314_v46 = vpop.permute.xlu1 %2505  ;;  %v6316_v8 = vpop.permute.xlu0 %2503 }
 0x352   : > { %9488 = vst [vmem:[#allocation307_spill] sm:$0xff] %v6314_v46  ;;  %9489 = vst [vmem:[#allocation308_spill] sm:$0xff] %v6316_v8 }
 0x353   : > { %2909 = vrot.lane.b32.xlu1 %v2884_v10, %s4940_s4  ;;  %2907 = vrot.lane.b32.xlu0 %v2883_v63, %s4940_s4  ;;  %v2948_v63 = vmul.f32 %v6074_v0, %v2946_v30 }
 0x355   : > { %v6320_v14 = vpop.permute.xlu1 %2509  ;;  %v6322_v41 = vpop.permute.xlu0 %2507 }
 0x356   : > { %9490 = vst [vmem:[#allocation309_spill] sm:$0xff] %v6320_v14  ;;  %9491 = vst [vmem:[#allocation310_spill] sm:$0xff] %v6322_v41  ;;  %v2947_v14 = vmul.f32 %v6078_v4, %v2946_v30  ;;  %v3014_v41 = vstv %s3013_s7  ;;  %s3353_s7 = sld [smem:[#allocation2 + %s3352_s5]]  ;;  %s4951_s5 = smov 77  }
 0x357   : > { %2913 = vrot.lane.b32.xlu1 %v2886_v54, %s4940_s4  ;;  %2911 = vrot.lane.b32.xlu0 %v2885_v22, %s4940_s4  ;;  %v2949_v22 = vmul.f32 %v6092_v18, %v2946_v30 }
 0x359   : > { %v6326_v46 = vpop.permute.xlu1 %2561  ;;  %v6328_v10 = vpop.permute.xlu0 %2559 }
 0x35a   : > { %9492 = vst [vmem:[#allocation311_spill] sm:$0xff] %v6326_v46  ;;  %9493 = vst [vmem:[#allocation312_spill] sm:$0xff] %v6328_v10 }
 0x35b   : > { %2917 = vrot.lane.b32.xlu1 %v2888_v29, %s4940_s4  ;;  %2915 = vrot.lane.b32.xlu0 %v2887_v47, %s4940_s4  ;;  %v2952_v29 = vmul.f32 %v6103_v3, %v2946_v30  ;;  %v2951_v47 = vmul.f32 %v6107_v17, %v2946_v30  ;;  %s4945_s4 = smov 83  }
 0x35d   : > { %v6332_v8 = vpop.permute.xlu1 %2565  ;;  %v6334_v54 = vpop.permute.xlu0 %2563 }
 0x35e   : > { %9494 = vst [vmem:[#allocation313_spill] sm:$0xff] %v6332_v8  ;;  %9495 = vst [vmem:[#allocation314_spill] sm:$0xff] %v6334_v54 }
 0x35f   : > { %2969 = vrot.lane.b32.xlu1 %v2948_v63, %s4941_s19  ;;  %2967 = vrot.lane.b32.xlu0 %v2947_v14, %s4941_s19  ;;  %v2954_v14 = vmul.f32 %v6117_v9, %v2946_v30 }
 0x361   : > { %v6338_v46 = vpop.permute.xlu1 %2569  ;;  %v6340_v10 = vpop.permute.xlu0 %2567 }
 0x362   : > { %9496 = vst [vmem:[#allocation315_spill] sm:$0xff] %v6338_v46  ;;  %9497 = vst [vmem:[#allocation316_spill] sm:$0xff] %v6340_v10  ;;  %v2953_v46 = vmul.f32 %v6121_v55, %v2946_v30 }
 0x363   : > { %2973 = vrot.lane.b32.xlu1 %v2950_v62, %s4941_s19  ;;  %2971 = vrot.lane.b32.xlu0 %v2949_v22, %s4941_s19  ;;  %v2956_v62 = vmul.f32 %v6131_v13, %v2946_v30  ;;  %v2955_v22 = vmul.f32 %v6135_v1, %v2946_v30  ;;  %v3018_v30 = vmul.f32 %v6088_v15, %v3014_v41 }
 0x365   : > { %v6345_v8 = vpop.permute.xlu1 %2573  ;;  %v6347_v63 = vpop.permute.xlu0 %2571 }
 0x366   : > { %9498 = vst [vmem:[#allocation317_spill] sm:$0xff] %v6345_v8  ;;  %9499 = vst [vmem:[#allocation318_spill] sm:$0xff] %v6347_v63 }
 0x367   : > { %2977 = vrot.lane.b32.xlu1 %v2952_v29, %s4941_s19  ;;  %2975 = vrot.lane.b32.xlu0 %v2951_v47, %s4941_s19  ;;  %v3016_v47 = vmul.f32 %v6074_v0, %v3014_v41 }
 0x369   : > { %v6351_v54 = vpop.permute.xlu1 %2577  ;;  %v6353_v10 = vpop.permute.xlu0 %2575 }
 0x36a   : > { %9500 = vst [vmem:[#allocation319_spill] sm:$0xff] %v6351_v54  ;;  %9501 = vst [vmem:[#allocation320_spill] sm:$0xff] %v6353_v10  ;;  %v3015_v54 = vmul.f32 %v6078_v4, %v3014_v41  ;;  %v3082_v10 = vstv %s3081_s27  ;;  %s3420_s27 = sadd.s32 48, %s5093_s18 }
 0x36b   : > { %2981 = vrot.lane.b32.xlu1 %v2954_v14, %s4941_s19  ;;  %2979 = vrot.lane.b32.xlu0 %v2953_v46, %s4941_s19  ;;  %v3017_v46 = vmul.f32 %v6092_v18, %v3014_v41 }
 0x36d   : > { %v6357_v8 = vpop.permute.xlu1 %2629  ;;  %v6359_v29 = vpop.permute.xlu0 %2627 }
 0x36e   : > { %9502 = vst [vmem:[#allocation321_spill] sm:$0xff] %v6357_v8  ;;  %9503 = vst [vmem:[#allocation322_spill] sm:$0xff] %v6359_v29 }
 0x36f   : > { %2985 = vrot.lane.b32.xlu1 %v2956_v62, %s4941_s19  ;;  %2983 = vrot.lane.b32.xlu0 %v2955_v22, %s4941_s19  ;;  %v3020_v62 = vmul.f32 %v6103_v3, %v3014_v41  ;;  %v3019_v22 = vmul.f32 %v6107_v17, %v3014_v41  ;;  %s4946_s19 = smov 82  }
 0x371   : > { %v6363_v63 = vpop.permute.xlu1 %2633  ;;  %v6365_v14 = vpop.permute.xlu0 %2631 }
 0x372   : > { %9504 = vst [vmem:[#allocation323_spill] sm:$0xff] %v6363_v63  ;;  %9505 = vst [vmem:[#allocation324_spill] sm:$0xff] %v6365_v14 }
 0x373   : > { %3037 = vrot.lane.b32.xlu1 %v3016_v47, %s4942_s8  ;;  %3035 = vrot.lane.b32.xlu0 %v3015_v54, %s4942_s8  ;;  %v3022_v54 = vmul.f32 %v6117_v9, %v3014_v41 }
 0x375   : > { %v6369_v8 = vpop.permute.xlu1 %2637  ;;  %v6371_v29 = vpop.permute.xlu0 %2635 }
 0x376   : > { %9506 = vst [vmem:[#allocation325_spill] sm:$0xff] %v6369_v8  ;;  %9507 = vst [vmem:[#allocation326_spill] sm:$0xff] %v6371_v29  ;;  %v3021_v8 = vmul.f32 %v6121_v55, %v3014_v41 }
 0x377   : > { %3041 = vrot.lane.b32.xlu1 %v3018_v30, %s4942_s8  ;;  %3039 = vrot.lane.b32.xlu0 %v3017_v46, %s4942_s8  ;;  %v3024_v30 = vmul.f32 %v6131_v13, %v3014_v41  ;;  %v3023_v46 = vmul.f32 %v6135_v1, %v3014_v41  ;;  %v3086_v41 = vmul.f32 %v6088_v15, %v3082_v10 }
 0x379   : > { %v6376_v63 = vpop.permute.xlu1 %2641  ;;  %v6378_v47 = vpop.permute.xlu0 %2639 }
 0x37a   : > { %9508 = vst [vmem:[#allocation327_spill] sm:$0xff] %v6376_v63  ;;  %9509 = vst [vmem:[#allocation328_spill] sm:$0xff] %v6378_v47 }
 0x37b   : > { %3045 = vrot.lane.b32.xlu1 %v3020_v62, %s4942_s8  ;;  %3043 = vrot.lane.b32.xlu0 %v3019_v22, %s4942_s8  ;;  %v3084_v22 = vmul.f32 %v6074_v0, %v3082_v10 }
 0x37d   : > { %v6382_v14 = vpop.permute.xlu1 %2645  ;;  %v6384_v29 = vpop.permute.xlu0 %2643 }
 0x37e   : > { %9510 = vst [vmem:[#allocation329_spill] sm:$0xff] %v6382_v14  ;;  %9511 = vst [vmem:[#allocation330_spill] sm:$0xff] %v6384_v29  ;;  %v3083_v14 = vmul.f32 %v6078_v4, %v3082_v10  ;;  %v3150_v29 = vstv %s3149_s26  ;;  %s3488_s26 = sadd.s32 49, %s5093_s18 }
 0x37f   : > { %3049 = vrot.lane.b32.xlu1 %v3022_v54, %s4942_s8  ;;  %3047 = vrot.lane.b32.xlu0 %v3021_v8, %s4942_s8  ;;  %v3085_v8 = vmul.f32 %v6092_v18, %v3082_v10 }
 0x381   : > { %v6388_v63 = vpop.permute.xlu1 %2697  ;;  %v6390_v62 = vpop.permute.xlu0 %2695 }
 0x382   : > { %9512 = vst [vmem:[#allocation331_spill] sm:$0xff] %v6388_v63  ;;  %9513 = vst [vmem:[#allocation332_spill] sm:$0xff] %v6390_v62 }
 0x383   : > { %3053 = vrot.lane.b32.xlu1 %v3024_v30, %s4942_s8  ;;  %3051 = vrot.lane.b32.xlu0 %v3023_v46, %s4942_s8  ;;  %v3088_v30 = vmul.f32 %v6103_v3, %v3082_v10  ;;  %v3087_v46 = vmul.f32 %v6107_v17, %v3082_v10  ;;  %s206_s8 = sld [smem:[#allocation2 + %s5093_s18]] }
 0x385   : > { %v6394_v47 = vpop.permute.xlu1 %2701  ;;  %v6396_v54 = vpop.permute.xlu0 %2699 }
 0x386   : > { %9514 = vst [vmem:[#allocation333_spill] sm:$0xff] %v6394_v47  ;;  %9515 = vst [vmem:[#allocation334_spill] sm:$0xff] %v6396_v54 }
 0x387   : > { %3105 = vrot.lane.b32.xlu1 %v3084_v22, %s4943_s28  ;;  %3103 = vrot.lane.b32.xlu0 %v3083_v14, %s4943_s28  ;;  %v3090_v14 = vmul.f32 %v6117_v9, %v3082_v10 }
 0x389   : > { %v6400_v63 = vpop.permute.xlu1 %2705  ;;  %v6402_v62 = vpop.permute.xlu0 %2703 }
 0x38a   : > { %9516 = vst [vmem:[#allocation335_spill] sm:$0xff] %v6400_v63  ;;  %9517 = vst [vmem:[#allocation336_spill] sm:$0xff] %v6402_v62  ;;  %v3089_v63 = vmul.f32 %v6121_v55, %v3082_v10 }
 0x38b   : > { %3109 = vrot.lane.b32.xlu1 %v3086_v41, %s4943_s28  ;;  %3107 = vrot.lane.b32.xlu0 %v3085_v8, %s4943_s28  ;;  %v3092_v41 = vmul.f32 %v6131_v13, %v3082_v10  ;;  %v3091_v8 = vmul.f32 %v6135_v1, %v3082_v10  ;;  %v3154_v10 = vmul.f32 %v6088_v15, %v3150_v29 }
 0x38d   : > { %v6407_v47 = vpop.permute.xlu1 %2709  ;;  %v6409_v22 = vpop.permute.xlu0 %2707 }
 0x38e   : > { %9518 = vst [vmem:[#allocation337_spill] sm:$0xff] %v6407_v47  ;;  %9519 = vst [vmem:[#allocation338_spill] sm:$0xff] %v6409_v22 }
 0x38f   : > { %3113 = vrot.lane.b32.xlu1 %v3088_v30, %s4943_s28  ;;  %3111 = vrot.lane.b32.xlu0 %v3087_v46, %s4943_s28  ;;  %v3152_v46 = vmul.f32 %v6074_v0, %v3150_v29 }
 0x391   : > { %v6413_v54 = vpop.permute.xlu1 %2713  ;;  %v6415_v62 = vpop.permute.xlu0 %2711 }
 0x392   : > { %9520 = vst [vmem:[#allocation339_spill] sm:$0xff] %v6413_v54  ;;  %9521 = vst [vmem:[#allocation340_spill] sm:$0xff] %v6415_v62  ;;  %v3151_v54 = vmul.f32 %v6078_v4, %v3150_v29  ;;  %v3218_v62 = vstv %s3217_s3  ;;  %s3556_s3 = sadd.s32 50, %s5093_s18 }
 0x393   : > { %3117 = vrot.lane.b32.xlu1 %v3090_v14, %s4943_s28  ;;  %3115 = vrot.lane.b32.xlu0 %v3089_v63, %s4943_s28  ;;  %v3153_v63 = vmul.f32 %v6092_v18, %v3150_v29 }
 0x395   : > { %v6419_v47 = vpop.permute.xlu1 %2765  ;;  %v6421_v30 = vpop.permute.xlu0 %2763 }
 0x396   : > { %9522 = vst [vmem:[#allocation341_spill] sm:$0xff] %v6419_v47  ;;  %9523 = vst [vmem:[#allocation342_spill] sm:$0xff] %v6421_v30 }
 0x397   : > { %3121 = vrot.lane.b32.xlu1 %v3092_v41, %s4943_s28  ;;  %3119 = vrot.lane.b32.xlu0 %v3091_v8, %s4943_s28  ;;  %v3156_v41 = vmul.f32 %v6103_v3, %v3150_v29  ;;  %v3155_v8 = vmul.f32 %v6107_v17, %v3150_v29  ;;  %s6583_s28 = sld [smem:[#allocation2 + %s3420_s27]]  ;;  %s3760_s27 = sadd.s32 53, %s5093_s18 }
 0x399   : > { %v6425_v22 = vpop.permute.xlu1 %2769  ;;  %v6427_v14 = vpop.permute.xlu0 %2767 }
 0x39a   : > { %9524 = vst [vmem:[#allocation343_spill] sm:$0xff] %v6425_v22  ;;  %9525 = vst [vmem:[#allocation344_spill] sm:$0xff] %v6427_v14 }
 0x39b   : > { %3173 = vrot.lane.b32.xlu1 %v3152_v46, %s4944_s30  ;;  %3171 = vrot.lane.b32.xlu0 %v3151_v54, %s4944_s30  ;;  %v3158_v54 = vmul.f32 %v6117_v9, %v3150_v29 }
 0x39d   : > { %v6431_v47 = vpop.permute.xlu1 %2773  ;;  %v6433_v30 = vpop.permute.xlu0 %2771 }
 0x39e   : > { %9526 = vst [vmem:[#allocation345_spill] sm:$0xff] %v6431_v47  ;;  %9527 = vst [vmem:[#allocation346_spill] sm:$0xff] %v6433_v30  ;;  %v3157_v47 = vmul.f32 %v6121_v55, %v3150_v29 }
 0x39f   : > { %3177 = vrot.lane.b32.xlu1 %v3154_v10, %s4944_s30  ;;  %3175 = vrot.lane.b32.xlu0 %v3153_v63, %s4944_s30  ;;  %v3160_v10 = vmul.f32 %v6131_v13, %v3150_v29  ;;  %v3159_v63 = vmul.f32 %v6135_v1, %v3150_v29  ;;  %v3222_v29 = vmul.f32 %v6088_v15, %v3218_v62 }
 0x3a1   : > { %v6438_v22 = vpop.permute.xlu1 %2777  ;;  %v6440_v46 = vpop.permute.xlu0 %2775 }
 0x3a2   : > { %9528 = vst [vmem:[#allocation347_spill] sm:$0xff] %v6438_v22  ;;  %9529 = vst [vmem:[#allocation348_spill] sm:$0xff] %v6440_v46 }
 0x3a3   : > { %3181 = vrot.lane.b32.xlu1 %v3156_v41, %s4944_s30  ;;  %3179 = vrot.lane.b32.xlu0 %v3155_v8, %s4944_s30  ;;  %v3220_v8 = vmul.f32 %v6074_v0, %v3218_v62 }
 0x3a5   : > { %v6444_v14 = vpop.permute.xlu1 %2781  ;;  %v6446_v30 = vpop.permute.xlu0 %2779 }
 0x3a6   : > { %9530 = vst [vmem:[#allocation349_spill] sm:$0xff] %v6444_v14  ;;  %9531 = vst [vmem:[#allocation350_spill] sm:$0xff] %v6446_v30  ;;  %v3219_v14 = vmul.f32 %v6078_v4, %v3218_v62  ;;  %v3286_v30 = vstv %s3285_s24  ;;  %s3624_s24 = sadd.s32 51, %s5093_s18 }
 0x3a7   : > { %3185 = vrot.lane.b32.xlu1 %v3158_v54, %s4944_s30  ;;  %3183 = vrot.lane.b32.xlu0 %v3157_v47, %s4944_s30  ;;  %v3221_v47 = vmul.f32 %v6092_v18, %v3218_v62 }
 0x3a9   : > { %v6450_v22 = vpop.permute.xlu1 %2833  ;;  %v6452_v41 = vpop.permute.xlu0 %2831 }
 0x3aa   : > { %9532 = vst [vmem:[#allocation351_spill] sm:$0xff] %v6450_v22  ;;  %9533 = vst [vmem:[#allocation352_spill] sm:$0xff] %v6452_v41 }
 0x3ab   : > { %3189 = vrot.lane.b32.xlu1 %v3160_v10, %s4944_s30  ;;  %3187 = vrot.lane.b32.xlu0 %v3159_v63, %s4944_s30  ;;  %v3224_v10 = vmul.f32 %v6103_v3, %v3218_v62  ;;  %v3223_v63 = vmul.f32 %v6107_v17, %v3218_v62  ;;  %s6753_s30 = sld [smem:[#allocation2 + %s3488_s26]]  ;;  %s3828_s26 = sadd.s32 54, %s5093_s18 }
 0x3ad   : > { %v6456_v46 = vpop.permute.xlu1 %2837  ;;  %v6458_v54 = vpop.permute.xlu0 %2835 }
 0x3ae   : > { %9534 = vst [vmem:[#allocation353_spill] sm:$0xff] %v6456_v46  ;;  %9535 = vst [vmem:[#allocation354_spill] sm:$0xff] %v6458_v54 }
 0x3af   : > { %3241 = vrot.lane.b32.xlu1 %v3220_v8, %s4945_s4  ;;  %3239 = vrot.lane.b32.xlu0 %v3219_v14, %s4945_s4  ;;  %v3226_v14 = vmul.f32 %v6117_v9, %v3218_v62 }
 0x3b1   : > { %v6462_v22 = vpop.permute.xlu1 %2841  ;;  %v6464_v41 = vpop.permute.xlu0 %2839 }
 0x3b2   : > { %9536 = vst [vmem:[#allocation355_spill] sm:$0xff] %v6462_v22  ;;  %9537 = vst [vmem:[#allocation356_spill] sm:$0xff] %v6464_v41  ;;  %v3225_v22 = vmul.f32 %v6121_v55, %v3218_v62 }
 0x3b3   : > { %3245 = vrot.lane.b32.xlu1 %v3222_v29, %s4945_s4  ;;  %3243 = vrot.lane.b32.xlu0 %v3221_v47, %s4945_s4  ;;  %v3228_v29 = vmul.f32 %v6131_v13, %v3218_v62  ;;  %v3227_v47 = vmul.f32 %v6135_v1, %v3218_v62  ;;  %v3290_v62 = vmul.f32 %v6088_v15, %v3286_v30 }
 0x3b5   : > { %v6469_v46 = vpop.permute.xlu1 %2845  ;;  %v6471_v8 = vpop.permute.xlu0 %2843 }
 0x3b6   : > { %9538 = vst [vmem:[#allocation357_spill] sm:$0xff] %v6469_v46  ;;  %9539 = vst [vmem:[#allocation358_spill] sm:$0xff] %v6471_v8 }
 0x3b7   : > { %3249 = vrot.lane.b32.xlu1 %v3224_v10, %s4945_s4  ;;  %3247 = vrot.lane.b32.xlu0 %v3223_v63, %s4945_s4  ;;  %v3288_v63 = vmul.f32 %v6074_v0, %v3286_v30 }
 0x3b9   : > { %v6475_v54 = vpop.permute.xlu1 %2849  ;;  %v6477_v41 = vpop.permute.xlu0 %2847 }
 0x3ba   : > { %9540 = vst [vmem:[#allocation359_spill] sm:$0xff] %v6475_v54  ;;  %9541 = vst [vmem:[#allocation360_spill] sm:$0xff] %v6477_v41  ;;  %v3287_v54 = vmul.f32 %v6078_v4, %v3286_v30  ;;  %v268_v41 = vsel %vm267_vm0, %v5194_v24, %v5200_v28  ;;  %v273_v24 = vsel %vm267_vm0, %v5213_v36, %v5211_v35 }
 0x3bb   : > { %3253 = vrot.lane.b32.xlu1 %v3226_v14, %s4945_s4  ;;  %3251 = vrot.lane.b32.xlu0 %v3225_v22, %s4945_s4  ;;  %v3289_v22 = vmul.f32 %v6092_v18, %v3286_v30 }
 0x3bd   : > { %v6481_v46 = vpop.permute.xlu1 %2901  ;;  %v6483_v10 = vpop.permute.xlu0 %2899 }
 0x3be   : > { %9542 = vst [vmem:[#allocation361_spill] sm:$0xff] %v6481_v46  ;;  %9543 = vst [vmem:[#allocation362_spill] sm:$0xff] %v6483_v10  ;;  %v6521_v10 = vstv %s3353_s7  ;;  %v207_v46 = vstv %s206_s8  ;;  %s3692_s7 = sadd.s32 52, %s5093_s18 }
 0x3bf   : > { %3257 = vrot.lane.b32.xlu1 %v3228_v29, %s4945_s4  ;;  %3255 = vrot.lane.b32.xlu0 %v3227_v47, %s4945_s4  ;;  %s6917_s4 = sld [smem:[#allocation2 + %s3556_s3]]  ;;  %s3896_s3 = sadd.s32 55, %s5093_s18 }
 0x3c0   : > { %s7221_s8 = sld [smem:[#allocation2 + %s3692_s7]]  ;;  %s4032_s7 = sadd.s32 57, %s5093_s18 }
 0x3c1   : > { %v6487_v8 = vpop.permute.xlu1 %2905  ;;  %v6489_v14 = vpop.permute.xlu0 %2903 }
 0x3c2   : > { %9544 = vst [vmem:[#allocation363_spill] sm:$0xff] %v6487_v8  ;;  %9545 = vst [vmem:[#allocation364_spill] sm:$0xff] %v6489_v14  ;;  %v3292_v8 = vmul.f32 %v6103_v3, %v3286_v30  ;;  %v3291_v14 = vmul.f32 %v6107_v17, %v3286_v30 }
 0x3c3   : > { %3309 = vrot.lane.b32.xlu1 %v3288_v63, %s4946_s19  ;;  %3307 = vrot.lane.b32.xlu0 %v3287_v54, %s4946_s19 }
 0x3c5   : > { %v6495_v29 = vpop.permute.xlu1 %2909  ;;  %v6497_v47 = vpop.permute.xlu0 %2907 }
 0x3c6   : > { %9546 = vst [vmem:[#allocation365_spill] sm:$0xff] %v6495_v29  ;;  %9547 = vst [vmem:[#allocation366_spill] sm:$0xff] %v6497_v47  ;;  %v3294_v29 = vmul.f32 %v6117_v9, %v3286_v30 }
 0x3c7   : > { %3313 = vrot.lane.b32.xlu1 %v3290_v62, %s4946_s19  ;;  %3311 = vrot.lane.b32.xlu0 %v3289_v22, %s4946_s19  ;;  %v3293_v62 = vmul.f32 %v6121_v55, %v3286_v30 }
 0x3c9   : > { %v6504_v63 = vpop.permute.xlu1 %2913  ;;  %v6506_v54 = vpop.permute.xlu0 %2911 }
 0x3ca   : > { %9548 = vst [vmem:[#allocation367_spill] sm:$0xff] %v6504_v63  ;;  %9549 = vst [vmem:[#allocation368_spill] sm:$0xff] %v6506_v54  ;;  %v3296_v63 = vmul.f32 %v6131_v13, %v3286_v30  ;;  %v3295_v54 = vmul.f32 %v6135_v1, %v3286_v30 }
 0x3cb   : > { %3317 = vrot.lane.b32.xlu1 %v3292_v8, %s4946_s19  ;;  %3315 = vrot.lane.b32.xlu0 %v3291_v14, %s4946_s19 }
 0x3cd   : > { %v6513_v47 = vpop.permute.xlu1 %2917  ;;  %v6515_v22 = vpop.permute.xlu0 %2915 }
 0x3ce   : > { %9550 = vst [vmem:[#allocation369_spill] sm:$0xff] %v6513_v47  ;;  %9551 = vst [vmem:[#allocation370_spill] sm:$0xff] %v6515_v22  ;;  %v208_v22 = vmul.f32 %v6078_v4, %v207_v46 }
 0x3cf   : > { %3321 = vrot.lane.b32.xlu1 %v3294_v29, %s4946_s19  ;;  %3319 = vrot.lane.b32.xlu0 %v3293_v62, %s4946_s19  ;;  %v3356_v29 = vmul.f32 %v6074_v0, %v6521_v10  ;;  %v3355_v62 = vmul.f32 %v6078_v4, %v6521_v10  ;;  %v212_v4 = vmul.f32 %v6103_v3, %v207_v46 }
 0x3d1   : > { %v6523_v8 = vpop.permute.xlu1 %2969  ;;  %v6525_v14 = vpop.permute.xlu0 %2967 }
 0x3d2   : > { %9552 = vst [vmem:[#allocation371_spill] sm:$0xff] %v6523_v8  ;;  %9553 = vst [vmem:[#allocation372_spill] sm:$0xff] %v6525_v14  ;;  %v210_v8 = vmul.f32 %v6092_v18, %v207_v46  ;;  %v209_v14 = vmul.f32 %v6074_v0, %v207_v46  ;;  %v211_v0 = vmul.f32 %v6088_v15, %v207_v46 }
 0x3d3   : > { %3325 = vrot.lane.b32.xlu1 %v3296_v63, %s4946_s19  ;;  %3323 = vrot.lane.b32.xlu0 %v3295_v54, %s4946_s19  ;;  %v270_v63 = vsel %vm267_vm0, %v5192_v23, %v5198_v27  ;;  %v3358_v54 = vmul.f32 %v6088_v15, %v6521_v10  ;;  %v272_v15 = vsel %vm267_vm0, %v5204_v31, %v5213_v36  ;;  %s7069_s19 = sld [smem:[#allocation2 + %s3624_s24]]  ;;  %s3964_s24 = sadd.s32 56, %s5093_s18 }
 0x3d4   : > { %v286_v37 = vadd.f32 %v270_v63, %v210_v8  ;;  %v3360_v31 = vmul.f32 %v6103_v3, %v6521_v10  ;;  %v284_v36 = vadd.f32 %v268_v41, %v208_v22  ;;  %v337_v3 = vsel %vm335_vm1, %v5223_v44, %v5231_v49 }
 0x3d5   : > { %v6533_v47 = vpop.permute.xlu1 %2973  ;;  %v6535_v30 = vpop.permute.xlu0 %2971 }
 0x3d6   : > { %9554 = vst [vmem:[#allocation373_spill] sm:$0xff] %v6533_v47  ;;  %9555 = vst [vmem:[#allocation374_spill] sm:$0xff] %v6535_v30  ;;  %v3357_v47 = vmul.f32 %v6092_v18, %v6521_v10  ;;  %v213_v30 = vmul.f32 %v6121_v55, %v207_v46 }
 0x3d7   : > { %3377 = vrot.lane.b32.xlu1 %v3356_v29, %s4947_s16  ;;  %3375 = vrot.lane.b32.xlu0 %v3355_v62, %s4947_s16  ;;  %v269_v29 = vsel %vm267_vm0, %v5200_v28, %v5192_v23  ;;  %v271_v62 = vsel %vm267_vm0, %v5198_v27, %v5206_v32  ;;  %v214_v23 = vmul.f32 %v6117_v9, %v207_v46 }
 0x3d8   : > { %v215_v28 = vmul.f32 %v6135_v1, %v207_v46  ;;  %v274_v27 = vsel %vm267_vm0, %v5211_v35, %v5219_v40  ;;  %v3359_v32 = vmul.f32 %v6107_v17, %v6521_v10  ;;  %v285_v8 = vadd.f32 %v269_v29, %v209_v14 }
 0x3d9   : > { %v6564_v18 = vpop.permute.xlu1 %2977  ;;  %v6566_v38 = vpop.permute.xlu0 %2975  ;;  %v287_v63 = vadd.f32 %v271_v62, %v211_v0  ;;  %v275_v35 = vsel %vm267_vm0, %v5219_v40, %v5217_v39  ;;  %v336_v46 = vsel %vm335_vm1, %v5225_v45, %v5223_v44  ;;  %v338_v17 = vsel %vm335_vm1, %v5231_v49, %v5229_v48 }
 0x3da   : > { %9556 = vst [vmem:[#allocation375_spill] sm:$0xff] %v6564_v18  ;;  %v288_v18 = vadd.f32 %v272_v15, %v212_v4  ;;  %v289_v22 = vadd.f32 %v273_v24, %v213_v30  ;;  %v290_v14 = vadd.f32 %v274_v27, %v214_v23  ;;  %v339_v39 = vsel %vm335_vm1, %v5229_v48, %v5237_v53 }
 0x3db   : > { %3381 = vrot.lane.b32.xlu1 %v3358_v54, %s4947_s16  ;;  %3379 = vrot.lane.b32.xlu0 %v3357_v47, %s4947_s16  ;;  %v340_v40 = vsel %vm335_vm1, %v5235_v52, %v5244_v57  ;;  %v341_v44 = vsel %vm335_vm1, %v5244_v57, %v5242_v56  ;;  %v3362_v45 = vmul.f32 %v6117_v9, %v6521_v10  ;;  %vm1355_vm0 = vcmask 908288  }
 0x3dc   : > { %v3361_v49 = vmul.f32 %v6121_v55, %v6521_v10  ;;  %v291_v30 = vadd.f32 %v275_v35, %v215_v28  ;;  %v352_v48 = vadd.f32 %v336_v46, %v284_v36  ;;  %v353_v53 = vadd.f32 %v337_v3, %v285_v8 }
 0x3dd   : > { %v6597_v41 = vpop.permute.xlu1 %2981  ;;  %v6599_v47 = vpop.permute.xlu0 %2979  ;;  %v354_v54 = vadd.f32 %v338_v17, %v286_v37  ;;  %v355_v0 = vadd.f32 %v339_v39, %v287_v63  ;;  %v342_v52 = vsel %vm335_vm1, %v5242_v56, %v5250_v61  ;;  %v343_v57 = vsel %vm335_vm1, %v5250_v61, %v5248_v60 }
 0x3de   : > { %v404_v9 = vsel %vm403_vm2, %v5256_v6, %v5254_v5  ;;  %v356_v29 = vadd.f32 %v340_v40, %v288_v18  ;;  %v357_v37 = vadd.f32 %v341_v44, %v289_v22  ;;  %v405_v62 = vsel %vm403_vm2, %v5254_v5, %v5262_v12  ;;  %v6714_v40 = vld [vmem:[%s5086_s6 + $0x10] sm:$0xff] }
 0x3df   : > { %3385 = vrot.lane.b32.xlu1 %v3360_v31, %s4947_s16  ;;  %3383 = vrot.lane.b32.xlu0 %v3359_v32, %s4947_s16  ;;  %v406_v56 = vsel %vm403_vm2, %v5262_v12, %v5260_v11  ;;  %v407_v60 = vsel %vm403_vm2, %v5260_v11, %v5268_v20  ;;  %v3364_v61 = vmul.f32 %v6131_v13, %v6521_v10  ;;  %v6645_v12 = vstv %s6583_s28  ;;  %s7373_s28 = sld [smem:[#allocation2 + %s3760_s27]]  ;;  %s4100_s27 = sadd.s32 58, %s5093_s18 }
 0x3e0   : > { %v3363_v6 = vmul.f32 %v6135_v1, %v6521_v10  ;;  %v358_v5 = vadd.f32 %v342_v52, %v290_v14  ;;  %v359_v15 = vadd.f32 %v343_v57, %v291_v30  ;;  %v420_v18 = vadd.f32 %v404_v9, %v352_v48  ;;  %v9559_v30 = vld [vmem:[#allocation14_spill] sm:$0xff]  ;;  %v9563_v9 = vld [vmem:[#allocation15_spill] sm:$0xff] }
 0x3e1   : > { %v6625_v4 = vpop.permute.xlu1 %2985  ;;  %v6627_v55 = vpop.permute.xlu0 %2983  ;;  %v408_v11 = vsel %vm403_vm2, %v5266_v19, %v5275_v26  ;;  %v409_v20 = vsel %vm403_vm2, %v5275_v26, %v5273_v25  ;;  %v410_v13 = vsel %vm403_vm2, %v5273_v25, %v5281_v34  ;;  %v411_v1 = vsel %vm403_vm2, %v5281_v34, %v5279_v33  ;;  %v6672_v25 = vld [vmem:[%s5086_s6 + $0x8] sm:$0xff]  ;;  %v6677_v34 = vld [vmem:[%s5086_s6] sm:$0xff] }
 0x3e2   : > { %v421_v23 = vadd.f32 %v405_v62, %v353_v53  ;;  %v422_v28 = vadd.f32 %v406_v56, %v354_v54  ;;  %v423_v19 = vadd.f32 %v407_v60, %v355_v0  ;;  %v472_v27 = vsel %vm471_vm3, %v5287_v43, %v5285_v42  ;;  %v9560_v53 = vld [vmem:[#allocation13_spill] sm:$0xff]  ;;  %v9561_v0 = vld [vmem:[#allocation16_spill] sm:$0xff]  ;;  %v9562_v57 = vld [vmem:[#allocation18_spill] sm:$0xff] }
 0x3e3   : > { %3389 = vrot.lane.b32.xlu1 %v3362_v45, %s4947_s16  ;;  %3387 = vrot.lane.b32.xlu0 %v3361_v49, %s4947_s16  ;;  %v473_v26 = vsel %vm471_vm3, %v5285_v42, %v5293_v51  ;;  %v3424_v33 = vmul.f32 %v6672_v25, %v6645_v12  ;;  %v3423_v31 = vmul.f32 %v6677_v34, %v6645_v12  ;;  %vm1423_vm1 = vcmask 900096  }
 0x3e4   : > { %v424_v43 = vadd.f32 %v408_v11, %v356_v29  ;;  %v425_v32 = vadd.f32 %v409_v20, %v357_v37  ;;  %v426_v36 = vadd.f32 %v410_v13, %v358_v5  ;;  %v427_v8 = vadd.f32 %v411_v1, %v359_v15  ;;  %v9565_v15 = vld [vmem:[#allocation20_spill] sm:$0xff]  ;;  %v6749_v13 = vld [vmem:[%s5086_s6 + $0x20] sm:$0xff] }
 0x3e5   : > { %v6659_v10 = vpop.permute.xlu1 %3037  ;;  %v6661_v24 = vpop.permute.xlu0 %3035  ;;  %v474_v42 = vsel %vm471_vm3, %v5293_v51, %v5291_v50  ;;  %v475_v63 = vsel %vm471_vm3, %v5291_v50, %v5299_v59  ;;  %v476_v35 = vsel %vm471_vm3, %v5297_v58, %v5306_v7  ;;  %v477_v46 = vsel %vm471_vm3, %v5306_v7, %v5304_v2  ;;  %v9557_v59 = vld [vmem:[#allocation11_spill] sm:$0xff]  ;;  %v9558_v58 = vld [vmem:[#allocation12_spill] sm:$0xff] }
 0x3e6   : > { %v488_v22 = vadd.f32 %v472_v27, %v420_v18  ;;  %v489_v14 = vadd.f32 %v473_v26, %v421_v23  ;;  %v478_v51 = vsel %vm471_vm3, %v5304_v2, %v5312_v21  ;;  %v479_v50 = vsel %vm471_vm3, %v5312_v21, %v5310_v16  ;;  %v6709_v7 = vld [vmem:[%s5086_s6 + $0x18] sm:$0xff]  ;;  %v6744_v11 = vld [vmem:[%s5086_s6 + $0x28] sm:$0xff]  ;;  %v9566_v26 = vld [vmem:[#allocation19_spill] sm:$0xff] }
 0x3e7   : > { %3393 = vrot.lane.b32.xlu1 %v3364_v61, %s4947_s16  ;;  %3391 = vrot.lane.b32.xlu0 %v3363_v6, %s4947_s16  ;;  %v540_v39 = vsel %vm539_vm4, %v9558_v58, %v9557_v59  ;;  %v3426_v2 = vmul.f32 %v6709_v7, %v6645_v12  ;;  %v3425_v16 = vmul.f32 %v6714_v40, %v6645_v12  ;;  %v9564_v6 = vld [vmem:[#allocation17_spill] sm:$0xff]  ;;  %vm1491_vm2 = vcmask 891904   ;;  %s4952_s16 = smov 76  }
 0x3e8   : > { %v490_v21 = vadd.f32 %v474_v42, %v422_v28  ;;  %v491_v44 = vadd.f32 %v475_v63, %v423_v19  ;;  %v492_v45 = vadd.f32 %v476_v35, %v424_v43  ;;  %v493_v49 = vadd.f32 %v477_v46, %v425_v32  ;;  %v9568_v43 = vld [vmem:[#allocation22_spill] sm:$0xff]  ;;  %v9570_v42 = vld [vmem:[#allocation23_spill] sm:$0xff]  ;;  %v9573_v58 = vld [vmem:[#allocation25_spill] sm:$0xff] }
 0x3e9   : > { %v6693_v3 = vpop.permute.xlu1 %3041  ;;  %v6695_v17 = vpop.permute.xlu0 %3039  ;;  %v541_v48 = vsel %vm539_vm4, %v9557_v59, %v9559_v30  ;;  %v542_v54 = vsel %vm539_vm4, %v9559_v30, %v9560_v53  ;;  %v543_v52 = vsel %vm539_vm4, %v9560_v53, %v9561_v0  ;;  %v544_v29 = vsel %vm539_vm4, %v9563_v9, %v9562_v57  ;;  %v9572_v59 = vld [vmem:[#allocation28_spill] sm:$0xff]  ;;  %v9576_v9 = vld [vmem:[#allocation29_spill] sm:$0xff] }
 0x3ea   : > { %v494_v56 = vadd.f32 %v478_v51, %v426_v36  ;;  %v495_v60 = vadd.f32 %v479_v50, %v427_v8  ;;  %v556_v61 = vadd.f32 %v540_v39, %v488_v22  ;;  %v545_v5 = vsel %vm539_vm4, %v9562_v57, %v9564_v6  ;;  %v9569_v36 = vld [vmem:[#allocation24_spill] sm:$0xff]  ;;  %v9571_v51 = vld [vmem:[#allocation26_spill] sm:$0xff] }
 0x3eb   : > { %3445 = vrot.lane.b32.xlu1 %v3424_v33, %s4948_s29  ;;  %3443 = vrot.lane.b32.xlu0 %v3423_v31, %s4948_s29  ;;  %v546_v18 = vsel %vm539_vm4, %v9564_v6, %v9565_v15  ;;  %v3428_v20 = vmul.f32 %v6744_v11, %v6645_v12  ;;  %v3427_v1 = vmul.f32 %v6749_v13, %v6645_v12  ;;  %v9567_v31 = vld [vmem:[#allocation21_spill] sm:$0xff]  ;;  %v9578_v6 = vld [vmem:[#allocation32_spill] sm:$0xff]  ;;  %vm1559_vm3 = vcmask 883712  }
 0x3ec   : > { %v557_v23 = vadd.f32 %v541_v48, %v489_v14  ;;  %v558_v28 = vadd.f32 %v542_v54, %v490_v21  ;;  %v559_v19 = vadd.f32 %v543_v52, %v491_v44  ;;  %v560_v27 = vadd.f32 %v544_v29, %v492_v45  ;;  %v6783_v21 = vld [vmem:[%s5086_s6 + $0x38] sm:$0xff]  ;;  %v6788_v45 = vld [vmem:[%s5086_s6 + $0x30] sm:$0xff] }
 0x3ed   : > { %v6730_v37 = vpop.permute.xlu1 %3045  ;;  %v6732_v62 = vpop.permute.xlu0 %3043  ;;  %v547_v33 = vsel %vm539_vm4, %v9565_v15, %v9566_v26  ;;  %v608_v32 = vsel %vm607_vm5, %v9568_v43, %v9567_v31  ;;  %v609_v8 = vsel %vm607_vm5, %v9567_v31, %v9569_v36  ;;  %v610_v63 = vsel %vm607_vm5, %v9569_v36, %v9570_v42  ;;  %v9575_v52 = vld [vmem:[#allocation30_spill] sm:$0xff]  ;;  %v6822_v31 = vld [vmem:[%s5086_s6 + $0x40] sm:$0xff] }
 0x3ee   : > { %v561_v22 = vadd.f32 %v545_v5, %v493_v49  ;;  %v562_v14 = vadd.f32 %v546_v18, %v494_v56  ;;  %v611_v50 = vsel %vm607_vm5, %v9570_v42, %v9571_v51  ;;  %v612_v39 = vsel %vm607_vm5, %v9573_v58, %v9572_v59  ;;  %v9577_v56 = vld [vmem:[#allocation31_spill] sm:$0xff]  ;;  %v9585_v58 = vld [vmem:[#allocation40_spill] sm:$0xff] }
 0x3ef   : > { %3449 = vrot.lane.b32.xlu1 %v3426_v2, %s4948_s29  ;;  %3447 = vrot.lane.b32.xlu0 %v3425_v16, %s4948_s29  ;;  %v9574_v2 = vld [vmem:[#allocation27_spill] sm:$0xff]  ;;  %v3430_v44 = vmul.f32 %v6783_v21, %v6645_v12  ;;  %v3429_v49 = vmul.f32 %v6788_v45, %v6645_v12  ;;  %v563_v30 = vadd.f32 %v547_v33, %v495_v60  ;;  %v6817_v33 = vld [vmem:[%s5086_s6 + $0x48] sm:$0xff]  ;;  %v6827_v42 = vstv %s6753_s30  ;;  %s7525_s30 = sld [smem:[#allocation2 + %s3828_s26]]  ;;  %s4958_s26 = smov 70  }
 0x3f0   : > { %v613_v16 = vsel %vm607_vm5, %v9572_v59, %v9574_v2  ;;  %v624_v48 = vadd.f32 %v608_v32, %v556_v61  ;;  %v625_v53 = vadd.f32 %v609_v8, %v557_v23  ;;  %v626_v54 = vadd.f32 %v610_v63, %v558_v28  ;;  %v9580_v23 = vld [vmem:[#allocation33_spill] sm:$0xff]  ;;  %v9582_v63 = vld [vmem:[#allocation38_spill] sm:$0xff] }
 0x3f1   : > { %v6767_v35 = vpop.permute.xlu1 %3049  ;;  %v6769_v46 = vpop.permute.xlu0 %3047  ;;  %v627_v0 = vadd.f32 %v611_v50, %v559_v19  ;;  %v614_v57 = vsel %vm607_vm5, %v9574_v2, %v9575_v52  ;;  %v615_v29 = vsel %vm607_vm5, %v9575_v52, %v9576_v9  ;;  %v676_v5 = vsel %vm675_vm6, %v9578_v6, %v9577_v56  ;;  %v9581_v19 = vld [vmem:[#allocation36_spill] sm:$0xff]  ;;  %v9584_v50 = vld [vmem:[#allocation37_spill] sm:$0xff]  ;;  %v9586_v2 = vld [vmem:[#allocation39_spill] sm:$0xff] }
 0x3f2   : > { %v628_v61 = vadd.f32 %v612_v39, %v560_v27  ;;  %v629_v18 = vadd.f32 %v613_v16, %v561_v22  ;;  %v679_v26 = vsel %vm675_vm6, %v9580_v23, %v9581_v19  ;;  %v3432_v27 = vmul.f32 %v6817_v33, %v6645_v12  ;;  %v9583_v22 = vld [vmem:[#allocation35_spill] sm:$0xff]  ;;  %v9588_v52 = vld [vmem:[#allocation42_spill] sm:$0xff]  ;;  %v9589_v9 = vld [vmem:[#allocation44_spill] sm:$0xff] }
 0x3f3   : > { %3453 = vrot.lane.b32.xlu1 %v3428_v20, %s4948_s29  ;;  %3451 = vrot.lane.b32.xlu0 %v3427_v1, %s4948_s29  ;;  %v9579_v20 = vld [vmem:[#allocation34_spill] sm:$0xff]  ;;  %v3431_v43 = vmul.f32 %v6822_v31, %v6645_v12  ;;  %v630_v32 = vadd.f32 %v614_v57, %v562_v14  ;;  %v631_v36 = vadd.f32 %v615_v29, %v563_v30  ;;  %v9592_v19 = vld [vmem:[#allocation48_spill] sm:$0xff]  ;;  %vm1627_vm4 = vcmask 875520  }
 0x3f4   : > { %v677_v1 = vsel %vm675_vm6, %v9577_v56, %v9579_v20  ;;  %v678_v28 = vsel %vm675_vm6, %v9579_v20, %v9580_v23  ;;  %v692_v8 = vadd.f32 %v676_v5, %v624_v48  ;;  %v680_v51 = vsel %vm675_vm6, %v9583_v22, %v9582_v63  ;;  %v9587_v48 = vld [vmem:[#allocation41_spill] sm:$0xff]  ;;  %v9590_v20 = vld [vmem:[#allocation43_spill] sm:$0xff]  ;;  %v9591_v23 = vld [vmem:[#allocation46_spill] sm:$0xff] }
 0x3f5   : > { %v6801_v15 = vpop.permute.xlu1 %3053  ;;  %v6803_v60 = vpop.permute.xlu0 %3051  ;;  %v681_v59 = vsel %vm675_vm6, %v9582_v63, %v9584_v50  ;;  %v682_v39 = vsel %vm675_vm6, %v9584_v50, %v9585_v58  ;;  %v683_v12 = vsel %vm675_vm6, %v9585_v58, %v9586_v2  ;;  %v695_v30 = vadd.f32 %v679_v26, %v627_v0  ;;  %v9593_v26 = vld [vmem:[#allocation45_spill] sm:$0xff]  ;;  %v9595_v22 = vld [vmem:[#allocation50_spill] sm:$0xff]  ;;  %v9597_v58 = vld [vmem:[#allocation51_spill] sm:$0xff] }
 0x3f6   : > { %v744_v57 = vsel %vm743_vm7, %v9588_v52, %v9587_v48  ;;  %v745_v29 = vsel %vm743_vm7, %v9587_v48, %v9589_v9  ;;  %v3492_v56 = vmul.f32 %v6672_v25, %v6827_v42  ;;  %v697_v0 = vadd.f32 %v681_v59, %v629_v18  ;;  %v9596_v50 = vld [vmem:[#allocation49_spill] sm:$0xff] }
 0x3f7   : > { %3457 = vrot.lane.b32.xlu1 %v3430_v44, %s4948_s29  ;;  %3455 = vrot.lane.b32.xlu0 %v3429_v49, %s4948_s29  ;;  %v693_v44 = vadd.f32 %v677_v1, %v625_v53  ;;  %v694_v49 = vadd.f32 %v678_v28, %v626_v54  ;;  %v3491_v53 = vmul.f32 %v6677_v34, %v6827_v42  ;;  %vm1695_vm5 = vcmask 867328  }
 0x3f8   : > { %v696_v54 = vadd.f32 %v680_v51, %v628_v61  ;;  %v698_v6 = vadd.f32 %v682_v39, %v630_v32  ;;  %v699_v5 = vadd.f32 %v683_v12, %v631_v36  ;;  %v746_v1 = vsel %vm743_vm7, %v9589_v9, %v9590_v20  ;;  %v9598_v39 = vld [vmem:[#allocation52_spill] sm:$0xff]  ;;  %v9599_v9 = vld [vmem:[#allocation54_spill] sm:$0xff] }
 0x3f9   : > { %v6841_v14 = vpop.permute.xlu1 %3105  ;;  %v6843_v16 = vpop.permute.xlu0 %3103  ;;  %v747_v28 = vsel %vm743_vm7, %v9590_v20, %v9591_v23  ;;  %v760_v32 = vadd.f32 %v744_v57, %v692_v8  ;;  %v761_v36 = vadd.f32 %v745_v29, %v693_v44  ;;  %v751_v59 = vsel %vm743_vm7, %v9595_v22, %v9596_v50  ;;  %v9600_v20 = vld [vmem:[#allocation53_spill] sm:$0xff]  ;;  %v9601_v23 = vld [vmem:[#allocation56_spill] sm:$0xff] }
 0x3fa   : > { %v812_v2 = vsel %vm811_vm8, %v9598_v39, %v9597_v58  ;;  %v3494_v8 = vmul.f32 %v6709_v7, %v6827_v42  ;;  %v3493_v12 = vmul.f32 %v6714_v40, %v6827_v42  ;;  %v762_v44 = vadd.f32 %v746_v1, %v694_v49 }
 0x3fb   : > { %3461 = vrot.lane.b32.xlu1 %v3432_v27, %s4948_s29  ;;  %3459 = vrot.lane.b32.xlu0 %v3431_v43, %s4948_s29  ;;  %v748_v27 = vsel %vm743_vm7, %v9593_v26, %v9592_v19  ;;  %v9594_v43 = vld [vmem:[#allocation47_spill] sm:$0xff]  ;;  %v763_v48 = vadd.f32 %v747_v28, %v695_v30  ;;  %v813_v29 = vsel %vm811_vm8, %v9597_v58, %v9599_v9  ;;  %v9604_v28 = vld [vmem:[#allocation57_spill] sm:$0xff]  ;;  %vm1763_vm6 = vcmask 859136   ;;  %s4953_s29 = smov 75  }
 0x3fc   : > { %v749_v63 = vsel %vm743_vm7, %v9592_v19, %v9594_v43  ;;  %v750_v51 = vsel %vm743_vm7, %v9594_v43, %v9595_v22  ;;  %v764_v52 = vadd.f32 %v748_v27, %v696_v54  ;;  %v9602_v19 = vld [vmem:[#allocation58_spill] sm:$0xff]  ;;  %v9603_v26 = vld [vmem:[#allocation55_spill] sm:$0xff]  ;;  %v828_v1 = vadd.f32 %v812_v2, %v760_v32  ;;  %v9607_v2 = vld [vmem:[#allocation61_spill] sm:$0xff] }
 0x3fd   : > { %v6869_v61 = vpop.permute.xlu1 %3109  ;;  %v6871_v18 = vpop.permute.xlu0 %3107  ;;  %v765_v57 = vadd.f32 %v749_v63, %v697_v0  ;;  %v816_v43 = vsel %vm811_vm8, %v9603_v26, %v9602_v19  ;;  %v766_v54 = vadd.f32 %v750_v51, %v698_v6  ;;  %v767_v0 = vadd.f32 %v751_v59, %v699_v5  ;;  %v9605_v63 = vld [vmem:[#allocation60_spill] sm:$0xff]  ;;  %v9606_v58 = vld [vmem:[#allocation59_spill] sm:$0xff]  ;;  %v9614_v26 = vld [vmem:[#allocation65_spill] sm:$0xff] }
 0x3fe   : > { %v817_v27 = vsel %vm811_vm8, %v9602_v19, %v9604_v28  ;;  %v818_v22 = vsel %vm811_vm8, %v9604_v28, %v9605_v63  ;;  %v3496_v50 = vmul.f32 %v6744_v11, %v6827_v42  ;;  %v3495_v6 = vmul.f32 %v6749_v13, %v6827_v42  ;;  %v9613_v19 = vld [vmem:[#allocation68_spill] sm:$0xff]  ;;  %v9615_v28 = vld [vmem:[#allocation67_spill] sm:$0xff] }
 0x3ff   : > { %3513 = vrot.lane.b32.xlu1 %v3492_v56, %s4949_s17  ;;  %3511 = vrot.lane.b32.xlu0 %v3491_v53, %s4949_s17  ;;  %v814_v56 = vsel %vm811_vm8, %v9599_v9, %v9600_v20  ;;  %v815_v53 = vsel %vm811_vm8, %v9600_v20, %v9601_v23  ;;  %v829_v5 = vadd.f32 %v813_v29, %v761_v36  ;;  %v9609_v9 = vld [vmem:[#allocation64_spill] sm:$0xff]  ;;  %v9610_v23 = vld [vmem:[#allocation63_spill] sm:$0xff]  ;;  %vm1831_vm7 = vcmask 850944  }
 0x400   : > { %v830_v32 = vadd.f32 %v814_v56, %v762_v44  ;;  %v831_v51 = vadd.f32 %v815_v53, %v763_v48  ;;  %v832_v59 = vadd.f32 %v816_v43, %v764_v52  ;;  %v819_v39 = vsel %vm811_vm8, %v9605_v63, %v9606_v58  ;;  %v9612_v56 = vld [vmem:[#allocation66_spill] sm:$0xff] }
 0x401   : > { %v6900_v49 = vpop.permute.xlu1 %3113  ;;  %v6902_v30 = vpop.permute.xlu0 %3111  ;;  %v881_v20 = vsel %vm879_vm9, %v9607_v2, %v9609_v9  ;;  %v882_v36 = vsel %vm879_vm9, %v9609_v9, %v9610_v23  ;;  %v833_v52 = vadd.f32 %v817_v27, %v765_v57  ;;  %v834_v29 = vadd.f32 %v818_v22, %v766_v54  ;;  %v9616_v9 = vld [vmem:[#allocation70_spill] sm:$0xff] }
 0x402   : > { %v883_v53 = vsel %vm879_vm9, %v9610_v23, %v9612_v56  ;;  %v884_v43 = vsel %vm879_vm9, %v9614_v26, %v9613_v19  ;;  %v885_v63 = vsel %vm879_vm9, %v9613_v19, %v9615_v28  ;;  %v3498_v57 = vmul.f32 %v6783_v21, %v6827_v42  ;;  %v9617_v56 = vld [vmem:[#allocation69_spill] sm:$0xff]  ;;  %v9619_v19 = vld [vmem:[#allocation72_spill] sm:$0xff] }
 0x403   : > { %3517 = vrot.lane.b32.xlu1 %v3494_v8, %s4949_s17  ;;  %3515 = vrot.lane.b32.xlu0 %v3493_v12, %s4949_s17  ;;  %v9608_v8 = vld [vmem:[#allocation62_spill] sm:$0xff]  ;;  %v3497_v54 = vmul.f32 %v6788_v45, %v6827_v42  ;;  %v835_v27 = vadd.f32 %v819_v39, %v767_v0  ;;  %v897_v58 = vadd.f32 %v881_v20, %v829_v5  ;;  %v9623_v39 = vld [vmem:[#allocation73_spill] sm:$0xff]  ;;  %v9624_v20 = vld [vmem:[#allocation76_spill] sm:$0xff]  ;;  %vm1899_vm8 = vcmask 842752  }
 0x404   : > { %v880_v12 = vsel %vm879_vm9, %v9608_v8, %v9607_v2  ;;  %v898_v2 = vadd.f32 %v882_v36, %v830_v32  ;;  %v899_v8 = vadd.f32 %v883_v53, %v831_v51  ;;  %v886_v23 = vsel %vm879_vm9, %v9615_v28, %v9616_v9  ;;  %v9622_v32 = vld [vmem:[#allocation74_spill] sm:$0xff] }
 0x405   : > { %v6931_v44 = vpop.permute.xlu1 %3117  ;;  %v6933_v48 = vpop.permute.xlu0 %3115  ;;  %v896_v22 = vadd.f32 %v880_v12, %v828_v1  ;;  %v900_v1 = vadd.f32 %v884_v43, %v832_v59  ;;  %v901_v5 = vadd.f32 %v885_v63, %v833_v52  ;;  %v950_v12 = vsel %vm947_vm10, %v9622_v32, %v9623_v39 }
 0x406   : > { %9611 = vst [vmem:[#allocation11_spill] sm:$0xff] %v6931_v44  ;;  %v951_v36 = vsel %vm947_vm10, %v9623_v39, %v9624_v20  ;;  %v3500_v59 = vmul.f32 %v6817_v33, %v6827_v42  ;;  %v3499_v52 = vmul.f32 %v6822_v31, %v6827_v42  ;;  %v902_v53 = vadd.f32 %v886_v23, %v834_v29  ;;  %v9629_v39 = vld [vmem:[#allocation79_spill] sm:$0xff]  ;;  %v9633_v20 = vld [vmem:[#allocation82_spill] sm:$0xff] }
 0x407   : > { %3521 = vrot.lane.b32.xlu1 %v3496_v50, %s4949_s17  ;;  %3519 = vrot.lane.b32.xlu0 %v3495_v6, %s4949_s17  ;;  %v887_v50 = vsel %vm879_vm9, %v9616_v9, %v9617_v56  ;;  %v9618_v6 = vld [vmem:[#allocation71_spill] sm:$0xff]  ;;  %v6979_v63 = vstv %s6917_s4  ;;  %v9625_v9 = vld [vmem:[#allocation78_spill] sm:$0xff]  ;;  %v966_v23 = vadd.f32 %v950_v12, %v898_v2  ;;  %vm1967_vm9 = vcmask 834560   ;;  %s7695_s4 = sld [smem:[#allocation2 + %s3896_s3]] }
 0x408   : > { %v948_v26 = vsel %vm947_vm10, %v9619_v19, %v9618_v6  ;;  %v949_v51 = vsel %vm947_vm10, %v9618_v6, %v9622_v32  ;;  %v903_v43 = vadd.f32 %v887_v50, %v835_v27  ;;  %v9626_v56 = vld [vmem:[#allocation75_spill] sm:$0xff]  ;;  %v9627_v19 = vld [vmem:[#allocation77_spill] sm:$0xff]  ;;  %v967_v50 = vadd.f32 %v951_v36, %v899_v8 }
 0x409   : > { %v6959_v44 = vpop.permute.xlu1 %3121  ;;  %v6961_v0 = vpop.permute.xlu0 %3119  ;;  %v964_v28 = vadd.f32 %v948_v26, %v896_v22  ;;  %v952_v6 = vsel %vm947_vm10, %v9626_v56, %v9625_v9  ;;  %v965_v22 = vadd.f32 %v949_v51, %v897_v58  ;;  %v9632_v26 = vld [vmem:[#allocation81_spill] sm:$0xff]  ;;  %v3559_v58 = vmul.f32 %v6677_v34, %v6979_v63  ;;  %v9635_v36 = vld [vmem:[#allocation83_spill] sm:$0xff] }
 0x40a   : > { %9620 = vst [vmem:[#allocation12_spill] sm:$0xff] %v6959_v44  ;;  %9621 = vst [vmem:[#allocation14_spill] sm:$0xff] %v6961_v0  ;;  %v1016_v56 = vsel %vm1015_vm11, %v9633_v20, %v9632_v26  ;;  %v968_v2 = vadd.f32 %v952_v6, %v900_v1  ;;  %v9642_v6 = vld [vmem:[#allocation90_spill] sm:$0xff] }
 0x40b   : > { %3525 = vrot.lane.b32.xlu1 %v3498_v57, %s4949_s17  ;;  %3523 = vrot.lane.b32.xlu0 %v3497_v54, %s4949_s17  ;;  %v953_v57 = vsel %vm947_vm10, %v9625_v9, %v9627_v19  ;;  %v9628_v54 = vld [vmem:[#allocation80_spill] sm:$0xff] }
 0x40c   : > { %v954_v32 = vsel %vm947_vm10, %v9627_v19, %v9628_v54  ;;  %v955_v42 = vsel %vm947_vm10, %v9628_v54, %v9629_v39  ;;  %v9634_v9 = vld [vmem:[#allocation84_spill] sm:$0xff]  ;;  %v3560_v19 = vmul.f32 %v6672_v25, %v6979_v63  ;;  %v969_v8 = vadd.f32 %v953_v57, %v901_v5  ;;  %v9636_v39 = vld [vmem:[#allocation86_spill] sm:$0xff] }
 0x40d   : > { %v6993_v29 = vpop.permute.xlu1 %3173  ;;  %v6995_v27 = vpop.permute.xlu0 %3171  ;;  %v1017_v44 = vsel %vm1015_vm11, %v9632_v26, %v9634_v9  ;;  %v970_v51 = vadd.f32 %v954_v32, %v902_v53  ;;  %v971_v12 = vadd.f32 %v955_v42, %v903_v43  ;;  %v1018_v54 = vsel %vm1015_vm11, %v9634_v9, %v9635_v36  ;;  %v9637_v26 = vld [vmem:[#allocation88_spill] sm:$0xff]  ;;  %v9643_v32 = vld [vmem:[#allocation89_spill] sm:$0xff]  ;;  %v9644_v9 = vld [vmem:[#allocation91_spill] sm:$0xff] }
 0x40e   : > { %9630 = vst [vmem:[#allocation13_spill] sm:$0xff] %v6993_v29  ;;  %9631 = vst [vmem:[#allocation16_spill] sm:$0xff] %v6995_v27  ;;  %v9639_v27 = vld [vmem:[#allocation87_spill] sm:$0xff]  ;;  %v1032_v53 = vadd.f32 %v1016_v56, %v964_v28  ;;  %v1033_v43 = vadd.f32 %v1017_v44, %v965_v22  ;;  %v1023_v42 = vsel %vm1015_vm11, %v9642_v6, %v9643_v32  ;;  %v9647_v32 = vld [vmem:[#allocation93_spill] sm:$0xff]  ;;  %vm2035_vm10 = vcmask 826368  }
 0x40f   : > { %3529 = vrot.lane.b32.xlu1 %v3500_v59, %s4949_s17  ;;  %3527 = vrot.lane.b32.xlu0 %v3499_v52, %s4949_s17  ;;  %v1019_v59 = vsel %vm1015_vm11, %v9635_v36, %v9636_v39  ;;  %v9638_v52 = vld [vmem:[#allocation85_spill] sm:$0xff]  ;;  %v1021_v29 = vsel %vm1015_vm11, %v9637_v26, %v9639_v27  ;;  %v1022_v57 = vsel %vm1015_vm11, %v9639_v27, %v9642_v6  ;;  %v9645_v36 = vld [vmem:[#allocation92_spill] sm:$0xff]  ;;  %s4954_s17 = smov 74  }
 0x410   : > { %v1020_v20 = vsel %vm1015_vm11, %v9638_v52, %v9637_v26  ;;  %v1084_v39 = vsel %vm1083_vm12, %v9645_v36, %v9644_v9  ;;  %v3562_v44 = vmul.f32 %v6709_v7, %v6979_v63  ;;  %v3561_v28 = vmul.f32 %v6714_v40, %v6979_v63  ;;  %v9646_v52 = vld [vmem:[#allocation94_spill] sm:$0xff]  ;;  %v9648_v36 = vld [vmem:[#allocation96_spill] sm:$0xff] }
 0x411   : > { %v7021_v1 = vpop.permute.xlu1 %3177  ;;  %v7023_v5 = vpop.permute.xlu0 %3175  ;;  %v1034_v27 = vadd.f32 %v1018_v54, %v966_v23  ;;  %v1035_v22 = vadd.f32 %v1019_v59, %v967_v50  ;;  %v1036_v56 = vadd.f32 %v1020_v20, %v968_v2  ;;  %v1037_v26 = vadd.f32 %v1021_v29, %v969_v8  ;;  %v9653_v54 = vld [vmem:[#allocation97_spill] sm:$0xff]  ;;  %v9654_v20 = vld [vmem:[#allocation100_spill] sm:$0xff] }
 0x412   : > { %9640 = vst [vmem:[#allocation18_spill] sm:$0xff] %v7021_v1  ;;  %9641 = vst [vmem:[#allocation15_spill] sm:$0xff] %v7023_v5  ;;  %v1085_v6 = vsel %vm1083_vm12, %v9644_v9, %v9646_v52  ;;  %v9649_v1 = vld [vmem:[#allocation98_spill] sm:$0xff]  ;;  %v9650_v5 = vld [vmem:[#allocation95_spill] sm:$0xff]  ;;  %v1038_v29 = vadd.f32 %v1022_v57, %v970_v51  ;;  %v1039_v2 = vadd.f32 %v1023_v42, %v971_v12  ;;  %vm2103_vm11 = vcmask 818176  }
 0x413   : > { %3581 = vrot.lane.b32.xlu1 %v3560_v19, %s4950_s22  ;;  %3579 = vrot.lane.b32.xlu0 %v3559_v58, %s4950_s22  ;;  %v1086_v19 = vsel %vm1083_vm12, %v9646_v52, %v9647_v32  ;;  %v1087_v58 = vsel %vm1083_vm12, %v9647_v32, %v9648_v36  ;;  %v1088_v0 = vsel %vm1083_vm12, %v9650_v5, %v9649_v1  ;;  %v9656_v52 = vld [vmem:[#allocation101_spill] sm:$0xff]  ;;  %v9658_v32 = vld [vmem:[#allocation104_spill] sm:$0xff] }
 0x414   : > { %v1100_v8 = vadd.f32 %v1084_v39, %v1032_v53  ;;  %v1089_v59 = vsel %vm1083_vm12, %v9649_v1, %v9653_v54  ;;  %v1090_v9 = vsel %vm1083_vm12, %v9653_v54, %v9654_v20  ;;  %v3564_v5 = vmul.f32 %v6744_v11, %v6979_v63  ;;  %v9655_v1 = vld [vmem:[#allocation99_spill] sm:$0xff] }
 0x415   : > { %v7052_v23 = vpop.permute.xlu1 %3181  ;;  %v7054_v50 = vpop.permute.xlu0 %3179  ;;  %v3563_v51 = vmul.f32 %v6749_v13, %v6979_v63  ;;  %v1101_v12 = vadd.f32 %v1085_v6, %v1033_v43  ;;  %v1102_v53 = vadd.f32 %v1086_v19, %v1034_v27  ;;  %v1103_v57 = vadd.f32 %v1087_v58, %v1035_v22  ;;  %v9659_v54 = vld [vmem:[#allocation103_spill] sm:$0xff]  ;;  %v9662_v6 = vld [vmem:[#allocation106_spill] sm:$0xff]  ;;  %v9663_v58 = vld [vmem:[#allocation108_spill] sm:$0xff] }
 0x416   : > { %9651 = vst [vmem:[#allocation17_spill] sm:$0xff] %v7052_v23  ;;  %9652 = vst [vmem:[#allocation20_spill] sm:$0xff] %v7054_v50  ;;  %v1104_v42 = vadd.f32 %v1088_v0, %v1036_v56  ;;  %v1091_v39 = vsel %vm1083_vm12, %v9654_v20, %v9655_v1  ;;  %v1153_v36 = vsel %vm1151_vm13, %v9656_v52, %v9658_v32  ;;  %v9664_v20 = vld [vmem:[#allocation105_spill] sm:$0xff]  ;;  %v9669_v23 = vld [vmem:[#allocation112_spill] sm:$0xff]  ;;  %vm2171_vm12 = vcmask 809984  }
 0x417   : > { %3585 = vrot.lane.b32.xlu1 %v3562_v44, %s4950_s22  ;;  %3583 = vrot.lane.b32.xlu0 %v3561_v28, %s4950_s22  ;;  %v9657_v44 = vld [vmem:[#allocation102_spill] sm:$0xff]  ;;  %v1154_v43 = vsel %vm1151_vm13, %v9658_v32, %v9659_v54  ;;  %v1105_v22 = vadd.f32 %v1089_v59, %v1037_v26  ;;  %v1106_v56 = vadd.f32 %v1090_v9, %v1038_v29 }
 0x418   : > { %v1152_v28 = vsel %vm1151_vm13, %v9657_v44, %v9656_v52  ;;  %v1155_v19 = vsel %vm1151_vm13, %v9659_v54, %v9662_v6  ;;  %v1156_v1 = vsel %vm1151_vm13, %v9664_v20, %v9663_v58  ;;  %v9665_v44 = vld [vmem:[#allocation107_spill] sm:$0xff]  ;;  %v3566_v26 = vmul.f32 %v6783_v21, %v6979_v63  ;;  %v9666_v20 = vld [vmem:[#allocation110_spill] sm:$0xff] }
 0x419   : > { %v7083_v27 = vpop.permute.xlu1 %3185  ;;  %v7085_v0 = vpop.permute.xlu0 %3183  ;;  %v1157_v52 = vsel %vm1151_vm13, %v9663_v58, %v9665_v44  ;;  %v3565_v29 = vmul.f32 %v6788_v45, %v6979_v63  ;;  %v1107_v59 = vadd.f32 %v1091_v39, %v1039_v2  ;;  %v1168_v9 = vadd.f32 %v1152_v28, %v1100_v8  ;;  %v9667_v58 = vld [vmem:[#allocation109_spill] sm:$0xff] }
 0x41a   : > { %9660 = vst [vmem:[#allocation19_spill] sm:$0xff] %v7083_v27  ;;  %9661 = vst [vmem:[#allocation21_spill] sm:$0xff] %v7085_v0  ;;  %v1169_v32 = vadd.f32 %v1153_v36, %v1101_v12  ;;  %v1170_v54 = vadd.f32 %v1154_v43, %v1102_v53  ;;  %v1171_v6 = vadd.f32 %v1155_v19, %v1103_v57  ;;  %v9672_v53 = vld [vmem:[#allocation114_spill] sm:$0xff]  ;;  %v9673_v39 = vld [vmem:[#allocation113_spill] sm:$0xff] }
 0x41b   : > { %3589 = vrot.lane.b32.xlu1 %v3564_v5, %s4950_s22  ;;  %3587 = vrot.lane.b32.xlu0 %v3563_v51, %s4950_s22  ;;  %v1158_v27 = vsel %vm1151_vm13, %v9665_v44, %v9666_v20  ;;  %v1159_v5 = vsel %vm1151_vm13, %v9666_v20, %v9667_v58  ;;  %v9668_v51 = vld [vmem:[#allocation111_spill] sm:$0xff]  ;;  %v1172_v8 = vadd.f32 %v1156_v1, %v1104_v42  ;;  %v9674_v36 = vld [vmem:[#allocation116_spill] sm:$0xff]  ;;  %v7131_v44 = vstv %s7069_s19  ;;  %s7859_s19 = sld [smem:[#allocation2 + %s3964_s24]]  ;;  %s4304_s24 = sadd.s32 61, %s5093_s18 }
 0x41c   : > { %v1220_v0 = vsel %vm1219_vm14, %v9669_v23, %v9668_v51  ;;  %v1173_v12 = vadd.f32 %v1157_v52, %v1105_v22  ;;  %v1221_v57 = vsel %vm1219_vm14, %v9668_v51, %v9672_v53  ;;  %v1222_v28 = vsel %vm1219_vm14, %v9672_v53, %v9673_v39  ;;  %v9675_v52 = vld [vmem:[#allocation118_spill] sm:$0xff]  ;;  %v9676_v20 = vld [vmem:[#allocation115_spill] sm:$0xff]  ;;  %v9677_v51 = vld [vmem:[#allocation117_spill] sm:$0xff] }
 0x41d   : > { %v7111_v50 = vpop.permute.xlu1 %3189  ;;  %v7113_v2 = vpop.permute.xlu0 %3187  ;;  %v1223_v43 = vsel %vm1219_vm14, %v9673_v39, %v9674_v36  ;;  %v3568_v23 = vmul.f32 %v6817_v33, %v6979_v63  ;;  %v3567_v42 = vmul.f32 %v6822_v31, %v6979_v63  ;;  %v1174_v22 = vadd.f32 %v1158_v27, %v1106_v56  ;;  %v9679_v39 = vld [vmem:[#allocation119_spill] sm:$0xff]  ;;  %v9683_v36 = vld [vmem:[#allocation122_spill] sm:$0xff] }
 0x41e   : > { %9670 = vst [vmem:[#allocation22_spill] sm:$0xff] %v7111_v50  ;;  %9671 = vst [vmem:[#allocation24_spill] sm:$0xff] %v7113_v2  ;;  %v1175_v19 = vadd.f32 %v1159_v5, %v1107_v59  ;;  %v1236_v1 = vadd.f32 %v1220_v0, %v1168_v9  ;;  %v1224_v58 = vsel %vm1219_vm14, %v9676_v20, %v9675_v52  ;;  %v9682_v5 = vld [vmem:[#allocation121_spill] sm:$0xff]  ;;  %vm2239_vm13 = vcmask 801792  }
 0x41f   : > { %3593 = vrot.lane.b32.xlu1 %v3566_v26, %s4950_s22  ;;  %3591 = vrot.lane.b32.xlu0 %v3565_v29, %s4950_s22  ;;  %v1225_v26 = vsel %vm1219_vm14, %v9675_v52, %v9677_v51  ;;  %v9678_v29 = vld [vmem:[#allocation120_spill] sm:$0xff]  ;;  %v1237_v56 = vadd.f32 %v1221_v57, %v1169_v32  ;;  %v1238_v59 = vadd.f32 %v1222_v28, %v1170_v54 }
 0x420   : > { %v1226_v53 = vsel %vm1219_vm14, %v9677_v51, %v9678_v29  ;;  %v1227_v63 = vsel %vm1219_vm14, %v9678_v29, %v9679_v39  ;;  %v1239_v9 = vadd.f32 %v1223_v43, %v1171_v6  ;;  %v1288_v20 = vsel %vm1287_vm15, %v9683_v36, %v9682_v5  ;;  %v9684_v52 = vld [vmem:[#allocation124_spill] sm:$0xff]  ;;  %v9685_v43 = vld [vmem:[#allocation123_spill] sm:$0xff]  ;;  %v9686_v39 = vld [vmem:[#allocation126_spill] sm:$0xff] }
 0x421   : > { %v7145_v27 = vpop.permute.xlu1 %3241  ;;  %v7147_v0 = vpop.permute.xlu0 %3239  ;;  %v1289_v50 = vsel %vm1287_vm15, %v9682_v5, %v9684_v52  ;;  %v3628_v51 = vmul.f32 %v6672_v25, %v7131_v44  ;;  %v3627_v32 = vmul.f32 %v6677_v34, %v7131_v44  ;;  %v1240_v54 = vadd.f32 %v1224_v58, %v1172_v8  ;;  %v9687_v5 = vld [vmem:[#allocation128_spill] sm:$0xff]  ;;  %v9692_v58 = vld [vmem:[#allocation130_spill] sm:$0xff] }
 0x422   : > { %9680 = vst [vmem:[#allocation23_spill] sm:$0xff] %v7145_v27  ;;  %9681 = vst [vmem:[#allocation26_spill] sm:$0xff] %v7147_v0  ;;  %v1241_v6 = vadd.f32 %v1225_v26, %v1173_v12  ;;  %v1242_v57 = vadd.f32 %v1226_v53, %v1174_v22  ;;  %v1243_v28 = vadd.f32 %v1227_v63, %v1175_v19  ;;  %v9689_v0 = vld [vmem:[#allocation127_spill] sm:$0xff]  ;;  %v9693_v53 = vld [vmem:[#allocation129_spill] sm:$0xff]  ;;  %vm2307_vm14 = vcmask 793600  }
 0x423   : > { %3597 = vrot.lane.b32.xlu1 %v3568_v23, %s4950_s22  ;;  %3595 = vrot.lane.b32.xlu0 %v3567_v42, %s4950_s22  ;;  %v1290_v29 = vsel %vm1287_vm15, %v9684_v52, %v9685_v43  ;;  %v1291_v23 = vsel %vm1287_vm15, %v9685_v43, %v9686_v39  ;;  %v9688_v42 = vld [vmem:[#allocation125_spill] sm:$0xff]  ;;  %v1293_v27 = vsel %vm1287_vm15, %v9687_v5, %v9689_v0  ;;  %v9694_v52 = vld [vmem:[#allocation131_spill] sm:$0xff]  ;;  %v9695_v43 = vld [vmem:[#allocation132_spill] sm:$0xff]  ;;  %s4955_s22 = smov 73  }
 0x424   : > { %v1292_v36 = vsel %vm1287_vm15, %v9688_v42, %v9687_v5  ;;  %v1304_v22 = vadd.f32 %v1288_v20, %v1236_v1  ;;  %v1305_v19 = vadd.f32 %v1289_v50, %v1237_v56  ;;  %v1294_v26 = vsel %vm1287_vm15, %v9689_v0, %v9692_v58  ;;  %v9696_v42 = vld [vmem:[#allocation134_spill] sm:$0xff] }
 0x425   : > { %v7173_v8 = vpop.permute.xlu1 %3245  ;;  %v7175_v12 = vpop.permute.xlu0 %3243  ;;  %v1295_v63 = vsel %vm1287_vm15, %v9692_v58, %v9693_v53  ;;  %v1356_v39 = vsel %vm1355_vm0, %v9695_v43, %v9694_v52  ;;  %v3630_v50 = vmul.f32 %v6709_v7, %v7131_v44  ;;  %v3629_v1 = vmul.f32 %v6714_v40, %v7131_v44  ;;  %v9697_v53 = vld [vmem:[#allocation133_spill] sm:$0xff]  ;;  %v9698_v43 = vld [vmem:[#allocation136_spill] sm:$0xff] }
 0x426   : > { %9690 = vst [vmem:[#allocation28_spill] sm:$0xff] %v7173_v8  ;;  %9691 = vst [vmem:[#allocation25_spill] sm:$0xff] %v7175_v12  ;;  %v1306_v0 = vadd.f32 %v1290_v29, %v1238_v59  ;;  %v1307_v56 = vadd.f32 %v1291_v23, %v1239_v9  ;;  %v1308_v20 = vadd.f32 %v1292_v36, %v1240_v54  ;;  %v9699_v8 = vld [vmem:[#allocation138_spill] sm:$0xff]  ;;  %v9700_v12 = vld [vmem:[#allocation135_spill] sm:$0xff]  ;;  %vm2375_vm15 = vcmask 785408  }
 0x427   : > { %3649 = vrot.lane.b32.xlu1 %v3628_v51, %s4951_s5  ;;  %3647 = vrot.lane.b32.xlu0 %v3627_v32, %s4951_s5  ;;  %v1309_v5 = vadd.f32 %v1293_v27, %v1241_v6  ;;  %v1357_v58 = vsel %vm1355_vm0, %v9694_v52, %v9696_v42  ;;  %v1358_v51 = vsel %vm1355_vm0, %v9696_v42, %v9697_v53  ;;  %v9703_v29 = vld [vmem:[#allocation137_spill] sm:$0xff]  ;;  %v9704_v36 = vld [vmem:[#allocation140_spill] sm:$0xff] }
 0x428   : > { %v1359_v32 = vsel %vm1355_vm0, %v9697_v53, %v9698_v43  ;;  %v1360_v2 = vsel %vm1355_vm0, %v9700_v12, %v9699_v8  ;;  %v1310_v27 = vadd.f32 %v1294_v26, %v1242_v57  ;;  %v1311_v54 = vadd.f32 %v1295_v63, %v1243_v28  ;;  %v9706_v42 = vld [vmem:[#allocation141_spill] sm:$0xff]  ;;  %v9708_v53 = vld [vmem:[#allocation144_spill] sm:$0xff] }
 0x429   : > { %v7204_v59 = vpop.permute.xlu1 %3249  ;;  %v7206_v9 = vpop.permute.xlu0 %3247  ;;  %v1372_v6 = vadd.f32 %v1356_v39, %v1304_v22  ;;  %v1361_v23 = vsel %vm1355_vm0, %v9699_v8, %v9703_v29  ;;  %v1362_v52 = vsel %vm1355_vm0, %v9703_v29, %v9704_v36  ;;  %v3632_v12 = vmul.f32 %v6744_v11, %v7131_v44  ;;  %v9705_v8 = vld [vmem:[#allocation139_spill] sm:$0xff] }
 0x42a   : > { %9701 = vst [vmem:[#allocation27_spill] sm:$0xff] %v7204_v59  ;;  %9702 = vst [vmem:[#allocation30_spill] sm:$0xff] %v7206_v9  ;;  %v3631_v57 = vmul.f32 %v6749_v13, %v7131_v44  ;;  %v1373_v28 = vadd.f32 %v1357_v58, %v1305_v19  ;;  %v1374_v22 = vadd.f32 %v1358_v51, %v1306_v0  ;;  %v9709_v29 = vld [vmem:[#allocation143_spill] sm:$0xff]  ;;  %v9712_v58 = vld [vmem:[#allocation146_spill] sm:$0xff] }
 0x42b   : > { %3653 = vrot.lane.b32.xlu1 %v3630_v50, %s4951_s5  ;;  %3651 = vrot.lane.b32.xlu0 %v3629_v1, %s4951_s5  ;;  %v1375_v26 = vadd.f32 %v1359_v32, %v1307_v56  ;;  %v1376_v63 = vadd.f32 %v1360_v2, %v1308_v20  ;;  %v1363_v39 = vsel %vm1355_vm0, %v9704_v36, %v9705_v8  ;;  %v9707_v50 = vld [vmem:[#allocation142_spill] sm:$0xff]  ;;  %v9713_v32 = vld [vmem:[#allocation148_spill] sm:$0xff]  ;;  %v9714_v36 = vld [vmem:[#allocation145_spill] sm:$0xff]  ;;  %vm2443_vm0 = vcmask 777216  }
 0x42c   : > { %v1424_v1 = vsel %vm1423_vm1, %v9707_v50, %v9706_v42  ;;  %v1425_v43 = vsel %vm1423_vm1, %v9706_v42, %v9708_v53  ;;  %v1426_v19 = vsel %vm1423_vm1, %v9708_v53, %v9709_v29  ;;  %v1377_v56 = vadd.f32 %v1361_v23, %v1309_v5  ;;  %v9715_v50 = vld [vmem:[#allocation147_spill] sm:$0xff]  ;;  %v9719_v59 = vld [vmem:[#allocation152_spill] sm:$0xff] }
 0x42d   : > { %v7235_v0 = vpop.permute.xlu1 %3253  ;;  %v7237_v2 = vpop.permute.xlu0 %3251  ;;  %v1378_v20 = vadd.f32 %v1362_v52, %v1310_v27  ;;  %v1427_v51 = vsel %vm1423_vm1, %v9709_v29, %v9712_v58  ;;  %v1428_v8 = vsel %vm1423_vm1, %v9714_v36, %v9713_v32  ;;  %v1429_v42 = vsel %vm1423_vm1, %v9713_v32, %v9715_v50  ;;  %v9716_v36 = vld [vmem:[#allocation150_spill] sm:$0xff]  ;;  %v9717_v32 = vld [vmem:[#allocation149_spill] sm:$0xff] }
 0x42e   : > { %9710 = vst [vmem:[#allocation29_spill] sm:$0xff] %v7235_v0  ;;  %9711 = vst [vmem:[#allocation31_spill] sm:$0xff] %v7237_v2  ;;  %v3634_v5 = vmul.f32 %v6783_v21, %v7131_v44  ;;  %v3633_v27 = vmul.f32 %v6788_v45, %v7131_v44  ;;  %v1379_v23 = vadd.f32 %v1363_v39, %v1311_v54  ;;  %v9723_v39 = vld [vmem:[#allocation153_spill] sm:$0xff] }
 0x42f   : > { %3657 = vrot.lane.b32.xlu1 %v3632_v12, %s4951_s5  ;;  %3655 = vrot.lane.b32.xlu0 %v3631_v57, %s4951_s5  ;;  %v1440_v52 = vadd.f32 %v1424_v1, %v1372_v6  ;;  %v1441_v53 = vadd.f32 %v1425_v43, %v1373_v28  ;;  %v1442_v29 = vadd.f32 %v1426_v19, %v1374_v22  ;;  %v9718_v57 = vld [vmem:[#allocation151_spill] sm:$0xff]  ;;  %v9722_v22 = vld [vmem:[#allocation154_spill] sm:$0xff]  ;;  %v9724_v43 = vld [vmem:[#allocation156_spill] sm:$0xff] }
 0x430   : > { %v1443_v58 = vadd.f32 %v1427_v51, %v1375_v26  ;;  %v1430_v0 = vsel %vm1423_vm1, %v9715_v50, %v9716_v36  ;;  %v1431_v12 = vsel %vm1423_vm1, %v9716_v36, %v9717_v32  ;;  %v1492_v2 = vsel %vm1491_vm2, %v9719_v59, %v9718_v57  ;;  %v9726_v36 = vld [vmem:[#allocation155_spill] sm:$0xff] }
 0x431   : > { %v7263_v9 = vpop.permute.xlu1 %3257  ;;  %v7265_v54 = vpop.permute.xlu0 %3255  ;;  %v1444_v6 = vadd.f32 %v1428_v8, %v1376_v63  ;;  %v1445_v28 = vadd.f32 %v1429_v42, %v1377_v56  ;;  %v1493_v26 = vsel %vm1491_vm2, %v9718_v57, %v9722_v22  ;;  %v1494_v1 = vsel %vm1491_vm2, %v9722_v22, %v9723_v39  ;;  %v9725_v42 = vld [vmem:[#allocation158_spill] sm:$0xff]  ;;  %v9727_v57 = vld [vmem:[#allocation157_spill] sm:$0xff] }
 0x432   : > { %9720 = vst [vmem:[#allocation32_spill] sm:$0xff] %v7263_v9  ;;  %9721 = vst [vmem:[#allocation34_spill] sm:$0xff] %v7265_v54  ;;  %v1495_v19 = vsel %vm1491_vm2, %v9723_v39, %v9724_v43  ;;  %v3636_v59 = vmul.f32 %v6817_v33, %v7131_v44  ;;  %v3635_v63 = vmul.f32 %v6822_v31, %v7131_v44  ;;  %v7283_v50 = vstv %s7221_s8  ;;  %v9729_v39 = vld [vmem:[#allocation159_spill] sm:$0xff]  ;;  %v9733_v43 = vld [vmem:[#allocation162_spill] sm:$0xff]  ;;  %s8011_s8 = sld [smem:[#allocation2 + %s4032_s7]]  ;;  %s4372_s7 = sadd.s32 62, %s5093_s18 }
 0x433   : > { %3661 = vrot.lane.b32.xlu1 %v3634_v5, %s4951_s5  ;;  %3659 = vrot.lane.b32.xlu0 %v3633_v27, %s4951_s5  ;;  %v1446_v56 = vadd.f32 %v1430_v0, %v1378_v20  ;;  %v1447_v51 = vadd.f32 %v1431_v12, %v1379_v23  ;;  %v1508_v8 = vadd.f32 %v1492_v2, %v1440_v52  ;;  %v9728_v27 = vld [vmem:[#allocation160_spill] sm:$0xff]  ;;  %v9732_v12 = vld [vmem:[#allocation161_spill] sm:$0xff]  ;;  %vm2511_vm1 = vcmask 769024  }
 0x434   : > { %v1496_v32 = vsel %vm1491_vm2, %v9726_v36, %v9725_v42  ;;  %v1497_v5 = vsel %vm1491_vm2, %v9725_v42, %v9727_v57  ;;  %v1498_v22 = vsel %vm1491_vm2, %v9727_v57, %v9728_v27  ;;  %v1499_v44 = vsel %vm1491_vm2, %v9728_v27, %v9729_v39  ;;  %v9734_v42 = vld [vmem:[#allocation164_spill] sm:$0xff]  ;;  %v9736_v39 = vld [vmem:[#allocation166_spill] sm:$0xff] }
 0x435   : > { %v7297_v0 = vpop.permute.xlu1 %3309  ;;  %v7299_v2 = vpop.permute.xlu0 %3307  ;;  %v1509_v20 = vadd.f32 %v1493_v26, %v1441_v53  ;;  %v1510_v23 = vadd.f32 %v1494_v1, %v1442_v29  ;;  %v1511_v52 = vadd.f32 %v1495_v19, %v1443_v58  ;;  %v1560_v36 = vsel %vm1559_vm3, %v9733_v43, %v9732_v12  ;;  %v9735_v19 = vld [vmem:[#allocation163_spill] sm:$0xff] }
 0x436   : > { %9730 = vst [vmem:[#allocation33_spill] sm:$0xff] %v7297_v0  ;;  %9731 = vst [vmem:[#allocation36_spill] sm:$0xff] %v7299_v2  ;;  %v1561_v9 = vsel %vm1559_vm3, %v9732_v12, %v9734_v42  ;;  %v3696_v57 = vmul.f32 %v6672_v25, %v7283_v50  ;;  %v3695_v53 = vmul.f32 %v6677_v34, %v7283_v50  ;;  %v9737_v12 = vld [vmem:[#allocation168_spill] sm:$0xff]  ;;  %v9739_v2 = vld [vmem:[#allocation167_spill] sm:$0xff]  ;;  %vm2579_vm2 = vcmask 760832  }
 0x437   : > { %3665 = vrot.lane.b32.xlu1 %v3636_v59, %s4951_s5  ;;  %3663 = vrot.lane.b32.xlu0 %v3635_v63, %s4951_s5  ;;  %v1512_v29 = vadd.f32 %v1496_v32, %v1444_v6  ;;  %v1513_v58 = vadd.f32 %v1497_v5, %v1445_v28  ;;  %v1514_v26 = vadd.f32 %v1498_v22, %v1446_v56  ;;  %v9738_v63 = vld [vmem:[#allocation165_spill] sm:$0xff]  ;;  %v9742_v32 = vld [vmem:[#allocation170_spill] sm:$0xff]  ;;  %s4956_s5 = smov 72  }
 0x438   : > { %v1515_v1 = vadd.f32 %v1499_v44, %v1447_v51  ;;  %v1562_v27 = vsel %vm1559_vm3, %v9734_v42, %v9735_v19  ;;  %v1563_v59 = vsel %vm1559_vm3, %v9735_v19, %v9736_v39  ;;  %v1564_v43 = vsel %vm1559_vm3, %v9738_v63, %v9737_v12  ;;  %v9743_v22 = vld [vmem:[#allocation169_spill] sm:$0xff]  ;;  %v9744_v42 = vld [vmem:[#allocation171_spill] sm:$0xff]  ;;  %v9745_v19 = vld [vmem:[#allocation172_spill] sm:$0xff] }
 0x439   : > { %v1565_v0 = vsel %vm1559_vm3, %v9737_v12, %v9739_v2  ;;  %v7325_v6 = vpop.permute.xlu1 %3313  ;;  %v7327_v28 = vpop.permute.xlu0 %3311  ;;  %v1576_v56 = vadd.f32 %v1560_v36, %v1508_v8  ;;  %v1577_v51 = vadd.f32 %v1561_v9, %v1509_v20  ;;  %v1566_v5 = vsel %vm1559_vm3, %v9739_v2, %v9742_v32  ;;  %v9746_v63 = vld [vmem:[#allocation174_spill] sm:$0xff] }
 0x43a   : > { %9740 = vst [vmem:[#allocation38_spill] sm:$0xff] %v7325_v6  ;;  %9741 = vst [vmem:[#allocation35_spill] sm:$0xff] %v7327_v28  ;;  %v1567_v44 = vsel %vm1559_vm3, %v9742_v32, %v9743_v22  ;;  %v1628_v39 = vsel %vm1627_vm4, %v9745_v19, %v9744_v42  ;;  %v3698_v9 = vmul.f32 %v6709_v7, %v7283_v50  ;;  %v9747_v22 = vld [vmem:[#allocation173_spill] sm:$0xff]  ;;  %v9748_v19 = vld [vmem:[#allocation176_spill] sm:$0xff]  ;;  %vm2647_vm3 = vcmask 752640  }
 0x43b   : > { %3717 = vrot.lane.b32.xlu1 %v3696_v57, %s4952_s16  ;;  %3715 = vrot.lane.b32.xlu0 %v3695_v53, %s4952_s16  ;;  %v3697_v8 = vmul.f32 %v6714_v40, %v7283_v50  ;;  %v1578_v2 = vadd.f32 %v1562_v27, %v1510_v23  ;;  %v1579_v20 = vadd.f32 %v1563_v59, %v1511_v52  ;;  %v9749_v6 = vld [vmem:[#allocation178_spill] sm:$0xff]  ;;  %v9750_v28 = vld [vmem:[#allocation175_spill] sm:$0xff]  ;;  %v9753_v27 = vld [vmem:[#allocation177_spill] sm:$0xff] }
 0x43c   : > { %v1580_v36 = vadd.f32 %v1564_v43, %v1512_v29  ;;  %v1581_v12 = vadd.f32 %v1565_v0, %v1513_v58  ;;  %v1629_v32 = vsel %vm1627_vm4, %v9744_v42, %v9746_v63  ;;  %v1630_v57 = vsel %vm1627_vm4, %v9746_v63, %v9747_v22  ;;  %v9754_v43 = vld [vmem:[#allocation180_spill] sm:$0xff]  ;;  %v9756_v63 = vld [vmem:[#allocation181_spill] sm:$0xff] }
 0x43d   : > { %v1631_v53 = vsel %vm1627_vm4, %v9747_v22, %v9748_v19  ;;  %v1632_v54 = vsel %vm1627_vm4, %v9750_v28, %v9749_v6  ;;  %v7356_v23 = vpop.permute.xlu1 %3317  ;;  %v7358_v52 = vpop.permute.xlu0 %3315  ;;  %v1582_v0 = vadd.f32 %v1566_v5, %v1514_v26  ;;  %v1583_v29 = vadd.f32 %v1567_v44, %v1515_v1  ;;  %v9758_v22 = vld [vmem:[#allocation184_spill] sm:$0xff] }
 0x43e   : > { %9751 = vst [vmem:[#allocation37_spill] sm:$0xff] %v7356_v23  ;;  %9752 = vst [vmem:[#allocation40_spill] sm:$0xff] %v7358_v52  ;;  %v1644_v58 = vadd.f32 %v1628_v39, %v1576_v56  ;;  %v1633_v59 = vsel %vm1627_vm4, %v9749_v6, %v9753_v27  ;;  %v1634_v42 = vsel %vm1627_vm4, %v9753_v27, %v9754_v43  ;;  %v9755_v6 = vld [vmem:[#allocation179_spill] sm:$0xff]  ;;  %v9769_v23 = vld [vmem:[#allocation192_spill] sm:$0xff] }
 0x43f   : > { %3721 = vrot.lane.b32.xlu1 %v3698_v9, %s4952_s16  ;;  %3719 = vrot.lane.b32.xlu0 %v3697_v8, %s4952_s16  ;;  %v3700_v28 = vmul.f32 %v6744_v11, %v7283_v50  ;;  %v3699_v26 = vmul.f32 %v6749_v13, %v7283_v50  ;;  %v1645_v1 = vadd.f32 %v1629_v32, %v1577_v51  ;;  %v9757_v9 = vld [vmem:[#allocation182_spill] sm:$0xff]  ;;  %v9759_v27 = vld [vmem:[#allocation183_spill] sm:$0xff] }
 0x440   : > { %v1646_v56 = vadd.f32 %v1630_v57, %v1578_v2  ;;  %v1647_v5 = vadd.f32 %v1631_v53, %v1579_v20  ;;  %v1648_v44 = vadd.f32 %v1632_v54, %v1580_v36  ;;  %v1635_v39 = vsel %vm1627_vm4, %v9754_v43, %v9755_v6  ;;  %v9762_v32 = vld [vmem:[#allocation186_spill] sm:$0xff]  ;;  %v9763_v53 = vld [vmem:[#allocation188_spill] sm:$0xff]  ;;  %v9764_v43 = vld [vmem:[#allocation185_spill] sm:$0xff] }
 0x441   : > { %v1696_v8 = vsel %vm1695_vm5, %v9757_v9, %v9756_v63  ;;  %v1697_v19 = vsel %vm1695_vm5, %v9756_v63, %v9758_v22  ;;  %v1698_v51 = vsel %vm1695_vm5, %v9758_v22, %v9759_v27  ;;  %v7387_v2 = vpop.permute.xlu1 %3321  ;;  %v7389_v54 = vpop.permute.xlu0 %3319  ;;  %v1649_v20 = vadd.f32 %v1633_v59, %v1581_v12  ;;  %v9765_v9 = vld [vmem:[#allocation187_spill] sm:$0xff] }
 0x442   : > { %9760 = vst [vmem:[#allocation39_spill] sm:$0xff] %v7387_v2  ;;  %9761 = vst [vmem:[#allocation41_spill] sm:$0xff] %v7389_v54  ;;  %v1650_v36 = vadd.f32 %v1634_v42, %v1582_v0  ;;  %v1699_v57 = vsel %vm1695_vm5, %v9759_v27, %v9762_v32  ;;  %v1700_v6 = vsel %vm1695_vm5, %v9764_v43, %v9763_v53  ;;  %v9766_v43 = vld [vmem:[#allocation190_spill] sm:$0xff]  ;;  %vm2715_vm4 = vcmask 744448  }
 0x443   : > { %v1701_v63 = vsel %vm1695_vm5, %v9763_v53, %v9765_v9  ;;  %3725 = vrot.lane.b32.xlu1 %v3700_v28, %s4952_s16  ;;  %3723 = vrot.lane.b32.xlu0 %v3699_v26, %s4952_s16  ;;  %v3702_v12 = vmul.f32 %v6783_v21, %v7283_v50  ;;  %v3701_v0 = vmul.f32 %v6788_v45, %v7283_v50  ;;  %v9767_v53 = vld [vmem:[#allocation189_spill] sm:$0xff]  ;;  %v9768_v26 = vld [vmem:[#allocation191_spill] sm:$0xff] }
 0x444   : > { %v1651_v59 = vadd.f32 %v1635_v39, %v1583_v29  ;;  %v1712_v42 = vadd.f32 %v1696_v8, %v1644_v58  ;;  %v1713_v22 = vadd.f32 %v1697_v19, %v1645_v1  ;;  %v1714_v27 = vadd.f32 %v1698_v51, %v1646_v56  ;;  %v9772_v56 = vld [vmem:[#allocation194_spill] sm:$0xff]  ;;  %v9773_v39 = vld [vmem:[#allocation193_spill] sm:$0xff]  ;;  %v9774_v19 = vld [vmem:[#allocation196_spill] sm:$0xff] }
 0x445   : > { %v1715_v32 = vadd.f32 %v1699_v57, %v1647_v5  ;;  %v1702_v2 = vsel %vm1695_vm5, %v9765_v9, %v9766_v43  ;;  %v1703_v28 = vsel %vm1695_vm5, %v9766_v43, %v9767_v53  ;;  %v1764_v54 = vsel %vm1763_vm6, %v9769_v23, %v9768_v26  ;;  %v7415_v52 = vpop.permute.xlu1 %3325  ;;  %v7417_v29 = vpop.permute.xlu0 %3323  ;;  %v9776_v43 = vld [vmem:[#allocation195_spill] sm:$0xff] }
 0x446   : > { %9770 = vst [vmem:[#allocation42_spill] sm:$0xff] %v7415_v52  ;;  %9771 = vst [vmem:[#allocation44_spill] sm:$0xff] %v7417_v29  ;;  %v1716_v58 = vadd.f32 %v1700_v6, %v1648_v44  ;;  %v1717_v1 = vadd.f32 %v1701_v63, %v1649_v20  ;;  %v1765_v5 = vsel %vm1763_vm6, %v9768_v26, %v9772_v56  ;;  %v7435_v9 = vstv %s7373_s28  ;;  %v9775_v63 = vld [vmem:[#allocation198_spill] sm:$0xff]  ;;  %v9777_v26 = vld [vmem:[#allocation197_spill] sm:$0xff]  ;;  %s8160_s28 = sld [smem:[#allocation2 + %s4100_s27]]  ;;  %s4579_s27 = sshll.u32 %s4887_s12, 10 }
 0x447   : > { %v1766_v8 = vsel %vm1763_vm6, %v9772_v56, %v9773_v39  ;;  %v1767_v51 = vsel %vm1763_vm6, %v9773_v39, %v9774_v19  ;;  %3729 = vrot.lane.b32.xlu1 %v3702_v12, %s4952_s16  ;;  %3727 = vrot.lane.b32.xlu0 %v3701_v0, %s4952_s16  ;;  %v3704_v23 = vmul.f32 %v6817_v33, %v7283_v50  ;;  %v9778_v0 = vld [vmem:[#allocation200_spill] sm:$0xff]  ;;  %v9779_v39 = vld [vmem:[#allocation199_spill] sm:$0xff]  ;;  %v9783_v19 = vld [vmem:[#allocation202_spill] sm:$0xff]  ;;  %vm2783_vm5 = vcmask 736256   ;;  %s4449_s12 = scalar_lea.sflag [#allocation4], %s5082_s23 }
 0x448   : > { %v3703_v44 = vmul.f32 %v6822_v31, %v7283_v50  ;;  %v1718_v20 = vadd.f32 %v1702_v2, %v1650_v36  ;;  %v1719_v57 = vadd.f32 %v1703_v28, %v1651_v59  ;;  %v1780_v6 = vadd.f32 %v1764_v54, %v1712_v42  ;;  %v9782_v28 = vld [vmem:[#allocation201_spill] sm:$0xff] }
 0x449   : > { %v1768_v53 = vsel %vm1763_vm6, %v9776_v43, %v9775_v63  ;;  %v1769_v12 = vsel %vm1763_vm6, %v9775_v63, %v9777_v26  ;;  %v1770_v56 = vsel %vm1763_vm6, %v9777_v26, %v9778_v0  ;;  %v1771_v50 = vsel %vm1763_vm6, %v9778_v0, %v9779_v39  ;;  %v7449_v2 = vpop.permute.xlu1 %3377  ;;  %v7451_v54 = vpop.permute.xlu0 %3375  ;;  %v9784_v63 = vld [vmem:[#allocation204_spill] sm:$0xff]  ;;  %v9786_v39 = vld [vmem:[#allocation206_spill] sm:$0xff] }
 0x44a   : > { %9780 = vst [vmem:[#allocation43_spill] sm:$0xff] %v7449_v2  ;;  %9781 = vst [vmem:[#allocation46_spill] sm:$0xff] %v7451_v54  ;;  %v1781_v36 = vadd.f32 %v1765_v5, %v1713_v22  ;;  %v1782_v59 = vadd.f32 %v1766_v8, %v1714_v27  ;;  %v1783_v42 = vadd.f32 %v1767_v51, %v1715_v32  ;;  %v9785_v51 = vld [vmem:[#allocation203_spill] sm:$0xff]  ;;  %vm2851_vm6 = vcmask 728064  }
 0x44b   : > { %v1832_v43 = vsel %vm1831_vm7, %v9783_v19, %v9782_v28  ;;  %v1833_v52 = vsel %vm1831_vm7, %v9782_v28, %v9784_v63  ;;  %3733 = vrot.lane.b32.xlu1 %v3704_v23, %s4952_s16  ;;  %3731 = vrot.lane.b32.xlu0 %v3703_v44, %s4952_s16  ;;  %v3764_v26 = vmul.f32 %v6672_v25, %v7435_v9  ;;  %v9787_v28 = vld [vmem:[#allocation208_spill] sm:$0xff]  ;;  %v9788_v44 = vld [vmem:[#allocation205_spill] sm:$0xff]  ;;  %v9789_v25 = vld [vmem:[#allocation207_spill] sm:$0xff]  ;;  %s4957_s16 = smov 71  }
 0x44c   : > { %v3763_v22 = vmul.f32 %v6677_v34, %v7435_v9  ;;  %v1784_v27 = vadd.f32 %v1768_v53, %v1716_v58  ;;  %v1785_v32 = vadd.f32 %v1769_v12, %v1717_v1  ;;  %v1786_v5 = vadd.f32 %v1770_v56, %v1718_v20  ;;  %v9792_v53 = vld [vmem:[#allocation210_spill] sm:$0xff]  ;;  %v9793_v56 = vld [vmem:[#allocation209_spill] sm:$0xff] }
 0x44d   : > { %v1787_v8 = vadd.f32 %v1771_v50, %v1719_v57  ;;  %v1834_v0 = vsel %vm1831_vm7, %v9784_v63, %v9785_v51  ;;  %v1835_v23 = vsel %vm1831_vm7, %v9785_v51, %v9786_v39  ;;  %v1836_v19 = vsel %vm1831_vm7, %v9788_v44, %v9787_v28  ;;  %v7477_v58 = vpop.permute.xlu1 %3381  ;;  %v7479_v1 = vpop.permute.xlu0 %3379  ;;  %v9794_v63 = vld [vmem:[#allocation211_spill] sm:$0xff]  ;;  %v9795_v51 = vld [vmem:[#allocation212_spill] sm:$0xff] }
 0x44e   : > { %v1837_v34 = vsel %vm1831_vm7, %v9787_v28, %v9789_v25  ;;  %9790 = vst [vmem:[#allocation48_spill] sm:$0xff] %v7477_v58  ;;  %9791 = vst [vmem:[#allocation45_spill] sm:$0xff] %v7479_v1  ;;  %v1848_v20 = vadd.f32 %v1832_v43, %v1780_v6  ;;  %v1849_v57 = vadd.f32 %v1833_v52, %v1781_v36  ;;  %v9800_v58 = vld [vmem:[#allocation215_spill] sm:$0xff] }
 0x44f   : > { %v1838_v12 = vsel %vm1831_vm7, %v9789_v25, %v9792_v53  ;;  %v1839_v50 = vsel %vm1831_vm7, %v9792_v53, %v9793_v56  ;;  %v1900_v39 = vsel %vm1899_vm8, %v9795_v51, %v9794_v63  ;;  %3785 = vrot.lane.b32.xlu1 %v3764_v26, %s4953_s29  ;;  %3783 = vrot.lane.b32.xlu0 %v3763_v22, %s4953_s29  ;;  %v9796_v25 = vld [vmem:[#allocation214_spill] sm:$0xff]  ;;  %v9797_v56 = vld [vmem:[#allocation213_spill] sm:$0xff]  ;;  %v9798_v51 = vld [vmem:[#allocation216_spill] sm:$0xff]  ;;  %vm2919_vm7 = vcmask 719872  }
 0x450   : > { %v3766_v52 = vmul.f32 %v6709_v7, %v7435_v9  ;;  %v3765_v6 = vmul.f32 %v6714_v40, %v7435_v9  ;;  %v1850_v36 = vadd.f32 %v1834_v0, %v1782_v59  ;;  %v1851_v43 = vadd.f32 %v1835_v23, %v1783_v42  ;;  %v9799_v7 = vld [vmem:[#allocation218_spill] sm:$0xff]  ;;  %v9803_v23 = vld [vmem:[#allocation217_spill] sm:$0xff] }
 0x451   : > { %v1852_v28 = vadd.f32 %v1836_v19, %v1784_v27  ;;  %v1853_v44 = vadd.f32 %v1837_v34, %v1785_v32  ;;  %v1901_v53 = vsel %vm1899_vm8, %v9794_v63, %v9796_v25  ;;  %v1902_v26 = vsel %vm1899_vm8, %v9796_v25, %v9797_v56  ;;  %v7508_v59 = vpop.permute.xlu1 %3385  ;;  %v7510_v42 = vpop.permute.xlu0 %3383  ;;  %v9804_v34 = vld [vmem:[#allocation220_spill] sm:$0xff] }
 0x452   : > { %v1903_v22 = vsel %vm1899_vm8, %v9797_v56, %v9798_v51  ;;  %v1904_v40 = vsel %vm1899_vm8, %v9800_v58, %v9799_v7  ;;  %9801 = vst [vmem:[#allocation47_spill] sm:$0xff] %v7508_v59  ;;  %9802 = vst [vmem:[#allocation50_spill] sm:$0xff] %v7510_v42  ;;  %v1854_v27 = vadd.f32 %v1838_v12, %v1786_v5  ;;  %v9806_v56 = vld [vmem:[#allocation221_spill] sm:$0xff]  ;;  %v9808_v51 = vld [vmem:[#allocation224_spill] sm:$0xff] }
 0x453   : > { %v1855_v32 = vadd.f32 %v1839_v50, %v1787_v8  ;;  %v1916_v0 = vadd.f32 %v1900_v39, %v1848_v20  ;;  %v1905_v19 = vsel %vm1899_vm8, %v9799_v7, %v9803_v23  ;;  %v1906_v63 = vsel %vm1899_vm8, %v9803_v23, %v9804_v34  ;;  %3789 = vrot.lane.b32.xlu1 %v3766_v52, %s4953_s29  ;;  %v9805_v39 = vld [vmem:[#allocation219_spill] sm:$0xff]  ;;  %v9807_v52 = vld [vmem:[#allocation222_spill] sm:$0xff]  ;;  %v9869_v42 = vld [vmem:[#allocation272_spill] sm:$0xff] }
 0x454   : > { %3787 = vrot.lane.b32.xlu0 %v3765_v6, %s4953_s29  ;;  %v3768_v58 = vmul.f32 %v6744_v11, %v7435_v9  ;;  %v3767_v5 = vmul.f32 %v6749_v13, %v7435_v9  ;;  %v1917_v8 = vadd.f32 %v1901_v53, %v1849_v57  ;;  %v1918_v20 = vadd.f32 %v1902_v26, %v1850_v36  ;;  %v9809_v7 = vld [vmem:[#allocation223_spill] sm:$0xff]  ;;  %v9812_v53 = vld [vmem:[#allocation226_spill] sm:$0xff] }
 0x455   : > { %v1919_v12 = vadd.f32 %v1903_v22, %v1851_v43  ;;  %v1920_v50 = vadd.f32 %v1904_v40, %v1852_v28  ;;  %v1907_v25 = vsel %vm1899_vm8, %v9804_v34, %v9805_v39  ;;  %v1968_v6 = vsel %vm1967_vm9, %v9807_v52, %v9806_v56  ;;  %v7539_v57 = vpop.permute.xlu1 %3389  ;;  %v7541_v36 = vpop.permute.xlu0 %3387  ;;  %v9813_v22 = vld [vmem:[#allocation228_spill] sm:$0xff]  ;;  %v9814_v40 = vld [vmem:[#allocation225_spill] sm:$0xff]  ;;  %v9815_v34 = vld [vmem:[#allocation227_spill] sm:$0xff] }
 0x456   : > { %v1969_v11 = vsel %vm1967_vm9, %v9806_v56, %v9808_v51  ;;  %v1970_v13 = vsel %vm1967_vm9, %v9808_v51, %v9809_v7  ;;  %9810 = vst [vmem:[#allocation49_spill] sm:$0xff] %v7539_v57  ;;  %9811 = vst [vmem:[#allocation51_spill] sm:$0xff] %v7541_v36  ;;  %v1921_v43 = vadd.f32 %v1905_v19, %v1853_v44  ;;  %v9865_v59 = vld [vmem:[#allocation267_spill] sm:$0xff]  ;;  %vm2987_vm8 = vcmask 711680  }
 0x457   : > { %v1922_v28 = vadd.f32 %v1906_v63, %v1854_v27  ;;  %v1971_v26 = vsel %vm1967_vm9, %v9809_v7, %v9812_v53  ;;  %v1972_v23 = vsel %vm1967_vm9, %v9814_v40, %v9813_v22  ;;  %v1973_v39 = vsel %vm1967_vm9, %v9813_v22, %v9815_v34  ;;  %3793 = vrot.lane.b32.xlu1 %v3768_v58, %s4953_s29  ;;  %v9816_v7 = vld [vmem:[#allocation230_spill] sm:$0xff]  ;;  %v9817_v22 = vld [vmem:[#allocation229_spill] sm:$0xff]  ;;  %v9819_v40 = vld [vmem:[#allocation232_spill] sm:$0xff] }
 0x458   : > { %3791 = vrot.lane.b32.xlu0 %v3767_v5, %s4953_s29  ;;  %v3770_v44 = vmul.f32 %v6783_v21, %v7435_v9  ;;  %v3769_v27 = vmul.f32 %v6788_v45, %v7435_v9  ;;  %v1923_v19 = vadd.f32 %v1907_v25, %v1855_v32  ;;  %v1984_v63 = vadd.f32 %v1968_v6, %v1916_v0  ;;  %v9818_v5 = vld [vmem:[#allocation231_spill] sm:$0xff]  ;;  %v9824_v6 = vld [vmem:[#allocation236_spill] sm:$0xff] }
 0x459   : > { %v1985_v56 = vadd.f32 %v1969_v11, %v1917_v8  ;;  %v1986_v52 = vadd.f32 %v1970_v13, %v1918_v20  ;;  %v1987_v51 = vadd.f32 %v1971_v26, %v1919_v12  ;;  %v1974_v53 = vsel %vm1967_vm9, %v9815_v34, %v9816_v7  ;;  %v7567_v57 = vpop.permute.xlu1 %3393  ;;  %v7569_v45 = vpop.permute.xlu0 %3391  ;;  %v9822_v8 = vld [vmem:[#allocation234_spill] sm:$0xff]  ;;  %v9823_v12 = vld [vmem:[#allocation233_spill] sm:$0xff]  ;;  %v9868_v36 = vld [vmem:[#allocation271_spill] sm:$0xff] }
 0x45a   : > { %v1975_v58 = vsel %vm1967_vm9, %v9816_v7, %v9817_v22  ;;  %v2036_v21 = vsel %vm2035_vm10, %v9819_v40, %v9818_v5  ;;  %9820 = vst [vmem:[#allocation52_spill] sm:$0xff] %v7567_v57  ;;  %9821 = vst [vmem:[#allocation54_spill] sm:$0xff] %v7569_v45  ;;  %v1988_v32 = vadd.f32 %v1972_v23, %v1920_v50  ;;  %v7587_v34 = vstv %s7525_s30  ;;  %v9826_v7 = vld [vmem:[#allocation235_spill] sm:$0xff]  ;;  %v9832_v40 = vld [vmem:[#allocation241_spill] sm:$0xff] }
 0x45b   : > { %v1989_v0 = vadd.f32 %v1973_v39, %v1921_v43  ;;  %v2037_v20 = vsel %vm2035_vm10, %v9818_v5, %v9822_v8  ;;  %v2038_v25 = vsel %vm2035_vm10, %v9822_v8, %v9823_v12  ;;  %v2039_v11 = vsel %vm2035_vm10, %v9823_v12, %v9824_v6  ;;  %3797 = vrot.lane.b32.xlu1 %v3770_v44, %s4953_s29  ;;  %v9825_v39 = vld [vmem:[#allocation238_spill] sm:$0xff]  ;;  %v9827_v5 = vld [vmem:[#allocation237_spill] sm:$0xff]  ;;  %v9834_v12 = vld [vmem:[#allocation244_spill] sm:$0xff] }
 0x45c   : > { %3795 = vrot.lane.b32.xlu0 %v3769_v27, %s4953_s29  ;;  %v3772_v50 = vmul.f32 %v6817_v33, %v7435_v9  ;;  %v3771_v13 = vmul.f32 %v6822_v31, %v7435_v9  ;;  %v1990_v43 = vadd.f32 %v1974_v53, %v1922_v28  ;;  %v1991_v26 = vadd.f32 %v1975_v58, %v1923_v19  ;;  %v9828_v27 = vld [vmem:[#allocation240_spill] sm:$0xff]  ;;  %v9829_v31 = vld [vmem:[#allocation239_spill] sm:$0xff]  ;;  %v9849_v57 = vld [vmem:[#allocation258_spill] sm:$0xff] }
 0x45d   : > { %v2052_v23 = vadd.f32 %v2036_v21, %v1984_v63  ;;  %v2040_v22 = vsel %vm2035_vm10, %v9826_v7, %v9825_v39  ;;  %v2041_v44 = vsel %vm2035_vm10, %v9825_v39, %v9827_v5  ;;  %v2042_v33 = vsel %vm2035_vm10, %v9827_v5, %v9828_v27  ;;  %v7601_v28 = vpop.permute.xlu1 %3445  ;;  %v7603_v19 = vpop.permute.xlu0 %3443  ;;  %v9833_v21 = vld [vmem:[#allocation242_spill] sm:$0xff]  ;;  %v9835_v5 = vld [vmem:[#allocation243_spill] sm:$0xff] }
 0x45e   : > { %v2043_v9 = vsel %vm2035_vm10, %v9828_v27, %v9829_v31  ;;  %9830 = vst [vmem:[#allocation53_spill] sm:$0xff] %v7601_v28  ;;  %9831 = vst [vmem:[#allocation56_spill] sm:$0xff] %v7603_v19  ;;  %v2053_v63 = vadd.f32 %v2037_v20, %v1985_v56  ;;  %v2054_v53 = vadd.f32 %v2038_v25, %v1986_v52  ;;  %v7614_v39 = vld [vmem:[%s5086_s6 + $0x8] sm:$0xff]  ;;  %v7619_v52 = vld [vmem:[%s5086_s6] sm:$0xff]  ;;  %vm3055_vm9 = vcmask 703488  }
 0x45f   : > { %v2055_v58 = vadd.f32 %v2039_v11, %v1987_v51  ;;  %v2104_v8 = vsel %vm2103_vm11, %v9833_v21, %v9832_v40  ;;  %v2105_v6 = vsel %vm2103_vm11, %v9832_v40, %v9834_v12  ;;  %3801 = vrot.lane.b32.xlu1 %v3772_v50, %s4953_s29  ;;  %v3832_v56 = vmul.f32 %v7614_v39, %v7587_v34  ;;  %v9837_v31 = vld [vmem:[#allocation248_spill] sm:$0xff]  ;;  %v9838_v40 = vld [vmem:[#allocation245_spill] sm:$0xff]  ;;  %v9839_v19 = vld [vmem:[#allocation247_spill] sm:$0xff] }
 0x460   : > { %3799 = vrot.lane.b32.xlu0 %v3771_v13, %s4953_s29  ;;  %v3831_v51 = vmul.f32 %v7619_v52, %v7587_v34  ;;  %v2056_v20 = vadd.f32 %v2040_v22, %v1988_v32  ;;  %v2057_v25 = vadd.f32 %v2041_v44, %v1989_v0  ;;  %v2058_v11 = vadd.f32 %v2042_v33, %v1990_v43  ;;  %v9836_v13 = vld [vmem:[#allocation246_spill] sm:$0xff]  ;;  %v9850_v45 = vld [vmem:[#allocation255_spill] sm:$0xff]  ;;  %s4168_s29 = sadd.s32 59, %s5093_s18 }
 0x461   : > { %v2059_v7 = vadd.f32 %v2043_v9, %v1991_v26  ;;  %v2106_v50 = vsel %vm2103_vm11, %v9834_v12, %v9835_v5  ;;  %v2107_v27 = vsel %vm2103_vm11, %v9835_v5, %v9836_v13  ;;  %v2108_v21 = vsel %vm2103_vm11, %v9838_v40, %v9837_v31  ;;  %v7635_v0 = vpop.permute.xlu1 %3449  ;;  %v7637_v43 = vpop.permute.xlu0 %3447  ;;  %v9842_v44 = vld [vmem:[#allocation250_spill] sm:$0xff]  ;;  %v9843_v9 = vld [vmem:[#allocation249_spill] sm:$0xff]  ;;  %v9844_v5 = vld [vmem:[#allocation251_spill] sm:$0xff]  ;;  %s8284_s30 = sld [smem:[#allocation2 + %s4168_s29]] }
 0x462   : > { %v2109_v32 = vsel %vm2103_vm11, %v9837_v31, %v9839_v19  ;;  %9840 = vst [vmem:[#allocation58_spill] sm:$0xff] %v7635_v0  ;;  %9841 = vst [vmem:[#allocation55_spill] sm:$0xff] %v7637_v43  ;;  %v2120_v26 = vadd.f32 %v2104_v8, %v2052_v23  ;;  %v2121_v22 = vadd.f32 %v2105_v6, %v2053_v63  ;;  %v9845_v13 = vld [vmem:[#allocation252_spill] sm:$0xff]  ;;  %v7656_v63 = vld [vmem:[%s5086_s6 + $0x10] sm:$0xff]  ;;  %vm3123_vm10 = vcmask 695296  }
 0x463   : > { %v2110_v33 = vsel %vm2103_vm11, %v9839_v19, %v9842_v44  ;;  %v2111_v12 = vsel %vm2103_vm11, %v9842_v44, %v9843_v9  ;;  %v2172_v40 = vsel %vm2171_vm12, %v9845_v13, %v9844_v5  ;;  %3853 = vrot.lane.b32.xlu1 %v3832_v56, %s4954_s17  ;;  %v7651_v23 = vld [vmem:[%s5086_s6 + $0x18] sm:$0xff]  ;;  %v3833_v8 = vmul.f32 %v7656_v63, %v7587_v34 }
 0x464   : > { %3851 = vrot.lane.b32.xlu0 %v3831_v51, %s4954_s17  ;;  %v3834_v19 = vmul.f32 %v7651_v23, %v7587_v34  ;;  %v2122_v6 = vadd.f32 %v2106_v50, %v2054_v53  ;;  %v2123_v31 = vadd.f32 %v2107_v27, %v2055_v58  ;;  %v2124_v44 = vadd.f32 %v2108_v21, %v2056_v20  ;;  %v9846_v13 = vld [vmem:[#allocation254_spill] sm:$0xff]  ;;  %v9847_v51 = vld [vmem:[#allocation253_spill] sm:$0xff]  ;;  %v9848_v43 = vld [vmem:[#allocation256_spill] sm:$0xff] }
 0x465   : > { %v2125_v9 = vadd.f32 %v2109_v32, %v2057_v25  ;;  %v2173_v56 = vsel %vm2171_vm12, %v9844_v5, %v9846_v13  ;;  %v2174_v0 = vsel %vm2171_vm12, %v9846_v13, %v9847_v51  ;;  %v2175_v28 = vsel %vm2171_vm12, %v9847_v51, %v9848_v43  ;;  %v7672_v58 = vpop.permute.xlu1 %3453  ;;  %v7674_v20 = vpop.permute.xlu0 %3451  ;;  %v9853_v21 = vld [vmem:[#allocation257_spill] sm:$0xff]  ;;  %v9854_v5 = vld [vmem:[#allocation260_spill] sm:$0xff]  ;;  %v9857_v51 = vld [vmem:[#allocation262_spill] sm:$0xff] }
 0x466   : > { %v2176_v53 = vsel %vm2171_vm12, %v9850_v45, %v9849_v57  ;;  %9851 = vst [vmem:[#allocation57_spill] sm:$0xff] %v7672_v58  ;;  %9852 = vst [vmem:[#allocation60_spill] sm:$0xff] %v7674_v20  ;;  %v2126_v25 = vadd.f32 %v2110_v33, %v2058_v11  ;;  %v2127_v50 = vadd.f32 %v2111_v12, %v2059_v7  ;;  %v7686_v45 = vld [vmem:[%s5086_s6 + $0x28] sm:$0xff]  ;;  %v7691_v7 = vld [vmem:[%s5086_s6 + $0x20] sm:$0xff]  ;;  %vm3191_vm11 = vcmask 687104  }
 0x467   : > { %v2188_v27 = vadd.f32 %v2172_v40, %v2120_v26  ;;  %v2177_v32 = vsel %vm2171_vm12, %v9849_v57, %v9853_v21  ;;  %v2178_v43 = vsel %vm2171_vm12, %v9853_v21, %v9854_v5  ;;  %3857 = vrot.lane.b32.xlu1 %v3834_v19, %s4954_s17  ;;  %v3836_v11 = vmul.f32 %v7686_v45, %v7587_v34  ;;  %v9855_v19 = vld [vmem:[#allocation259_spill] sm:$0xff]  ;;  %v9856_v13 = vld [vmem:[#allocation261_spill] sm:$0xff]  ;;  %v9858_v58 = vld [vmem:[#allocation264_spill] sm:$0xff] }
 0x468   : > { %3855 = vrot.lane.b32.xlu0 %v3833_v8, %s4954_s17  ;;  %v3835_v26 = vmul.f32 %v7691_v7, %v7587_v34  ;;  %v2189_v57 = vadd.f32 %v2173_v56, %v2121_v22  ;;  %v2190_v33 = vadd.f32 %v2174_v0, %v2122_v6  ;;  %v2191_v12 = vadd.f32 %v2175_v28, %v2123_v31  ;;  %v9859_v22 = vld [vmem:[#allocation263_spill] sm:$0xff]  ;;  %v9862_v56 = vld [vmem:[#allocation266_spill] sm:$0xff] }
 0x469   : > { %v2192_v40 = vadd.f32 %v2176_v53, %v2124_v44  ;;  %v2179_v8 = vsel %vm2171_vm12, %v9854_v5, %v9855_v19  ;;  %v2240_v21 = vsel %vm2239_vm13, %v9857_v51, %v9856_v13  ;;  %v2241_v20 = vsel %vm2239_vm13, %v9856_v13, %v9858_v58  ;;  %v7709_v0 = vpop.permute.xlu1 %3457  ;;  %v7711_v6 = vpop.permute.xlu0 %3455  ;;  %v9863_v5 = vld [vmem:[#allocation268_spill] sm:$0xff]  ;;  %v9864_v19 = vld [vmem:[#allocation265_spill] sm:$0xff] }
 0x46a   : > { %v2242_v28 = vsel %vm2239_vm13, %v9858_v58, %v9859_v22  ;;  %9860 = vst [vmem:[#allocation59_spill] sm:$0xff] %v7709_v0  ;;  %9861 = vst [vmem:[#allocation61_spill] sm:$0xff] %v7711_v6  ;;  %v2193_v31 = vadd.f32 %v2177_v32, %v2125_v9  ;;  %v2194_v44 = vadd.f32 %v2178_v43, %v2126_v25  ;;  %v7725_v58 = vld [vmem:[%s5086_s6 + $0x38] sm:$0xff]  ;;  %v7730_v25 = vld [vmem:[%s5086_s6 + $0x30] sm:$0xff]  ;;  %vm3259_vm12 = vcmask 678912  }
 0x46b   : > { %v2243_v53 = vsel %vm2239_vm13, %v9859_v22, %v9862_v56  ;;  %v2244_v51 = vsel %vm2239_vm13, %v9864_v19, %v9863_v5  ;;  %v2245_v13 = vsel %vm2239_vm13, %v9863_v5, %v9865_v59  ;;  %3861 = vrot.lane.b32.xlu1 %v3836_v11, %s4954_s17  ;;  %v3838_v9 = vmul.f32 %v7725_v58, %v7587_v34  ;;  %v9866_v0 = vld [vmem:[#allocation270_spill] sm:$0xff] }
 0x46c   : > { %3859 = vrot.lane.b32.xlu0 %v3835_v26, %s4954_s17  ;;  %v3837_v32 = vmul.f32 %v7730_v25, %v7587_v34  ;;  %v2195_v43 = vadd.f32 %v2179_v8, %v2127_v50  ;;  %v2256_v22 = vadd.f32 %v2240_v21, %v2188_v27  ;;  %v2257_v56 = vadd.f32 %v2241_v20, %v2189_v57  ;;  %v9867_v26 = vld [vmem:[#allocation269_spill] sm:$0xff]  ;;  %v9872_v57 = vld [vmem:[#allocation274_spill] sm:$0xff]  ;;  %v9874_v8 = vld [vmem:[#allocation276_spill] sm:$0xff] }
 0x46d   : > { %v2258_v19 = vadd.f32 %v2242_v28, %v2190_v33  ;;  %v2259_v5 = vadd.f32 %v2243_v53, %v2191_v12  ;;  %v2246_v11 = vsel %vm2239_vm13, %v9865_v59, %v9866_v0  ;;  %v2247_v6 = vsel %vm2239_vm13, %v9866_v0, %v9867_v26  ;;  %v7743_v54 = vpop.permute.xlu1 %3461  ;;  %v7745_v50 = vpop.permute.xlu0 %3459  ;;  %v9873_v59 = vld [vmem:[#allocation273_spill] sm:$0xff]  ;;  %v9876_v26 = vld [vmem:[#allocation275_spill] sm:$0xff] }
 0x46e   : > { %v2308_v1 = vsel %vm2307_vm14, %v9869_v42, %v9868_v36  ;;  %9870 = vst [vmem:[#allocation62_spill] sm:$0xff] %v7743_v54  ;;  %9871 = vst [vmem:[#allocation64_spill] sm:$0xff] %v7745_v50  ;;  %v2260_v20 = vadd.f32 %v2244_v51, %v2192_v40  ;;  %v2261_v27 = vadd.f32 %v2245_v13, %v2193_v31  ;;  %v7759_v42 = vld [vmem:[%s5086_s6 + $0x48] sm:$0xff]  ;;  %v7764_v28 = vld [vmem:[%s5086_s6 + $0x40] sm:$0xff]  ;;  %v7769_v51 = vstv %s7695_s4  ;;  %s4959_s4 = smov 69  }
 0x46f   : > { %v2309_v33 = vsel %vm2307_vm14, %v9868_v36, %v9872_v57  ;;  %v2310_v12 = vsel %vm2307_vm14, %v9872_v57, %v9873_v59  ;;  %v2311_v21 = vsel %vm2307_vm14, %v9873_v59, %v9874_v8  ;;  %3865 = vrot.lane.b32.xlu1 %v3838_v9, %s4954_s17  ;;  %v3840_v40 = vmul.f32 %v7759_v42, %v7587_v34  ;;  %v9875_v13 = vld [vmem:[#allocation278_spill] sm:$0xff]  ;;  %v9878_v59 = vld [vmem:[#allocation280_spill] sm:$0xff]  ;;  %v9879_v54 = vld [vmem:[#allocation279_spill] sm:$0xff] }
 0x470   : > { %3863 = vrot.lane.b32.xlu0 %v3837_v32, %s4954_s17  ;;  %v3839_v36 = vmul.f32 %v7764_v28, %v7587_v34  ;;  %v2262_v0 = vadd.f32 %v2246_v11, %v2194_v44  ;;  %v2263_v31 = vadd.f32 %v2247_v6, %v2195_v43  ;;  %v2324_v53 = vadd.f32 %v2308_v1, %v2256_v22  ;;  %v9877_v32 = vld [vmem:[#allocation277_spill] sm:$0xff] }
 0x471   : > { %v2312_v9 = vsel %vm2307_vm14, %v9876_v26, %v9875_v13  ;;  %v2313_v57 = vsel %vm2307_vm14, %v9875_v13, %v9877_v32  ;;  %v2314_v8 = vsel %vm2307_vm14, %v9877_v32, %v9878_v59  ;;  %v2315_v34 = vsel %vm2307_vm14, %v9878_v59, %v9879_v54  ;;  %v7783_v6 = vpop.permute.xlu1 %3513  ;;  %v7785_v1 = vpop.permute.xlu0 %3511  ;;  %v9882_v11 = vld [vmem:[#allocation281_spill] sm:$0xff]  ;;  %v9883_v26 = vld [vmem:[#allocation282_spill] sm:$0xff]  ;;  %v9884_v13 = vld [vmem:[#allocation284_spill] sm:$0xff] }
 0x472   : > { %9880 = vst [vmem:[#allocation63_spill] sm:$0xff] %v7783_v6  ;;  %9881 = vst [vmem:[#allocation66_spill] sm:$0xff] %v7785_v1  ;;  %v2325_v44 = vadd.f32 %v2309_v33, %v2257_v56  ;;  %v2326_v43 = vadd.f32 %v2310_v12, %v2258_v19  ;;  %v2327_v22 = vadd.f32 %v2311_v21, %v2259_v5  ;;  %v9885_v21 = vld [vmem:[#allocation283_spill] sm:$0xff]  ;;  %v9886_v59 = vld [vmem:[#allocation286_spill] sm:$0xff]  ;;  %vm3327_vm13 = vcmask 670720  }
 0x473   : > { %v2376_v50 = vsel %vm2375_vm15, %v9883_v26, %v9882_v11  ;;  %v2377_v2 = vsel %vm2375_vm15, %v9882_v11, %v9884_v13  ;;  %3869 = vrot.lane.b32.xlu1 %v3840_v40, %s4954_s17  ;;  %v3900_v54 = vmul.f32 %v7614_v39, %v7769_v51  ;;  %v3899_v56 = vmul.f32 %v7619_v52, %v7769_v51  ;;  %v9887_v11 = vld [vmem:[#allocation288_spill] sm:$0xff]  ;;  %v9889_v1 = vld [vmem:[#allocation287_spill] sm:$0xff] }
 0x474   : > { %3867 = vrot.lane.b32.xlu0 %v3839_v36, %s4954_s17  ;;  %v2328_v19 = vadd.f32 %v2312_v9, %v2260_v20  ;;  %v2329_v5 = vadd.f32 %v2313_v57, %v2261_v27  ;;  %v2330_v33 = vadd.f32 %v2314_v8, %v2262_v0  ;;  %v2331_v12 = vadd.f32 %v2315_v34, %v2263_v31  ;;  %v9888_v36 = vld [vmem:[#allocation285_spill] sm:$0xff]  ;;  %v9892_v9 = vld [vmem:[#allocation290_spill] sm:$0xff]  ;;  %s4236_s17 = sadd.s32 60, %s5093_s18  ;;  %s4572_s18 = sshll.u32 %s5082_s23, 6 }
 0x475   : > { %v2378_v32 = vsel %vm2375_vm15, %v9884_v13, %v9885_v21  ;;  %v2379_v40 = vsel %vm2375_vm15, %v9885_v21, %v9886_v59  ;;  %v2380_v26 = vsel %vm2375_vm15, %v9888_v36, %v9887_v11  ;;  %v2381_v6 = vsel %vm2375_vm15, %v9887_v11, %v9889_v1  ;;  %v7811_v20 = vpop.permute.xlu1 %3517  ;;  %v7813_v27 = vpop.permute.xlu0 %3515  ;;  %v9893_v8 = vld [vmem:[#allocation289_spill] sm:$0xff]  ;;  %v9894_v13 = vld [vmem:[#allocation291_spill] sm:$0xff]  ;;  %v9895_v21 = vld [vmem:[#allocation292_spill] sm:$0xff]  ;;  %s8346_s3 = sld [smem:[#allocation2 + %s4236_s17]] }
 0x476   : > { %9890 = vst [vmem:[#allocation68_spill] sm:$0xff] %v7811_v20  ;;  %9891 = vst [vmem:[#allocation65_spill] sm:$0xff] %v7813_v27  ;;  %v2392_v0 = vadd.f32 %v2376_v50, %v2324_v53  ;;  %v2393_v31 = vadd.f32 %v2377_v2, %v2325_v44  ;;  %v2382_v57 = vsel %vm2375_vm15, %v9889_v1, %v9892_v9  ;;  %v9896_v36 = vld [vmem:[#allocation294_spill] sm:$0xff]  ;;  %v9900_v27 = vld [vmem:[#allocation295_spill] sm:$0xff]  ;;  %vm3395_vm14 = vcmask 662528  }
 0x477   : > { %v2383_v34 = vsel %vm2375_vm15, %v9892_v9, %v9893_v8  ;;  %v2444_v59 = vsel %vm2443_vm0, %v9895_v21, %v9894_v13  ;;  %3921 = vrot.lane.b32.xlu1 %v3900_v54, %s4955_s22  ;;  %v3902_v2 = vmul.f32 %v7651_v23, %v7769_v51  ;;  %v3901_v50 = vmul.f32 %v7656_v63, %v7769_v51  ;;  %v9897_v8 = vld [vmem:[#allocation293_spill] sm:$0xff]  ;;  %v9898_v21 = vld [vmem:[#allocation296_spill] sm:$0xff]  ;;  %v9899_v20 = vld [vmem:[#allocation298_spill] sm:$0xff] }
 0x478   : > { %3919 = vrot.lane.b32.xlu0 %v3899_v56, %s4955_s22  ;;  %v2394_v53 = vadd.f32 %v2378_v32, %v2326_v43  ;;  %v2395_v1 = vadd.f32 %v2379_v40, %v2327_v22  ;;  %v2396_v44 = vadd.f32 %v2380_v26, %v2328_v19  ;;  %v2397_v11 = vadd.f32 %v2381_v6, %v2329_v5  ;;  %v9903_v32 = vld [vmem:[#allocation297_spill] sm:$0xff]  ;;  %v9904_v26 = vld [vmem:[#allocation300_spill] sm:$0xff] }
 0x479   : > { %v2445_v9 = vsel %vm2443_vm0, %v9894_v13, %v9896_v36  ;;  %v2446_v54 = vsel %vm2443_vm0, %v9896_v36, %v9897_v8  ;;  %v2447_v56 = vsel %vm2443_vm0, %v9897_v8, %v9898_v21  ;;  %v2448_v29 = vsel %vm2443_vm0, %v9900_v27, %v9899_v20  ;;  %v7842_v43 = vpop.permute.xlu1 %3521  ;;  %v7844_v22 = vpop.permute.xlu0 %3519  ;;  %v9906_v36 = vld [vmem:[#allocation301_spill] sm:$0xff]  ;;  %v9908_v8 = vld [vmem:[#allocation304_spill] sm:$0xff] }
 0x47a   : > { %9901 = vst [vmem:[#allocation67_spill] sm:$0xff] %v7842_v43  ;;  %9902 = vst [vmem:[#allocation70_spill] sm:$0xff] %v7844_v22  ;;  %v2398_v6 = vadd.f32 %v2382_v57, %v2330_v33  ;;  %v2399_v19 = vadd.f32 %v2383_v34, %v2331_v12  ;;  %v2460_v5 = vadd.f32 %v2444_v59, %v2392_v0  ;;  %v9919_v43 = vld [vmem:[#allocation312_spill] sm:$0xff]  ;;  %vm3463_vm15 = vcmask 654336  }
 0x47b   : > { %v2449_v40 = vsel %vm2443_vm0, %v9899_v20, %v9903_v32  ;;  %v2450_v13 = vsel %vm2443_vm0, %v9903_v32, %v9904_v26  ;;  %3925 = vrot.lane.b32.xlu1 %v3902_v2, %s4955_s22  ;;  %v3904_v27 = vmul.f32 %v7686_v45, %v7769_v51  ;;  %v3903_v33 = vmul.f32 %v7691_v7, %v7769_v51  ;;  %v9905_v20 = vld [vmem:[#allocation299_spill] sm:$0xff]  ;;  %v9907_v2 = vld [vmem:[#allocation302_spill] sm:$0xff] }
 0x47c   : > { %3923 = vrot.lane.b32.xlu0 %v3901_v50, %s4955_s22  ;;  %v2461_v12 = vadd.f32 %v2445_v9, %v2393_v31  ;;  %v2462_v0 = vadd.f32 %v2446_v54, %v2394_v53  ;;  %v2463_v57 = vadd.f32 %v2447_v56, %v2395_v1  ;;  %v2464_v34 = vadd.f32 %v2448_v29, %v2396_v44  ;;  %v9909_v32 = vld [vmem:[#allocation303_spill] sm:$0xff]  ;;  %v9912_v9 = vld [vmem:[#allocation306_spill] sm:$0xff]  ;;  %v9913_v56 = vld [vmem:[#allocation308_spill] sm:$0xff] }
 0x47d   : > { %v2451_v59 = vsel %vm2443_vm0, %v9904_v26, %v9905_v20  ;;  %v2512_v50 = vsel %vm2511_vm1, %v9907_v2, %v9906_v36  ;;  %v2513_v21 = vsel %vm2511_vm1, %v9906_v36, %v9908_v8  ;;  %v2514_v31 = vsel %vm2511_vm1, %v9908_v8, %v9909_v32  ;;  %v7873_v53 = vpop.permute.xlu1 %3525  ;;  %v7875_v29 = vpop.permute.xlu0 %3523  ;;  %v9914_v26 = vld [vmem:[#allocation305_spill] sm:$0xff]  ;;  %v9915_v2 = vld [vmem:[#allocation307_spill] sm:$0xff] }
 0x47e   : > { %9910 = vst [vmem:[#allocation69_spill] sm:$0xff] %v7873_v53  ;;  %9911 = vst [vmem:[#allocation71_spill] sm:$0xff] %v7875_v29  ;;  %v2465_v1 = vadd.f32 %v2449_v40, %v2397_v11  ;;  %v2466_v44 = vadd.f32 %v2450_v13, %v2398_v6  ;;  %v2515_v54 = vsel %vm2511_vm1, %v9909_v32, %v9912_v9  ;;  %vm3803_vm0 = vcmask 613376  }
 0x47f   : > { %v2516_v20 = vsel %vm2511_vm1, %v9914_v26, %v9913_v56  ;;  %v2517_v36 = vsel %vm2511_vm1, %v9913_v56, %v9915_v2  ;;  %3929 = vrot.lane.b32.xlu1 %v3904_v27, %s4955_s22  ;;  %v3906_v11 = vmul.f32 %v7725_v58, %v7769_v51  ;;  %v3905_v6 = vmul.f32 %v7730_v25, %v7769_v51  ;;  %v9916_v26 = vld [vmem:[#allocation310_spill] sm:$0xff]  ;;  %v9917_v56 = vld [vmem:[#allocation309_spill] sm:$0xff] }
 0x480   : > { %3927 = vrot.lane.b32.xlu0 %v3903_v33, %s4955_s22  ;;  %v2467_v40 = vadd.f32 %v2451_v59, %v2399_v19  ;;  %v2528_v13 = vadd.f32 %v2512_v50, %v2460_v5  ;;  %v2529_v8 = vadd.f32 %v2513_v21, %v2461_v12  ;;  %v2530_v32 = vadd.f32 %v2514_v31, %v2462_v0  ;;  %v9918_v33 = vld [vmem:[#allocation311_spill] sm:$0xff]  ;;  %v9922_v0 = vld [vmem:[#allocation314_spill] sm:$0xff]  ;;  %v9923_v59 = vld [vmem:[#allocation313_spill] sm:$0xff] }
 0x481   : > { %v2531_v9 = vadd.f32 %v2515_v54, %v2463_v57  ;;  %v2518_v53 = vsel %vm2511_vm1, %v9915_v2, %v9916_v26  ;;  %v2519_v27 = vsel %vm2511_vm1, %v9916_v26, %v9917_v56  ;;  %v2580_v29 = vsel %vm2579_vm2, %v9919_v43, %v9918_v33  ;;  %v7901_v22 = vpop.permute.xlu1 %3529  ;;  %v7903_v19 = vpop.permute.xlu0 %3527  ;;  %v9924_v21 = vld [vmem:[#allocation316_spill] sm:$0xff]  ;;  %v9926_v26 = vld [vmem:[#allocation315_spill] sm:$0xff] }
 0x482   : > { %9920 = vst [vmem:[#allocation72_spill] sm:$0xff] %v7901_v22  ;;  %9921 = vst [vmem:[#allocation74_spill] sm:$0xff] %v7903_v19  ;;  %v2532_v5 = vadd.f32 %v2516_v20, %v2464_v34  ;;  %v2533_v12 = vadd.f32 %v2517_v36, %v2465_v1  ;;  %v2581_v57 = vsel %vm2579_vm2, %v9918_v33, %v9922_v0  ;;  %v7921_v2 = vstv %s7859_s19  ;;  %v9925_v36 = vld [vmem:[#allocation318_spill] sm:$0xff]  ;;  %v9927_v33 = vld [vmem:[#allocation317_spill] sm:$0xff]  ;;  %s8652_s19 = sld [smem:[#allocation2 + %s4304_s24]] }
 0x483   : > { %v2582_v50 = vsel %vm2579_vm2, %v9922_v0, %v9923_v59  ;;  %v2583_v31 = vsel %vm2579_vm2, %v9923_v59, %v9924_v21  ;;  %3933 = vrot.lane.b32.xlu1 %v3906_v11, %s4955_s22  ;;  %v3908_v43 = vmul.f32 %v7759_v42, %v7769_v51  ;;  %v3907_v34 = vmul.f32 %v7764_v28, %v7769_v51  ;;  %v9929_v59 = vld [vmem:[#allocation319_spill] sm:$0xff]  ;;  %v9933_v21 = vld [vmem:[#allocation322_spill] sm:$0xff] }
 0x484   : > { %3931 = vrot.lane.b32.xlu0 %v3905_v6, %s4955_s22  ;;  %v2534_v1 = vadd.f32 %v2518_v53, %v2466_v44  ;;  %v2535_v54 = vadd.f32 %v2519_v27, %v2467_v40  ;;  %v2596_v20 = vadd.f32 %v2580_v29, %v2528_v13  ;;  %v2584_v56 = vsel %vm2579_vm2, %v9926_v26, %v9925_v36  ;;  %v9928_v6 = vld [vmem:[#allocation320_spill] sm:$0xff]  ;;  %v9932_v27 = vld [vmem:[#allocation321_spill] sm:$0xff] }
 0x485   : > { %v2585_v11 = vsel %vm2579_vm2, %v9925_v36, %v9927_v33  ;;  %v2586_v0 = vsel %vm2579_vm2, %v9927_v33, %v9928_v6  ;;  %v2587_v51 = vsel %vm2579_vm2, %v9928_v6, %v9929_v59  ;;  %v7935_v53 = vpop.permute.xlu1 %3581  ;;  %v7937_v29 = vpop.permute.xlu0 %3579  ;;  %v2597_v44 = vadd.f32 %v2581_v57, %v2529_v8  ;;  %v9934_v36 = vld [vmem:[#allocation324_spill] sm:$0xff]  ;;  %v9936_v59 = vld [vmem:[#allocation326_spill] sm:$0xff] }
 0x486   : > { %9930 = vst [vmem:[#allocation73_spill] sm:$0xff] %v7935_v53  ;;  %9931 = vst [vmem:[#allocation76_spill] sm:$0xff] %v7937_v29  ;;  %v2598_v40 = vadd.f32 %v2582_v50, %v2530_v32  ;;  %v2599_v13 = vadd.f32 %v2583_v31, %v2531_v9  ;;  %v2648_v26 = vsel %vm2647_vm3, %v9933_v21, %v9932_v27  ;;  %v9935_v31 = vld [vmem:[#allocation323_spill] sm:$0xff]  ;;  %vm3531_vm1 = vcmask 646144  }
 0x487   : > { %v2649_v22 = vsel %vm2647_vm3, %v9932_v27, %v9934_v36  ;;  %3937 = vrot.lane.b32.xlu1 %v3908_v43, %s4955_s22  ;;  %v3968_v33 = vmul.f32 %v7614_v39, %v7921_v2  ;;  %v3967_v8 = vmul.f32 %v7619_v52, %v7921_v2  ;;  %v2600_v32 = vadd.f32 %v2584_v56, %v2532_v5  ;;  %v9937_v27 = vld [vmem:[#allocation328_spill] sm:$0xff]  ;;  %v9939_v29 = vld [vmem:[#allocation327_spill] sm:$0xff]  ;;  %v9942_v56 = vld [vmem:[#allocation330_spill] sm:$0xff] }
 0x488   : > { %3935 = vrot.lane.b32.xlu0 %v3907_v34, %s4955_s22  ;;  %v2601_v9 = vadd.f32 %v2585_v11, %v2533_v12  ;;  %v2602_v57 = vadd.f32 %v2586_v0, %v2534_v1  ;;  %v2603_v50 = vadd.f32 %v2587_v51, %v2535_v54  ;;  %v2650_v6 = vsel %vm2647_vm3, %v9934_v36, %v9935_v31  ;;  %v9938_v34 = vld [vmem:[#allocation325_spill] sm:$0xff]  ;;  %v9944_v36 = vld [vmem:[#allocation331_spill] sm:$0xff]  ;;  %s4960_s22 = smov 68  }
 0x489   : > { %v2651_v43 = vsel %vm2647_vm3, %v9935_v31, %v9936_v59  ;;  %v2652_v21 = vsel %vm2647_vm3, %v9938_v34, %v9937_v27  ;;  %v2653_v53 = vsel %vm2647_vm3, %v9937_v27, %v9939_v29  ;;  %v7963_v5 = vpop.permute.xlu1 %3585  ;;  %v7965_v12 = vpop.permute.xlu0 %3583  ;;  %v2664_v1 = vadd.f32 %v2648_v26, %v2596_v20  ;;  %v9943_v0 = vld [vmem:[#allocation329_spill] sm:$0xff]  ;;  %v9945_v31 = vld [vmem:[#allocation332_spill] sm:$0xff]  ;;  %v9946_v34 = vld [vmem:[#allocation334_spill] sm:$0xff] }
 0x48a   : > { %9940 = vst [vmem:[#allocation78_spill] sm:$0xff] %v7963_v5  ;;  %9941 = vst [vmem:[#allocation75_spill] sm:$0xff] %v7965_v12  ;;  %v2665_v54 = vadd.f32 %v2649_v22, %v2597_v44  ;;  %v2654_v11 = vsel %vm2647_vm3, %v9939_v29, %v9942_v56  ;;  %v2655_v51 = vsel %vm2647_vm3, %v9942_v56, %v9943_v0  ;;  %v9947_v0 = vld [vmem:[#allocation333_spill] sm:$0xff]  ;;  %v9949_v5 = vld [vmem:[#allocation338_spill] sm:$0xff]  ;;  %vm3599_vm2 = vcmask 637952  }
 0x48b   : > { %v2716_v59 = vsel %vm2715_vm4, %v9945_v31, %v9944_v36  ;;  %3989 = vrot.lane.b32.xlu1 %v3968_v33, %s4956_s5  ;;  %v3970_v22 = vmul.f32 %v7651_v23, %v7921_v2  ;;  %v3969_v20 = vmul.f32 %v7656_v63, %v7921_v2  ;;  %v2666_v29 = vadd.f32 %v2650_v6, %v2598_v40  ;;  %v9948_v31 = vld [vmem:[#allocation336_spill] sm:$0xff]  ;;  %v9950_v12 = vld [vmem:[#allocation335_spill] sm:$0xff]  ;;  %v9953_v6 = vld [vmem:[#allocation337_spill] sm:$0xff] }
 0x48c   : > { %3987 = vrot.lane.b32.xlu0 %v3967_v8, %s4956_s5  ;;  %v2667_v44 = vadd.f32 %v2651_v43, %v2599_v13  ;;  %v2668_v26 = vadd.f32 %v2652_v21, %v2600_v32  ;;  %v2669_v27 = vadd.f32 %v2653_v53, %v2601_v9  ;;  %v2717_v56 = vsel %vm2715_vm4, %v9944_v36, %v9946_v34  ;;  %v9954_v21 = vld [vmem:[#allocation340_spill] sm:$0xff] }
 0x48d   : > { %v2718_v33 = vsel %vm2715_vm4, %v9946_v34, %v9947_v0  ;;  %v2719_v8 = vsel %vm2715_vm4, %v9947_v0, %v9948_v31  ;;  %v2720_v19 = vsel %vm2715_vm4, %v9950_v12, %v9949_v5  ;;  %v7994_v40 = vpop.permute.xlu1 %3589  ;;  %v7996_v13 = vpop.permute.xlu0 %3587  ;;  %v2670_v53 = vadd.f32 %v2654_v11, %v2602_v57  ;;  %v9956_v34 = vld [vmem:[#allocation341_spill] sm:$0xff]  ;;  %v9958_v0 = vld [vmem:[#allocation344_spill] sm:$0xff] }
 0x48e   : > { %9951 = vst [vmem:[#allocation77_spill] sm:$0xff] %v7994_v40  ;;  %9952 = vst [vmem:[#allocation80_spill] sm:$0xff] %v7996_v13  ;;  %v2671_v32 = vadd.f32 %v2655_v51, %v2603_v50  ;;  %v2732_v9 = vadd.f32 %v2716_v59, %v2664_v1  ;;  %v2721_v43 = vsel %vm2715_vm4, %v9949_v5, %v9953_v6  ;;  %v9955_v5 = vld [vmem:[#allocation339_spill] sm:$0xff]  ;;  %v9969_v40 = vld [vmem:[#allocation352_spill] sm:$0xff]  ;;  %vm3667_vm3 = vcmask 629760  }
 0x48f   : > { %v2722_v36 = vsel %vm2715_vm4, %v9953_v6, %v9954_v21  ;;  %3993 = vrot.lane.b32.xlu1 %v3970_v22, %s4956_s5  ;;  %v3972_v12 = vmul.f32 %v7686_v45, %v7921_v2  ;;  %v3971_v57 = vmul.f32 %v7691_v7, %v7921_v2  ;;  %v2733_v50 = vadd.f32 %v2717_v56, %v2665_v54  ;;  %v9957_v22 = vld [vmem:[#allocation342_spill] sm:$0xff]  ;;  %v9959_v6 = vld [vmem:[#allocation343_spill] sm:$0xff] }
 0x490   : > { %3991 = vrot.lane.b32.xlu0 %v3969_v20, %s4956_s5  ;;  %v2734_v1 = vadd.f32 %v2718_v33, %v2666_v29  ;;  %v2735_v11 = vadd.f32 %v2719_v8, %v2667_v44  ;;  %v2736_v51 = vadd.f32 %v2720_v19, %v2668_v26  ;;  %v2723_v59 = vsel %vm2715_vm4, %v9954_v21, %v9955_v5  ;;  %v9962_v56 = vld [vmem:[#allocation346_spill] sm:$0xff]  ;;  %v9963_v8 = vld [vmem:[#allocation348_spill] sm:$0xff]  ;;  %v9964_v21 = vld [vmem:[#allocation345_spill] sm:$0xff] }
 0x491   : > { %v2784_v20 = vsel %vm2783_vm5, %v9957_v22, %v9956_v34  ;;  %v2785_v31 = vsel %vm2783_vm5, %v9956_v34, %v9958_v0  ;;  %v2786_v54 = vsel %vm2783_vm5, %v9958_v0, %v9959_v6  ;;  %v8025_v29 = vpop.permute.xlu1 %3593  ;;  %v8027_v19 = vpop.permute.xlu0 %3591  ;;  %v2737_v44 = vadd.f32 %v2721_v43, %v2669_v27  ;;  %v9965_v22 = vld [vmem:[#allocation347_spill] sm:$0xff] }
 0x492   : > { %9960 = vst [vmem:[#allocation79_spill] sm:$0xff] %v8025_v29  ;;  %9961 = vst [vmem:[#allocation81_spill] sm:$0xff] %v8027_v19  ;;  %v2738_v26 = vadd.f32 %v2722_v36, %v2670_v53  ;;  %v2787_v33 = vsel %vm2783_vm5, %v9959_v6, %v9962_v56  ;;  %v2788_v5 = vsel %vm2783_vm5, %v9964_v21, %v9963_v8  ;;  %v9966_v21 = vld [vmem:[#allocation350_spill] sm:$0xff]  ;;  %vm3735_vm4 = vcmask 621568  }
 0x493   : > { %v2789_v34 = vsel %vm2783_vm5, %v9963_v8, %v9965_v22  ;;  %3997 = vrot.lane.b32.xlu1 %v3972_v12, %s4956_s5  ;;  %v3974_v27 = vmul.f32 %v7725_v58, %v7921_v2  ;;  %v3973_v53 = vmul.f32 %v7730_v25, %v7921_v2  ;;  %v2739_v43 = vadd.f32 %v2723_v59, %v2671_v32  ;;  %v9967_v8 = vld [vmem:[#allocation349_spill] sm:$0xff] }
 0x494   : > { %3995 = vrot.lane.b32.xlu0 %v3971_v57, %s4956_s5  ;;  %v2800_v36 = vadd.f32 %v2784_v20, %v2732_v9  ;;  %v2801_v0 = vadd.f32 %v2785_v31, %v2733_v50  ;;  %v2802_v6 = vadd.f32 %v2786_v54, %v2734_v1  ;;  %v2803_v56 = vadd.f32 %v2787_v33, %v2735_v11  ;;  %v9968_v57 = vld [vmem:[#allocation351_spill] sm:$0xff]  ;;  %v9972_v1 = vld [vmem:[#allocation354_spill] sm:$0xff]  ;;  %v9973_v59 = vld [vmem:[#allocation353_spill] sm:$0xff] }
 0x495   : > { %v2790_v29 = vsel %vm2783_vm5, %v9965_v22, %v9966_v21  ;;  %v2791_v12 = vsel %vm2783_vm5, %v9966_v21, %v9967_v8  ;;  %v2852_v19 = vsel %vm2851_vm6, %v9969_v40, %v9968_v57  ;;  %v8053_v13 = vpop.permute.xlu1 %3597  ;;  %v8055_v32 = vpop.permute.xlu0 %3595  ;;  %v2804_v9 = vadd.f32 %v2788_v5, %v2736_v51  ;;  %v9974_v31 = vld [vmem:[#allocation356_spill] sm:$0xff]  ;;  %v9976_v21 = vld [vmem:[#allocation355_spill] sm:$0xff] }
 0x496   : > { %9970 = vst [vmem:[#allocation82_spill] sm:$0xff] %v8053_v13  ;;  %9971 = vst [vmem:[#allocation84_spill] sm:$0xff] %v8055_v32  ;;  %v2805_v50 = vadd.f32 %v2789_v34, %v2737_v44  ;;  %v2853_v11 = vsel %vm2851_vm6, %v9968_v57, %v9972_v1  ;;  %v2854_v20 = vsel %vm2851_vm6, %v9972_v1, %v9973_v59  ;;  %v8073_v22 = vstv %s8011_s8  ;;  %v9975_v34 = vld [vmem:[#allocation358_spill] sm:$0xff]  ;;  %v9977_v57 = vld [vmem:[#allocation357_spill] sm:$0xff]  ;;  %s4373_s8 = sld [smem:[#allocation2 + %s4372_s7]] }
 0x497   : > { %v2855_v54 = vsel %vm2851_vm6, %v9973_v59, %v9974_v31  ;;  %4001 = vrot.lane.b32.xlu1 %v3974_v27, %s4956_s5  ;;  %v3976_v40 = vmul.f32 %v7759_v42, %v7921_v2  ;;  %v3975_v51 = vmul.f32 %v7764_v28, %v7921_v2  ;;  %v2806_v44 = vadd.f32 %v2790_v29, %v2738_v26  ;;  %v9979_v59 = vld [vmem:[#allocation359_spill] sm:$0xff]  ;;  %v9983_v31 = vld [vmem:[#allocation362_spill] sm:$0xff] }
 0x498   : > { %3999 = vrot.lane.b32.xlu0 %v3973_v53, %s4956_s5  ;;  %v2807_v33 = vadd.f32 %v2791_v12, %v2739_v43  ;;  %v2868_v5 = vadd.f32 %v2852_v19, %v2800_v36  ;;  %v2856_v8 = vsel %vm2851_vm6, %v9976_v21, %v9975_v34  ;;  %v2857_v27 = vsel %vm2851_vm6, %v9975_v34, %v9977_v57  ;;  %v9978_v53 = vld [vmem:[#allocation360_spill] sm:$0xff]  ;;  %v9982_v12 = vld [vmem:[#allocation361_spill] sm:$0xff] }
 0x499   : > { %v2858_v1 = vsel %vm2851_vm6, %v9977_v57, %v9978_v53  ;;  %v2859_v2 = vsel %vm2851_vm6, %v9978_v53, %v9979_v59  ;;  %v8087_v29 = vpop.permute.xlu1 %3649  ;;  %v8089_v19 = vpop.permute.xlu0 %3647  ;;  %v2869_v26 = vadd.f32 %v2853_v11, %v2801_v0  ;;  %v2870_v43 = vadd.f32 %v2854_v20, %v2802_v6  ;;  %v9984_v34 = vld [vmem:[#allocation364_spill] sm:$0xff]  ;;  %v9985_v53 = vld [vmem:[#allocation363_spill] sm:$0xff] }
 0x49a   : > { %9980 = vst [vmem:[#allocation83_spill] sm:$0xff] %v8087_v29  ;;  %9981 = vst [vmem:[#allocation86_spill] sm:$0xff] %v8089_v19  ;;  %v2871_v36 = vadd.f32 %v2855_v54, %v2803_v56  ;;  %v2920_v21 = vsel %vm2919_vm7, %v9983_v31, %v9982_v12  ;;  %v2921_v13 = vsel %vm2919_vm7, %v9982_v12, %v9984_v34  ;;  %v9986_v12 = vld [vmem:[#allocation366_spill] sm:$0xff]  ;;  %v9988_v31 = vld [vmem:[#allocation365_spill] sm:$0xff]  ;;  %vm3871_vm5 = vcmask 605184  }
 0x49b   : > { %4005 = vrot.lane.b32.xlu1 %v3976_v40, %s4956_s5  ;;  %v4036_v57 = vmul.f32 %v7614_v39, %v8073_v22  ;;  %v4035_v0 = vmul.f32 %v7619_v52, %v8073_v22  ;;  %v2872_v6 = vadd.f32 %v2856_v8, %v2804_v9  ;;  %v2873_v56 = vadd.f32 %v2857_v27, %v2805_v50  ;;  %v9989_v50 = vld [vmem:[#allocation367_spill] sm:$0xff]  ;;  %v9991_v8 = vld [vmem:[#allocation369_spill] sm:$0xff] }
 0x49c   : > { %4003 = vrot.lane.b32.xlu0 %v3975_v51, %s4956_s5  ;;  %v2874_v11 = vadd.f32 %v2858_v1, %v2806_v44  ;;  %v2875_v20 = vadd.f32 %v2859_v2, %v2807_v33  ;;  %v2936_v54 = vadd.f32 %v2920_v21, %v2868_v5  ;;  %v2922_v59 = vsel %vm2919_vm7, %v9984_v34, %v9985_v53  ;;  %v9987_v51 = vld [vmem:[#allocation368_spill] sm:$0xff]  ;;  %v9990_v33 = vld [vmem:[#allocation370_spill] sm:$0xff]  ;;  %v9992_v1 = vld [vmem:[#allocation371_spill] sm:$0xff]  ;;  %s4961_s5 = smov 67  }
 0x49d   : > { %v2923_v40 = vsel %vm2919_vm7, %v9985_v53, %v9986_v12  ;;  %v2924_v19 = vsel %vm2919_vm7, %v9988_v31, %v9987_v51  ;;  %v8112_v32 = vpop.permute.xlu1 %3653  ;;  %v8114_v29 = vpop.permute.xlu0 %3651  ;;  %v2937_v9 = vadd.f32 %v2921_v13, %v2869_v26  ;;  %v2925_v44 = vsel %vm2919_vm7, %v9987_v51, %v9989_v50  ;;  %v9993_v2 = vld [vmem:[#allocation372_spill] sm:$0xff]  ;;  %v9994_v51 = vld [vmem:[#allocation374_spill] sm:$0xff] }
 0x49e   : > { %v2926_v5 = vsel %vm2919_vm7, %v9989_v50, %v9990_v33  ;;  %v2927_v27 = vsel %vm2919_vm7, %v9990_v33, %v9991_v8  ;;  %v2988_v21 = vsel %vm2987_vm8, %v9993_v2, %v9992_v1  ;;  %v4038_v13 = vmul.f32 %v7651_v23, %v8073_v22  ;;  %v9995_v50 = vld [vmem:[#allocation373_spill] sm:$0xff] }
 0x49f   : > { %4057 = vrot.lane.b32.xlu1 %v4036_v57, %s4957_s16  ;;  %v4037_v26 = vmul.f32 %v7656_v63, %v8073_v22  ;;  %v2938_v34 = vadd.f32 %v2922_v59, %v2870_v43  ;;  %v2939_v53 = vadd.f32 %v2923_v40, %v2871_v36  ;;  %v2940_v12 = vadd.f32 %v2924_v19, %v2872_v6 }
 0x4a0   : > { %4055 = vrot.lane.b32.xlu0 %v4035_v0, %s4957_s16  ;;  %v2989_v31 = vsel %vm2987_vm8, %v9992_v1, %v9994_v51  ;;  %v2990_v33 = vsel %vm2987_vm8, %v9994_v51, %v9995_v50  ;;  %v2991_v57 = vsel %vm2987_vm8, %v9995_v50, %v6566_v38  ;;  %v9996_v0 = vld [vmem:[#allocation375_spill] sm:$0xff]  ;;  %v2993_v19 = vsel %vm2987_vm8, %v6599_v47, %v6597_v41 }
 0x4a1   : > { %v2992_v8 = vsel %vm2987_vm8, %v9996_v0, %v6599_v47  ;;  %v8149_v43 = vpop.permute.xlu1 %3657  ;;  %v8151_v36 = vpop.permute.xlu0 %3655  ;;  %v2941_v6 = vadd.f32 %v2925_v44, %v2873_v56  ;;  %v2942_v59 = vadd.f32 %v2926_v5, %v2874_v11  ;;  %v2943_v40 = vadd.f32 %v2927_v27, %v2875_v20 }
 0x4a2   : > { %9997 = vst [vmem:[#allocation88_spill] sm:$0xff] %v8149_v43  ;;  %v3004_v1 = vadd.f32 %v2988_v21, %v2936_v54  ;;  %v3005_v2 = vadd.f32 %v2989_v31, %v2937_v9  ;;  %v4040_v38 = vmul.f32 %v7686_v45, %v8073_v22  ;;  %v4039_v47 = vmul.f32 %v7691_v7, %v8073_v22 }
 0x4a3   : > { %4061 = vrot.lane.b32.xlu1 %v4038_v13, %s4957_s16  ;;  %v3006_v51 = vadd.f32 %v2990_v33, %v2938_v34  ;;  %v3007_v50 = vadd.f32 %v2991_v57, %v2939_v53  ;;  %v3008_v0 = vadd.f32 %v2992_v8, %v2940_v12  ;;  %v3009_v43 = vadd.f32 %v2993_v19, %v2941_v6  ;;  %v9998_v6 = vld [vmem:[#allocation11_spill] sm:$0xff] }
 0x4a4   : > { %4059 = vrot.lane.b32.xlu0 %v4037_v26, %s4957_s16  ;;  %v2994_v56 = vsel %vm2987_vm8, %v6597_v41, %v6627_v55  ;;  %v2995_v11 = vsel %vm2987_vm8, %v6627_v55, %v6625_v4  ;;  %v3056_v20 = vsel %vm3055_vm9, %v6661_v24, %v6659_v10  ;;  %v3057_v54 = vsel %vm3055_vm9, %v6659_v10, %v6695_v17 }
 0x4a5   : > { %v8174_v9 = vpop.permute.xlu1 %3661  ;;  %v8176_v44 = vpop.permute.xlu0 %3659  ;;  %v3058_v41 = vsel %vm3055_vm9, %v6695_v17, %v6693_v3  ;;  %v3059_v4 = vsel %vm3055_vm9, %v6693_v3, %v6732_v62  ;;  %v3060_v55 = vsel %vm3055_vm9, %v6730_v37, %v6769_v46  ;;  %v3061_v10 = vsel %vm3055_vm9, %v6769_v46, %v6767_v35 }
 0x4a6   : > { %v3062_v24 = vsel %vm3055_vm9, %v6767_v35, %v6803_v60  ;;  %v4042_v17 = vmul.f32 %v7725_v58, %v8073_v22  ;;  %v4041_v3 = vmul.f32 %v7730_v25, %v8073_v22  ;;  %v3010_v62 = vadd.f32 %v2994_v56, %v2942_v59 }
 0x4a7   : > { %4065 = vrot.lane.b32.xlu1 %v4040_v38, %s4957_s16  ;;  %v3011_v37 = vadd.f32 %v2995_v11, %v2943_v40  ;;  %v3072_v5 = vadd.f32 %v3056_v20, %v3004_v1  ;;  %v3073_v27 = vadd.f32 %v3057_v54, %v3005_v2  ;;  %v3074_v21 = vadd.f32 %v3058_v41, %v3006_v51  ;;  %v9999_v40 = vld [vmem:[#allocation14_spill] sm:$0xff]  ;;  %v10002_v51 = vld [vmem:[#allocation16_spill] sm:$0xff] }
 0x4a8   : > { %4063 = vrot.lane.b32.xlu0 %v4039_v47, %s4957_s16  ;;  %v3063_v46 = vsel %vm3055_vm9, %v6803_v60, %v6801_v15  ;;  %v3124_v35 = vsel %vm3123_vm10, %v6843_v16, %v6841_v14  ;;  %v3125_v13 = vsel %vm3123_vm10, %v6841_v14, %v6871_v18  ;;  %v3075_v53 = vadd.f32 %v3059_v4, %v3007_v50  ;;  %v10000_v47 = vld [vmem:[#allocation12_spill] sm:$0xff]  ;;  %v10003_v50 = vld [vmem:[#allocation15_spill] sm:$0xff] }
 0x4a9   : > { %v8208_v26 = vpop.permute.xlu1 %3665  ;;  %v8210_v34 = vpop.permute.xlu0 %3663  ;;  %v3076_v12 = vadd.f32 %v3060_v55, %v3008_v0  ;;  %v3077_v31 = vadd.f32 %v3061_v10, %v3009_v43  ;;  %v3078_v33 = vadd.f32 %v3062_v24, %v3010_v62  ;;  %v3126_v15 = vsel %vm3123_vm10, %v6871_v18, %v6869_v61  ;;  %v10004_v0 = vld [vmem:[#allocation18_spill] sm:$0xff]  ;;  %v10005_v10 = vld [vmem:[#allocation20_spill] sm:$0xff] }
 0x4aa   : > { %v4044_v60 = vmul.f32 %v7759_v42, %v8073_v22  ;;  %v4043_v14 = vmul.f32 %v7764_v28, %v8073_v22  ;;  %v3079_v16 = vadd.f32 %v3063_v46, %v3011_v37  ;;  %v3140_v57 = vadd.f32 %v3124_v35, %v3072_v5  ;;  %v10008_v37 = vld [vmem:[#allocation19_spill] sm:$0xff] }
 0x4ab   : > { %4069 = vrot.lane.b32.xlu1 %v4042_v17, %s4957_s16  ;;  %v3141_v8 = vadd.f32 %v3125_v13, %v3073_v27  ;;  %v8222_v19 = vstv %s8160_s28  ;;  %v3127_v18 = vsel %vm3123_vm10, %v6869_v61, %v6902_v30  ;;  %v3128_v43 = vsel %vm3123_vm10, %v6900_v49, %v6933_v48  ;;  %v10001_v30 = vld [vmem:[#allocation13_spill] sm:$0xff]  ;;  %v10009_v27 = vld [vmem:[#allocation24_spill] sm:$0xff] }
 0x4ac   : > { %4067 = vrot.lane.b32.xlu0 %v4041_v3, %s4957_s16  ;;  %v3129_v59 = vsel %vm3123_vm10, %v6933_v48, %v9998_v6  ;;  %v3130_v22 = vsel %vm3123_vm10, %v9998_v6, %v9999_v40  ;;  %v3142_v38 = vadd.f32 %v3126_v15, %v3074_v21  ;;  %v3131_v61 = vsel %vm3123_vm10, %v9999_v40, %v10000_v47  ;;  %v10006_v17 = vld [vmem:[#allocation21_spill] sm:$0xff]  ;;  %v10012_v6 = vld [vmem:[#allocation26_spill] sm:$0xff] }
 0x4ad   : > { %v8236_v1 = vpop.permute.xlu1 %3717  ;;  %v8238_v2 = vpop.permute.xlu0 %3715  ;;  %v3192_v49 = vsel %vm3191_vm11, %v10002_v51, %v10001_v30  ;;  %v3193_v48 = vsel %vm3191_vm11, %v10001_v30, %v10003_v50  ;;  %v3194_v56 = vsel %vm3191_vm11, %v10003_v50, %v10004_v0  ;;  %v4104_v11 = vmul.f32 %v7614_v39, %v8222_v19  ;;  %v10007_v3 = vld [vmem:[#allocation17_spill] sm:$0xff] }
 0x4ae   : > { %v4103_v20 = vmul.f32 %v7619_v52, %v8222_v19  ;;  %v3143_v54 = vadd.f32 %v3127_v18, %v3075_v53  ;;  %v3144_v41 = vadd.f32 %v3128_v43, %v3076_v12  ;;  %v3145_v4 = vadd.f32 %v3129_v59, %v3077_v31  ;;  %v10011_v43 = vld [vmem:[#allocation23_spill] sm:$0xff]  ;;  %v10013_v40 = vld [vmem:[#allocation25_spill] sm:$0xff] }
 0x4af   : > { %4073 = vrot.lane.b32.xlu1 %v4044_v60, %s4957_s16  ;;  %v3146_v55 = vadd.f32 %v3130_v22, %v3078_v33  ;;  %v3195_v24 = vsel %vm3191_vm11, %v10004_v0, %v10005_v10  ;;  %v3196_v62 = vsel %vm3191_vm11, %v10007_v3, %v10006_v17  ;;  %v3197_v5 = vsel %vm3191_vm11, %v10006_v17, %v10008_v37  ;;  %v10010_v33 = vld [vmem:[#allocation22_spill] sm:$0xff]  ;;  %v10017_v0 = vld [vmem:[#allocation27_spill] sm:$0xff] }
 0x4b0   : > { %4071 = vrot.lane.b32.xlu0 %v4043_v14, %s4957_s16  ;;  %v3198_v21 = vsel %vm3191_vm11, %v10008_v37, %v10009_v27  ;;  %v3147_v13 = vadd.f32 %v3131_v61, %v3079_v16  ;;  %v3208_v53 = vadd.f32 %v3192_v49, %v3140_v57  ;;  %v3209_v12 = vadd.f32 %v3193_v48, %v3141_v8  ;;  %v10015_v61 = vld [vmem:[#allocation30_spill] sm:$0xff]  ;;  %v10016_v48 = vld [vmem:[#allocation31_spill] sm:$0xff]  ;;  %s8808_s16 = scalar_lea.vmem [#allocation7], %s4572_s18 }
 0x4b1   : > { %v8270_v46 = vpop.permute.xlu1 %3721  ;;  %v8272_v35 = vpop.permute.xlu0 %3719  ;;  %v3210_v31 = vadd.f32 %v3194_v56, %v3142_v38  ;;  %v3199_v15 = vsel %vm3191_vm11, %v10009_v27, %v10010_v33  ;;  %v4106_v60 = vmul.f32 %v7651_v23, %v8222_v19  ;;  %v4105_v14 = vmul.f32 %v7656_v63, %v8222_v19  ;;  %v10014_v38 = vld [vmem:[#allocation28_spill] sm:$0xff]  ;;  %s4465_s28 = sshll.u32 %s8808_s16, 4  ;;  %s8861_s28 = int_to_ptr.vmem [resolvable:$true] %s4465_s28 }
 0x4b2   : > { %v3211_v16 = vadd.f32 %v3195_v24, %v3143_v54  ;;  %v3212_v57 = vadd.f32 %v3196_v62, %v3144_v41  ;;  %v3213_v8 = vadd.f32 %v3197_v5, %v3145_v4  ;;  %v3214_v18 = vadd.f32 %v3198_v21, %v3146_v55  ;;  %v10019_v54 = vld [vmem:[#allocation34_spill] sm:$0xff]  ;;  %v10020_v4 = vld [vmem:[#allocation32_spill] sm:$0xff]  ;;  %v10021_v21 = vld [vmem:[#allocation33_spill] sm:$0xff]  ;;  %s4811_s17 = scalar_lea.vmem %s8861_s28, 1024 }
 0x4b3   : > { %4125 = vrot.lane.b32.xlu1 %v4104_v11, %s4958_s26  ;;  %v3260_v59 = vsel %vm3259_vm12, %v10012_v6, %v10011_v43  ;;  %v3261_v22 = vsel %vm3259_vm12, %v10011_v43, %v10013_v40  ;;  %v3262_v47 = vsel %vm3259_vm12, %v10013_v40, %v10014_v38  ;;  %v3263_v30 = vsel %vm3259_vm12, %v10014_v38, %v10015_v61  ;;  %v10018_v11 = vld [vmem:[#allocation29_spill] sm:$0xff]  ;;  %v10028_v61 = vld [vmem:[#allocation39_spill] sm:$0xff]  ;;  %p4812_p3 = scmp.ne.s32.totalorder %s8861_s28, %s4811_s17 }
 0x4b4   : > { %4123 = vrot.lane.b32.xlu0 %v4103_v20, %s4958_s26  ;;  %v3215_v50 = vadd.f32 %v3199_v15, %v3147_v13  ;;  %v3264_v56 = vsel %vm3259_vm12, %v10017_v0, %v10016_v48  ;;  %v3265_v20 = vsel %vm3259_vm12, %v10016_v48, %v10018_v11  ;;  %v3266_v41 = vsel %vm3259_vm12, %v10018_v11, %v10019_v54  ;;  %v10022_v13 = vld [vmem:[#allocation36_spill] sm:$0xff]  ;;  %v10023_v15 = vld [vmem:[#allocation35_spill] sm:$0xff]  ;;  %v10026_v6 = vld [vmem:[#allocation41_spill] sm:$0xff] }
 0x4b5   : > { %v8298_v51 = vpop.permute.xlu1 %3725  ;;  %v8300_v49 = vpop.permute.xlu0 %3723  ;;  %v3267_v55 = vsel %vm3259_vm12, %v10019_v54, %v10020_v4  ;;  %v4108_v10 = vmul.f32 %v7686_v45, %v8222_v19  ;;  %v4107_v24 = vmul.f32 %v7691_v7, %v8222_v19  ;;  %v3276_v17 = vadd.f32 %v3260_v59, %v3208_v53  ;;  %v10027_v59 = vld [vmem:[#allocation37_spill] sm:$0xff]  ;;  %p4813_p7 = pnand %p4812_p3, %p5029_p8 }
 0x4b6   : > { %v3277_v3 = vadd.f32 %v3261_v22, %v3209_v12  ;;  %v3278_v62 = vadd.f32 %v3262_v47, %v3210_v31  ;;  %v3279_v37 = vadd.f32 %v3263_v30, %v3211_v16  ;;  %v3280_v5 = vadd.f32 %v3264_v56, %v3212_v57  ;;  %v10024_v31 = vld [vmem:[#allocation38_spill] sm:$0xff]  ;;  %v10025_v57 = vld [vmem:[#allocation40_spill] sm:$0xff] }
 0x4b7   : > { %4129 = vrot.lane.b32.xlu1 %v4106_v60, %s4958_s26  ;;  %v3281_v27 = vadd.f32 %v3265_v20, %v3213_v8  ;;  %v3328_v33 = vsel %vm3327_vm13, %v10022_v13, %v10021_v21  ;;  %v3329_v60 = vsel %vm3327_vm13, %v10021_v21, %v10023_v15  ;;  %v3282_v53 = vadd.f32 %v3266_v41, %v3214_v18  ;;  %v10029_v56 = vld [vmem:[#allocation44_spill] sm:$0xff]  ;;  %v10030_v20 = vld [vmem:[#allocation42_spill] sm:$0xff]  ;;  %p4814_p9 = pneg %p4813_p7 }
 0x4b8   : > { %4127 = vrot.lane.b32.xlu0 %v4105_v14, %s4958_s26  ;;  %v3283_v12 = vadd.f32 %v3267_v55, %v3215_v50  ;;  %v3330_v16 = vsel %vm3327_vm13, %v10023_v15, %v10024_v31  ;;  %v3331_v8 = vsel %vm3327_vm13, %v10024_v31, %v10025_v57  ;;  %v3332_v40 = vsel %vm3327_vm13, %v10027_v59, %v10026_v6  ;;  %v10033_v15 = vld [vmem:[#allocation45_spill] sm:$0xff]  ;;  %v10034_v31 = vld [vmem:[#allocation48_spill] sm:$0xff] }
 0x4b9   : > { %v8327_v14 = vpop.permute.xlu1 %3729  ;;  %v8329_v43 = vpop.permute.xlu0 %3727  ;;  %v4110_v18 = vmul.f32 %v7725_v58, %v8222_v19  ;;  %v4109_v22 = vmul.f32 %v7730_v25, %v8222_v19  ;;  %v3344_v38 = vadd.f32 %v3328_v33, %v3276_v17  ;;  %v3345_v47 = vadd.f32 %v3329_v60, %v3277_v3 }
 0x4ba   : > { %v3333_v30 = vsel %vm3327_vm13, %v10026_v6, %v10028_v61  ;;  %v4170_v50 = vstv %s8284_s30  ;;  %v3346_v48 = vadd.f32 %v3330_v16, %v3278_v62  ;;  %v3347_v0 = vadd.f32 %v3331_v8, %v3279_v37  ;;  %v10035_v16 = vld [vmem:[#allocation50_spill] sm:$0xff]  ;;  %v10037_v8 = vld [vmem:[#allocation51_spill] sm:$0xff]  ;;  %s8859_s30 = scalar_lea.hbm %s8913_s2, %s4579_s27 }
 0x4bb   : > { %4133 = vrot.lane.b32.xlu1 %v4108_v10, %s4958_s26  ;;  %v3334_v11 = vsel %vm3327_vm13, %v10028_v61, %v10029_v56  ;;  %v3335_v54 = vsel %vm3327_vm13, %v10029_v56, %v10030_v20  ;;  %v3348_v55 = vadd.f32 %v3332_v40, %v3280_v5  ;;  %v10031_v10 = vld [vmem:[#allocation43_spill] sm:$0xff]  ;;  %v4112_v3 = vmul.f32 %v7759_v42, %v8222_v19  ;;  %v10039_v40 = vld [vmem:[#allocation49_spill] sm:$0xff] }
 0x4bc   : > { %4131 = vrot.lane.b32.xlu0 %v4107_v24, %s4958_s26  ;;  %v10032_v24 = vld [vmem:[#allocation46_spill] sm:$0xff]  ;;  %v4111_v62 = vmul.f32 %v7764_v28, %v8222_v19  ;;  %v3349_v37 = vadd.f32 %v3333_v30, %v3281_v27  ;;  %v4172_v21 = vmul.f32 %v7614_v39, %v4170_v50  ;;  %v4171_v5 = vmul.f32 %v7619_v52, %v4170_v50  ;;  %v10038_v6 = vld [vmem:[#allocation47_spill] sm:$0xff] }
 0x4bd   : > { %v8358_v41 = vpop.permute.xlu1 %3733  ;;  %v8360_v4 = vpop.permute.xlu0 %3731  ;;  %v3396_v17 = vsel %vm3395_vm14, %v10032_v24, %v10031_v10  ;;  %v3350_v13 = vadd.f32 %v3334_v11, %v3282_v53  ;;  %v3351_v33 = vadd.f32 %v3335_v54, %v3283_v12  ;;  %v3397_v60 = vsel %vm3395_vm14, %v10031_v10, %v10033_v15  ;;  %v10040_v11 = vld [vmem:[#allocation54_spill] sm:$0xff]  ;;  %v10041_v54 = vld [vmem:[#allocation52_spill] sm:$0xff] }
 0x4be   : > { %v3398_v19 = vsel %vm3395_vm14, %v10033_v15, %v10034_v31  ;;  %v3412_v27 = vadd.f32 %v3396_v17, %v3344_v38  ;;  %v3399_v57 = vsel %vm3395_vm14, %v10034_v31, %v10035_v16  ;;  %v4174_v53 = vmul.f32 %v7651_v23, %v4170_v50  ;;  %v10043_v15 = vld [vmem:[#allocation56_spill] sm:$0xff] }
 0x4bf   : > { %4137 = vrot.lane.b32.xlu1 %v4110_v18, %s4958_s26  ;;  %v4173_v12 = vmul.f32 %v7656_v63, %v4170_v50  ;;  %v3400_v59 = vsel %vm3395_vm14, %v10038_v6, %v10037_v8  ;;  %v3401_v18 = vsel %vm3395_vm14, %v10037_v8, %v10039_v40  ;;  %v8398_v38 = vmul.f32 %v7691_v7, %v4170_v50  ;;  %v10048_v6 = vld [vmem:[#allocation60_spill] sm:$0xff] }
 0x4c0   : > { %4135 = vrot.lane.b32.xlu0 %v4109_v22, %s4958_s26  ;;  %v8395_v22 = vmul.f32 %v7686_v45, %v4170_v50  ;;  %v3413_v61 = vadd.f32 %v3397_v60, %v3345_v47  ;;  %v3414_v30 = vadd.f32 %v3398_v19, %v3346_v48  ;;  %v8403_v23 = vmul.f32 %v7725_v58, %v4170_v50  ;;  %v10046_v19 = vld [vmem:[#allocation55_spill] sm:$0xff] }
 0x4c1   : > { %v8382_v39 = vpop.permute.xlu1 %3785  ;;  %v8384_v52 = vpop.permute.xlu0 %3783  ;;  %v8406_v63 = vstv %s8346_s3  ;;  %v3415_v56 = vadd.f32 %v3399_v57, %v3347_v0  ;;  %v3402_v20 = vsel %vm3395_vm14, %v10039_v40, %v10040_v11  ;;  %v3403_v47 = vsel %vm3395_vm14, %v10040_v11, %v10041_v54  ;;  %v10047_v57 = vld [vmem:[#allocation58_spill] sm:$0xff]  ;;  %s4963_s3 = smov [#allocation7]  }
 0x4c2   : > { %10036 = vst [vmem:[#allocation85_spill] sm:$0xff] %v8384_v52  ;;  %v8415_v48 = vmul.f32 %v7730_v25, %v4170_v50  ;;  %v3416_v10 = vadd.f32 %v3400_v59, %v3348_v55  ;;  %v3417_v24 = vadd.f32 %v3401_v18, %v3349_v37  ;;  %v8423_v0 = vmul.f32 %v7764_v28, %v4170_v50  ;;  %v8433_v55 = vld [vmem:[%s5086_s6 + $0x8] sm:$0xff]  ;;  %v10049_v59 = vld [vmem:[#allocation61_spill] sm:$0xff]  ;;  %v8461_v18 = vld [vmem:[%s5086_s6 + $0x18] sm:$0xff] }
 0x4c3   : > { %4141 = vrot.lane.b32.xlu1 %v4112_v3, %s4958_s26  ;;  %v8420_v3 = vmul.f32 %v7759_v42, %v4170_v50  ;;  %10044 = vst [vmem:[#allocation87_spill] sm:$0xff] %v8433_v55  ;;  %v8437_v37 = vmul.f32 %v8433_v55, %v8406_v63  ;;  %v8440_v42 = vld [vmem:[%s5086_s6] sm:$0xff]  ;;  %v3418_v50 = vadd.f32 %v3402_v20, %v3350_v13  ;;  %10051 = vst [vmem:[#allocation89_spill] sm:$0xff] %v8461_v18  ;;  %v10067_v52 = vld [vmem:[#allocation78_spill] sm:$0xff]  ;;  %vm3939_vm6 = vcmask 596992  }
 0x4c4   : > { %4139 = vrot.lane.b32.xlu0 %v4111_v62, %s4958_s26  ;;  %v10042_v62 = vld [vmem:[#allocation53_spill] sm:$0xff]  ;;  %10045 = vst [vmem:[#allocation90_spill] sm:$0xff] %v8440_v42  ;;  %v8444_v28 = vmul.f32 %v8440_v42, %v8406_v63  ;;  %v3419_v31 = vadd.f32 %v3403_v47, %v3351_v33  ;;  %v3466_v8 = vsel %vm3463_vm15, %v10046_v19, %v10047_v57  ;;  %vm4007_vm7 = vcmask 588800  }
 0x4c5   : > { %v3790_v17 = vpop.permute.xlu1 %3789  ;;  %v3464_v60 = vsel %vm3463_vm15, %v10043_v15, %v10042_v62  ;;  %v3465_v16 = vsel %vm3463_vm15, %v10042_v62, %v10046_v19  ;;  %v3467_v13 = vsel %vm3463_vm15, %v10047_v57, %v10048_v6  ;;  %v10050_v33 = vld [vmem:[#allocation57_spill] sm:$0xff]  ;;  %v8465_v11 = vmul.f32 %v8461_v18, %v8406_v63  ;;  %v10054_v6 = vld [vmem:[#allocation64_spill] sm:$0xff] }
 0x4c6   : > { %v8417_v58 = vpop.permute.xlu0 %3787  ;;  %v3468_v40 = vsel %vm3463_vm15, %v10050_v33, %v10049_v59  ;;  %v8471_v62 = vld [vmem:[%s5086_s6 + $0x10] sm:$0xff]  ;;  %v8479_v19 = vmul.f32 %v7686_v45, %v8406_v63  ;;  %v3481_v57 = vadd.f32 %v3465_v16, %v3413_v61  ;;  %v3482_v33 = vadd.f32 %v3466_v8, %v3414_v30  ;;  %v10055_v61 = vld [vmem:[#allocation62_spill] sm:$0xff] }
 0x4c7   : > { %v8430_v25 = vsel %vm3803_vm0, %v8417_v58, %v3790_v17  ;;  %4193 = vrot.lane.b32.xlu1 %v4172_v21, %s4959_s4  ;;  %v3480_v21 = vadd.f32 %v3464_v60, %v3412_v27  ;;  %10053 = vst [vmem:[#allocation91_spill] sm:$0xff] %v8471_v62  ;;  %v8475_v15 = vmul.f32 %v8471_v62, %v8406_v63  ;;  %v10058_v42 = vld [vmem:[#allocation65_spill] sm:$0xff]  ;;  %v10062_v8 = vld [vmem:[#allocation67_spill] sm:$0xff]  ;;  %vm4075_vm8 = vcmask 580608  }
 0x4c8   : > { %4191 = vrot.lane.b32.xlu0 %v4171_v5, %s4959_s4  ;;  %v10052_v5 = vld [vmem:[#allocation59_spill] sm:$0xff]  ;;  %v3483_v18 = vadd.f32 %v3467_v13, %v3415_v56  ;;  %v3484_v62 = vadd.f32 %v3468_v40, %v3416_v10  ;;  %v3471_v16 = vsel %vm3463_vm15, %v10054_v6, %v10055_v61  ;;  %v10059_v56 = vld [vmem:[#allocation68_spill] sm:$0xff]  ;;  %v10060_v10 = vld [vmem:[#allocation70_spill] sm:$0xff]  ;;  %vm4143_vm9 = vcmask 572416  }
 0x4c9   : > { %v3469_v20 = vsel %vm3463_vm15, %v10049_v59, %v10052_v5  ;;  %v3794_v54 = vpop.permute.xlu1 %3793  ;;  %v3470_v27 = vsel %vm3463_vm15, %v10052_v5, %v10054_v6  ;;  %v8489_v59 = vmul.f32 %v7691_v7, %v8406_v63  ;;  %v10056_v5 = vld [vmem:[#allocation63_spill] sm:$0xff]  ;;  %v10063_v6 = vld [vmem:[#allocation69_spill] sm:$0xff]  ;;  %vm4211_vm10 = vcmask 564224  }
 0x4ca   : > { %v3792_v47 = vpop.permute.xlu0 %3791  ;;  %v3485_v45 = vadd.f32 %v3469_v20, %v3417_v24  ;;  %v3533_v7 = vsel %vm3531_vm1, %v10056_v5, %v10058_v42  ;;  %v3486_v30 = vadd.f32 %v3470_v27, %v3418_v50  ;;  %v10061_v24 = vld [vmem:[#allocation71_spill] sm:$0xff]  ;;  %v10066_v55 = vld [vmem:[#allocation73_spill] sm:$0xff]  ;;  %vm4279_vm11 = vcmask 556032  }
 0x4cb   : > { %v8485_v60 = vsel %vm3803_vm0, %v3790_v17, %v3792_v47  ;;  %4197 = vrot.lane.b32.xlu1 %v4174_v53, %s4959_s4  ;;  %v10057_v17 = vld [vmem:[#allocation66_spill] sm:$0xff]  ;;  %v3534_v53 = vsel %vm3531_vm1, %v10058_v42, %v10059_v56  ;;  %v3536_v13 = vsel %vm3531_vm1, %v10062_v8, %v10061_v24  ;;  %v3537_v61 = vsel %vm3531_vm1, %v10061_v24, %v10063_v6 }
 0x4cc   : > { %4195 = vrot.lane.b32.xlu0 %v4173_v12, %s4959_s4  ;;  %v3532_v47 = vsel %vm3531_vm1, %v10057_v17, %v10056_v5  ;;  %v3535_v12 = vsel %vm3531_vm1, %v10059_v56, %v10060_v10  ;;  %v10064_v5 = vld [vmem:[#allocation74_spill] sm:$0xff]  ;;  %v3487_v17 = vadd.f32 %v3471_v16, %v3419_v31  ;;  %v3549_v10 = vadd.f32 %v3533_v7, %v3481_v57  ;;  %v10068_v57 = vld [vmem:[#allocation72_spill] sm:$0xff] }
 0x4cd   : > { %v3798_v40 = vpop.permute.xlu1 %3797  ;;  %v3538_v50 = vsel %vm3531_vm1, %v10063_v6, %v10064_v5  ;;  %v8523_v56 = vadd.f32 %v3532_v47, %v3480_v21  ;;  %v3550_v24 = vadd.f32 %v3534_v53, %v3482_v33  ;;  %v3551_v8 = vadd.f32 %v3535_v12, %v3483_v18  ;;  %v10065_v6 = vld [vmem:[#allocation75_spill] sm:$0xff] }
 0x4ce   : > { %v3796_v20 = vpop.permute.xlu0 %3795  ;;  %v3602_v31 = vsel %vm3599_vm2, %v10065_v6, %v10067_v52  ;;  %v3552_v21 = vadd.f32 %v3536_v13, %v3484_v62  ;;  %v3553_v16 = vadd.f32 %v3537_v61, %v3485_v45  ;;  %v3539_v47 = vsel %vm3531_vm1, %v10064_v5, %v10068_v57  ;;  %v10070_v13 = vld [vmem:[#allocation80_spill] sm:$0xff]  ;;  %v10071_v61 = vld [vmem:[#allocation81_spill] sm:$0xff] }
 0x4cf   : > { %v8518_v42 = vsel %vm3803_vm0, %v3794_v54, %v3796_v20  ;;  %v8521_v27 = vsel %vm3803_vm0, %v3796_v20, %v3798_v40  ;;  %4201 = vrot.lane.b32.xlu1 %v8395_v22, %s4959_s4  ;;  %v3601_v54 = vsel %vm3599_vm2, %v10066_v55, %v10065_v6  ;;  %v3554_v22 = vadd.f32 %v3538_v50, %v3486_v30 }
 0x4d0   : > { %4199 = vrot.lane.b32.xlu0 %v8398_v38, %s4959_s4  ;;  %v10069_v38 = vld [vmem:[#allocation83_spill] sm:$0xff]  ;;  %v3670_v33 = vsel %vm3667_vm3, %v8114_v29, %v8112_v32  ;;  %v3617_v45 = vadd.f32 %v3601_v54, %v3549_v10  ;;  %v3618_v12 = vadd.f32 %v3602_v31, %v3550_v24  ;;  %v3603_v30 = vsel %vm3599_vm2, %v10067_v52, %v10070_v13  ;;  %v10074_v31 = vld [vmem:[#allocation76_spill] sm:$0xff] }
 0x4d1   : > { %v3802_v7 = vpop.permute.xlu1 %3801  ;;  %v3669_v18 = vsel %vm3667_vm3, %v10069_v38, %v8114_v29  ;;  %v3555_v29 = vadd.f32 %v3539_v47, %v3487_v17  ;;  %v3737_v50 = vsel %vm3735_vm4, %v8236_v1, %v8272_v35  ;;  %v3738_v52 = vsel %vm3735_vm4, %v8272_v35, %v8270_v46  ;;  %v10073_v10 = vld [vmem:[#allocation79_spill] sm:$0xff]  ;;  %v10077_v13 = vld [vmem:[#allocation88_spill] sm:$0xff] }
 0x4d2   : > { %v3800_v20 = vpop.permute.xlu0 %3799  ;;  %v3685_v24 = vadd.f32 %v3669_v18, %v3617_v45  ;;  %v3671_v17 = vsel %vm3667_vm3, %v8112_v32, %v8151_v36  ;;  %v3600_v57 = vsel %vm3599_vm2, %v10074_v31, %v10066_v55  ;;  %v3619_v47 = vadd.f32 %v3603_v30, %v3551_v8  ;;  %v10075_v8 = vld [vmem:[#allocation84_spill] sm:$0xff]  ;;  %v10076_v45 = vld [vmem:[#allocation82_spill] sm:$0xff] }
 0x4d3   : > { %v8545_v53 = vsel %vm3803_vm0, %v3798_v40, %v3800_v20  ;;  %v8548_v62 = vsel %vm3803_vm0, %v3800_v20, %v3802_v7  ;;  %4205 = vrot.lane.b32.xlu1 %v8403_v23, %s4959_s4  ;;  %v10072_v40 = vld [vmem:[#allocation77_spill] sm:$0xff]  ;;  %v3605_v23 = vsel %vm3599_vm2, %v10071_v61, %v10073_v10  ;;  %v3805_v35 = vsel %vm3803_vm0, %v8382_v39, %v8417_v58 }
 0x4d4   : > { %4203 = vrot.lane.b32.xlu0 %v8415_v48, %s4959_s4  ;;  %v3604_v5 = vsel %vm3599_vm2, %v10072_v40, %v10071_v61  ;;  %v3686_v48 = vadd.f32 %v3670_v33, %v3618_v12  ;;  %v3753_v20 = vadd.f32 %v3737_v50, %v3685_v24  ;;  %v3739_v32 = vsel %vm3735_vm4, %v8270_v46, %v8300_v49 }
 0x4d5   : > { %v3854_v6 = vpop.permute.xlu1 %3853  ;;  %v3620_v36 = vadd.f32 %v3604_v5, %v3552_v21  ;;  %v3621_v55 = vadd.f32 %v3605_v23, %v3553_v16  ;;  %v3606_v58 = vsel %vm3599_vm2, %v10073_v10, %v10075_v8  ;;  %v3687_v33 = vadd.f32 %v3671_v17, %v3619_v47 }
 0x4d6   : > { %v3852_v54 = vpop.permute.xlu0 %3851  ;;  %v3754_v18 = vadd.f32 %v3738_v52, %v3686_v48  ;;  %v3607_v12 = vsel %vm3599_vm2, %v10075_v8, %v10076_v45  ;;  %v3672_v46 = vsel %vm3667_vm3, %v10077_v13, %v8176_v44  ;;  %v3821_v49 = vadd.f32 %v3805_v35, %v3753_v20 }
 0x4d7   : > { %v8579_v7 = vsel %vm3871_vm5, %v3852_v54, %v3854_v6  ;;  %4209 = vrot.lane.b32.xlu1 %v8420_v3, %s4959_s4  ;;  %v3673_v21 = vsel %vm3667_vm3, %v8176_v44, %v8174_v9  ;;  %v3755_v16 = vadd.f32 %v3739_v32, %v3687_v33  ;;  %v3740_v5 = vsel %vm3735_vm4, %v8298_v51, %v8329_v43 }
 0x4d8   : > { %4207 = vrot.lane.b32.xlu0 %v8423_v0, %s4959_s4  ;;  %v3822_v3 = vadd.f32 %v8430_v25, %v3754_v18  ;;  %v3616_v44 = vadd.f32 %v3600_v57, %v8523_v56  ;;  %v3622_v25 = vadd.f32 %v3606_v58, %v3554_v22  ;;  %v3688_v10 = vadd.f32 %v3672_v46, %v3620_v36  ;;  %v10078_v56 = vld [vmem:[#allocation86_spill] sm:$0xff]  ;;  %v8648_v57 = vld [vmem:[%s5086_s6 + $0x30] sm:$0xff]  ;;  %s4815_s4 = sshll.u32 %s4963_s3, 4  ;;  %s4816_s4 = int_to_ptr.vmem [resolvable:$false] %s4815_s4 }
 0x4d9   : > { %v3858_v30 = vpop.permute.xlu1 %3857  ;;  %v3741_v51 = vsel %vm3735_vm4, %v8329_v43, %v8327_v14  ;;  %v3623_v23 = vadd.f32 %v3607_v12, %v3555_v29  ;;  %v3689_v24 = vadd.f32 %v3673_v21, %v3621_v55  ;;  %v3674_v48 = vsel %vm3667_vm3, %v8174_v9, %v8210_v34  ;;  %p4818_p12 = scmp.lt.s32.totalorder %s8861_s28, %s4816_s4 }
 0x4da   : > { %v3856_v0 = vpop.permute.xlu0 %3855  ;;  %v3668_v22 = vsel %vm3667_vm3, %v10078_v56, %v10069_v38  ;;  %v3675_v43 = vsel %vm3667_vm3, %v8210_v34, %v8208_v26  ;;  %v3756_v29 = vadd.f32 %v3740_v5, %v3688_v10  ;;  %v3742_v9 = vsel %vm3735_vm4, %v8327_v14, %v8360_v4  ;;  %v8643_v34 = vld [vmem:[%s5086_s6 + $0x38] sm:$0xff] }
 0x4db   : > { %v3873_v61 = vsel %vm3871_vm5, %v3854_v6, %v3856_v0  ;;  %v3874_v40 = vsel %vm3871_vm5, %v3856_v0, %v3858_v30  ;;  %4261 = vrot.lane.b32.xlu1 %v8437_v37, %s4960_s22  ;;  %v3823_v37 = vadd.f32 %v8485_v60, %v3755_v16  ;;  %v3757_v54 = vadd.f32 %v3741_v51, %v3689_v24  ;;  %v10082_v24 = vld [vmem:[#allocation89_spill] sm:$0xff] }
 0x4dc   : > { %v8606_v50 = vadd.f32 %v3873_v61, %v3821_v49  ;;  %v8608_v52 = vadd.f32 %v3874_v40, %v3822_v3  ;;  %4259 = vrot.lane.b32.xlu0 %v8444_v28, %s4960_s22  ;;  %v3690_v38 = vadd.f32 %v3674_v48, %v3622_v25  ;;  %v3743_v26 = vsel %vm3735_vm4, %v8360_v4, %v8358_v41  ;;  %v8678_v49 = vld [vmem:[%s5086_s6 + $0x40] sm:$0xff] }
 0x4dd   : > { %v3862_v17 = vpop.permute.xlu1 %3861  ;;  %v4246_v31 = vmul.f32 %v8643_v34, %v8406_v63  ;;  %v4245_v14 = vmul.f32 %v8648_v57, %v8406_v63  ;;  %v3691_v47 = vadd.f32 %v3675_v43, %v3623_v23  ;;  %v3825_v35 = vadd.f32 %v8521_v27, %v3757_v54  ;;  %v4771_v54 = vld [vmem:[%s5086_s6 + $0x20] sm:$0xff] }
 0x4de   : > { %v3860_v28 = vpop.permute.xlu0 %3859  ;;  %v3736_v4 = vsel %vm3735_vm4, %v8238_v2, %v8236_v1  ;;  %v3758_v18 = vadd.f32 %v3742_v9, %v3690_v38  ;;  %vm4347_vm12 = vcmask 547840   ;;  %vm4415_vm13 = vcmask 539648  }
 0x4df   : > { %v3875_v6 = vsel %vm3871_vm5, %v3858_v30, %v3860_v28  ;;  %4265 = vrot.lane.b32.xlu1 %v8465_v11, %s4960_s22  ;;  %v3684_v11 = vadd.f32 %v3668_v22, %v3616_v44  ;;  %v3759_v55 = vadd.f32 %v3743_v26, %v3691_v47  ;;  %v10081_v44 = vld [vmem:[#allocation90_spill] sm:$0xff]  ;;  %v10083_v28 = vld [vmem:[#allocation91_spill] sm:$0xff] }
 0x4e0   : > { %v8633_v60 = vadd.f32 %v3875_v6, %v3823_v37  ;;  %4263 = vrot.lane.b32.xlu0 %v8475_v15, %s4960_s22  ;;  %v3824_v15 = vadd.f32 %v8518_v42, %v3756_v29  ;;  %v10079_v42 = vld [vmem:[#allocation85_spill] sm:$0xff]  ;;  %v3826_v27 = vadd.f32 %v8545_v53, %v3758_v18 }
 0x4e1   : > { %v3866_v20 = vpop.permute.xlu1 %3865  ;;  %v3804_v1 = vsel %vm3803_vm0, %v10079_v42, %v8382_v39  ;;  %v3752_v2 = vadd.f32 %v3736_v4, %v3684_v11  ;;  %v3827_v33 = vadd.f32 %v8548_v62, %v3759_v55  ;;  %v4247_v39 = vmul.f32 %v8678_v49, %v8406_v63 }
 0x4e2   : > { %v3864_v41 = vpop.permute.xlu0 %3863  ;;  %v4306_v62 = vstv %s8652_s19 }
 0x4e3   : > { %v3876_v32 = vsel %vm3871_vm5, %v3862_v17, %v3864_v41  ;;  %v3877_v36 = vsel %vm3871_vm5, %v3864_v41, %v3866_v20  ;;  %4269 = vrot.lane.b32.xlu1 %v8479_v19, %s4960_s22  ;;  %v8673_v19 = vld [vmem:[%s5086_s6 + $0x48] sm:$0xff]  ;;  %v3820_v53 = vadd.f32 %v3804_v1, %v3752_v2  ;;  %v4307_v25 = vmul.f32 %v10081_v44, %v4306_v62 }
 0x4e4   : > { %v3892_v8 = vadd.f32 %v3876_v32, %v3824_v15  ;;  %v3893_v58 = vadd.f32 %v3877_v36, %v3825_v35  ;;  %4267 = vrot.lane.b32.xlu0 %v8489_v59, %s4960_s22  ;;  %v4248_v59 = vmul.f32 %v8673_v19, %v8406_v63  ;;  %v10080_v63 = vld [vmem:[#allocation87_spill] sm:$0xff]  ;;  %v4310_v48 = vmul.f32 %v10082_v24, %v4306_v62 }
 0x4e5   : > { %v3870_v45 = vpop.permute.xlu1 %3869  ;;  %v3888_v0 = vadd.f32 %v8579_v7, %v3820_v53  ;;  %v4308_v5 = vmul.f32 %v10080_v63, %v4306_v62  ;;  %v4309_v56 = vmul.f32 %v10083_v28, %v4306_v62  ;;  %v4311_v9 = vmul.f32 %v4771_v54, %v4306_v62 }
 0x4e6   : > { %v3868_v12 = vpop.permute.xlu0 %3867  ;;  %v4314_v11 = vmul.f32 %v8643_v34, %v4306_v62  ;;  %v4316_v18 = vmul.f32 %v8673_v19, %v4306_v62  ;;  %v4315_v55 = vmul.f32 %v8678_v49, %v4306_v62 }
 0x4e7   : > { %v3878_v13 = vsel %vm3871_vm5, %v3866_v20, %v3868_v12  ;;  %v3879_v46 = vsel %vm3871_vm5, %v3868_v12, %v3870_v45  ;;  %4273 = vrot.lane.b32.xlu1 %v4246_v31, %s4960_s22 }
 0x4e8   : > { %v3894_v3 = vadd.f32 %v3878_v13, %v3826_v27  ;;  %v3895_v30 = vadd.f32 %v3879_v46, %v3827_v33  ;;  %4271 = vrot.lane.b32.xlu0 %v4245_v14, %s4960_s22 }
 0x4e9   : > { %v3922_v21 = vpop.permute.xlu1 %3921 }
 0x4ea   : > { %v3920_v16 = vpop.permute.xlu0 %3919 }
 0x4eb   : > { %v3940_v61 = vsel %vm3939_vm6, %v3920_v16, %v3922_v21  ;;  %4277 = vrot.lane.b32.xlu1 %v4248_v59, %s4960_s22 }
 0x4ec   : > { %v3956_v40 = vadd.f32 %v3940_v61, %v3888_v0  ;;  %4275 = vrot.lane.b32.xlu0 %v4247_v39, %s4960_s22  ;;  %s4817_s22 = scalar_lea.vmem %s4816_s4, 2048 }
 0x4ed   : > { %v3926_v10 = vpop.permute.xlu1 %3925  ;;  %p4819_p13 = scmp.lt.s32.totalorder %s4817_s22, %s4811_s17 }
 0x4ee   : > { %v3924_v51 = vpop.permute.xlu0 %3923 }
 0x4ef   : > { %v3941_v23 = vsel %vm3939_vm6, %v3922_v21, %v3924_v51  ;;  %v3942_v7 = vsel %vm3939_vm6, %v3924_v51, %v3926_v10  ;;  %4329 = vrot.lane.b32.xlu1 %v4308_v5, %s4961_s5  ;;  %p4820_p2 = por %p4819_p13, %p4818_p12 }
 0x4f0   : > { %v3957_v37 = vadd.f32 %v3941_v23, %v8606_v50  ;;  %v3958_v17 = vadd.f32 %v3942_v7, %v8608_v52  ;;  %4327 = vrot.lane.b32.xlu0 %v4307_v25, %s4961_s5  ;;  %v4770_v50 = vld [vmem:[%s5086_s6 + $0x28] sm:$0xff]  ;;  %s4962_s6 = smov 66  }
 0x4f1   : > { %v3930_v22 = vpop.permute.xlu1 %3929  ;;  %v4312_v52 = vmul.f32 %v4770_v50, %v4306_v62  ;;  %p4821_p5 = pnand %p4820_p2, %p4814_p9 }
 0x4f2   : > { %v3928_v43 = vpop.permute.xlu0 %3927 }
 0x4f3   : > { %v3943_v29 = vsel %vm3939_vm6, %v3926_v10, %v3928_v43  ;;  %4333 = vrot.lane.b32.xlu1 %v4310_v48, %s4961_s5 }
 0x4f4   : > { %v3959_v6 = vadd.f32 %v3943_v29, %v8633_v60  ;;  %4331 = vrot.lane.b32.xlu0 %v4309_v56, %s4961_s5  ;;  %v4313_v60 = vmul.f32 %v8648_v57, %v4306_v62 }
 0x4f5   : > { %v3934_v38 = vpop.permute.xlu1 %3933 }
 0x4f6   : > { %v3932_v26 = vpop.permute.xlu0 %3931 }
 0x4f7   : > { %v3944_v31 = vsel %vm3939_vm6, %v3930_v22, %v3932_v26  ;;  %v3945_v14 = vsel %vm3939_vm6, %v3932_v26, %v3934_v38  ;;  %4337 = vrot.lane.b32.xlu1 %v4312_v52, %s4961_s5 }
 0x4f8   : > { %v3960_v47 = vadd.f32 %v3944_v31, %v3892_v8  ;;  %v3961_v15 = vadd.f32 %v3945_v14, %v3893_v58  ;;  %4335 = vrot.lane.b32.xlu0 %v4311_v9, %s4961_s5  ;;  %v4374_v8 = vstv %s4373_s8 }
 0x4f9   : > { %v3938_v35 = vpop.permute.xlu1 %3937  ;;  %v4376_v27 = vmul.f32 %v10080_v63, %v4374_v8  ;;  %v4375_v33 = vmul.f32 %v10081_v44, %v4374_v8  ;;  %v4378_v59 = vmul.f32 %v10082_v24, %v4374_v8  ;;  %v4380_v16 = vmul.f32 %v4770_v50, %v4374_v8 }
 0x4fa   : > { %v3936_v20 = vpop.permute.xlu0 %3935  ;;  %v4379_v61 = vmul.f32 %v4771_v54, %v4374_v8  ;;  %v4382_v25 = vmul.f32 %v8643_v34, %v4374_v8  ;;  %v4381_v23 = vmul.f32 %v8648_v57, %v4374_v8  ;;  %v4383_v34 = vmul.f32 %v8678_v49, %v4374_v8 }
 0x4fb   : > { %v3946_v41 = vsel %vm3939_vm6, %v3934_v38, %v3936_v20  ;;  %v3947_v4 = vsel %vm3939_vm6, %v3936_v20, %v3938_v35  ;;  %4341 = vrot.lane.b32.xlu1 %v4314_v11, %s4961_s5 }
 0x4fc   : > { %v3962_v32 = vadd.f32 %v3946_v41, %v3894_v3  ;;  %v3963_v36 = vadd.f32 %v3947_v4, %v3895_v30  ;;  %4339 = vrot.lane.b32.xlu0 %v4313_v60, %s4961_s5  ;;  %v4377_v3 = vmul.f32 %v10083_v28, %v4374_v8 }
 0x4fd   : > { %v3990_v58 = vpop.permute.xlu1 %3989 }
 0x4fe   : > { %v3988_v42 = vpop.permute.xlu0 %3987 }
 0x4ff   : > { %v4008_v1 = vsel %vm4007_vm7, %v3988_v42, %v3990_v58  ;;  %4345 = vrot.lane.b32.xlu1 %v4316_v18, %s4961_s5 }
 0x500   : > { %v4024_v2 = vadd.f32 %v4008_v1, %v3956_v40  ;;  %4343 = vrot.lane.b32.xlu0 %v4315_v55, %s4961_s5 }
 0x501   : > { %v3994_v45 = vpop.permute.xlu1 %3993 }
 0x502   : > { %v3992_v12 = vpop.permute.xlu0 %3991 }
 0x503   : > { %v4009_v13 = vsel %vm4007_vm7, %v3990_v58, %v3992_v12  ;;  %v4010_v46 = vsel %vm4007_vm7, %v3992_v12, %v3994_v45  ;;  %4397 = vrot.lane.b32.xlu1 %v4376_v27, %s4962_s6 }
 0x504   : > { %v4025_v39 = vadd.f32 %v4009_v13, %v3957_v37  ;;  %v4026_v53 = vadd.f32 %v4010_v46, %v3958_v17  ;;  %4395 = vrot.lane.b32.xlu0 %v4375_v33, %s4962_s6  ;;  %v4384_v17 = vmul.f32 %v8673_v19, %v4374_v8 }
 0x505   : > { %v3998_v30 = vpop.permute.xlu1 %3997 }
 0x506   : > { %v3996_v62 = vpop.permute.xlu0 %3995 }
 0x507   : > { %v4011_v0 = vsel %vm4007_vm7, %v3994_v45, %v3996_v62  ;;  %4401 = vrot.lane.b32.xlu1 %v4378_v59, %s4962_s6 }
 0x508   : > { %v4027_v21 = vadd.f32 %v4011_v0, %v3959_v6  ;;  %4399 = vrot.lane.b32.xlu0 %v4377_v3, %s4962_s6 }
 0x509   : > { %v4002_v40 = vpop.permute.xlu1 %4001 }
 0x50a   : > { %v4000_v63 = vpop.permute.xlu0 %3999 }
 0x50b   : > { %v4012_v5 = vsel %vm4007_vm7, %v3998_v30, %v4000_v63  ;;  %v4013_v44 = vsel %vm4007_vm7, %v4000_v63, %v4002_v40  ;;  %4405 = vrot.lane.b32.xlu1 %v4380_v16, %s4962_s6 }
 0x50c   : > { %v4028_v10 = vadd.f32 %v4012_v5, %v3960_v47  ;;  %v4029_v51 = vadd.f32 %v4013_v44, %v3961_v15  ;;  %4403 = vrot.lane.b32.xlu0 %v4379_v61, %s4962_s6 }
 0x50d   : > { %v4006_v7 = vpop.permute.xlu1 %4005 }
 0x50e   : > { %v4004_v24 = vpop.permute.xlu0 %4003 }
 0x50f   : > { %v4014_v48 = vsel %vm4007_vm7, %v4002_v40, %v4004_v24  ;;  %v4015_v37 = vsel %vm4007_vm7, %v4004_v24, %v4006_v7  ;;  %4409 = vrot.lane.b32.xlu1 %v4382_v25, %s4962_s6 }
 0x510   : > { %v4030_v28 = vadd.f32 %v4014_v48, %v3962_v32  ;;  %v4031_v56 = vadd.f32 %v4015_v37, %v3963_v36  ;;  %4407 = vrot.lane.b32.xlu0 %v4381_v23, %s4962_s6 }
 0x511   : > { %v4058_v22 = vpop.permute.xlu1 %4057 }
 0x512   : > { %v4056_v43 = vpop.permute.xlu0 %4055 }
 0x513   : > { %v4076_v57 = vsel %vm4075_vm8, %v4056_v43, %v4058_v22  ;;  %4413 = vrot.lane.b32.xlu1 %v4384_v17, %s4962_s6 }
 0x514   : > { %v4092_v29 = vadd.f32 %v4076_v57, %v4024_v2  ;;  %4411 = vrot.lane.b32.xlu0 %v4383_v34, %s4962_s6 }
 0x515   : > { %v4062_v6 = vpop.permute.xlu1 %4061 }
 0x516   : > { %v4060_v19 = vpop.permute.xlu0 %4059 }
 0x517   : > { %v4077_v50 = vsel %vm4075_vm8, %v4058_v22, %v4060_v19  ;;  %v4078_v52 = vsel %vm4075_vm8, %v4060_v19, %v4062_v6 }
 0x518   : > { %v4093_v54 = vadd.f32 %v4077_v50, %v4025_v39  ;;  %v4094_v9 = vadd.f32 %v4078_v52, %v4026_v53 }
 0x519   : > { %v4066_v38 = vpop.permute.xlu1 %4065 }
 0x51a   : > { %v4064_v26 = vpop.permute.xlu0 %4063 }
 0x51b   : > { %v4079_v49 = vsel %vm4075_vm8, %v4062_v6, %v4064_v26 }
 0x51c   : > { %v4095_v31 = vadd.f32 %v4079_v49, %v4027_v21 }
 0x51d   : > { %v4070_v14 = vpop.permute.xlu1 %4069 }
 0x51e   : > { %v4068_v11 = vpop.permute.xlu0 %4067 }
 0x51f   : > { %v4080_v47 = vsel %vm4075_vm8, %v4066_v38, %v4068_v11  ;;  %v4081_v15 = vsel %vm4075_vm8, %v4068_v11, %v4070_v14 }
 0x520   : > { %v4096_v60 = vadd.f32 %v4080_v47, %v4028_v10  ;;  %v4097_v35 = vadd.f32 %v4081_v15, %v4029_v51 }
 0x521   : > { %v4074_v20 = vpop.permute.xlu1 %4073 }
 0x522   : > { %v4072_v41 = vpop.permute.xlu0 %4071 }
 0x523   : > { %v4082_v4 = vsel %vm4075_vm8, %v4070_v14, %v4072_v41  ;;  %v4083_v18 = vsel %vm4075_vm8, %v4072_v41, %v4074_v20 }
 0x524   : > { %v4098_v32 = vadd.f32 %v4082_v4, %v4030_v28  ;;  %v4099_v36 = vadd.f32 %v4083_v18, %v4031_v56 }
 0x525   : > { %v4126_v55 = vpop.permute.xlu1 %4125 }
 0x526   : > { %v4124_v8 = vpop.permute.xlu0 %4123 }
 0x527   : > { %v4144_v58 = vsel %vm4143_vm9, %v4124_v8, %v4126_v55 }
 0x528   : > { %v4160_v42 = vadd.f32 %v4144_v58, %v4092_v29 }
 0x529   : > { %v4130_v1 = vpop.permute.xlu1 %4129 }
 0x52a   : > { %v4128_v2 = vpop.permute.xlu0 %4127 }
 0x52b   : > { %v4145_v27 = vsel %vm4143_vm9, %v4126_v55, %v4128_v2  ;;  %v4146_v33 = vsel %vm4143_vm9, %v4128_v2, %v4130_v1 }
 0x52c   : > { %v8757_v45 = vadd.f32 %v4145_v27, %v4093_v54  ;;  %v4162_v12 = vadd.f32 %v4146_v33, %v4094_v9 }
 0x52d   : > { %v4134_v13 = vpop.permute.xlu1 %4133 }
 0x52e   : > { %v4132_v46 = vpop.permute.xlu0 %4131 }
 0x52f   : > { %v4147_v59 = vsel %vm4143_vm9, %v4130_v1, %v4132_v46 }
 0x530   : > { %v8760_v39 = vadd.f32 %v4147_v59, %v4095_v31 }
 0x531   : > { %v4138_v53 = vpop.permute.xlu1 %4137 }
 0x532   : > { %v4136_v3 = vpop.permute.xlu0 %4135 }
 0x533   : > { %v4148_v30 = vsel %vm4143_vm9, %v4134_v13, %v4136_v3  ;;  %v4149_v62 = vsel %vm4143_vm9, %v4136_v3, %v4138_v53 }
 0x534   : > { %v8764_v0 = vadd.f32 %v4148_v30, %v4096_v60  ;;  %v8766_v21 = vadd.f32 %v4149_v62, %v4097_v35 }
 0x535   : > { %v4142_v16 = vpop.permute.xlu1 %4141 }
 0x536   : > { %v4140_v61 = vpop.permute.xlu0 %4139 }
 0x537   : > { %v4150_v40 = vsel %vm4143_vm9, %v4138_v53, %v4140_v61  ;;  %v4151_v63 = vsel %vm4143_vm9, %v4140_v61, %v4142_v16 }
 0x538   : > { %v8770_v5 = vadd.f32 %v4150_v40, %v4098_v32  ;;  %v8772_v44 = vadd.f32 %v4151_v63, %v4099_v36 }
 0x539   : > { %v4194_v25 = vpop.permute.xlu1 %4193 }
 0x53a   : > { %v4192_v10 = vpop.permute.xlu0 %4191 }
 0x53b   : > { %v4212_v47 = vsel %vm4211_vm10, %v4192_v10, %v4194_v25 }
 0x53c   : > { %v4228_v60 = vadd.f32 %v4212_v47, %v4160_v42 }
 0x53d   : > { %v4198_v51 = vpop.permute.xlu1 %4197 }
 0x53e   : > { %v4196_v23 = vpop.permute.xlu0 %4195 }
 0x53f   : > { %v4213_v41 = vsel %vm4211_vm10, %v4194_v25, %v4196_v23  ;;  %v4214_v4 = vsel %vm4211_vm10, %v4196_v23, %v4198_v51 }
 0x540   : > { %v4229_v8 = vadd.f32 %v4213_v41, %v8757_v45  ;;  %v4230_v58 = vadd.f32 %v4214_v4, %v4162_v12 }
 0x541   : > { %v4202_v7 = vpop.permute.xlu1 %4201 }
 0x542   : > { %v4200_v24 = vpop.permute.xlu0 %4199 }
 0x543   : > { %v4215_v27 = vsel %vm4211_vm10, %v4198_v51, %v4200_v24 }
 0x544   : > { %v4231_v62 = vadd.f32 %v4215_v27, %v8760_v39 }
 0x545   : > { %v8774_v48 = vpop.permute.xlu1 %4205 }
 0x546   : > { %v4204_v37 = vpop.permute.xlu0 %4203 }
 0x547   : > { %v4216_v45 = vsel %vm4211_vm10, %v4202_v7, %v4204_v37  ;;  %v4217_v63 = vsel %vm4211_vm10, %v4204_v37, %v8774_v48 }
 0x549   : > { %v8776_v17 = vpop.permute.xlu1 %4209 }
 0x54a   : > { %v8778_v28 = vpop.permute.xlu0 %4207 }
 0x54b   : > { %v4218_v37 = vsel %vm4211_vm10, %v8774_v48, %v8778_v28 }
 0x54d   : > { %v4262_v56 = vpop.permute.xlu1 %4261 }
 0x54e   : > { %v4260_v34 = vpop.permute.xlu0 %4259 }
 0x54f   : > { %v4280_v15 = vsel %vm4279_vm11, %v4260_v34, %v4262_v56  ;;  %v4232_v34 = vadd.f32 %v4216_v45, %v8764_v0 }
 0x550   : > { %v4296_v32 = vadd.f32 %v4280_v15, %v4228_v60 }
 0x551   : > { %v4266_v22 = vpop.permute.xlu1 %4265 }
 0x552   : > { %v4264_v43 = vpop.permute.xlu0 %4263 }
 0x553   : > { %v4281_v36 = vsel %vm4279_vm11, %v4262_v56, %v4264_v43  ;;  %v4282_v55 = vsel %vm4279_vm11, %v4264_v43, %v4266_v22 }
 0x554   : > { %v4297_v59 = vadd.f32 %v4281_v36, %v4229_v8  ;;  %v4298_v53 = vadd.f32 %v4282_v55, %v4230_v58 }
 0x555   : > { %v4270_v57 = vpop.permute.xlu1 %4269 }
 0x556   : > { %v4268_v29 = vpop.permute.xlu0 %4267 }
 0x557   : > { %v4283_v30 = vsel %vm4279_vm11, %v4266_v22, %v4268_v29  ;;  %v4233_v22 = vadd.f32 %v4217_v63, %v8766_v21 }
 0x558   : > { %v4299_v51 = vadd.f32 %v4283_v30, %v4231_v62 }
 0x559   : > { %v8780_v6 = vpop.permute.xlu1 %4273 }
 0x55a   : > { %v4272_v19 = vpop.permute.xlu0 %4271 }
 0x55b   : > { %v4284_v24 = vsel %vm4279_vm11, %v4270_v57, %v4272_v19  ;;  %v4285_v56 = vsel %vm4279_vm11, %v4272_v19, %v8780_v6  ;;  %v4219_v57 = vsel %vm4211_vm10, %v8778_v28, %v8776_v17  ;;  %v4234_v17 = vadd.f32 %v4218_v37, %v8770_v5 }
 0x55c   : > { %v4235_v28 = vadd.f32 %v4219_v57, %v8772_v44 }
 0x55d   : > { %v8782_v50 = vpop.permute.xlu1 %4277 }
 0x55e   : > { %v8784_v52 = vpop.permute.xlu0 %4275 }
 0x561   : > { %v4330_v54 = vpop.permute.xlu1 %4329 }
 0x562   : > { %v4328_v9 = vpop.permute.xlu0 %4327 }
 0x563   : > { %v4348_v18 = vsel %vm4347_vm12, %v4328_v9, %v4330_v54  ;;  %v4300_v9 = vadd.f32 %v4284_v24, %v4232_v34 }
 0x564   : > { %v4364_v42 = vadd.f32 %v4348_v18, %v4296_v32 }
 0x565   : > { %v4334_v38 = vpop.permute.xlu1 %4333 }
 0x566   : > { %v4332_v26 = vpop.permute.xlu0 %4331 }
 0x567   : > { %v4349_v33 = vsel %vm4347_vm12, %v4330_v54, %v4332_v26  ;;  %v4350_v13 = vsel %vm4347_vm12, %v4332_v26, %v4334_v38  ;;  %v4286_v26 = vsel %vm4279_vm11, %v8780_v6, %v8784_v52 }
 0x568   : > { %v4365_v12 = vadd.f32 %v4349_v33, %v4297_v59  ;;  %v4366_v16 = vadd.f32 %v4350_v13, %v4298_v53  ;;  %v4302_v44 = vadd.f32 %v4286_v26, %v4234_v17 }
 0x569   : > { %v4338_v49 = vpop.permute.xlu1 %4337 }
 0x56a   : > { %v4336_v31 = vpop.permute.xlu0 %4335 }
 0x56b   : > { %v4351_v25 = vsel %vm4347_vm12, %v4334_v38, %v4336_v31  ;;  %v4301_v38 = vadd.f32 %v4285_v56, %v4233_v22  ;;  %v4287_v31 = vsel %vm4279_vm11, %v8784_v52, %v8782_v50 }
 0x56c   : > { %v4367_v43 = vadd.f32 %v4351_v25, %v4299_v51  ;;  %v4303_v60 = vadd.f32 %v4287_v31, %v4235_v28 }
 0x56d   : > { %v8786_v14 = vpop.permute.xlu1 %4341 }
 0x56e   : > { %v4340_v11 = vpop.permute.xlu0 %4339 }
 0x56f   : > { %v4352_v19 = vsel %vm4347_vm12, %v4338_v49, %v4340_v11  ;;  %v4353_v0 = vsel %vm4347_vm12, %v4340_v11, %v8786_v14 }
 0x570   : > { %v4368_v49 = vadd.f32 %v4352_v19, %v4300_v9  ;;  %v4369_v11 = vadd.f32 %v4353_v0, %v4301_v38 }
 0x571   : > { %v8790_v35 = vpop.permute.xlu1 %4345 }
 0x572   : > { %v8792_v20 = vpop.permute.xlu0 %4343 }
 0x573   : > { %v4354_v6 = vsel %vm4347_vm12, %v8786_v14, %v8792_v20  ;;  %v4355_v50 = vsel %vm4347_vm12, %v8792_v20, %v8790_v35 }
 0x574   : > { %v4370_v18 = vadd.f32 %v4354_v6, %v4302_v44  ;;  %v4371_v32 = vadd.f32 %v4355_v50, %v4303_v60 }
 0x575   : > { %v4398_v1 = vpop.permute.xlu1 %4397 }
 0x576   : > { %v4396_v2 = vpop.permute.xlu0 %4395 }
 0x577   : > { %v4416_v46 = vsel %vm4415_vm13, %v4396_v2, %v4398_v1 }
 0x578   : > { %v4432_v3 = vadd.f32 %v4416_v46, %v4364_v42 }
 0x579   : > { %v4402_v61 = vpop.permute.xlu1 %4401 }
 0x57a   : > { %4440 = vst [vmem:[%s8808_s16] sm:$0xff] %v4432_v3  ;;  %v4400_v40 = vpop.permute.xlu0 %4399 }
 0x57b   : > { %v4417_v10 = vsel %vm4415_vm13, %v4398_v1, %v4400_v40  ;;  %v4418_v39 = vsel %vm4415_vm13, %v4400_v40, %v4402_v61 }
 0x57c   : > { %v4433_v23 = vadd.f32 %v4417_v10, %v4365_v12  ;;  %v4434_v7 = vadd.f32 %v4418_v39, %v4366_v16 }
 0x57d   : > { %v4406_v29 = vpop.permute.xlu1 %4405 }
 0x57e   : > { %4441 = vst [vmem:[%s8808_s16 + $0x8] sm:$0xff] %v4433_v23  ;;  %4442 = vst [vmem:[%s8808_s16 + $0x10] sm:$0xff] %v4434_v7  ;;  %v4404_v54 = vpop.permute.xlu0 %4403 }
 0x57f   : > { %v4419_v21 = vsel %vm4415_vm13, %v4402_v61, %v4404_v54 }
 0x580   : > { %v4435_v48 = vadd.f32 %v4419_v21, %v4367_v43 }
 0x581   : > { %v4410_v47 = vpop.permute.xlu1 %4409 }
 0x582   : > { %4443 = vst [vmem:[%s8808_s16 + $0x18] sm:$0xff] %v4435_v48  ;;  %v4408_v15 = vpop.permute.xlu0 %4407 }
 0x583   : > { %v4420_v5 = vsel %vm4415_vm13, %v4406_v29, %v4408_v15  ;;  %v4421_v52 = vsel %vm4415_vm13, %v4408_v15, %v4410_v47 }
 0x584   : > { %v4436_v41 = vadd.f32 %v4420_v5, %v4368_v49  ;;  %v4437_v4 = vadd.f32 %v4421_v52, %v4369_v11 }
 0x585   : > { %v4414_v14 = vpop.permute.xlu1 %4413 }
 0x586   : > { %4444 = vst [vmem:[%s8808_s16 + $0x20] sm:$0xff] %v4436_v41  ;;  %4445 = vst [vmem:[%s8808_s16 + $0x28] sm:$0xff] %v4437_v4  ;;  %v4412_v35 = vpop.permute.xlu0 %4411 }
 0x587   : > { %v4422_v20 = vsel %vm4415_vm13, %v4410_v47, %v4412_v35  ;;  %v4423_v36 = vsel %vm4415_vm13, %v4412_v35, %v4414_v14 }
 0x588   : > { %v4438_v55 = vadd.f32 %v4422_v20, %v4370_v18  ;;  %v4439_v8 = vadd.f32 %v4423_v36, %v4371_v32 }
 0x58a   : > { %4446 = vst [vmem:[%s8808_s16 + $0x30] sm:$0xff] %v4438_v55  ;;  %4447 = vst [vmem:[%s8808_s16 + $0x38] sm:$0xff] %v4439_v8 }
 0x58b   : > { %4824 = shalt.err (!%p4821_p5)
}
 0x58c   : > { %s4825_s24 = scalar_lea.hbm %s8859_s30, 1024  ;;  %s4829_s7 = scalar_lea.hbm %s8913_s2, 2048 }
 0x58d   : > { %p4826_p10 = scmp.ne.s32.totalorder %s8859_s30, %s4825_s24  ;;  %p4830_p0 = scmp.lt.s32.totalorder %s8859_s30, %s8913_s2 }
 0x58e   : > { %p4831_p4 = scmp.lt.s32.totalorder %s4829_s7, %s4825_s24 }
 0x58f   : > { %p4827_p11 = pnand %p4826_p10, %p5029_p8 }
 0x590   : > { %p4832_p6 = por %p4831_p4, %p4830_p0 }
 0x591   : > { %p4828_p1 = pneg %p4827_p11 }
 0x593   : > { %p4833_p3 = pnand %p4832_p6, %p4828_p1 }
 0x595   : > { %4836 = shalt.err (!%p4833_p3)
}
 0x596   : > { %s4964_s18 = smov 512   ;;  %s4965_s16 = smov 32  }
 0x597   : > { %4589 = dma.vmem_to_hbm [thread:$0]  (%p5029_p8), %s8861_s28, 1024, %s8859_s30, %s4449_s12, %s4964_s18, %s4964_s18, %s4965_s16  }
 0x598 PF: > { %s4480_s27 = sand.u32 1, %s4875_s9   ;;  %p10084_p7 = scmp.ne.s32.totalorder %s9189_s21, 0 }
 0x599   : > { %p10085_p9 = scmp.ge.s32.totalorder %s4895_s14, 2  ;;  %s4481_s29 = scalar_lea.sflag [#allocation4], %s4480_s27 }
 0x59b   : > { %p4600_p12 = pnand %p10085_p9, %p10084_p7 }
 0x59d   : > { %p4601_p13 = pneg %p4600_p12 }
 0x59f   : > { %4870 = dma.done.wait (%p4601_p13), %s4481_s29, 1024  }
 0x5a0   : > { %4872 = vsyncadd (%p4601_p13), %s4481_s29, 4294966272  ;;  %s19_s14 = sadd.s32 1, %s4895_s14   ;;  %s10086_s9 = smov %s4879_s10 }
 0x5a1   : > { %p16_p2 = scmp.ge.s32.totalorder %s19_s14, 4   ;;  %s10087_s10 = smov %s4883_s11 }
 0x5a2   : > { %s10088_s11 = smov %s5069_s15  ;;  %s10089_s12 = smov %s4891_s13 }
 0x5a3   : > { %s10090_s13 = smov %s10092_s25  ;;  %18 = sbr.rel (!%p16_p2) target bundleno = 7 (0x7), region = 78 }
 0x5a8   :  { %4486 = vsyncpa [#allocation3], 1 }
 0x5a9   :  { %4488 = vsyncpa [#allocation3 + $0x1], 1 }
 0x5aa   :  { %4489 = vsyncpa [#allocation4], 1 }
 0x5ab   :  { %4491 = vsyncpa [#allocation4 + $0x1], 1 }
 0x5ac   :  { %4492 = vsyncpa [#allocation5], 1 }
 0x5ad   :  { %4494 = vsyncpa [#allocation5 + $0x1], 1 }

</bundles_post_ra>
